<compile_context>
chip_gen: v6e
topology: v6e:2x2x1
jax: 0.10.0
libtpu: 0.0.40
codegen_flags: <defaults>
</compile_context>

<pallas_src>
import functools

import jax
import jax.numpy as jnp
import numpy as np
from jax.experimental import pallas as pl
from jax.experimental.pallas import tpu as pltpu

EPS = 1e-5            # nn.BatchNorm1d default eps
BYPASS_SCALE = 0.66   # FactorizedTDNN bypass scale

# Small hyper-parameters consistent with the module's constructor.
FEAT_DIM = 8
IVECTOR_DIM = 0
INPUT_DIM = FEAT_DIM * 3 + IVECTOR_DIM        # 24
HIDDEN_DIM = 32
BOTTLENECK_DIM = 16
PREFINAL_BOTTLENECK_DIM = 16
OUTPUT_DIM = 12
KERNEL_SIZE_LIST = [3, 3, 3, 1, 3, 3, 3, 3, 3, 3, 3, 3]
SUBSAMPLING_FACTOR_LIST = [1, 1, 1, 3, 1, 1, 1, 1, 1, 1, 1, 1]


# ----------------------------------------------------------------------------
# The single fused Pallas kernel
# ----------------------------------------------------------------------------
def _make_fused_kernel(n_batch, t_in):
    """Build the fused kernel body (all layers, activations VMEM resident)."""

    def kernel(*refs):
        x_ref = refs[0]
        o_chain_ref, o_xent_ref = refs[-2], refs[-1]
        w_it = iter(refs[1:-2])

        def take():
            return next(w_it)[...]

        dot = functools.partial(jnp.dot, preferred_element_type=jnp.float32)

        def bn(ys):
            # Training-mode BatchNorm1d (affine=False): stats over all N*T
            # rows, biased variance, single reduction pass (sum & sumsq).
            m = sum(y.shape[0] for y in ys)
            s = jnp.sum(ys[0], axis=0, keepdims=True)
            ss = jnp.sum(ys[0] * ys[0], axis=0, keepdims=True)
            for y in ys[1:]:
                s = s + jnp.sum(y, axis=0, keepdims=True)
                ss = ss + jnp.sum(y * y, axis=0, keepdims=True)
            mean = s * (1.0 / m)
            var = ss * (1.0 / m) - mean * mean
            inv = jax.lax.rsqrt(var + EPS)
            return [(y - mean) * inv for y in ys]

        def conv_rows(xb, w, k, cin, t_out):
            # Conv1d(kernel=k, stride=1, no padding) as k shifted matmuls.
            acc = dot(xb[0:t_out, :], w[0:cin, :])
            for j in range(1, k):
                acc = acc + dot(xb[j:j + t_out, :], w[j * cin:(j + 1) * cin, :])
            return acc

        # ---- input BatchNorm (replace-LDA) ----
        xs = [x_ref[b] for b in range(n_batch)]     # each [T, INPUT_DIM]
        xs = bn(xs)
        t = t_in

        # ---- tdnn1: Conv1d(k=3) + bias + ReLU + BN ----
        w1, b1 = take(), take()
        t_out = t - 2
        xs = bn([jnp.maximum(conv_rows(xb, w1, 3, INPUT_DIM, t_out) + b1, 0.0)
                 for xb in xs])
        t = t_out

        # ---- factorized TDNN stack (W_eff = wl @ wa folded in the wrapper) ----
        for k, s in zip(KERNEL_SIZE_LIST, SUBSAMPLING_FACTOR_LIST):
            w_eff, b_a = take(), take()
            t_out = (t - k) // s + 1
            if k == 3:
                assert s == 1  # holds for this configuration
                pre = [conv_rows(xb, w_eff, 3, HIDDEN_DIM, t_out) for xb in xs]
                bypass = [xb[1:t - 1, :] for xb in xs]   # x[:, :, s:-s:s], s=1
            else:  # k == 1
                if s == 1:
                    sub = xs
                else:
                    # gather-free stride-s subsample: tiny selection matmul.
                    rows = jax.lax.broadcasted_iota(jnp.int32, (t_out, t), 0)
                    cols = jax.lax.broadcasted_iota(jnp.int32, (t_out, t), 1)
                    sel = (cols == rows * s).astype(jnp.float32)
                    sub = [dot(sel, xb) for xb in xs]
                pre = [dot(xq, w_eff) for xq in sub]
                bypass = sub                              # x[:, :, ::s]
            ys = bn([jnp.maximum(p + b_a, 0.0) for p in pre])
            xs = [BYPASS_SCALE * xb + y for xb, y in zip(bypass, ys)]
            t = t_out

        # ---- prefinal_l (1x1 orthonormal conv, no bias), shared by both heads ----
        w_l = take()
        xl = [dot(xb, w_l) for xb in xs]

        def prefinal(zs, wa, ba, wb):
            ys = bn([jnp.maximum(dot(z, wa) + ba, 0.0) for z in zs])
            return bn([dot(y, wb) for y in ys])

        wc1, bc1, wc2 = take(), take(), take()
        wx1, bx1, wx2 = take(), take(), take()
        wo, bo = take(), take()
        wxo, bxo = take(), take()

        pc = prefinal(xl, wc1, bc1, wc2)
        px = prefinal(xl, wx1, bx1, wx2)

        for b in range(n_batch):
            o_chain_ref[b] = dot(pc[b], wo) + bo
            logits = dot(px[b], wxo) + bxo
            mx = jnp.max(logits, axis=-1, keepdims=True)
            e = jnp.exp(logits - mx)
            o_xent_ref[b] = logits - mx - jnp.log(jnp.sum(e, axis=-1, keepdims=True))

    return kernel


# ----------------------------------------------------------------------------
# Wrapper (weight folding + the single pallas_call)
# ----------------------------------------------------------------------------
def _fold_params(params):
    """Flat weight list; TDNNF pairs folded to W_eff = wl @ wa (associativity)."""
    hp = functools.partial(jnp.dot, precision=jax.lax.Precision.HIGHEST)
    ws = [params["tdnn1_w"], params["tdnn1_b"]]
    for p in params["tdnnf"]:
        ws.append(hp(p["wl"], p["wa"]))   # [k*HIDDEN, HIDDEN]
        ws.append(p["ba"])
    ws += [
        params["prefinal_l_w"],
        params["prefinal_chain_w1"], params["prefinal_chain_b1"], params["prefinal_chain_w2"],
        params["prefinal_xent_w1"], params["prefinal_xent_b1"], params["prefinal_xent_w2"],
        params["output_w"], params["output_b"],
        params["output_xent_w"], params["output_xent_b"],
    ]
    return ws


def _final_time(t):
    t = t - 2                              # tdnn1 (k=3)
    for k, s in zip(KERNEL_SIZE_LIST, SUBSAMPLING_FACTOR_LIST):
        t = (t - k) // s + 1
    return t


@jax.jit
def chain_model_forward(x, params):
    # layout: x is [N, T, INPUT_DIM] (channel-last)
    n, t, c = x.shape
    assert c == INPUT_DIM
    weights = _fold_params(params)
    t_f = _final_time(t)
    kernel = _make_fused_kernel(n, t)
    nnet, xent = pl.pallas_call(
        kernel,
        out_shape=(jax.ShapeDtypeStruct((n, t_f, OUTPUT_DIM), jnp.float32),
                   jax.ShapeDtypeStruct((n, t_f, OUTPUT_DIM), jnp.float32)),
        in_specs=[pl.BlockSpec(memory_space=pltpu.MemorySpace.VMEM)
                  for _ in range(1 + len(weights))],
        out_specs=(pl.BlockSpec(memory_space=pltpu.MemorySpace.VMEM),
                   pl.BlockSpec(memory_space=pltpu.MemorySpace.VMEM)),
    )(x, *weights)
    return nnet, xent


# ----------------------------------------------------------------------------
# Parameters (deterministic, synthetic)
# ----------------------------------------------------------------------------
def init_params(key):
    keys = iter(jax.random.split(key, 64))

    def w(shape, scale):
        return jax.random.normal(next(keys), shape, jnp.float32) * np.float32(scale)

    params = {}
    params["tdnn1_w"] = w((3 * INPUT_DIM, HIDDEN_DIM), 1.0 / np.sqrt(3 * INPUT_DIM))
    params["tdnn1_b"] = w((1, HIDDEN_DIM), 0.1)
    tdnnfs = []
    for k in KERNEL_SIZE_LIST:
        tdnnfs.append(dict(
            wl=w((k * HIDDEN_DIM, BOTTLENECK_DIM), 1.0 / np.sqrt(k * HIDDEN_DIM)),
            wa=w((BOTTLENECK_DIM, HIDDEN_DIM), 1.0 / np.sqrt(BOTTLENECK_DIM)),
            ba=w((1, HIDDEN_DIM), 0.1),
        ))
    params["tdnnf"] = tdnnfs
    params["prefinal_l_w"] = w((HIDDEN_DIM, PREFINAL_BOTTLENECK_DIM), 1.0 / np.sqrt(HIDDEN_DIM))
    for name in ("chain", "xent"):
        params[f"prefinal_{name}_w1"] = w((PREFINAL_BOTTLENECK_DIM, HIDDEN_DIM),
                                          1.0 / np.sqrt(PREFINAL_BOTTLENECK_DIM))
        params[f"prefinal_{name}_b1"] = w((1, HIDDEN_DIM), 0.1)
        params[f"prefinal_{name}_w2"] = w((HIDDEN_DIM, PREFINAL_BOTTLENECK_DIM),
                                          1.0 / np.sqrt(HIDDEN_DIM))
    params["output_w"] = w((PREFINAL_BOTTLENECK_DIM, OUTPUT_DIM), 1.0 / np.sqrt(PREFINAL_BOTTLENECK_DIM))
    params["output_b"] = w((1, OUTPUT_DIM), 0.1)
    params["output_xent_w"] = w((PREFINAL_BOTTLENECK_DIM, OUTPUT_DIM),
                                1.0 / np.sqrt(PREFINAL_BOTTLENECK_DIM))
    params["output_xent_b"] = w((1, OUTPUT_DIM), 0.1)
    return params


# ----------------------------------------------------------------------------
# Pure-JAX reference (mirrors the PyTorch module, unfolded, HIGHEST precision)
# ----------------------------------------------------------------------------
def _im2col(x, k, s):
    # x: [N, T, C] -> ([N, T_out, k*C], T_out) for Conv1d(kernel=k, stride=s).
    n, t, c = x.shape
    t_out = (t - k) // s + 1
    cols = [x[:, j: j + (t_out - 1) * s + 1: s, :] for j in range(k)]
    return jnp.concatenate(cols, axis=-1), t_out


def _ref_bn(y):
    mean = jnp.mean(y, axis=0, keepdims=True)
    var = jnp.mean(jnp.square(y - mean), axis=0, keepdims=True)
    return (y - mean) * jax.lax.rsqrt(var + EPS)


def ref_forward(x, params):
    dot = functools.partial(jnp.dot, precision=jax.lax.Precision.HIGHEST)
    n, t, c = x.shape
    x = _ref_bn(x.reshape(n * t, c)).reshape(n, t, c)
    xc, t = _im2col(x, 3, 1)
    h = _ref_bn(jnp.maximum(dot(xc.reshape(n * t, 3 * c), params["tdnn1_w"]) + params["tdnn1_b"], 0.0))
    x = h.reshape(n, t, HIDDEN_DIM)
    for i, (k, s) in enumerate(zip(KERNEL_SIZE_LIST, SUBSAMPLING_FACTOR_LIST)):
        p = params["tdnnf"][i]
        xc, t_out = _im2col(x, k, s)
        xb = x[:, s:t - s:s, :] if k == 3 else x[:, ::s, :]
        m = n * t_out
        y = dot(xc.reshape(m, k * HIDDEN_DIM), p["wl"])
        y = jnp.maximum(dot(y, p["wa"]) + p["ba"], 0.0)
        y = _ref_bn(y)
        x = (BYPASS_SCALE * xb.reshape(m, HIDDEN_DIM) + y).reshape(n, t_out, HIDDEN_DIM)
        t = t_out
    m = n * t
    xl = dot(x.reshape(m, HIDDEN_DIM), params["prefinal_l_w"])

    def prefinal(z, w1, b1, w2):
        z = _ref_bn(jnp.maximum(dot(z, w1) + b1, 0.0))
        return _ref_bn(dot(z, w2))

    pc = prefinal(xl, params["prefinal_chain_w1"], params["prefinal_chain_b1"],
                  params["prefinal_chain_w2"])
    nnet = dot(pc, params["output_w"]) + params["output_b"]
    px = prefinal(xl, params["prefinal_xent_w1"], params["prefinal_xent_b1"],
                  params["prefinal_xent_w2"])
    logits = dot(px, params["output_xent_w"]) + params["output_xent_b"]
    xent = jax.nn.log_softmax(logits, axis=-1)
    return nnet.reshape(n, t, OUTPUT_DIM), xent.reshape(n, t, OUTPUT_DIM)


if __name__ == "__main__":
    key = jax.random.PRNGKey(0)
    pkey, xkey = jax.random.split(key)
    params = init_params(pkey)

    N, T = 2, 80   # T large enough to survive the time-context reduction (final T = 8)
    x = jax.random.normal(xkey, (N, T, INPUT_DIM), jnp.float32)

    nnet, xent = jax.block_until_ready(chain_model_forward(x, params))
    ref_nnet, ref_xent = ref_forward(x, params)

    assert nnet.shape == ref_nnet.shape == (N, _final_time(T), OUTPUT_DIM)
    assert xent.shape == ref_xent.shape
    np.testing.assert_allclose(np.asarray(nnet), np.asarray(ref_nnet), rtol=5e-3, atol=5e-3)
    np.testing.assert_allclose(np.asarray(xent), np.asarray(ref_xent), rtol=5e-3, atol=5e-3)
    print("KERNEL_OK")
</pallas_src>

<mosaic_0001>
module attributes {stable_mosaic.version = 11 : i64} {
  func.func @kernel(%arg0: memref<2x80x24xf32, #tpu.memory_space<vmem>>, %arg1: memref<72x32xf32, #tpu.memory_space<vmem>>, %arg2: memref<1x32xf32, #tpu.memory_space<vmem>>, %arg3: memref<96x32xf32, #tpu.memory_space<vmem>>, %arg4: memref<1x32xf32, #tpu.memory_space<vmem>>, %arg5: memref<96x32xf32, #tpu.memory_space<vmem>>, %arg6: memref<1x32xf32, #tpu.memory_space<vmem>>, %arg7: memref<96x32xf32, #tpu.memory_space<vmem>>, %arg8: memref<1x32xf32, #tpu.memory_space<vmem>>, %arg9: memref<32x32xf32, #tpu.memory_space<vmem>>, %arg10: memref<1x32xf32, #tpu.memory_space<vmem>>, %arg11: memref<96x32xf32, #tpu.memory_space<vmem>>, %arg12: memref<1x32xf32, #tpu.memory_space<vmem>>, %arg13: memref<96x32xf32, #tpu.memory_space<vmem>>, %arg14: memref<1x32xf32, #tpu.memory_space<vmem>>, %arg15: memref<96x32xf32, #tpu.memory_space<vmem>>, %arg16: memref<1x32xf32, #tpu.memory_space<vmem>>, %arg17: memref<96x32xf32, #tpu.memory_space<vmem>>, %arg18: memref<1x32xf32, #tpu.memory_space<vmem>>, %arg19: memref<96x32xf32, #tpu.memory_space<vmem>>, %arg20: memref<1x32xf32, #tpu.memory_space<vmem>>, %arg21: memref<96x32xf32, #tpu.memory_space<vmem>>, %arg22: memref<1x32xf32, #tpu.memory_space<vmem>>, %arg23: memref<96x32xf32, #tpu.memory_space<vmem>>, %arg24: memref<1x32xf32, #tpu.memory_space<vmem>>, %arg25: memref<96x32xf32, #tpu.memory_space<vmem>>, %arg26: memref<1x32xf32, #tpu.memory_space<vmem>>, %arg27: memref<32x16xf32, #tpu.memory_space<vmem>>, %arg28: memref<16x32xf32, #tpu.memory_space<vmem>>, %arg29: memref<1x32xf32, #tpu.memory_space<vmem>>, %arg30: memref<32x16xf32, #tpu.memory_space<vmem>>, %arg31: memref<16x32xf32, #tpu.memory_space<vmem>>, %arg32: memref<1x32xf32, #tpu.memory_space<vmem>>, %arg33: memref<32x16xf32, #tpu.memory_space<vmem>>, %arg34: memref<16x12xf32, #tpu.memory_space<vmem>>, %arg35: memref<1x12xf32, #tpu.memory_space<vmem>>, %arg36: memref<16x12xf32, #tpu.memory_space<vmem>>, %arg37: memref<1x12xf32, #tpu.memory_space<vmem>>, %arg38: memref<2x8x12xf32, #tpu.memory_space<vmem>>, %arg39: memref<2x8x12xf32, #tpu.memory_space<vmem>>) attributes {dimension_semantics = [], scalar_prefetch = 0 : i64, scratch_operands = 0 : i64, tpu.core_type = #tpu.core_type<tc>} {
    %c0 = arith.constant 0 : index
    %c0_0 = arith.constant 0 : index
    %c0_1 = arith.constant 0 : index
    %0 = vector.load %arg0[%c0, %c0_0, %c0_1] : memref<2x80x24xf32, #tpu.memory_space<vmem>>, vector<1x80x24xf32>
    %1 = vector.shape_cast %0 : vector<1x80x24xf32> to vector<80x24xf32>
    %c1 = arith.constant 1 : index
    %c0_2 = arith.constant 0 : index
    %c0_3 = arith.constant 0 : index
    %2 = vector.load %arg0[%c1, %c0_2, %c0_3] : memref<2x80x24xf32, #tpu.memory_space<vmem>>, vector<1x80x24xf32>
    %3 = vector.shape_cast %2 : vector<1x80x24xf32> to vector<80x24xf32>
    %cst = arith.constant dense<0.000000e+00> : vector<24xf32>
    %4 = vector.multi_reduction <add>, %1, %cst [0] : vector<80x24xf32> to vector<24xf32>
    %5 = vector.shape_cast %4 : vector<24xf32> to vector<1x24xf32>
    %6 = arith.mulf %1, %1 : vector<80x24xf32>
    %cst_4 = arith.constant dense<0.000000e+00> : vector<24xf32>
    %7 = vector.multi_reduction <add>, %6, %cst_4 [0] : vector<80x24xf32> to vector<24xf32>
    %8 = vector.shape_cast %7 : vector<24xf32> to vector<1x24xf32>
    %cst_5 = arith.constant dense<0.000000e+00> : vector<24xf32>
    %9 = vector.multi_reduction <add>, %3, %cst_5 [0] : vector<80x24xf32> to vector<24xf32>
    %10 = vector.shape_cast %9 : vector<24xf32> to vector<1x24xf32>
    %11 = arith.addf %5, %10 : vector<1x24xf32>
    %12 = arith.mulf %3, %3 : vector<80x24xf32>
    %cst_6 = arith.constant dense<0.000000e+00> : vector<24xf32>
    %13 = vector.multi_reduction <add>, %12, %cst_6 [0] : vector<80x24xf32> to vector<24xf32>
    %14 = vector.shape_cast %13 : vector<24xf32> to vector<1x24xf32>
    %15 = arith.addf %8, %14 : vector<1x24xf32>
    %cst_7 = arith.constant 6.250000e-03 : f32
    %16 = vector.broadcast %cst_7 : f32 to vector<1x24xf32>
    %17 = arith.mulf %11, %16 : vector<1x24xf32>
    %cst_8 = arith.constant 6.250000e-03 : f32
    %18 = vector.broadcast %cst_8 : f32 to vector<1x24xf32>
    %19 = arith.mulf %15, %18 : vector<1x24xf32>
    %20 = arith.mulf %17, %17 : vector<1x24xf32>
    %21 = arith.subf %19, %20 : vector<1x24xf32>
    %cst_9 = arith.constant 9.99999974E-6 : f32
    %22 = vector.broadcast %cst_9 : f32 to vector<1x24xf32>
    %23 = arith.addf %21, %22 : vector<1x24xf32>
    %24 = math.rsqrt %23 : vector<1x24xf32>
    %25 = vector.broadcast %17 : vector<1x24xf32> to vector<80x24xf32>
    %26 = arith.subf %1, %25 : vector<80x24xf32>
    %27 = vector.broadcast %24 : vector<1x24xf32> to vector<80x24xf32>
    %28 = arith.mulf %26, %27 : vector<80x24xf32>
    %29 = vector.broadcast %17 : vector<1x24xf32> to vector<80x24xf32>
    %30 = arith.subf %3, %29 : vector<80x24xf32>
    %31 = vector.broadcast %24 : vector<1x24xf32> to vector<80x24xf32>
    %32 = arith.mulf %30, %31 : vector<80x24xf32>
    %c0_10 = arith.constant 0 : index
    %c0_11 = arith.constant 0 : index
    %33 = vector.load %arg1[%c0_10, %c0_11] : memref<72x32xf32, #tpu.memory_space<vmem>>, vector<72x32xf32>
    %c0_12 = arith.constant 0 : index
    %c0_13 = arith.constant 0 : index
    %34 = vector.load %arg2[%c0_12, %c0_13] : memref<1x32xf32, #tpu.memory_space<vmem>>, vector<1x32xf32>
    %35 = vector.extract_strided_slice %28 {offsets = [0, 0], sizes = [78, 24], strides = [1, 1]} : vector<80x24xf32> to vector<78x24xf32>
    %36 = vector.extract_strided_slice %33 {offsets = [0, 0], sizes = [24, 32], strides = [1, 1]} : vector<72x32xf32> to vector<24x32xf32>
    %cst_14 = arith.constant dense<0.000000e+00> : vector<78x32xf32>
    %37 = tpu.matmul %35, %36, %cst_14 {dimension_numbers = #tpu.dot_dimension_numbers<[1], [0], [0], [1], [0, 0, 1, 1], [], []>} : vector<78x24xf32>, vector<24x32xf32>, vector<78x32xf32> -> vector<78x32xf32>
    %38 = vector.extract_strided_slice %28 {offsets = [1, 0], sizes = [78, 24], strides = [1, 1]} : vector<80x24xf32> to vector<78x24xf32>
    %39 = vector.extract_strided_slice %33 {offsets = [24, 0], sizes = [24, 32], strides = [1, 1]} : vector<72x32xf32> to vector<24x32xf32>
    %cst_15 = arith.constant dense<0.000000e+00> : vector<78x32xf32>
    %40 = tpu.matmul %38, %39, %cst_15 {dimension_numbers = #tpu.dot_dimension_numbers<[1], [0], [0], [1], [0, 0, 1, 1], [], []>} : vector<78x24xf32>, vector<24x32xf32>, vector<78x32xf32> -> vector<78x32xf32>
    %41 = arith.addf %37, %40 : vector<78x32xf32>
    %42 = vector.extract_strided_slice %28 {offsets = [2, 0], sizes = [78, 24], strides = [1, 1]} : vector<80x24xf32> to vector<78x24xf32>
    %43 = vector.extract_strided_slice %33 {offsets = [48, 0], sizes = [24, 32], strides = [1, 1]} : vector<72x32xf32> to vector<24x32xf32>
    %cst_16 = arith.constant dense<0.000000e+00> : vector<78x32xf32>
    %44 = tpu.matmul %42, %43, %cst_16 {dimension_numbers = #tpu.dot_dimension_numbers<[1], [0], [0], [1], [0, 0, 1, 1], [], []>} : vector<78x24xf32>, vector<24x32xf32>, vector<78x32xf32> -> vector<78x32xf32>
    %45 = arith.addf %41, %44 : vector<78x32xf32>
    %46 = vector.broadcast %34 : vector<1x32xf32> to vector<78x32xf32>
    %47 = arith.addf %45, %46 : vector<78x32xf32>
    %cst_17 = arith.constant 0.000000e+00 : f32
    %48 = vector.broadcast %cst_17 : f32 to vector<78x32xf32>
    %49 = arith.maximumf %47, %48 : vector<78x32xf32>
    %50 = vector.extract_strided_slice %32 {offsets = [0, 0], sizes = [78, 24], strides = [1, 1]} : vector<80x24xf32> to vector<78x24xf32>
    %51 = vector.extract_strided_slice %33 {offsets = [0, 0], sizes = [24, 32], strides = [1, 1]} : vector<72x32xf32> to vector<24x32xf32>
    %cst_18 = arith.constant dense<0.000000e+00> : vector<78x32xf32>
    %52 = tpu.matmul %50, %51, %cst_18 {dimension_numbers = #tpu.dot_dimension_numbers<[1], [0], [0], [1], [0, 0, 1, 1], [], []>} : vector<78x24xf32>, vector<24x32xf32>, vector<78x32xf32> -> vector<78x32xf32>
    %53 = vector.extract_strided_slice %32 {offsets = [1, 0], sizes = [78, 24], strides = [1, 1]} : vector<80x24xf32> to vector<78x24xf32>
    %54 = vector.extract_strided_slice %33 {offsets = [24, 0], sizes = [24, 32], strides = [1, 1]} : vector<72x32xf32> to vector<24x32xf32>
    %cst_19 = arith.constant dense<0.000000e+00> : vector<78x32xf32>
    %55 = tpu.matmul %53, %54, %cst_19 {dimension_numbers = #tpu.dot_dimension_numbers<[1], [0], [0], [1], [0, 0, 1, 1], [], []>} : vector<78x24xf32>, vector<24x32xf32>, vector<78x32xf32> -> vector<78x32xf32>
    %56 = arith.addf %52, %55 : vector<78x32xf32>
    %57 = vector.extract_strided_slice %32 {offsets = [2, 0], sizes = [78, 24], strides = [1, 1]} : vector<80x24xf32> to vector<78x24xf32>
    %58 = vector.extract_strided_slice %33 {offsets = [48, 0], sizes = [24, 32], strides = [1, 1]} : vector<72x32xf32> to vector<24x32xf32>
    %cst_20 = arith.constant dense<0.000000e+00> : vector<78x32xf32>
    %59 = tpu.matmul %57, %58, %cst_20 {dimension_numbers = #tpu.dot_dimension_numbers<[1], [0], [0], [1], [0, 0, 1, 1], [], []>} : vector<78x24xf32>, vector<24x32xf32>, vector<78x32xf32> -> vector<78x32xf32>
    %60 = arith.addf %56, %59 : vector<78x32xf32>
    %61 = vector.broadcast %34 : vector<1x32xf32> to vector<78x32xf32>
    %62 = arith.addf %60, %61 : vector<78x32xf32>
    %cst_21 = arith.constant 0.000000e+00 : f32
    %63 = vector.broadcast %cst_21 : f32 to vector<78x32xf32>
    %64 = arith.maximumf %62, %63 : vector<78x32xf32>
    %cst_22 = arith.constant dense<0.000000e+00> : vector<32xf32>
    %65 = vector.multi_reduction <add>, %49, %cst_22 [0] : vector<78x32xf32> to vector<32xf32>
    %66 = vector.shape_cast %65 : vector<32xf32> to vector<1x32xf32>
    %67 = arith.mulf %49, %49 : vector<78x32xf32>
    %cst_23 = arith.constant dense<0.000000e+00> : vector<32xf32>
    %68 = vector.multi_reduction <add>, %67, %cst_23 [0] : vector<78x32xf32> to vector<32xf32>
    %69 = vector.shape_cast %68 : vector<32xf32> to vector<1x32xf32>
    %cst_24 = arith.constant dense<0.000000e+00> : vector<32xf32>
    %70 = vector.multi_reduction <add>, %64, %cst_24 [0] : vector<78x32xf32> to vector<32xf32>
    %71 = vector.shape_cast %70 : vector<32xf32> to vector<1x32xf32>
    %72 = arith.addf %66, %71 : vector<1x32xf32>
    %73 = arith.mulf %64, %64 : vector<78x32xf32>
    %cst_25 = arith.constant dense<0.000000e+00> : vector<32xf32>
    %74 = vector.multi_reduction <add>, %73, %cst_25 [0] : vector<78x32xf32> to vector<32xf32>
    %75 = vector.shape_cast %74 : vector<32xf32> to vector<1x32xf32>
    %76 = arith.addf %69, %75 : vector<1x32xf32>
    %cst_26 = arith.constant 0.00641025649 : f32
    %77 = vector.broadcast %cst_26 : f32 to vector<1x32xf32>
    %78 = arith.mulf %72, %77 : vector<1x32xf32>
    %cst_27 = arith.constant 0.00641025649 : f32
    %79 = vector.broadcast %cst_27 : f32 to vector<1x32xf32>
    %80 = arith.mulf %76, %79 : vector<1x32xf32>
    %81 = arith.mulf %78, %78 : vector<1x32xf32>
    %82 = arith.subf %80, %81 : vector<1x32xf32>
    %cst_28 = arith.constant 9.99999974E-6 : f32
    %83 = vector.broadcast %cst_28 : f32 to vector<1x32xf32>
    %84 = arith.addf %82, %83 : vector<1x32xf32>
    %85 = math.rsqrt %84 : vector<1x32xf32>
    %86 = vector.broadcast %78 : vector<1x32xf32> to vector<78x32xf32>
    %87 = arith.subf %49, %86 : vector<78x32xf32>
    %88 = vector.broadcast %85 : vector<1x32xf32> to vector<78x32xf32>
    %89 = arith.mulf %87, %88 : vector<78x32xf32>
    %90 = vector.broadcast %78 : vector<1x32xf32> to vector<78x32xf32>
    %91 = arith.subf %64, %90 : vector<78x32xf32>
    %92 = vector.broadcast %85 : vector<1x32xf32> to vector<78x32xf32>
    %93 = arith.mulf %91, %92 : vector<78x32xf32>
    %c0_29 = arith.constant 0 : index
    %c0_30 = arith.constant 0 : index
    %94 = vector.load %arg3[%c0_29, %c0_30] : memref<96x32xf32, #tpu.memory_space<vmem>>, vector<96x32xf32>
    %c0_31 = arith.constant 0 : index
    %c0_32 = arith.constant 0 : index
    %95 = vector.load %arg4[%c0_31, %c0_32] : memref<1x32xf32, #tpu.memory_space<vmem>>, vector<1x32xf32>
    %96 = vector.extract_strided_slice %89 {offsets = [0, 0], sizes = [76, 32], strides = [1, 1]} : vector<78x32xf32> to vector<76x32xf32>
    %97 = vector.extract_strided_slice %94 {offsets = [0, 0], sizes = [32, 32], strides = [1, 1]} : vector<96x32xf32> to vector<32x32xf32>
    %cst_33 = arith.constant dense<0.000000e+00> : vector<76x32xf32>
    %98 = tpu.matmul %96, %97, %cst_33 {dimension_numbers = #tpu.dot_dimension_numbers<[1], [0], [0], [1], [0, 0, 1, 1], [], []>} : vector<76x32xf32>, vector<32x32xf32>, vector<76x32xf32> -> vector<76x32xf32>
    %99 = vector.extract_strided_slice %89 {offsets = [1, 0], sizes = [76, 32], strides = [1, 1]} : vector<78x32xf32> to vector<76x32xf32>
    %100 = vector.extract_strided_slice %94 {offsets = [32, 0], sizes = [32, 32], strides = [1, 1]} : vector<96x32xf32> to vector<32x32xf32>
    %cst_34 = arith.constant dense<0.000000e+00> : vector<76x32xf32>
    %101 = tpu.matmul %99, %100, %cst_34 {dimension_numbers = #tpu.dot_dimension_numbers<[1], [0], [0], [1], [0, 0, 1, 1], [], []>} : vector<76x32xf32>, vector<32x32xf32>, vector<76x32xf32> -> vector<76x32xf32>
    %102 = arith.addf %98, %101 : vector<76x32xf32>
    %103 = vector.extract_strided_slice %89 {offsets = [2, 0], sizes = [76, 32], strides = [1, 1]} : vector<78x32xf32> to vector<76x32xf32>
    %104 = vector.extract_strided_slice %94 {offsets = [64, 0], sizes = [32, 32], strides = [1, 1]} : vector<96x32xf32> to vector<32x32xf32>
    %cst_35 = arith.constant dense<0.000000e+00> : vector<76x32xf32>
    %105 = tpu.matmul %103, %104, %cst_35 {dimension_numbers = #tpu.dot_dimension_numbers<[1], [0], [0], [1], [0, 0, 1, 1], [], []>} : vector<76x32xf32>, vector<32x32xf32>, vector<76x32xf32> -> vector<76x32xf32>
    %106 = arith.addf %102, %105 : vector<76x32xf32>
    %107 = vector.extract_strided_slice %93 {offsets = [0, 0], sizes = [76, 32], strides = [1, 1]} : vector<78x32xf32> to vector<76x32xf32>
    %108 = vector.extract_strided_slice %94 {offsets = [0, 0], sizes = [32, 32], strides = [1, 1]} : vector<96x32xf32> to vector<32x32xf32>
    %cst_36 = arith.constant dense<0.000000e+00> : vector<76x32xf32>
    %109 = tpu.matmul %107, %108, %cst_36 {dimension_numbers = #tpu.dot_dimension_numbers<[1], [0], [0], [1], [0, 0, 1, 1], [], []>} : vector<76x32xf32>, vector<32x32xf32>, vector<76x32xf32> -> vector<76x32xf32>
    %110 = vector.extract_strided_slice %93 {offsets = [1, 0], sizes = [76, 32], strides = [1, 1]} : vector<78x32xf32> to vector<76x32xf32>
    %111 = vector.extract_strided_slice %94 {offsets = [32, 0], sizes = [32, 32], strides = [1, 1]} : vector<96x32xf32> to vector<32x32xf32>
    %cst_37 = arith.constant dense<0.000000e+00> : vector<76x32xf32>
    %112 = tpu.matmul %110, %111, %cst_37 {dimension_numbers = #tpu.dot_dimension_numbers<[1], [0], [0], [1], [0, 0, 1, 1], [], []>} : vector<76x32xf32>, vector<32x32xf32>, vector<76x32xf32> -> vector<76x32xf32>
    %113 = arith.addf %109, %112 : vector<76x32xf32>
    %114 = vector.extract_strided_slice %93 {offsets = [2, 0], sizes = [76, 32], strides = [1, 1]} : vector<78x32xf32> to vector<76x32xf32>
    %115 = vector.extract_strided_slice %94 {offsets = [64, 0], sizes = [32, 32], strides = [1, 1]} : vector<96x32xf32> to vector<32x32xf32>
    %cst_38 = arith.constant dense<0.000000e+00> : vector<76x32xf32>
    %116 = tpu.matmul %114, %115, %cst_38 {dimension_numbers = #tpu.dot_dimension_numbers<[1], [0], [0], [1], [0, 0, 1, 1], [], []>} : vector<76x32xf32>, vector<32x32xf32>, vector<76x32xf32> -> vector<76x32xf32>
    %117 = arith.addf %113, %116 : vector<76x32xf32>
    %118 = vector.extract_strided_slice %89 {offsets = [1, 0], sizes = [76, 32], strides = [1, 1]} : vector<78x32xf32> to vector<76x32xf32>
    %119 = vector.extract_strided_slice %93 {offsets = [1, 0], sizes = [76, 32], strides = [1, 1]} : vector<78x32xf32> to vector<76x32xf32>
    %120 = vector.broadcast %95 : vector<1x32xf32> to vector<76x32xf32>
    %121 = arith.addf %106, %120 : vector<76x32xf32>
    %cst_39 = arith.constant 0.000000e+00 : f32
    %122 = vector.broadcast %cst_39 : f32 to vector<76x32xf32>
    %123 = arith.maximumf %121, %122 : vector<76x32xf32>
    %124 = vector.broadcast %95 : vector<1x32xf32> to vector<76x32xf32>
    %125 = arith.addf %117, %124 : vector<76x32xf32>
    %cst_40 = arith.constant 0.000000e+00 : f32
    %126 = vector.broadcast %cst_40 : f32 to vector<76x32xf32>
    %127 = arith.maximumf %125, %126 : vector<76x32xf32>
    %cst_41 = arith.constant dense<0.000000e+00> : vector<32xf32>
    %128 = vector.multi_reduction <add>, %123, %cst_41 [0] : vector<76x32xf32> to vector<32xf32>
    %129 = vector.shape_cast %128 : vector<32xf32> to vector<1x32xf32>
    %130 = arith.mulf %123, %123 : vector<76x32xf32>
    %cst_42 = arith.constant dense<0.000000e+00> : vector<32xf32>
    %131 = vector.multi_reduction <add>, %130, %cst_42 [0] : vector<76x32xf32> to vector<32xf32>
    %132 = vector.shape_cast %131 : vector<32xf32> to vector<1x32xf32>
    %cst_43 = arith.constant dense<0.000000e+00> : vector<32xf32>
    %133 = vector.multi_reduction <add>, %127, %cst_43 [0] : vector<76x32xf32> to vector<32xf32>
    %134 = vector.shape_cast %133 : vector<32xf32> to vector<1x32xf32>
    %135 = arith.addf %129, %134 : vector<1x32xf32>
    %136 = arith.mulf %127, %127 : vector<76x32xf32>
    %cst_44 = arith.constant dense<0.000000e+00> : vector<32xf32>
    %137 = vector.multi_reduction <add>, %136, %cst_44 [0] : vector<76x32xf32> to vector<32xf32>
    %138 = vector.shape_cast %137 : vector<32xf32> to vector<1x32xf32>
    %139 = arith.addf %132, %138 : vector<1x32xf32>
    %cst_45 = arith.constant 0.00657894742 : f32
    %140 = vector.broadcast %cst_45 : f32 to vector<1x32xf32>
    %141 = arith.mulf %135, %140 : vector<1x32xf32>
    %cst_46 = arith.constant 0.00657894742 : f32
    %142 = vector.broadcast %cst_46 : f32 to vector<1x32xf32>
    %143 = arith.mulf %139, %142 : vector<1x32xf32>
    %144 = arith.mulf %141, %141 : vector<1x32xf32>
    %145 = arith.subf %143, %144 : vector<1x32xf32>
    %cst_47 = arith.constant 9.99999974E-6 : f32
    %146 = vector.broadcast %cst_47 : f32 to vector<1x32xf32>
    %147 = arith.addf %145, %146 : vector<1x32xf32>
    %148 = math.rsqrt %147 : vector<1x32xf32>
    %149 = vector.broadcast %141 : vector<1x32xf32> to vector<76x32xf32>
    %150 = arith.subf %123, %149 : vector<76x32xf32>
    %151 = vector.broadcast %148 : vector<1x32xf32> to vector<76x32xf32>
    %152 = arith.mulf %150, %151 : vector<76x32xf32>
    %153 = vector.broadcast %141 : vector<1x32xf32> to vector<76x32xf32>
    %154 = arith.subf %127, %153 : vector<76x32xf32>
    %155 = vector.broadcast %148 : vector<1x32xf32> to vector<76x32xf32>
    %156 = arith.mulf %154, %155 : vector<76x32xf32>
    %cst_48 = arith.constant 6.600000e-01 : f32
    %157 = vector.broadcast %cst_48 : f32 to vector<76x32xf32>
    %158 = arith.mulf %157, %118 : vector<76x32xf32>
    %159 = arith.addf %158, %152 : vector<76x32xf32>
    %cst_49 = arith.constant 6.600000e-01 : f32
    %160 = vector.broadcast %cst_49 : f32 to vector<76x32xf32>
    %161 = arith.mulf %160, %119 : vector<76x32xf32>
    %162 = arith.addf %161, %156 : vector<76x32xf32>
    %c0_50 = arith.constant 0 : index
    %c0_51 = arith.constant 0 : index
    %163 = vector.load %arg5[%c0_50, %c0_51] : memref<96x32xf32, #tpu.memory_space<vmem>>, vector<96x32xf32>
    %c0_52 = arith.constant 0 : index
    %c0_53 = arith.constant 0 : index
    %164 = vector.load %arg6[%c0_52, %c0_53] : memref<1x32xf32, #tpu.memory_space<vmem>>, vector<1x32xf32>
    %165 = vector.extract_strided_slice %159 {offsets = [0, 0], sizes = [74, 32], strides = [1, 1]} : vector<76x32xf32> to vector<74x32xf32>
    %166 = vector.extract_strided_slice %163 {offsets = [0, 0], sizes = [32, 32], strides = [1, 1]} : vector<96x32xf32> to vector<32x32xf32>
    %cst_54 = arith.constant dense<0.000000e+00> : vector<74x32xf32>
    %167 = tpu.matmul %165, %166, %cst_54 {dimension_numbers = #tpu.dot_dimension_numbers<[1], [0], [0], [1], [0, 0, 1, 1], [], []>} : vector<74x32xf32>, vector<32x32xf32>, vector<74x32xf32> -> vector<74x32xf32>
    %168 = vector.extract_strided_slice %159 {offsets = [1, 0], sizes = [74, 32], strides = [1, 1]} : vector<76x32xf32> to vector<74x32xf32>
    %169 = vector.extract_strided_slice %163 {offsets = [32, 0], sizes = [32, 32], strides = [1, 1]} : vector<96x32xf32> to vector<32x32xf32>
    %cst_55 = arith.constant dense<0.000000e+00> : vector<74x32xf32>
    %170 = tpu.matmul %168, %169, %cst_55 {dimension_numbers = #tpu.dot_dimension_numbers<[1], [0], [0], [1], [0, 0, 1, 1], [], []>} : vector<74x32xf32>, vector<32x32xf32>, vector<74x32xf32> -> vector<74x32xf32>
    %171 = arith.addf %167, %170 : vector<74x32xf32>
    %172 = vector.extract_strided_slice %159 {offsets = [2, 0], sizes = [74, 32], strides = [1, 1]} : vector<76x32xf32> to vector<74x32xf32>
    %173 = vector.extract_strided_slice %163 {offsets = [64, 0], sizes = [32, 32], strides = [1, 1]} : vector<96x32xf32> to vector<32x32xf32>
    %cst_56 = arith.constant dense<0.000000e+00> : vector<74x32xf32>
    %174 = tpu.matmul %172, %173, %cst_56 {dimension_numbers = #tpu.dot_dimension_numbers<[1], [0], [0], [1], [0, 0, 1, 1], [], []>} : vector<74x32xf32>, vector<32x32xf32>, vector<74x32xf32> -> vector<74x32xf32>
    %175 = arith.addf %171, %174 : vector<74x32xf32>
    %176 = vector.extract_strided_slice %162 {offsets = [0, 0], sizes = [74, 32], strides = [1, 1]} : vector<76x32xf32> to vector<74x32xf32>
    %177 = vector.extract_strided_slice %163 {offsets = [0, 0], sizes = [32, 32], strides = [1, 1]} : vector<96x32xf32> to vector<32x32xf32>
    %cst_57 = arith.constant dense<0.000000e+00> : vector<74x32xf32>
    %178 = tpu.matmul %176, %177, %cst_57 {dimension_numbers = #tpu.dot_dimension_numbers<[1], [0], [0], [1], [0, 0, 1, 1], [], []>} : vector<74x32xf32>, vector<32x32xf32>, vector<74x32xf32> -> vector<74x32xf32>
    %179 = vector.extract_strided_slice %162 {offsets = [1, 0], sizes = [74, 32], strides = [1, 1]} : vector<76x32xf32> to vector<74x32xf32>
    %180 = vector.extract_strided_slice %163 {offsets = [32, 0], sizes = [32, 32], strides = [1, 1]} : vector<96x32xf32> to vector<32x32xf32>
    %cst_58 = arith.constant dense<0.000000e+00> : vector<74x32xf32>
    %181 = tpu.matmul %179, %180, %cst_58 {dimension_numbers = #tpu.dot_dimension_numbers<[1], [0], [0], [1], [0, 0, 1, 1], [], []>} : vector<74x32xf32>, vector<32x32xf32>, vector<74x32xf32> -> vector<74x32xf32>
    %182 = arith.addf %178, %181 : vector<74x32xf32>
    %183 = vector.extract_strided_slice %162 {offsets = [2, 0], sizes = [74, 32], strides = [1, 1]} : vector<76x32xf32> to vector<74x32xf32>
    %184 = vector.extract_strided_slice %163 {offsets = [64, 0], sizes = [32, 32], strides = [1, 1]} : vector<96x32xf32> to vector<32x32xf32>
    %cst_59 = arith.constant dense<0.000000e+00> : vector<74x32xf32>
    %185 = tpu.matmul %183, %184, %cst_59 {dimension_numbers = #tpu.dot_dimension_numbers<[1], [0], [0], [1], [0, 0, 1, 1], [], []>} : vector<74x32xf32>, vector<32x32xf32>, vector<74x32xf32> -> vector<74x32xf32>
    %186 = arith.addf %182, %185 : vector<74x32xf32>
    %187 = vector.extract_strided_slice %159 {offsets = [1, 0], sizes = [74, 32], strides = [1, 1]} : vector<76x32xf32> to vector<74x32xf32>
    %188 = vector.extract_strided_slice %162 {offsets = [1, 0], sizes = [74, 32], strides = [1, 1]} : vector<76x32xf32> to vector<74x32xf32>
    %189 = vector.broadcast %164 : vector<1x32xf32> to vector<74x32xf32>
    %190 = arith.addf %175, %189 : vector<74x32xf32>
    %cst_60 = arith.constant 0.000000e+00 : f32
    %191 = vector.broadcast %cst_60 : f32 to vector<74x32xf32>
    %192 = arith.maximumf %190, %191 : vector<74x32xf32>
    %193 = vector.broadcast %164 : vector<1x32xf32> to vector<74x32xf32>
    %194 = arith.addf %186, %193 : vector<74x32xf32>
    %cst_61 = arith.constant 0.000000e+00 : f32
    %195 = vector.broadcast %cst_61 : f32 to vector<74x32xf32>
    %196 = arith.maximumf %194, %195 : vector<74x32xf32>
    %cst_62 = arith.constant dense<0.000000e+00> : vector<32xf32>
    %197 = vector.multi_reduction <add>, %192, %cst_62 [0] : vector<74x32xf32> to vector<32xf32>
    %198 = vector.shape_cast %197 : vector<32xf32> to vector<1x32xf32>
    %199 = arith.mulf %192, %192 : vector<74x32xf32>
    %cst_63 = arith.constant dense<0.000000e+00> : vector<32xf32>
    %200 = vector.multi_reduction <add>, %199, %cst_63 [0] : vector<74x32xf32> to vector<32xf32>
    %201 = vector.shape_cast %200 : vector<32xf32> to vector<1x32xf32>
    %cst_64 = arith.constant dense<0.000000e+00> : vector<32xf32>
    %202 = vector.multi_reduction <add>, %196, %cst_64 [0] : vector<74x32xf32> to vector<32xf32>
    %203 = vector.shape_cast %202 : vector<32xf32> to vector<1x32xf32>
    %204 = arith.addf %198, %203 : vector<1x32xf32>
    %205 = arith.mulf %196, %196 : vector<74x32xf32>
    %cst_65 = arith.constant dense<0.000000e+00> : vector<32xf32>
    %206 = vector.multi_reduction <add>, %205, %cst_65 [0] : vector<74x32xf32> to vector<32xf32>
    %207 = vector.shape_cast %206 : vector<32xf32> to vector<1x32xf32>
    %208 = arith.addf %201, %207 : vector<1x32xf32>
    %cst_66 = arith.constant 0.00675675692 : f32
    %209 = vector.broadcast %cst_66 : f32 to vector<1x32xf32>
    %210 = arith.mulf %204, %209 : vector<1x32xf32>
    %cst_67 = arith.constant 0.00675675692 : f32
    %211 = vector.broadcast %cst_67 : f32 to vector<1x32xf32>
    %212 = arith.mulf %208, %211 : vector<1x32xf32>
    %213 = arith.mulf %210, %210 : vector<1x32xf32>
    %214 = arith.subf %212, %213 : vector<1x32xf32>
    %cst_68 = arith.constant 9.99999974E-6 : f32
    %215 = vector.broadcast %cst_68 : f32 to vector<1x32xf32>
    %216 = arith.addf %214, %215 : vector<1x32xf32>
    %217 = math.rsqrt %216 : vector<1x32xf32>
    %218 = vector.broadcast %210 : vector<1x32xf32> to vector<74x32xf32>
    %219 = arith.subf %192, %218 : vector<74x32xf32>
    %220 = vector.broadcast %217 : vector<1x32xf32> to vector<74x32xf32>
    %221 = arith.mulf %219, %220 : vector<74x32xf32>
    %222 = vector.broadcast %210 : vector<1x32xf32> to vector<74x32xf32>
    %223 = arith.subf %196, %222 : vector<74x32xf32>
    %224 = vector.broadcast %217 : vector<1x32xf32> to vector<74x32xf32>
    %225 = arith.mulf %223, %224 : vector<74x32xf32>
    %cst_69 = arith.constant 6.600000e-01 : f32
    %226 = vector.broadcast %cst_69 : f32 to vector<74x32xf32>
    %227 = arith.mulf %226, %187 : vector<74x32xf32>
    %228 = arith.addf %227, %221 : vector<74x32xf32>
    %cst_70 = arith.constant 6.600000e-01 : f32
    %229 = vector.broadcast %cst_70 : f32 to vector<74x32xf32>
    %230 = arith.mulf %229, %188 : vector<74x32xf32>
    %231 = arith.addf %230, %225 : vector<74x32xf32>
    %c0_71 = arith.constant 0 : index
    %c0_72 = arith.constant 0 : index
    %232 = vector.load %arg7[%c0_71, %c0_72] : memref<96x32xf32, #tpu.memory_space<vmem>>, vector<96x32xf32>
    %c0_73 = arith.constant 0 : index
    %c0_74 = arith.constant 0 : index
    %233 = vector.load %arg8[%c0_73, %c0_74] : memref<1x32xf32, #tpu.memory_space<vmem>>, vector<1x32xf32>
    %234 = vector.extract_strided_slice %228 {offsets = [0, 0], sizes = [72, 32], strides = [1, 1]} : vector<74x32xf32> to vector<72x32xf32>
    %235 = vector.extract_strided_slice %232 {offsets = [0, 0], sizes = [32, 32], strides = [1, 1]} : vector<96x32xf32> to vector<32x32xf32>
    %cst_75 = arith.constant dense<0.000000e+00> : vector<72x32xf32>
    %236 = tpu.matmul %234, %235, %cst_75 {dimension_numbers = #tpu.dot_dimension_numbers<[1], [0], [0], [1], [0, 0, 1, 1], [], []>} : vector<72x32xf32>, vector<32x32xf32>, vector<72x32xf32> -> vector<72x32xf32>
    %237 = vector.extract_strided_slice %228 {offsets = [1, 0], sizes = [72, 32], strides = [1, 1]} : vector<74x32xf32> to vector<72x32xf32>
    %238 = vector.extract_strided_slice %232 {offsets = [32, 0], sizes = [32, 32], strides = [1, 1]} : vector<96x32xf32> to vector<32x32xf32>
    %cst_76 = arith.constant dense<0.000000e+00> : vector<72x32xf32>
    %239 = tpu.matmul %237, %238, %cst_76 {dimension_numbers = #tpu.dot_dimension_numbers<[1], [0], [0], [1], [0, 0, 1, 1], [], []>} : vector<72x32xf32>, vector<32x32xf32>, vector<72x32xf32> -> vector<72x32xf32>
    %240 = arith.addf %236, %239 : vector<72x32xf32>
    %241 = vector.extract_strided_slice %228 {offsets = [2, 0], sizes = [72, 32], strides = [1, 1]} : vector<74x32xf32> to vector<72x32xf32>
    %242 = vector.extract_strided_slice %232 {offsets = [64, 0], sizes = [32, 32], strides = [1, 1]} : vector<96x32xf32> to vector<32x32xf32>
    %cst_77 = arith.constant dense<0.000000e+00> : vector<72x32xf32>
    %243 = tpu.matmul %241, %242, %cst_77 {dimension_numbers = #tpu.dot_dimension_numbers<[1], [0], [0], [1], [0, 0, 1, 1], [], []>} : vector<72x32xf32>, vector<32x32xf32>, vector<72x32xf32> -> vector<72x32xf32>
    %244 = arith.addf %240, %243 : vector<72x32xf32>
    %245 = vector.extract_strided_slice %231 {offsets = [0, 0], sizes = [72, 32], strides = [1, 1]} : vector<74x32xf32> to vector<72x32xf32>
    %246 = vector.extract_strided_slice %232 {offsets = [0, 0], sizes = [32, 32], strides = [1, 1]} : vector<96x32xf32> to vector<32x32xf32>
    %cst_78 = arith.constant dense<0.000000e+00> : vector<72x32xf32>
    %247 = tpu.matmul %245, %246, %cst_78 {dimension_numbers = #tpu.dot_dimension_numbers<[1], [0], [0], [1], [0, 0, 1, 1], [], []>} : vector<72x32xf32>, vector<32x32xf32>, vector<72x32xf32> -> vector<72x32xf32>
    %248 = vector.extract_strided_slice %231 {offsets = [1, 0], sizes = [72, 32], strides = [1, 1]} : vector<74x32xf32> to vector<72x32xf32>
    %249 = vector.extract_strided_slice %232 {offsets = [32, 0], sizes = [32, 32], strides = [1, 1]} : vector<96x32xf32> to vector<32x32xf32>
    %cst_79 = arith.constant dense<0.000000e+00> : vector<72x32xf32>
    %250 = tpu.matmul %248, %249, %cst_79 {dimension_numbers = #tpu.dot_dimension_numbers<[1], [0], [0], [1], [0, 0, 1, 1], [], []>} : vector<72x32xf32>, vector<32x32xf32>, vector<72x32xf32> -> vector<72x32xf32>
    %251 = arith.addf %247, %250 : vector<72x32xf32>
    %252 = vector.extract_strided_slice %231 {offsets = [2, 0], sizes = [72, 32], strides = [1, 1]} : vector<74x32xf32> to vector<72x32xf32>
    %253 = vector.extract_strided_slice %232 {offsets = [64, 0], sizes = [32, 32], strides = [1, 1]} : vector<96x32xf32> to vector<32x32xf32>
    %cst_80 = arith.constant dense<0.000000e+00> : vector<72x32xf32>
    %254 = tpu.matmul %252, %253, %cst_80 {dimension_numbers = #tpu.dot_dimension_numbers<[1], [0], [0], [1], [0, 0, 1, 1], [], []>} : vector<72x32xf32>, vector<32x32xf32>, vector<72x32xf32> -> vector<72x32xf32>
    %255 = arith.addf %251, %254 : vector<72x32xf32>
    %256 = vector.extract_strided_slice %228 {offsets = [1, 0], sizes = [72, 32], strides = [1, 1]} : vector<74x32xf32> to vector<72x32xf32>
    %257 = vector.extract_strided_slice %231 {offsets = [1, 0], sizes = [72, 32], strides = [1, 1]} : vector<74x32xf32> to vector<72x32xf32>
    %258 = vector.broadcast %233 : vector<1x32xf32> to vector<72x32xf32>
    %259 = arith.addf %244, %258 : vector<72x32xf32>
    %cst_81 = arith.constant 0.000000e+00 : f32
    %260 = vector.broadcast %cst_81 : f32 to vector<72x32xf32>
    %261 = arith.maximumf %259, %260 : vector<72x32xf32>
    %262 = vector.broadcast %233 : vector<1x32xf32> to vector<72x32xf32>
    %263 = arith.addf %255, %262 : vector<72x32xf32>
    %cst_82 = arith.constant 0.000000e+00 : f32
    %264 = vector.broadcast %cst_82 : f32 to vector<72x32xf32>
    %265 = arith.maximumf %263, %264 : vector<72x32xf32>
    %cst_83 = arith.constant dense<0.000000e+00> : vector<32xf32>
    %266 = vector.multi_reduction <add>, %261, %cst_83 [0] : vector<72x32xf32> to vector<32xf32>
    %267 = vector.shape_cast %266 : vector<32xf32> to vector<1x32xf32>
    %268 = arith.mulf %261, %261 : vector<72x32xf32>
    %cst_84 = arith.constant dense<0.000000e+00> : vector<32xf32>
    %269 = vector.multi_reduction <add>, %268, %cst_84 [0] : vector<72x32xf32> to vector<32xf32>
    %270 = vector.shape_cast %269 : vector<32xf32> to vector<1x32xf32>
    %cst_85 = arith.constant dense<0.000000e+00> : vector<32xf32>
    %271 = vector.multi_reduction <add>, %265, %cst_85 [0] : vector<72x32xf32> to vector<32xf32>
    %272 = vector.shape_cast %271 : vector<32xf32> to vector<1x32xf32>
    %273 = arith.addf %267, %272 : vector<1x32xf32>
    %274 = arith.mulf %265, %265 : vector<72x32xf32>
    %cst_86 = arith.constant dense<0.000000e+00> : vector<32xf32>
    %275 = vector.multi_reduction <add>, %274, %cst_86 [0] : vector<72x32xf32> to vector<32xf32>
    %276 = vector.shape_cast %275 : vector<32xf32> to vector<1x32xf32>
    %277 = arith.addf %270, %276 : vector<1x32xf32>
    %cst_87 = arith.constant 0.0069444445 : f32
    %278 = vector.broadcast %cst_87 : f32 to vector<1x32xf32>
    %279 = arith.mulf %273, %278 : vector<1x32xf32>
    %cst_88 = arith.constant 0.0069444445 : f32
    %280 = vector.broadcast %cst_88 : f32 to vector<1x32xf32>
    %281 = arith.mulf %277, %280 : vector<1x32xf32>
    %282 = arith.mulf %279, %279 : vector<1x32xf32>
    %283 = arith.subf %281, %282 : vector<1x32xf32>
    %cst_89 = arith.constant 9.99999974E-6 : f32
    %284 = vector.broadcast %cst_89 : f32 to vector<1x32xf32>
    %285 = arith.addf %283, %284 : vector<1x32xf32>
    %286 = math.rsqrt %285 : vector<1x32xf32>
    %287 = vector.broadcast %279 : vector<1x32xf32> to vector<72x32xf32>
    %288 = arith.subf %261, %287 : vector<72x32xf32>
    %289 = vector.broadcast %286 : vector<1x32xf32> to vector<72x32xf32>
    %290 = arith.mulf %288, %289 : vector<72x32xf32>
    %291 = vector.broadcast %279 : vector<1x32xf32> to vector<72x32xf32>
    %292 = arith.subf %265, %291 : vector<72x32xf32>
    %293 = vector.broadcast %286 : vector<1x32xf32> to vector<72x32xf32>
    %294 = arith.mulf %292, %293 : vector<72x32xf32>
    %cst_90 = arith.constant 6.600000e-01 : f32
    %295 = vector.broadcast %cst_90 : f32 to vector<72x32xf32>
    %296 = arith.mulf %295, %256 : vector<72x32xf32>
    %297 = arith.addf %296, %290 : vector<72x32xf32>
    %cst_91 = arith.constant 6.600000e-01 : f32
    %298 = vector.broadcast %cst_91 : f32 to vector<72x32xf32>
    %299 = arith.mulf %298, %257 : vector<72x32xf32>
    %300 = arith.addf %299, %294 : vector<72x32xf32>
    %c0_92 = arith.constant 0 : index
    %c0_93 = arith.constant 0 : index
    %301 = vector.load %arg9[%c0_92, %c0_93] : memref<32x32xf32, #tpu.memory_space<vmem>>, vector<32x32xf32>
    %c0_94 = arith.constant 0 : index
    %c0_95 = arith.constant 0 : index
    %302 = vector.load %arg10[%c0_94, %c0_95] : memref<1x32xf32, #tpu.memory_space<vmem>>, vector<1x32xf32>
    %303 = tpu.iota {dimensions = array<i32: 0>} : vector<24x72xi32>
    %304 = tpu.iota {dimensions = array<i32: 1>} : vector<24x72xi32>
    %c3_i32 = arith.constant 3 : i32
    %305 = vector.broadcast %c3_i32 : i32 to vector<24x72xi32>
    %306 = arith.muli %303, %305 : vector<24x72xi32>
    %307 = arith.cmpi eq, %304, %306 : vector<24x72xi32>
    %308 = arith.extui %307 : vector<24x72xi1> to vector<24x72xi32>
    %309 = arith.sitofp %308 : vector<24x72xi32> to vector<24x72xf32>
    %cst_96 = arith.constant dense<0.000000e+00> : vector<24x32xf32>
    %310 = tpu.matmul %309, %297, %cst_96 {dimension_numbers = #tpu.dot_dimension_numbers<[1], [0], [0], [1], [0, 0, 1, 1], [], []>} : vector<24x72xf32>, vector<72x32xf32>, vector<24x32xf32> -> vector<24x32xf32>
    %cst_97 = arith.constant dense<0.000000e+00> : vector<24x32xf32>
    %311 = tpu.matmul %309, %300, %cst_97 {dimension_numbers = #tpu.dot_dimension_numbers<[1], [0], [0], [1], [0, 0, 1, 1], [], []>} : vector<24x72xf32>, vector<72x32xf32>, vector<24x32xf32> -> vector<24x32xf32>
    %cst_98 = arith.constant dense<0.000000e+00> : vector<24x32xf32>
    %312 = tpu.matmul %310, %301, %cst_98 {dimension_numbers = #tpu.dot_dimension_numbers<[1], [0], [0], [1], [0, 0, 1, 1], [], []>} : vector<24x32xf32>, vector<32x32xf32>, vector<24x32xf32> -> vector<24x32xf32>
    %cst_99 = arith.constant dense<0.000000e+00> : vector<24x32xf32>
    %313 = tpu.matmul %311, %301, %cst_99 {dimension_numbers = #tpu.dot_dimension_numbers<[1], [0], [0], [1], [0, 0, 1, 1], [], []>} : vector<24x32xf32>, vector<32x32xf32>, vector<24x32xf32> -> vector<24x32xf32>
    %314 = vector.broadcast %302 : vector<1x32xf32> to vector<24x32xf32>
    %315 = arith.addf %312, %314 : vector<24x32xf32>
    %cst_100 = arith.constant 0.000000e+00 : f32
    %316 = vector.broadcast %cst_100 : f32 to vector<24x32xf32>
    %317 = arith.maximumf %315, %316 : vector<24x32xf32>
    %318 = vector.broadcast %302 : vector<1x32xf32> to vector<24x32xf32>
    %319 = arith.addf %313, %318 : vector<24x32xf32>
    %cst_101 = arith.constant 0.000000e+00 : f32
    %320 = vector.broadcast %cst_101 : f32 to vector<24x32xf32>
    %321 = arith.maximumf %319, %320 : vector<24x32xf32>
    %cst_102 = arith.constant dense<0.000000e+00> : vector<32xf32>
    %322 = vector.multi_reduction <add>, %317, %cst_102 [0] : vector<24x32xf32> to vector<32xf32>
    %323 = vector.shape_cast %322 : vector<32xf32> to vector<1x32xf32>
    %324 = arith.mulf %317, %317 : vector<24x32xf32>
    %cst_103 = arith.constant dense<0.000000e+00> : vector<32xf32>
    %325 = vector.multi_reduction <add>, %324, %cst_103 [0] : vector<24x32xf32> to vector<32xf32>
    %326 = vector.shape_cast %325 : vector<32xf32> to vector<1x32xf32>
    %cst_104 = arith.constant dense<0.000000e+00> : vector<32xf32>
    %327 = vector.multi_reduction <add>, %321, %cst_104 [0] : vector<24x32xf32> to vector<32xf32>
    %328 = vector.shape_cast %327 : vector<32xf32> to vector<1x32xf32>
    %329 = arith.addf %323, %328 : vector<1x32xf32>
    %330 = arith.mulf %321, %321 : vector<24x32xf32>
    %cst_105 = arith.constant dense<0.000000e+00> : vector<32xf32>
    %331 = vector.multi_reduction <add>, %330, %cst_105 [0] : vector<24x32xf32> to vector<32xf32>
    %332 = vector.shape_cast %331 : vector<32xf32> to vector<1x32xf32>
    %333 = arith.addf %326, %332 : vector<1x32xf32>
    %cst_106 = arith.constant 0.020833334 : f32
    %334 = vector.broadcast %cst_106 : f32 to vector<1x32xf32>
    %335 = arith.mulf %329, %334 : vector<1x32xf32>
    %cst_107 = arith.constant 0.020833334 : f32
    %336 = vector.broadcast %cst_107 : f32 to vector<1x32xf32>
    %337 = arith.mulf %333, %336 : vector<1x32xf32>
    %338 = arith.mulf %335, %335 : vector<1x32xf32>
    %339 = arith.subf %337, %338 : vector<1x32xf32>
    %cst_108 = arith.constant 9.99999974E-6 : f32
    %340 = vector.broadcast %cst_108 : f32 to vector<1x32xf32>
    %341 = arith.addf %339, %340 : vector<1x32xf32>
    %342 = math.rsqrt %341 : vector<1x32xf32>
    %343 = vector.broadcast %335 : vector<1x32xf32> to vector<24x32xf32>
    %344 = arith.subf %317, %343 : vector<24x32xf32>
    %345 = vector.broadcast %342 : vector<1x32xf32> to vector<24x32xf32>
    %346 = arith.mulf %344, %345 : vector<24x32xf32>
    %347 = vector.broadcast %335 : vector<1x32xf32> to vector<24x32xf32>
    %348 = arith.subf %321, %347 : vector<24x32xf32>
    %349 = vector.broadcast %342 : vector<1x32xf32> to vector<24x32xf32>
    %350 = arith.mulf %348, %349 : vector<24x32xf32>
    %cst_109 = arith.constant 6.600000e-01 : f32
    %351 = vector.broadcast %cst_109 : f32 to vector<24x32xf32>
    %352 = arith.mulf %351, %310 : vector<24x32xf32>
    %353 = arith.addf %352, %346 : vector<24x32xf32>
    %cst_110 = arith.constant 6.600000e-01 : f32
    %354 = vector.broadcast %cst_110 : f32 to vector<24x32xf32>
    %355 = arith.mulf %354, %311 : vector<24x32xf32>
    %356 = arith.addf %355, %350 : vector<24x32xf32>
    %c0_111 = arith.constant 0 : index
    %c0_112 = arith.constant 0 : index
    %357 = vector.load %arg11[%c0_111, %c0_112] : memref<96x32xf32, #tpu.memory_space<vmem>>, vector<96x32xf32>
    %c0_113 = arith.constant 0 : index
    %c0_114 = arith.constant 0 : index
    %358 = vector.load %arg12[%c0_113, %c0_114] : memref<1x32xf32, #tpu.memory_space<vmem>>, vector<1x32xf32>
    %359 = vector.extract_strided_slice %353 {offsets = [0, 0], sizes = [22, 32], strides = [1, 1]} : vector<24x32xf32> to vector<22x32xf32>
    %360 = vector.extract_strided_slice %357 {offsets = [0, 0], sizes = [32, 32], strides = [1, 1]} : vector<96x32xf32> to vector<32x32xf32>
    %cst_115 = arith.constant dense<0.000000e+00> : vector<22x32xf32>
    %361 = tpu.matmul %359, %360, %cst_115 {dimension_numbers = #tpu.dot_dimension_numbers<[1], [0], [0], [1], [0, 0, 1, 1], [], []>} : vector<22x32xf32>, vector<32x32xf32>, vector<22x32xf32> -> vector<22x32xf32>
    %362 = vector.extract_strided_slice %353 {offsets = [1, 0], sizes = [22, 32], strides = [1, 1]} : vector<24x32xf32> to vector<22x32xf32>
    %363 = vector.extract_strided_slice %357 {offsets = [32, 0], sizes = [32, 32], strides = [1, 1]} : vector<96x32xf32> to vector<32x32xf32>
    %cst_116 = arith.constant dense<0.000000e+00> : vector<22x32xf32>
    %364 = tpu.matmul %362, %363, %cst_116 {dimension_numbers = #tpu.dot_dimension_numbers<[1], [0], [0], [1], [0, 0, 1, 1], [], []>} : vector<22x32xf32>, vector<32x32xf32>, vector<22x32xf32> -> vector<22x32xf32>
    %365 = arith.addf %361, %364 : vector<22x32xf32>
    %366 = vector.extract_strided_slice %353 {offsets = [2, 0], sizes = [22, 32], strides = [1, 1]} : vector<24x32xf32> to vector<22x32xf32>
    %367 = vector.extract_strided_slice %357 {offsets = [64, 0], sizes = [32, 32], strides = [1, 1]} : vector<96x32xf32> to vector<32x32xf32>
    %cst_117 = arith.constant dense<0.000000e+00> : vector<22x32xf32>
    %368 = tpu.matmul %366, %367, %cst_117 {dimension_numbers = #tpu.dot_dimension_numbers<[1], [0], [0], [1], [0, 0, 1, 1], [], []>} : vector<22x32xf32>, vector<32x32xf32>, vector<22x32xf32> -> vector<22x32xf32>
    %369 = arith.addf %365, %368 : vector<22x32xf32>
    %370 = vector.extract_strided_slice %356 {offsets = [0, 0], sizes = [22, 32], strides = [1, 1]} : vector<24x32xf32> to vector<22x32xf32>
    %371 = vector.extract_strided_slice %357 {offsets = [0, 0], sizes = [32, 32], strides = [1, 1]} : vector<96x32xf32> to vector<32x32xf32>
    %cst_118 = arith.constant dense<0.000000e+00> : vector<22x32xf32>
    %372 = tpu.matmul %370, %371, %cst_118 {dimension_numbers = #tpu.dot_dimension_numbers<[1], [0], [0], [1], [0, 0, 1, 1], [], []>} : vector<22x32xf32>, vector<32x32xf32>, vector<22x32xf32> -> vector<22x32xf32>
    %373 = vector.extract_strided_slice %356 {offsets = [1, 0], sizes = [22, 32], strides = [1, 1]} : vector<24x32xf32> to vector<22x32xf32>
    %374 = vector.extract_strided_slice %357 {offsets = [32, 0], sizes = [32, 32], strides = [1, 1]} : vector<96x32xf32> to vector<32x32xf32>
    %cst_119 = arith.constant dense<0.000000e+00> : vector<22x32xf32>
    %375 = tpu.matmul %373, %374, %cst_119 {dimension_numbers = #tpu.dot_dimension_numbers<[1], [0], [0], [1], [0, 0, 1, 1], [], []>} : vector<22x32xf32>, vector<32x32xf32>, vector<22x32xf32> -> vector<22x32xf32>
    %376 = arith.addf %372, %375 : vector<22x32xf32>
    %377 = vector.extract_strided_slice %356 {offsets = [2, 0], sizes = [22, 32], strides = [1, 1]} : vector<24x32xf32> to vector<22x32xf32>
    %378 = vector.extract_strided_slice %357 {offsets = [64, 0], sizes = [32, 32], strides = [1, 1]} : vector<96x32xf32> to vector<32x32xf32>
    %cst_120 = arith.constant dense<0.000000e+00> : vector<22x32xf32>
    %379 = tpu.matmul %377, %378, %cst_120 {dimension_numbers = #tpu.dot_dimension_numbers<[1], [0], [0], [1], [0, 0, 1, 1], [], []>} : vector<22x32xf32>, vector<32x32xf32>, vector<22x32xf32> -> vector<22x32xf32>
    %380 = arith.addf %376, %379 : vector<22x32xf32>
    %381 = vector.extract_strided_slice %353 {offsets = [1, 0], sizes = [22, 32], strides = [1, 1]} : vector<24x32xf32> to vector<22x32xf32>
    %382 = vector.extract_strided_slice %356 {offsets = [1, 0], sizes = [22, 32], strides = [1, 1]} : vector<24x32xf32> to vector<22x32xf32>
    %383 = vector.broadcast %358 : vector<1x32xf32> to vector<22x32xf32>
    %384 = arith.addf %369, %383 : vector<22x32xf32>
    %cst_121 = arith.constant 0.000000e+00 : f32
    %385 = vector.broadcast %cst_121 : f32 to vector<22x32xf32>
    %386 = arith.maximumf %384, %385 : vector<22x32xf32>
    %387 = vector.broadcast %358 : vector<1x32xf32> to vector<22x32xf32>
    %388 = arith.addf %380, %387 : vector<22x32xf32>
    %cst_122 = arith.constant 0.000000e+00 : f32
    %389 = vector.broadcast %cst_122 : f32 to vector<22x32xf32>
    %390 = arith.maximumf %388, %389 : vector<22x32xf32>
    %cst_123 = arith.constant dense<0.000000e+00> : vector<32xf32>
    %391 = vector.multi_reduction <add>, %386, %cst_123 [0] : vector<22x32xf32> to vector<32xf32>
    %392 = vector.shape_cast %391 : vector<32xf32> to vector<1x32xf32>
    %393 = arith.mulf %386, %386 : vector<22x32xf32>
    %cst_124 = arith.constant dense<0.000000e+00> : vector<32xf32>
    %394 = vector.multi_reduction <add>, %393, %cst_124 [0] : vector<22x32xf32> to vector<32xf32>
    %395 = vector.shape_cast %394 : vector<32xf32> to vector<1x32xf32>
    %cst_125 = arith.constant dense<0.000000e+00> : vector<32xf32>
    %396 = vector.multi_reduction <add>, %390, %cst_125 [0] : vector<22x32xf32> to vector<32xf32>
    %397 = vector.shape_cast %396 : vector<32xf32> to vector<1x32xf32>
    %398 = arith.addf %392, %397 : vector<1x32xf32>
    %399 = arith.mulf %390, %390 : vector<22x32xf32>
    %cst_126 = arith.constant dense<0.000000e+00> : vector<32xf32>
    %400 = vector.multi_reduction <add>, %399, %cst_126 [0] : vector<22x32xf32> to vector<32xf32>
    %401 = vector.shape_cast %400 : vector<32xf32> to vector<1x32xf32>
    %402 = arith.addf %395, %401 : vector<1x32xf32>
    %cst_127 = arith.constant 0.0227272734 : f32
    %403 = vector.broadcast %cst_127 : f32 to vector<1x32xf32>
    %404 = arith.mulf %398, %403 : vector<1x32xf32>
    %cst_128 = arith.constant 0.0227272734 : f32
    %405 = vector.broadcast %cst_128 : f32 to vector<1x32xf32>
    %406 = arith.mulf %402, %405 : vector<1x32xf32>
    %407 = arith.mulf %404, %404 : vector<1x32xf32>
    %408 = arith.subf %406, %407 : vector<1x32xf32>
    %cst_129 = arith.constant 9.99999974E-6 : f32
    %409 = vector.broadcast %cst_129 : f32 to vector<1x32xf32>
    %410 = arith.addf %408, %409 : vector<1x32xf32>
    %411 = math.rsqrt %410 : vector<1x32xf32>
    %412 = vector.broadcast %404 : vector<1x32xf32> to vector<22x32xf32>
    %413 = arith.subf %386, %412 : vector<22x32xf32>
    %414 = vector.broadcast %411 : vector<1x32xf32> to vector<22x32xf32>
    %415 = arith.mulf %413, %414 : vector<22x32xf32>
    %416 = vector.broadcast %404 : vector<1x32xf32> to vector<22x32xf32>
    %417 = arith.subf %390, %416 : vector<22x32xf32>
    %418 = vector.broadcast %411 : vector<1x32xf32> to vector<22x32xf32>
    %419 = arith.mulf %417, %418 : vector<22x32xf32>
    %cst_130 = arith.constant 6.600000e-01 : f32
    %420 = vector.broadcast %cst_130 : f32 to vector<22x32xf32>
    %421 = arith.mulf %420, %381 : vector<22x32xf32>
    %422 = arith.addf %421, %415 : vector<22x32xf32>
    %cst_131 = arith.constant 6.600000e-01 : f32
    %423 = vector.broadcast %cst_131 : f32 to vector<22x32xf32>
    %424 = arith.mulf %423, %382 : vector<22x32xf32>
    %425 = arith.addf %424, %419 : vector<22x32xf32>
    %c0_132 = arith.constant 0 : index
    %c0_133 = arith.constant 0 : index
    %426 = vector.load %arg13[%c0_132, %c0_133] : memref<96x32xf32, #tpu.memory_space<vmem>>, vector<96x32xf32>
    %c0_134 = arith.constant 0 : index
    %c0_135 = arith.constant 0 : index
    %427 = vector.load %arg14[%c0_134, %c0_135] : memref<1x32xf32, #tpu.memory_space<vmem>>, vector<1x32xf32>
    %428 = vector.extract_strided_slice %422 {offsets = [0, 0], sizes = [20, 32], strides = [1, 1]} : vector<22x32xf32> to vector<20x32xf32>
    %429 = vector.extract_strided_slice %426 {offsets = [0, 0], sizes = [32, 32], strides = [1, 1]} : vector<96x32xf32> to vector<32x32xf32>
    %cst_136 = arith.constant dense<0.000000e+00> : vector<20x32xf32>
    %430 = tpu.matmul %428, %429, %cst_136 {dimension_numbers = #tpu.dot_dimension_numbers<[1], [0], [0], [1], [0, 0, 1, 1], [], []>} : vector<20x32xf32>, vector<32x32xf32>, vector<20x32xf32> -> vector<20x32xf32>
    %431 = vector.extract_strided_slice %422 {offsets = [1, 0], sizes = [20, 32], strides = [1, 1]} : vector<22x32xf32> to vector<20x32xf32>
    %432 = vector.extract_strided_slice %426 {offsets = [32, 0], sizes = [32, 32], strides = [1, 1]} : vector<96x32xf32> to vector<32x32xf32>
    %cst_137 = arith.constant dense<0.000000e+00> : vector<20x32xf32>
    %433 = tpu.matmul %431, %432, %cst_137 {dimension_numbers = #tpu.dot_dimension_numbers<[1], [0], [0], [1], [0, 0, 1, 1], [], []>} : vector<20x32xf32>, vector<32x32xf32>, vector<20x32xf32> -> vector<20x32xf32>
    %434 = arith.addf %430, %433 : vector<20x32xf32>
    %435 = vector.extract_strided_slice %422 {offsets = [2, 0], sizes = [20, 32], strides = [1, 1]} : vector<22x32xf32> to vector<20x32xf32>
    %436 = vector.extract_strided_slice %426 {offsets = [64, 0], sizes = [32, 32], strides = [1, 1]} : vector<96x32xf32> to vector<32x32xf32>
    %cst_138 = arith.constant dense<0.000000e+00> : vector<20x32xf32>
    %437 = tpu.matmul %435, %436, %cst_138 {dimension_numbers = #tpu.dot_dimension_numbers<[1], [0], [0], [1], [0, 0, 1, 1], [], []>} : vector<20x32xf32>, vector<32x32xf32>, vector<20x32xf32> -> vector<20x32xf32>
    %438 = arith.addf %434, %437 : vector<20x32xf32>
    %439 = vector.extract_strided_slice %425 {offsets = [0, 0], sizes = [20, 32], strides = [1, 1]} : vector<22x32xf32> to vector<20x32xf32>
    %440 = vector.extract_strided_slice %426 {offsets = [0, 0], sizes = [32, 32], strides = [1, 1]} : vector<96x32xf32> to vector<32x32xf32>
    %cst_139 = arith.constant dense<0.000000e+00> : vector<20x32xf32>
    %441 = tpu.matmul %439, %440, %cst_139 {dimension_numbers = #tpu.dot_dimension_numbers<[1], [0], [0], [1], [0, 0, 1, 1], [], []>} : vector<20x32xf32>, vector<32x32xf32>, vector<20x32xf32> -> vector<20x32xf32>
    %442 = vector.extract_strided_slice %425 {offsets = [1, 0], sizes = [20, 32], strides = [1, 1]} : vector<22x32xf32> to vector<20x32xf32>
    %443 = vector.extract_strided_slice %426 {offsets = [32, 0], sizes = [32, 32], strides = [1, 1]} : vector<96x32xf32> to vector<32x32xf32>
    %cst_140 = arith.constant dense<0.000000e+00> : vector<20x32xf32>
    %444 = tpu.matmul %442, %443, %cst_140 {dimension_numbers = #tpu.dot_dimension_numbers<[1], [0], [0], [1], [0, 0, 1, 1], [], []>} : vector<20x32xf32>, vector<32x32xf32>, vector<20x32xf32> -> vector<20x32xf32>
    %445 = arith.addf %441, %444 : vector<20x32xf32>
    %446 = vector.extract_strided_slice %425 {offsets = [2, 0], sizes = [20, 32], strides = [1, 1]} : vector<22x32xf32> to vector<20x32xf32>
    %447 = vector.extract_strided_slice %426 {offsets = [64, 0], sizes = [32, 32], strides = [1, 1]} : vector<96x32xf32> to vector<32x32xf32>
    %cst_141 = arith.constant dense<0.000000e+00> : vector<20x32xf32>
    %448 = tpu.matmul %446, %447, %cst_141 {dimension_numbers = #tpu.dot_dimension_numbers<[1], [0], [0], [1], [0, 0, 1, 1], [], []>} : vector<20x32xf32>, vector<32x32xf32>, vector<20x32xf32> -> vector<20x32xf32>
    %449 = arith.addf %445, %448 : vector<20x32xf32>
    %450 = vector.extract_strided_slice %422 {offsets = [1, 0], sizes = [20, 32], strides = [1, 1]} : vector<22x32xf32> to vector<20x32xf32>
    %451 = vector.extract_strided_slice %425 {offsets = [1, 0], sizes = [20, 32], strides = [1, 1]} : vector<22x32xf32> to vector<20x32xf32>
    %452 = vector.broadcast %427 : vector<1x32xf32> to vector<20x32xf32>
    %453 = arith.addf %438, %452 : vector<20x32xf32>
    %cst_142 = arith.constant 0.000000e+00 : f32
    %454 = vector.broadcast %cst_142 : f32 to vector<20x32xf32>
    %455 = arith.maximumf %453, %454 : vector<20x32xf32>
    %456 = vector.broadcast %427 : vector<1x32xf32> to vector<20x32xf32>
    %457 = arith.addf %449, %456 : vector<20x32xf32>
    %cst_143 = arith.constant 0.000000e+00 : f32
    %458 = vector.broadcast %cst_143 : f32 to vector<20x32xf32>
    %459 = arith.maximumf %457, %458 : vector<20x32xf32>
    %cst_144 = arith.constant dense<0.000000e+00> : vector<32xf32>
    %460 = vector.multi_reduction <add>, %455, %cst_144 [0] : vector<20x32xf32> to vector<32xf32>
    %461 = vector.shape_cast %460 : vector<32xf32> to vector<1x32xf32>
    %462 = arith.mulf %455, %455 : vector<20x32xf32>
    %cst_145 = arith.constant dense<0.000000e+00> : vector<32xf32>
    %463 = vector.multi_reduction <add>, %462, %cst_145 [0] : vector<20x32xf32> to vector<32xf32>
    %464 = vector.shape_cast %463 : vector<32xf32> to vector<1x32xf32>
    %cst_146 = arith.constant dense<0.000000e+00> : vector<32xf32>
    %465 = vector.multi_reduction <add>, %459, %cst_146 [0] : vector<20x32xf32> to vector<32xf32>
    %466 = vector.shape_cast %465 : vector<32xf32> to vector<1x32xf32>
    %467 = arith.addf %461, %466 : vector<1x32xf32>
    %468 = arith.mulf %459, %459 : vector<20x32xf32>
    %cst_147 = arith.constant dense<0.000000e+00> : vector<32xf32>
    %469 = vector.multi_reduction <add>, %468, %cst_147 [0] : vector<20x32xf32> to vector<32xf32>
    %470 = vector.shape_cast %469 : vector<32xf32> to vector<1x32xf32>
    %471 = arith.addf %464, %470 : vector<1x32xf32>
    %cst_148 = arith.constant 2.500000e-02 : f32
    %472 = vector.broadcast %cst_148 : f32 to vector<1x32xf32>
    %473 = arith.mulf %467, %472 : vector<1x32xf32>
    %cst_149 = arith.constant 2.500000e-02 : f32
    %474 = vector.broadcast %cst_149 : f32 to vector<1x32xf32>
    %475 = arith.mulf %471, %474 : vector<1x32xf32>
    %476 = arith.mulf %473, %473 : vector<1x32xf32>
    %477 = arith.subf %475, %476 : vector<1x32xf32>
    %cst_150 = arith.constant 9.99999974E-6 : f32
    %478 = vector.broadcast %cst_150 : f32 to vector<1x32xf32>
    %479 = arith.addf %477, %478 : vector<1x32xf32>
    %480 = math.rsqrt %479 : vector<1x32xf32>
    %481 = vector.broadcast %473 : vector<1x32xf32> to vector<20x32xf32>
    %482 = arith.subf %455, %481 : vector<20x32xf32>
    %483 = vector.broadcast %480 : vector<1x32xf32> to vector<20x32xf32>
    %484 = arith.mulf %482, %483 : vector<20x32xf32>
    %485 = vector.broadcast %473 : vector<1x32xf32> to vector<20x32xf32>
    %486 = arith.subf %459, %485 : vector<20x32xf32>
    %487 = vector.broadcast %480 : vector<1x32xf32> to vector<20x32xf32>
    %488 = arith.mulf %486, %487 : vector<20x32xf32>
    %cst_151 = arith.constant 6.600000e-01 : f32
    %489 = vector.broadcast %cst_151 : f32 to vector<20x32xf32>
    %490 = arith.mulf %489, %450 : vector<20x32xf32>
    %491 = arith.addf %490, %484 : vector<20x32xf32>
    %cst_152 = arith.constant 6.600000e-01 : f32
    %492 = vector.broadcast %cst_152 : f32 to vector<20x32xf32>
    %493 = arith.mulf %492, %451 : vector<20x32xf32>
    %494 = arith.addf %493, %488 : vector<20x32xf32>
    %c0_153 = arith.constant 0 : index
    %c0_154 = arith.constant 0 : index
    %495 = vector.load %arg15[%c0_153, %c0_154] : memref<96x32xf32, #tpu.memory_space<vmem>>, vector<96x32xf32>
    %c0_155 = arith.constant 0 : index
    %c0_156 = arith.constant 0 : index
    %496 = vector.load %arg16[%c0_155, %c0_156] : memref<1x32xf32, #tpu.memory_space<vmem>>, vector<1x32xf32>
    %497 = vector.extract_strided_slice %491 {offsets = [0, 0], sizes = [18, 32], strides = [1, 1]} : vector<20x32xf32> to vector<18x32xf32>
    %498 = vector.extract_strided_slice %495 {offsets = [0, 0], sizes = [32, 32], strides = [1, 1]} : vector<96x32xf32> to vector<32x32xf32>
    %cst_157 = arith.constant dense<0.000000e+00> : vector<18x32xf32>
    %499 = tpu.matmul %497, %498, %cst_157 {dimension_numbers = #tpu.dot_dimension_numbers<[1], [0], [0], [1], [0, 0, 1, 1], [], []>} : vector<18x32xf32>, vector<32x32xf32>, vector<18x32xf32> -> vector<18x32xf32>
    %500 = vector.extract_strided_slice %491 {offsets = [1, 0], sizes = [18, 32], strides = [1, 1]} : vector<20x32xf32> to vector<18x32xf32>
    %501 = vector.extract_strided_slice %495 {offsets = [32, 0], sizes = [32, 32], strides = [1, 1]} : vector<96x32xf32> to vector<32x32xf32>
    %cst_158 = arith.constant dense<0.000000e+00> : vector<18x32xf32>
    %502 = tpu.matmul %500, %501, %cst_158 {dimension_numbers = #tpu.dot_dimension_numbers<[1], [0], [0], [1], [0, 0, 1, 1], [], []>} : vector<18x32xf32>, vector<32x32xf32>, vector<18x32xf32> -> vector<18x32xf32>
    %503 = arith.addf %499, %502 : vector<18x32xf32>
    %504 = vector.extract_strided_slice %491 {offsets = [2, 0], sizes = [18, 32], strides = [1, 1]} : vector<20x32xf32> to vector<18x32xf32>
    %505 = vector.extract_strided_slice %495 {offsets = [64, 0], sizes = [32, 32], strides = [1, 1]} : vector<96x32xf32> to vector<32x32xf32>
    %cst_159 = arith.constant dense<0.000000e+00> : vector<18x32xf32>
    %506 = tpu.matmul %504, %505, %cst_159 {dimension_numbers = #tpu.dot_dimension_numbers<[1], [0], [0], [1], [0, 0, 1, 1], [], []>} : vector<18x32xf32>, vector<32x32xf32>, vector<18x32xf32> -> vector<18x32xf32>
    %507 = arith.addf %503, %506 : vector<18x32xf32>
    %508 = vector.extract_strided_slice %494 {offsets = [0, 0], sizes = [18, 32], strides = [1, 1]} : vector<20x32xf32> to vector<18x32xf32>
    %509 = vector.extract_strided_slice %495 {offsets = [0, 0], sizes = [32, 32], strides = [1, 1]} : vector<96x32xf32> to vector<32x32xf32>
    %cst_160 = arith.constant dense<0.000000e+00> : vector<18x32xf32>
    %510 = tpu.matmul %508, %509, %cst_160 {dimension_numbers = #tpu.dot_dimension_numbers<[1], [0], [0], [1], [0, 0, 1, 1], [], []>} : vector<18x32xf32>, vector<32x32xf32>, vector<18x32xf32> -> vector<18x32xf32>
    %511 = vector.extract_strided_slice %494 {offsets = [1, 0], sizes = [18, 32], strides = [1, 1]} : vector<20x32xf32> to vector<18x32xf32>
    %512 = vector.extract_strided_slice %495 {offsets = [32, 0], sizes = [32, 32], strides = [1, 1]} : vector<96x32xf32> to vector<32x32xf32>
    %cst_161 = arith.constant dense<0.000000e+00> : vector<18x32xf32>
    %513 = tpu.matmul %511, %512, %cst_161 {dimension_numbers = #tpu.dot_dimension_numbers<[1], [0], [0], [1], [0, 0, 1, 1], [], []>} : vector<18x32xf32>, vector<32x32xf32>, vector<18x32xf32> -> vector<18x32xf32>
    %514 = arith.addf %510, %513 : vector<18x32xf32>
    %515 = vector.extract_strided_slice %494 {offsets = [2, 0], sizes = [18, 32], strides = [1, 1]} : vector<20x32xf32> to vector<18x32xf32>
    %516 = vector.extract_strided_slice %495 {offsets = [64, 0], sizes = [32, 32], strides = [1, 1]} : vector<96x32xf32> to vector<32x32xf32>
    %cst_162 = arith.constant dense<0.000000e+00> : vector<18x32xf32>
    %517 = tpu.matmul %515, %516, %cst_162 {dimension_numbers = #tpu.dot_dimension_numbers<[1], [0], [0], [1], [0, 0, 1, 1], [], []>} : vector<18x32xf32>, vector<32x32xf32>, vector<18x32xf32> -> vector<18x32xf32>
    %518 = arith.addf %514, %517 : vector<18x32xf32>
    %519 = vector.extract_strided_slice %491 {offsets = [1, 0], sizes = [18, 32], strides = [1, 1]} : vector<20x32xf32> to vector<18x32xf32>
    %520 = vector.extract_strided_slice %494 {offsets = [1, 0], sizes = [18, 32], strides = [1, 1]} : vector<20x32xf32> to vector<18x32xf32>
    %521 = vector.broadcast %496 : vector<1x32xf32> to vector<18x32xf32>
    %522 = arith.addf %507, %521 : vector<18x32xf32>
    %cst_163 = arith.constant 0.000000e+00 : f32
    %523 = vector.broadcast %cst_163 : f32 to vector<18x32xf32>
    %524 = arith.maximumf %522, %523 : vector<18x32xf32>
    %525 = vector.broadcast %496 : vector<1x32xf32> to vector<18x32xf32>
    %526 = arith.addf %518, %525 : vector<18x32xf32>
    %cst_164 = arith.constant 0.000000e+00 : f32
    %527 = vector.broadcast %cst_164 : f32 to vector<18x32xf32>
    %528 = arith.maximumf %526, %527 : vector<18x32xf32>
    %cst_165 = arith.constant dense<0.000000e+00> : vector<32xf32>
    %529 = vector.multi_reduction <add>, %524, %cst_165 [0] : vector<18x32xf32> to vector<32xf32>
    %530 = vector.shape_cast %529 : vector<32xf32> to vector<1x32xf32>
    %531 = arith.mulf %524, %524 : vector<18x32xf32>
    %cst_166 = arith.constant dense<0.000000e+00> : vector<32xf32>
    %532 = vector.multi_reduction <add>, %531, %cst_166 [0] : vector<18x32xf32> to vector<32xf32>
    %533 = vector.shape_cast %532 : vector<32xf32> to vector<1x32xf32>
    %cst_167 = arith.constant dense<0.000000e+00> : vector<32xf32>
    %534 = vector.multi_reduction <add>, %528, %cst_167 [0] : vector<18x32xf32> to vector<32xf32>
    %535 = vector.shape_cast %534 : vector<32xf32> to vector<1x32xf32>
    %536 = arith.addf %530, %535 : vector<1x32xf32>
    %537 = arith.mulf %528, %528 : vector<18x32xf32>
    %cst_168 = arith.constant dense<0.000000e+00> : vector<32xf32>
    %538 = vector.multi_reduction <add>, %537, %cst_168 [0] : vector<18x32xf32> to vector<32xf32>
    %539 = vector.shape_cast %538 : vector<32xf32> to vector<1x32xf32>
    %540 = arith.addf %533, %539 : vector<1x32xf32>
    %cst_169 = arith.constant 0.027777778 : f32
    %541 = vector.broadcast %cst_169 : f32 to vector<1x32xf32>
    %542 = arith.mulf %536, %541 : vector<1x32xf32>
    %cst_170 = arith.constant 0.027777778 : f32
    %543 = vector.broadcast %cst_170 : f32 to vector<1x32xf32>
    %544 = arith.mulf %540, %543 : vector<1x32xf32>
    %545 = arith.mulf %542, %542 : vector<1x32xf32>
    %546 = arith.subf %544, %545 : vector<1x32xf32>
    %cst_171 = arith.constant 9.99999974E-6 : f32
    %547 = vector.broadcast %cst_171 : f32 to vector<1x32xf32>
    %548 = arith.addf %546, %547 : vector<1x32xf32>
    %549 = math.rsqrt %548 : vector<1x32xf32>
    %550 = vector.broadcast %542 : vector<1x32xf32> to vector<18x32xf32>
    %551 = arith.subf %524, %550 : vector<18x32xf32>
    %552 = vector.broadcast %549 : vector<1x32xf32> to vector<18x32xf32>
    %553 = arith.mulf %551, %552 : vector<18x32xf32>
    %554 = vector.broadcast %542 : vector<1x32xf32> to vector<18x32xf32>
    %555 = arith.subf %528, %554 : vector<18x32xf32>
    %556 = vector.broadcast %549 : vector<1x32xf32> to vector<18x32xf32>
    %557 = arith.mulf %555, %556 : vector<18x32xf32>
    %cst_172 = arith.constant 6.600000e-01 : f32
    %558 = vector.broadcast %cst_172 : f32 to vector<18x32xf32>
    %559 = arith.mulf %558, %519 : vector<18x32xf32>
    %560 = arith.addf %559, %553 : vector<18x32xf32>
    %cst_173 = arith.constant 6.600000e-01 : f32
    %561 = vector.broadcast %cst_173 : f32 to vector<18x32xf32>
    %562 = arith.mulf %561, %520 : vector<18x32xf32>
    %563 = arith.addf %562, %557 : vector<18x32xf32>
    %c0_174 = arith.constant 0 : index
    %c0_175 = arith.constant 0 : index
    %564 = vector.load %arg17[%c0_174, %c0_175] : memref<96x32xf32, #tpu.memory_space<vmem>>, vector<96x32xf32>
    %c0_176 = arith.constant 0 : index
    %c0_177 = arith.constant 0 : index
    %565 = vector.load %arg18[%c0_176, %c0_177] : memref<1x32xf32, #tpu.memory_space<vmem>>, vector<1x32xf32>
    %566 = vector.extract_strided_slice %560 {offsets = [0, 0], sizes = [16, 32], strides = [1, 1]} : vector<18x32xf32> to vector<16x32xf32>
    %567 = vector.extract_strided_slice %564 {offsets = [0, 0], sizes = [32, 32], strides = [1, 1]} : vector<96x32xf32> to vector<32x32xf32>
    %cst_178 = arith.constant dense<0.000000e+00> : vector<16x32xf32>
    %568 = tpu.matmul %566, %567, %cst_178 {dimension_numbers = #tpu.dot_dimension_numbers<[1], [0], [0], [1], [0, 0, 1, 1], [], []>} : vector<16x32xf32>, vector<32x32xf32>, vector<16x32xf32> -> vector<16x32xf32>
    %569 = vector.extract_strided_slice %560 {offsets = [1, 0], sizes = [16, 32], strides = [1, 1]} : vector<18x32xf32> to vector<16x32xf32>
    %570 = vector.extract_strided_slice %564 {offsets = [32, 0], sizes = [32, 32], strides = [1, 1]} : vector<96x32xf32> to vector<32x32xf32>
    %cst_179 = arith.constant dense<0.000000e+00> : vector<16x32xf32>
    %571 = tpu.matmul %569, %570, %cst_179 {dimension_numbers = #tpu.dot_dimension_numbers<[1], [0], [0], [1], [0, 0, 1, 1], [], []>} : vector<16x32xf32>, vector<32x32xf32>, vector<16x32xf32> -> vector<16x32xf32>
    %572 = arith.addf %568, %571 : vector<16x32xf32>
    %573 = vector.extract_strided_slice %560 {offsets = [2, 0], sizes = [16, 32], strides = [1, 1]} : vector<18x32xf32> to vector<16x32xf32>
    %574 = vector.extract_strided_slice %564 {offsets = [64, 0], sizes = [32, 32], strides = [1, 1]} : vector<96x32xf32> to vector<32x32xf32>
    %cst_180 = arith.constant dense<0.000000e+00> : vector<16x32xf32>
    %575 = tpu.matmul %573, %574, %cst_180 {dimension_numbers = #tpu.dot_dimension_numbers<[1], [0], [0], [1], [0, 0, 1, 1], [], []>} : vector<16x32xf32>, vector<32x32xf32>, vector<16x32xf32> -> vector<16x32xf32>
    %576 = arith.addf %572, %575 : vector<16x32xf32>
    %577 = vector.extract_strided_slice %563 {offsets = [0, 0], sizes = [16, 32], strides = [1, 1]} : vector<18x32xf32> to vector<16x32xf32>
    %578 = vector.extract_strided_slice %564 {offsets = [0, 0], sizes = [32, 32], strides = [1, 1]} : vector<96x32xf32> to vector<32x32xf32>
    %cst_181 = arith.constant dense<0.000000e+00> : vector<16x32xf32>
    %579 = tpu.matmul %577, %578, %cst_181 {dimension_numbers = #tpu.dot_dimension_numbers<[1], [0], [0], [1], [0, 0, 1, 1], [], []>} : vector<16x32xf32>, vector<32x32xf32>, vector<16x32xf32> -> vector<16x32xf32>
    %580 = vector.extract_strided_slice %563 {offsets = [1, 0], sizes = [16, 32], strides = [1, 1]} : vector<18x32xf32> to vector<16x32xf32>
    %581 = vector.extract_strided_slice %564 {offsets = [32, 0], sizes = [32, 32], strides = [1, 1]} : vector<96x32xf32> to vector<32x32xf32>
    %cst_182 = arith.constant dense<0.000000e+00> : vector<16x32xf32>
    %582 = tpu.matmul %580, %581, %cst_182 {dimension_numbers = #tpu.dot_dimension_numbers<[1], [0], [0], [1], [0, 0, 1, 1], [], []>} : vector<16x32xf32>, vector<32x32xf32>, vector<16x32xf32> -> vector<16x32xf32>
    %583 = arith.addf %579, %582 : vector<16x32xf32>
    %584 = vector.extract_strided_slice %563 {offsets = [2, 0], sizes = [16, 32], strides = [1, 1]} : vector<18x32xf32> to vector<16x32xf32>
    %585 = vector.extract_strided_slice %564 {offsets = [64, 0], sizes = [32, 32], strides = [1, 1]} : vector<96x32xf32> to vector<32x32xf32>
    %cst_183 = arith.constant dense<0.000000e+00> : vector<16x32xf32>
    %586 = tpu.matmul %584, %585, %cst_183 {dimension_numbers = #tpu.dot_dimension_numbers<[1], [0], [0], [1], [0, 0, 1, 1], [], []>} : vector<16x32xf32>, vector<32x32xf32>, vector<16x32xf32> -> vector<16x32xf32>
    %587 = arith.addf %583, %586 : vector<16x32xf32>
    %588 = vector.extract_strided_slice %560 {offsets = [1, 0], sizes = [16, 32], strides = [1, 1]} : vector<18x32xf32> to vector<16x32xf32>
    %589 = vector.extract_strided_slice %563 {offsets = [1, 0], sizes = [16, 32], strides = [1, 1]} : vector<18x32xf32> to vector<16x32xf32>
    %590 = vector.broadcast %565 : vector<1x32xf32> to vector<16x32xf32>
    %591 = arith.addf %576, %590 : vector<16x32xf32>
    %cst_184 = arith.constant 0.000000e+00 : f32
    %592 = vector.broadcast %cst_184 : f32 to vector<16x32xf32>
    %593 = arith.maximumf %591, %592 : vector<16x32xf32>
    %594 = vector.broadcast %565 : vector<1x32xf32> to vector<16x32xf32>
    %595 = arith.addf %587, %594 : vector<16x32xf32>
    %cst_185 = arith.constant 0.000000e+00 : f32
    %596 = vector.broadcast %cst_185 : f32 to vector<16x32xf32>
    %597 = arith.maximumf %595, %596 : vector<16x32xf32>
    %cst_186 = arith.constant dense<0.000000e+00> : vector<32xf32>
    %598 = vector.multi_reduction <add>, %593, %cst_186 [0] : vector<16x32xf32> to vector<32xf32>
    %599 = vector.shape_cast %598 : vector<32xf32> to vector<1x32xf32>
    %600 = arith.mulf %593, %593 : vector<16x32xf32>
    %cst_187 = arith.constant dense<0.000000e+00> : vector<32xf32>
    %601 = vector.multi_reduction <add>, %600, %cst_187 [0] : vector<16x32xf32> to vector<32xf32>
    %602 = vector.shape_cast %601 : vector<32xf32> to vector<1x32xf32>
    %cst_188 = arith.constant dense<0.000000e+00> : vector<32xf32>
    %603 = vector.multi_reduction <add>, %597, %cst_188 [0] : vector<16x32xf32> to vector<32xf32>
    %604 = vector.shape_cast %603 : vector<32xf32> to vector<1x32xf32>
    %605 = arith.addf %599, %604 : vector<1x32xf32>
    %606 = arith.mulf %597, %597 : vector<16x32xf32>
    %cst_189 = arith.constant dense<0.000000e+00> : vector<32xf32>
    %607 = vector.multi_reduction <add>, %606, %cst_189 [0] : vector<16x32xf32> to vector<32xf32>
    %608 = vector.shape_cast %607 : vector<32xf32> to vector<1x32xf32>
    %609 = arith.addf %602, %608 : vector<1x32xf32>
    %cst_190 = arith.constant 3.125000e-02 : f32
    %610 = vector.broadcast %cst_190 : f32 to vector<1x32xf32>
    %611 = arith.mulf %605, %610 : vector<1x32xf32>
    %cst_191 = arith.constant 3.125000e-02 : f32
    %612 = vector.broadcast %cst_191 : f32 to vector<1x32xf32>
    %613 = arith.mulf %609, %612 : vector<1x32xf32>
    %614 = arith.mulf %611, %611 : vector<1x32xf32>
    %615 = arith.subf %613, %614 : vector<1x32xf32>
    %cst_192 = arith.constant 9.99999974E-6 : f32
    %616 = vector.broadcast %cst_192 : f32 to vector<1x32xf32>
    %617 = arith.addf %615, %616 : vector<1x32xf32>
    %618 = math.rsqrt %617 : vector<1x32xf32>
    %619 = vector.broadcast %611 : vector<1x32xf32> to vector<16x32xf32>
    %620 = arith.subf %593, %619 : vector<16x32xf32>
    %621 = vector.broadcast %618 : vector<1x32xf32> to vector<16x32xf32>
    %622 = arith.mulf %620, %621 : vector<16x32xf32>
    %623 = vector.broadcast %611 : vector<1x32xf32> to vector<16x32xf32>
    %624 = arith.subf %597, %623 : vector<16x32xf32>
    %625 = vector.broadcast %618 : vector<1x32xf32> to vector<16x32xf32>
    %626 = arith.mulf %624, %625 : vector<16x32xf32>
    %cst_193 = arith.constant 6.600000e-01 : f32
    %627 = vector.broadcast %cst_193 : f32 to vector<16x32xf32>
    %628 = arith.mulf %627, %588 : vector<16x32xf32>
    %629 = arith.addf %628, %622 : vector<16x32xf32>
    %cst_194 = arith.constant 6.600000e-01 : f32
    %630 = vector.broadcast %cst_194 : f32 to vector<16x32xf32>
    %631 = arith.mulf %630, %589 : vector<16x32xf32>
    %632 = arith.addf %631, %626 : vector<16x32xf32>
    %c0_195 = arith.constant 0 : index
    %c0_196 = arith.constant 0 : index
    %633 = vector.load %arg19[%c0_195, %c0_196] : memref<96x32xf32, #tpu.memory_space<vmem>>, vector<96x32xf32>
    %c0_197 = arith.constant 0 : index
    %c0_198 = arith.constant 0 : index
    %634 = vector.load %arg20[%c0_197, %c0_198] : memref<1x32xf32, #tpu.memory_space<vmem>>, vector<1x32xf32>
    %635 = vector.extract_strided_slice %629 {offsets = [0, 0], sizes = [14, 32], strides = [1, 1]} : vector<16x32xf32> to vector<14x32xf32>
    %636 = vector.extract_strided_slice %633 {offsets = [0, 0], sizes = [32, 32], strides = [1, 1]} : vector<96x32xf32> to vector<32x32xf32>
    %cst_199 = arith.constant dense<0.000000e+00> : vector<14x32xf32>
    %637 = tpu.matmul %635, %636, %cst_199 {dimension_numbers = #tpu.dot_dimension_numbers<[1], [0], [0], [1], [0, 0, 1, 1], [], []>} : vector<14x32xf32>, vector<32x32xf32>, vector<14x32xf32> -> vector<14x32xf32>
    %638 = vector.extract_strided_slice %629 {offsets = [1, 0], sizes = [14, 32], strides = [1, 1]} : vector<16x32xf32> to vector<14x32xf32>
    %639 = vector.extract_strided_slice %633 {offsets = [32, 0], sizes = [32, 32], strides = [1, 1]} : vector<96x32xf32> to vector<32x32xf32>
    %cst_200 = arith.constant dense<0.000000e+00> : vector<14x32xf32>
    %640 = tpu.matmul %638, %639, %cst_200 {dimension_numbers = #tpu.dot_dimension_numbers<[1], [0], [0], [1], [0, 0, 1, 1], [], []>} : vector<14x32xf32>, vector<32x32xf32>, vector<14x32xf32> -> vector<14x32xf32>
    %641 = arith.addf %637, %640 : vector<14x32xf32>
    %642 = vector.extract_strided_slice %629 {offsets = [2, 0], sizes = [14, 32], strides = [1, 1]} : vector<16x32xf32> to vector<14x32xf32>
    %643 = vector.extract_strided_slice %633 {offsets = [64, 0], sizes = [32, 32], strides = [1, 1]} : vector<96x32xf32> to vector<32x32xf32>
    %cst_201 = arith.constant dense<0.000000e+00> : vector<14x32xf32>
    %644 = tpu.matmul %642, %643, %cst_201 {dimension_numbers = #tpu.dot_dimension_numbers<[1], [0], [0], [1], [0, 0, 1, 1], [], []>} : vector<14x32xf32>, vector<32x32xf32>, vector<14x32xf32> -> vector<14x32xf32>
    %645 = arith.addf %641, %644 : vector<14x32xf32>
    %646 = vector.extract_strided_slice %632 {offsets = [0, 0], sizes = [14, 32], strides = [1, 1]} : vector<16x32xf32> to vector<14x32xf32>
    %647 = vector.extract_strided_slice %633 {offsets = [0, 0], sizes = [32, 32], strides = [1, 1]} : vector<96x32xf32> to vector<32x32xf32>
    %cst_202 = arith.constant dense<0.000000e+00> : vector<14x32xf32>
    %648 = tpu.matmul %646, %647, %cst_202 {dimension_numbers = #tpu.dot_dimension_numbers<[1], [0], [0], [1], [0, 0, 1, 1], [], []>} : vector<14x32xf32>, vector<32x32xf32>, vector<14x32xf32> -> vector<14x32xf32>
    %649 = vector.extract_strided_slice %632 {offsets = [1, 0], sizes = [14, 32], strides = [1, 1]} : vector<16x32xf32> to vector<14x32xf32>
    %650 = vector.extract_strided_slice %633 {offsets = [32, 0], sizes = [32, 32], strides = [1, 1]} : vector<96x32xf32> to vector<32x32xf32>
    %cst_203 = arith.constant dense<0.000000e+00> : vector<14x32xf32>
    %651 = tpu.matmul %649, %650, %cst_203 {dimension_numbers = #tpu.dot_dimension_numbers<[1], [0], [0], [1], [0, 0, 1, 1], [], []>} : vector<14x32xf32>, vector<32x32xf32>, vector<14x32xf32> -> vector<14x32xf32>
    %652 = arith.addf %648, %651 : vector<14x32xf32>
    %653 = vector.extract_strided_slice %632 {offsets = [2, 0], sizes = [14, 32], strides = [1, 1]} : vector<16x32xf32> to vector<14x32xf32>
    %654 = vector.extract_strided_slice %633 {offsets = [64, 0], sizes = [32, 32], strides = [1, 1]} : vector<96x32xf32> to vector<32x32xf32>
    %cst_204 = arith.constant dense<0.000000e+00> : vector<14x32xf32>
    %655 = tpu.matmul %653, %654, %cst_204 {dimension_numbers = #tpu.dot_dimension_numbers<[1], [0], [0], [1], [0, 0, 1, 1], [], []>} : vector<14x32xf32>, vector<32x32xf32>, vector<14x32xf32> -> vector<14x32xf32>
    %656 = arith.addf %652, %655 : vector<14x32xf32>
    %657 = vector.extract_strided_slice %629 {offsets = [1, 0], sizes = [14, 32], strides = [1, 1]} : vector<16x32xf32> to vector<14x32xf32>
    %658 = vector.extract_strided_slice %632 {offsets = [1, 0], sizes = [14, 32], strides = [1, 1]} : vector<16x32xf32> to vector<14x32xf32>
    %659 = vector.broadcast %634 : vector<1x32xf32> to vector<14x32xf32>
    %660 = arith.addf %645, %659 : vector<14x32xf32>
    %cst_205 = arith.constant 0.000000e+00 : f32
    %661 = vector.broadcast %cst_205 : f32 to vector<14x32xf32>
    %662 = arith.maximumf %660, %661 : vector<14x32xf32>
    %663 = vector.broadcast %634 : vector<1x32xf32> to vector<14x32xf32>
    %664 = arith.addf %656, %663 : vector<14x32xf32>
    %cst_206 = arith.constant 0.000000e+00 : f32
    %665 = vector.broadcast %cst_206 : f32 to vector<14x32xf32>
    %666 = arith.maximumf %664, %665 : vector<14x32xf32>
    %cst_207 = arith.constant dense<0.000000e+00> : vector<32xf32>
    %667 = vector.multi_reduction <add>, %662, %cst_207 [0] : vector<14x32xf32> to vector<32xf32>
    %668 = vector.shape_cast %667 : vector<32xf32> to vector<1x32xf32>
    %669 = arith.mulf %662, %662 : vector<14x32xf32>
    %cst_208 = arith.constant dense<0.000000e+00> : vector<32xf32>
    %670 = vector.multi_reduction <add>, %669, %cst_208 [0] : vector<14x32xf32> to vector<32xf32>
    %671 = vector.shape_cast %670 : vector<32xf32> to vector<1x32xf32>
    %cst_209 = arith.constant dense<0.000000e+00> : vector<32xf32>
    %672 = vector.multi_reduction <add>, %666, %cst_209 [0] : vector<14x32xf32> to vector<32xf32>
    %673 = vector.shape_cast %672 : vector<32xf32> to vector<1x32xf32>
    %674 = arith.addf %668, %673 : vector<1x32xf32>
    %675 = arith.mulf %666, %666 : vector<14x32xf32>
    %cst_210 = arith.constant dense<0.000000e+00> : vector<32xf32>
    %676 = vector.multi_reduction <add>, %675, %cst_210 [0] : vector<14x32xf32> to vector<32xf32>
    %677 = vector.shape_cast %676 : vector<32xf32> to vector<1x32xf32>
    %678 = arith.addf %671, %677 : vector<1x32xf32>
    %cst_211 = arith.constant 0.0357142873 : f32
    %679 = vector.broadcast %cst_211 : f32 to vector<1x32xf32>
    %680 = arith.mulf %674, %679 : vector<1x32xf32>
    %cst_212 = arith.constant 0.0357142873 : f32
    %681 = vector.broadcast %cst_212 : f32 to vector<1x32xf32>
    %682 = arith.mulf %678, %681 : vector<1x32xf32>
    %683 = arith.mulf %680, %680 : vector<1x32xf32>
    %684 = arith.subf %682, %683 : vector<1x32xf32>
    %cst_213 = arith.constant 9.99999974E-6 : f32
    %685 = vector.broadcast %cst_213 : f32 to vector<1x32xf32>
    %686 = arith.addf %684, %685 : vector<1x32xf32>
    %687 = math.rsqrt %686 : vector<1x32xf32>
    %688 = vector.broadcast %680 : vector<1x32xf32> to vector<14x32xf32>
    %689 = arith.subf %662, %688 : vector<14x32xf32>
    %690 = vector.broadcast %687 : vector<1x32xf32> to vector<14x32xf32>
    %691 = arith.mulf %689, %690 : vector<14x32xf32>
    %692 = vector.broadcast %680 : vector<1x32xf32> to vector<14x32xf32>
    %693 = arith.subf %666, %692 : vector<14x32xf32>
    %694 = vector.broadcast %687 : vector<1x32xf32> to vector<14x32xf32>
    %695 = arith.mulf %693, %694 : vector<14x32xf32>
    %cst_214 = arith.constant 6.600000e-01 : f32
    %696 = vector.broadcast %cst_214 : f32 to vector<14x32xf32>
    %697 = arith.mulf %696, %657 : vector<14x32xf32>
    %698 = arith.addf %697, %691 : vector<14x32xf32>
    %cst_215 = arith.constant 6.600000e-01 : f32
    %699 = vector.broadcast %cst_215 : f32 to vector<14x32xf32>
    %700 = arith.mulf %699, %658 : vector<14x32xf32>
    %701 = arith.addf %700, %695 : vector<14x32xf32>
    %c0_216 = arith.constant 0 : index
    %c0_217 = arith.constant 0 : index
    %702 = vector.load %arg21[%c0_216, %c0_217] : memref<96x32xf32, #tpu.memory_space<vmem>>, vector<96x32xf32>
    %c0_218 = arith.constant 0 : index
    %c0_219 = arith.constant 0 : index
    %703 = vector.load %arg22[%c0_218, %c0_219] : memref<1x32xf32, #tpu.memory_space<vmem>>, vector<1x32xf32>
    %704 = vector.extract_strided_slice %698 {offsets = [0, 0], sizes = [12, 32], strides = [1, 1]} : vector<14x32xf32> to vector<12x32xf32>
    %705 = vector.extract_strided_slice %702 {offsets = [0, 0], sizes = [32, 32], strides = [1, 1]} : vector<96x32xf32> to vector<32x32xf32>
    %cst_220 = arith.constant dense<0.000000e+00> : vector<12x32xf32>
    %706 = tpu.matmul %704, %705, %cst_220 {dimension_numbers = #tpu.dot_dimension_numbers<[1], [0], [0], [1], [0, 0, 1, 1], [], []>} : vector<12x32xf32>, vector<32x32xf32>, vector<12x32xf32> -> vector<12x32xf32>
    %707 = vector.extract_strided_slice %698 {offsets = [1, 0], sizes = [12, 32], strides = [1, 1]} : vector<14x32xf32> to vector<12x32xf32>
    %708 = vector.extract_strided_slice %702 {offsets = [32, 0], sizes = [32, 32], strides = [1, 1]} : vector<96x32xf32> to vector<32x32xf32>
    %cst_221 = arith.constant dense<0.000000e+00> : vector<12x32xf32>
    %709 = tpu.matmul %707, %708, %cst_221 {dimension_numbers = #tpu.dot_dimension_numbers<[1], [0], [0], [1], [0, 0, 1, 1], [], []>} : vector<12x32xf32>, vector<32x32xf32>, vector<12x32xf32> -> vector<12x32xf32>
    %710 = arith.addf %706, %709 : vector<12x32xf32>
    %711 = vector.extract_strided_slice %698 {offsets = [2, 0], sizes = [12, 32], strides = [1, 1]} : vector<14x32xf32> to vector<12x32xf32>
    %712 = vector.extract_strided_slice %702 {offsets = [64, 0], sizes = [32, 32], strides = [1, 1]} : vector<96x32xf32> to vector<32x32xf32>
    %cst_222 = arith.constant dense<0.000000e+00> : vector<12x32xf32>
    %713 = tpu.matmul %711, %712, %cst_222 {dimension_numbers = #tpu.dot_dimension_numbers<[1], [0], [0], [1], [0, 0, 1, 1], [], []>} : vector<12x32xf32>, vector<32x32xf32>, vector<12x32xf32> -> vector<12x32xf32>
    %714 = arith.addf %710, %713 : vector<12x32xf32>
    %715 = vector.extract_strided_slice %701 {offsets = [0, 0], sizes = [12, 32], strides = [1, 1]} : vector<14x32xf32> to vector<12x32xf32>
    %716 = vector.extract_strided_slice %702 {offsets = [0, 0], sizes = [32, 32], strides = [1, 1]} : vector<96x32xf32> to vector<32x32xf32>
    %cst_223 = arith.constant dense<0.000000e+00> : vector<12x32xf32>
    %717 = tpu.matmul %715, %716, %cst_223 {dimension_numbers = #tpu.dot_dimension_numbers<[1], [0], [0], [1], [0, 0, 1, 1], [], []>} : vector<12x32xf32>, vector<32x32xf32>, vector<12x32xf32> -> vector<12x32xf32>
    %718 = vector.extract_strided_slice %701 {offsets = [1, 0], sizes = [12, 32], strides = [1, 1]} : vector<14x32xf32> to vector<12x32xf32>
    %719 = vector.extract_strided_slice %702 {offsets = [32, 0], sizes = [32, 32], strides = [1, 1]} : vector<96x32xf32> to vector<32x32xf32>
    %cst_224 = arith.constant dense<0.000000e+00> : vector<12x32xf32>
    %720 = tpu.matmul %718, %719, %cst_224 {dimension_numbers = #tpu.dot_dimension_numbers<[1], [0], [0], [1], [0, 0, 1, 1], [], []>} : vector<12x32xf32>, vector<32x32xf32>, vector<12x32xf32> -> vector<12x32xf32>
    %721 = arith.addf %717, %720 : vector<12x32xf32>
    %722 = vector.extract_strided_slice %701 {offsets = [2, 0], sizes = [12, 32], strides = [1, 1]} : vector<14x32xf32> to vector<12x32xf32>
    %723 = vector.extract_strided_slice %702 {offsets = [64, 0], sizes = [32, 32], strides = [1, 1]} : vector<96x32xf32> to vector<32x32xf32>
    %cst_225 = arith.constant dense<0.000000e+00> : vector<12x32xf32>
    %724 = tpu.matmul %722, %723, %cst_225 {dimension_numbers = #tpu.dot_dimension_numbers<[1], [0], [0], [1], [0, 0, 1, 1], [], []>} : vector<12x32xf32>, vector<32x32xf32>, vector<12x32xf32> -> vector<12x32xf32>
    %725 = arith.addf %721, %724 : vector<12x32xf32>
    %726 = vector.extract_strided_slice %698 {offsets = [1, 0], sizes = [12, 32], strides = [1, 1]} : vector<14x32xf32> to vector<12x32xf32>
    %727 = vector.extract_strided_slice %701 {offsets = [1, 0], sizes = [12, 32], strides = [1, 1]} : vector<14x32xf32> to vector<12x32xf32>
    %728 = vector.broadcast %703 : vector<1x32xf32> to vector<12x32xf32>
    %729 = arith.addf %714, %728 : vector<12x32xf32>
    %cst_226 = arith.constant 0.000000e+00 : f32
    %730 = vector.broadcast %cst_226 : f32 to vector<12x32xf32>
    %731 = arith.maximumf %729, %730 : vector<12x32xf32>
    %732 = vector.broadcast %703 : vector<1x32xf32> to vector<12x32xf32>
    %733 = arith.addf %725, %732 : vector<12x32xf32>
    %cst_227 = arith.constant 0.000000e+00 : f32
    %734 = vector.broadcast %cst_227 : f32 to vector<12x32xf32>
    %735 = arith.maximumf %733, %734 : vector<12x32xf32>
    %cst_228 = arith.constant dense<0.000000e+00> : vector<32xf32>
    %736 = vector.multi_reduction <add>, %731, %cst_228 [0] : vector<12x32xf32> to vector<32xf32>
    %737 = vector.shape_cast %736 : vector<32xf32> to vector<1x32xf32>
    %738 = arith.mulf %731, %731 : vector<12x32xf32>
    %cst_229 = arith.constant dense<0.000000e+00> : vector<32xf32>
    %739 = vector.multi_reduction <add>, %738, %cst_229 [0] : vector<12x32xf32> to vector<32xf32>
    %740 = vector.shape_cast %739 : vector<32xf32> to vector<1x32xf32>
    %cst_230 = arith.constant dense<0.000000e+00> : vector<32xf32>
    %741 = vector.multi_reduction <add>, %735, %cst_230 [0] : vector<12x32xf32> to vector<32xf32>
    %742 = vector.shape_cast %741 : vector<32xf32> to vector<1x32xf32>
    %743 = arith.addf %737, %742 : vector<1x32xf32>
    %744 = arith.mulf %735, %735 : vector<12x32xf32>
    %cst_231 = arith.constant dense<0.000000e+00> : vector<32xf32>
    %745 = vector.multi_reduction <add>, %744, %cst_231 [0] : vector<12x32xf32> to vector<32xf32>
    %746 = vector.shape_cast %745 : vector<32xf32> to vector<1x32xf32>
    %747 = arith.addf %740, %746 : vector<1x32xf32>
    %cst_232 = arith.constant 0.0416666679 : f32
    %748 = vector.broadcast %cst_232 : f32 to vector<1x32xf32>
    %749 = arith.mulf %743, %748 : vector<1x32xf32>
    %cst_233 = arith.constant 0.0416666679 : f32
    %750 = vector.broadcast %cst_233 : f32 to vector<1x32xf32>
    %751 = arith.mulf %747, %750 : vector<1x32xf32>
    %752 = arith.mulf %749, %749 : vector<1x32xf32>
    %753 = arith.subf %751, %752 : vector<1x32xf32>
    %cst_234 = arith.constant 9.99999974E-6 : f32
    %754 = vector.broadcast %cst_234 : f32 to vector<1x32xf32>
    %755 = arith.addf %753, %754 : vector<1x32xf32>
    %756 = math.rsqrt %755 : vector<1x32xf32>
    %757 = vector.broadcast %749 : vector<1x32xf32> to vector<12x32xf32>
    %758 = arith.subf %731, %757 : vector<12x32xf32>
    %759 = vector.broadcast %756 : vector<1x32xf32> to vector<12x32xf32>
    %760 = arith.mulf %758, %759 : vector<12x32xf32>
    %761 = vector.broadcast %749 : vector<1x32xf32> to vector<12x32xf32>
    %762 = arith.subf %735, %761 : vector<12x32xf32>
    %763 = vector.broadcast %756 : vector<1x32xf32> to vector<12x32xf32>
    %764 = arith.mulf %762, %763 : vector<12x32xf32>
    %cst_235 = arith.constant 6.600000e-01 : f32
    %765 = vector.broadcast %cst_235 : f32 to vector<12x32xf32>
    %766 = arith.mulf %765, %726 : vector<12x32xf32>
    %767 = arith.addf %766, %760 : vector<12x32xf32>
    %cst_236 = arith.constant 6.600000e-01 : f32
    %768 = vector.broadcast %cst_236 : f32 to vector<12x32xf32>
    %769 = arith.mulf %768, %727 : vector<12x32xf32>
    %770 = arith.addf %769, %764 : vector<12x32xf32>
    %c0_237 = arith.constant 0 : index
    %c0_238 = arith.constant 0 : index
    %771 = vector.load %arg23[%c0_237, %c0_238] : memref<96x32xf32, #tpu.memory_space<vmem>>, vector<96x32xf32>
    %c0_239 = arith.constant 0 : index
    %c0_240 = arith.constant 0 : index
    %772 = vector.load %arg24[%c0_239, %c0_240] : memref<1x32xf32, #tpu.memory_space<vmem>>, vector<1x32xf32>
    %773 = vector.extract_strided_slice %767 {offsets = [0, 0], sizes = [10, 32], strides = [1, 1]} : vector<12x32xf32> to vector<10x32xf32>
    %774 = vector.extract_strided_slice %771 {offsets = [0, 0], sizes = [32, 32], strides = [1, 1]} : vector<96x32xf32> to vector<32x32xf32>
    %cst_241 = arith.constant dense<0.000000e+00> : vector<10x32xf32>
    %775 = tpu.matmul %773, %774, %cst_241 {dimension_numbers = #tpu.dot_dimension_numbers<[1], [0], [0], [1], [0, 0, 1, 1], [], []>} : vector<10x32xf32>, vector<32x32xf32>, vector<10x32xf32> -> vector<10x32xf32>
    %776 = vector.extract_strided_slice %767 {offsets = [1, 0], sizes = [10, 32], strides = [1, 1]} : vector<12x32xf32> to vector<10x32xf32>
    %777 = vector.extract_strided_slice %771 {offsets = [32, 0], sizes = [32, 32], strides = [1, 1]} : vector<96x32xf32> to vector<32x32xf32>
    %cst_242 = arith.constant dense<0.000000e+00> : vector<10x32xf32>
    %778 = tpu.matmul %776, %777, %cst_242 {dimension_numbers = #tpu.dot_dimension_numbers<[1], [0], [0], [1], [0, 0, 1, 1], [], []>} : vector<10x32xf32>, vector<32x32xf32>, vector<10x32xf32> -> vector<10x32xf32>
    %779 = arith.addf %775, %778 : vector<10x32xf32>
    %780 = vector.extract_strided_slice %767 {offsets = [2, 0], sizes = [10, 32], strides = [1, 1]} : vector<12x32xf32> to vector<10x32xf32>
    %781 = vector.extract_strided_slice %771 {offsets = [64, 0], sizes = [32, 32], strides = [1, 1]} : vector<96x32xf32> to vector<32x32xf32>
    %cst_243 = arith.constant dense<0.000000e+00> : vector<10x32xf32>
    %782 = tpu.matmul %780, %781, %cst_243 {dimension_numbers = #tpu.dot_dimension_numbers<[1], [0], [0], [1], [0, 0, 1, 1], [], []>} : vector<10x32xf32>, vector<32x32xf32>, vector<10x32xf32> -> vector<10x32xf32>
    %783 = arith.addf %779, %782 : vector<10x32xf32>
    %784 = vector.extract_strided_slice %770 {offsets = [0, 0], sizes = [10, 32], strides = [1, 1]} : vector<12x32xf32> to vector<10x32xf32>
    %785 = vector.extract_strided_slice %771 {offsets = [0, 0], sizes = [32, 32], strides = [1, 1]} : vector<96x32xf32> to vector<32x32xf32>
    %cst_244 = arith.constant dense<0.000000e+00> : vector<10x32xf32>
    %786 = tpu.matmul %784, %785, %cst_244 {dimension_numbers = #tpu.dot_dimension_numbers<[1], [0], [0], [1], [0, 0, 1, 1], [], []>} : vector<10x32xf32>, vector<32x32xf32>, vector<10x32xf32> -> vector<10x32xf32>
    %787 = vector.extract_strided_slice %770 {offsets = [1, 0], sizes = [10, 32], strides = [1, 1]} : vector<12x32xf32> to vector<10x32xf32>
    %788 = vector.extract_strided_slice %771 {offsets = [32, 0], sizes = [32, 32], strides = [1, 1]} : vector<96x32xf32> to vector<32x32xf32>
    %cst_245 = arith.constant dense<0.000000e+00> : vector<10x32xf32>
    %789 = tpu.matmul %787, %788, %cst_245 {dimension_numbers = #tpu.dot_dimension_numbers<[1], [0], [0], [1], [0, 0, 1, 1], [], []>} : vector<10x32xf32>, vector<32x32xf32>, vector<10x32xf32> -> vector<10x32xf32>
    %790 = arith.addf %786, %789 : vector<10x32xf32>
    %791 = vector.extract_strided_slice %770 {offsets = [2, 0], sizes = [10, 32], strides = [1, 1]} : vector<12x32xf32> to vector<10x32xf32>
    %792 = vector.extract_strided_slice %771 {offsets = [64, 0], sizes = [32, 32], strides = [1, 1]} : vector<96x32xf32> to vector<32x32xf32>
    %cst_246 = arith.constant dense<0.000000e+00> : vector<10x32xf32>
    %793 = tpu.matmul %791, %792, %cst_246 {dimension_numbers = #tpu.dot_dimension_numbers<[1], [0], [0], [1], [0, 0, 1, 1], [], []>} : vector<10x32xf32>, vector<32x32xf32>, vector<10x32xf32> -> vector<10x32xf32>
    %794 = arith.addf %790, %793 : vector<10x32xf32>
    %795 = vector.extract_strided_slice %767 {offsets = [1, 0], sizes = [10, 32], strides = [1, 1]} : vector<12x32xf32> to vector<10x32xf32>
    %796 = vector.extract_strided_slice %770 {offsets = [1, 0], sizes = [10, 32], strides = [1, 1]} : vector<12x32xf32> to vector<10x32xf32>
    %797 = vector.broadcast %772 : vector<1x32xf32> to vector<10x32xf32>
    %798 = arith.addf %783, %797 : vector<10x32xf32>
    %cst_247 = arith.constant 0.000000e+00 : f32
    %799 = vector.broadcast %cst_247 : f32 to vector<10x32xf32>
    %800 = arith.maximumf %798, %799 : vector<10x32xf32>
    %801 = vector.broadcast %772 : vector<1x32xf32> to vector<10x32xf32>
    %802 = arith.addf %794, %801 : vector<10x32xf32>
    %cst_248 = arith.constant 0.000000e+00 : f32
    %803 = vector.broadcast %cst_248 : f32 to vector<10x32xf32>
    %804 = arith.maximumf %802, %803 : vector<10x32xf32>
    %cst_249 = arith.constant dense<0.000000e+00> : vector<32xf32>
    %805 = vector.multi_reduction <add>, %800, %cst_249 [0] : vector<10x32xf32> to vector<32xf32>
    %806 = vector.shape_cast %805 : vector<32xf32> to vector<1x32xf32>
    %807 = arith.mulf %800, %800 : vector<10x32xf32>
    %cst_250 = arith.constant dense<0.000000e+00> : vector<32xf32>
    %808 = vector.multi_reduction <add>, %807, %cst_250 [0] : vector<10x32xf32> to vector<32xf32>
    %809 = vector.shape_cast %808 : vector<32xf32> to vector<1x32xf32>
    %cst_251 = arith.constant dense<0.000000e+00> : vector<32xf32>
    %810 = vector.multi_reduction <add>, %804, %cst_251 [0] : vector<10x32xf32> to vector<32xf32>
    %811 = vector.shape_cast %810 : vector<32xf32> to vector<1x32xf32>
    %812 = arith.addf %806, %811 : vector<1x32xf32>
    %813 = arith.mulf %804, %804 : vector<10x32xf32>
    %cst_252 = arith.constant dense<0.000000e+00> : vector<32xf32>
    %814 = vector.multi_reduction <add>, %813, %cst_252 [0] : vector<10x32xf32> to vector<32xf32>
    %815 = vector.shape_cast %814 : vector<32xf32> to vector<1x32xf32>
    %816 = arith.addf %809, %815 : vector<1x32xf32>
    %cst_253 = arith.constant 5.000000e-02 : f32
    %817 = vector.broadcast %cst_253 : f32 to vector<1x32xf32>
    %818 = arith.mulf %812, %817 : vector<1x32xf32>
    %cst_254 = arith.constant 5.000000e-02 : f32
    %819 = vector.broadcast %cst_254 : f32 to vector<1x32xf32>
    %820 = arith.mulf %816, %819 : vector<1x32xf32>
    %821 = arith.mulf %818, %818 : vector<1x32xf32>
    %822 = arith.subf %820, %821 : vector<1x32xf32>
    %cst_255 = arith.constant 9.99999974E-6 : f32
    %823 = vector.broadcast %cst_255 : f32 to vector<1x32xf32>
    %824 = arith.addf %822, %823 : vector<1x32xf32>
    %825 = math.rsqrt %824 : vector<1x32xf32>
    %826 = vector.broadcast %818 : vector<1x32xf32> to vector<10x32xf32>
    %827 = arith.subf %800, %826 : vector<10x32xf32>
    %828 = vector.broadcast %825 : vector<1x32xf32> to vector<10x32xf32>
    %829 = arith.mulf %827, %828 : vector<10x32xf32>
    %830 = vector.broadcast %818 : vector<1x32xf32> to vector<10x32xf32>
    %831 = arith.subf %804, %830 : vector<10x32xf32>
    %832 = vector.broadcast %825 : vector<1x32xf32> to vector<10x32xf32>
    %833 = arith.mulf %831, %832 : vector<10x32xf32>
    %cst_256 = arith.constant 6.600000e-01 : f32
    %834 = vector.broadcast %cst_256 : f32 to vector<10x32xf32>
    %835 = arith.mulf %834, %795 : vector<10x32xf32>
    %836 = arith.addf %835, %829 : vector<10x32xf32>
    %cst_257 = arith.constant 6.600000e-01 : f32
    %837 = vector.broadcast %cst_257 : f32 to vector<10x32xf32>
    %838 = arith.mulf %837, %796 : vector<10x32xf32>
    %839 = arith.addf %838, %833 : vector<10x32xf32>
    %c0_258 = arith.constant 0 : index
    %c0_259 = arith.constant 0 : index
    %840 = vector.load %arg25[%c0_258, %c0_259] : memref<96x32xf32, #tpu.memory_space<vmem>>, vector<96x32xf32>
    %c0_260 = arith.constant 0 : index
    %c0_261 = arith.constant 0 : index
    %841 = vector.load %arg26[%c0_260, %c0_261] : memref<1x32xf32, #tpu.memory_space<vmem>>, vector<1x32xf32>
    %842 = vector.extract_strided_slice %836 {offsets = [0, 0], sizes = [8, 32], strides = [1, 1]} : vector<10x32xf32> to vector<8x32xf32>
    %843 = vector.extract_strided_slice %840 {offsets = [0, 0], sizes = [32, 32], strides = [1, 1]} : vector<96x32xf32> to vector<32x32xf32>
    %cst_262 = arith.constant dense<0.000000e+00> : vector<8x32xf32>
    %844 = tpu.matmul %842, %843, %cst_262 {dimension_numbers = #tpu.dot_dimension_numbers<[1], [0], [0], [1], [0, 0, 1, 1], [], []>} : vector<8x32xf32>, vector<32x32xf32>, vector<8x32xf32> -> vector<8x32xf32>
    %845 = vector.extract_strided_slice %836 {offsets = [1, 0], sizes = [8, 32], strides = [1, 1]} : vector<10x32xf32> to vector<8x32xf32>
    %846 = vector.extract_strided_slice %840 {offsets = [32, 0], sizes = [32, 32], strides = [1, 1]} : vector<96x32xf32> to vector<32x32xf32>
    %cst_263 = arith.constant dense<0.000000e+00> : vector<8x32xf32>
    %847 = tpu.matmul %845, %846, %cst_263 {dimension_numbers = #tpu.dot_dimension_numbers<[1], [0], [0], [1], [0, 0, 1, 1], [], []>} : vector<8x32xf32>, vector<32x32xf32>, vector<8x32xf32> -> vector<8x32xf32>
    %848 = arith.addf %844, %847 : vector<8x32xf32>
    %849 = vector.extract_strided_slice %836 {offsets = [2, 0], sizes = [8, 32], strides = [1, 1]} : vector<10x32xf32> to vector<8x32xf32>
    %850 = vector.extract_strided_slice %840 {offsets = [64, 0], sizes = [32, 32], strides = [1, 1]} : vector<96x32xf32> to vector<32x32xf32>
    %cst_264 = arith.constant dense<0.000000e+00> : vector<8x32xf32>
    %851 = tpu.matmul %849, %850, %cst_264 {dimension_numbers = #tpu.dot_dimension_numbers<[1], [0], [0], [1], [0, 0, 1, 1], [], []>} : vector<8x32xf32>, vector<32x32xf32>, vector<8x32xf32> -> vector<8x32xf32>
    %852 = arith.addf %848, %851 : vector<8x32xf32>
    %853 = vector.extract_strided_slice %839 {offsets = [0, 0], sizes = [8, 32], strides = [1, 1]} : vector<10x32xf32> to vector<8x32xf32>
    %854 = vector.extract_strided_slice %840 {offsets = [0, 0], sizes = [32, 32], strides = [1, 1]} : vector<96x32xf32> to vector<32x32xf32>
    %cst_265 = arith.constant dense<0.000000e+00> : vector<8x32xf32>
    %855 = tpu.matmul %853, %854, %cst_265 {dimension_numbers = #tpu.dot_dimension_numbers<[1], [0], [0], [1], [0, 0, 1, 1], [], []>} : vector<8x32xf32>, vector<32x32xf32>, vector<8x32xf32> -> vector<8x32xf32>
    %856 = vector.extract_strided_slice %839 {offsets = [1, 0], sizes = [8, 32], strides = [1, 1]} : vector<10x32xf32> to vector<8x32xf32>
    %857 = vector.extract_strided_slice %840 {offsets = [32, 0], sizes = [32, 32], strides = [1, 1]} : vector<96x32xf32> to vector<32x32xf32>
    %cst_266 = arith.constant dense<0.000000e+00> : vector<8x32xf32>
    %858 = tpu.matmul %856, %857, %cst_266 {dimension_numbers = #tpu.dot_dimension_numbers<[1], [0], [0], [1], [0, 0, 1, 1], [], []>} : vector<8x32xf32>, vector<32x32xf32>, vector<8x32xf32> -> vector<8x32xf32>
    %859 = arith.addf %855, %858 : vector<8x32xf32>
    %860 = vector.extract_strided_slice %839 {offsets = [2, 0], sizes = [8, 32], strides = [1, 1]} : vector<10x32xf32> to vector<8x32xf32>
    %861 = vector.extract_strided_slice %840 {offsets = [64, 0], sizes = [32, 32], strides = [1, 1]} : vector<96x32xf32> to vector<32x32xf32>
    %cst_267 = arith.constant dense<0.000000e+00> : vector<8x32xf32>
    %862 = tpu.matmul %860, %861, %cst_267 {dimension_numbers = #tpu.dot_dimension_numbers<[1], [0], [0], [1], [0, 0, 1, 1], [], []>} : vector<8x32xf32>, vector<32x32xf32>, vector<8x32xf32> -> vector<8x32xf32>
    %863 = arith.addf %859, %862 : vector<8x32xf32>
    %864 = vector.extract_strided_slice %836 {offsets = [1, 0], sizes = [8, 32], strides = [1, 1]} : vector<10x32xf32> to vector<8x32xf32>
    %865 = vector.extract_strided_slice %839 {offsets = [1, 0], sizes = [8, 32], strides = [1, 1]} : vector<10x32xf32> to vector<8x32xf32>
    %866 = vector.broadcast %841 : vector<1x32xf32> to vector<8x32xf32>
    %867 = arith.addf %852, %866 : vector<8x32xf32>
    %cst_268 = arith.constant 0.000000e+00 : f32
    %868 = vector.broadcast %cst_268 : f32 to vector<8x32xf32>
    %869 = arith.maximumf %867, %868 : vector<8x32xf32>
    %870 = vector.broadcast %841 : vector<1x32xf32> to vector<8x32xf32>
    %871 = arith.addf %863, %870 : vector<8x32xf32>
    %cst_269 = arith.constant 0.000000e+00 : f32
    %872 = vector.broadcast %cst_269 : f32 to vector<8x32xf32>
    %873 = arith.maximumf %871, %872 : vector<8x32xf32>
    %cst_270 = arith.constant dense<0.000000e+00> : vector<32xf32>
    %874 = vector.multi_reduction <add>, %869, %cst_270 [0] : vector<8x32xf32> to vector<32xf32>
    %875 = vector.shape_cast %874 : vector<32xf32> to vector<1x32xf32>
    %876 = arith.mulf %869, %869 : vector<8x32xf32>
    %cst_271 = arith.constant dense<0.000000e+00> : vector<32xf32>
    %877 = vector.multi_reduction <add>, %876, %cst_271 [0] : vector<8x32xf32> to vector<32xf32>
    %878 = vector.shape_cast %877 : vector<32xf32> to vector<1x32xf32>
    %cst_272 = arith.constant dense<0.000000e+00> : vector<32xf32>
    %879 = vector.multi_reduction <add>, %873, %cst_272 [0] : vector<8x32xf32> to vector<32xf32>
    %880 = vector.shape_cast %879 : vector<32xf32> to vector<1x32xf32>
    %881 = arith.addf %875, %880 : vector<1x32xf32>
    %882 = arith.mulf %873, %873 : vector<8x32xf32>
    %cst_273 = arith.constant dense<0.000000e+00> : vector<32xf32>
    %883 = vector.multi_reduction <add>, %882, %cst_273 [0] : vector<8x32xf32> to vector<32xf32>
    %884 = vector.shape_cast %883 : vector<32xf32> to vector<1x32xf32>
    %885 = arith.addf %878, %884 : vector<1x32xf32>
    %cst_274 = arith.constant 6.250000e-02 : f32
    %886 = vector.broadcast %cst_274 : f32 to vector<1x32xf32>
    %887 = arith.mulf %881, %886 : vector<1x32xf32>
    %cst_275 = arith.constant 6.250000e-02 : f32
    %888 = vector.broadcast %cst_275 : f32 to vector<1x32xf32>
    %889 = arith.mulf %885, %888 : vector<1x32xf32>
    %890 = arith.mulf %887, %887 : vector<1x32xf32>
    %891 = arith.subf %889, %890 : vector<1x32xf32>
    %cst_276 = arith.constant 9.99999974E-6 : f32
    %892 = vector.broadcast %cst_276 : f32 to vector<1x32xf32>
    %893 = arith.addf %891, %892 : vector<1x32xf32>
    %894 = math.rsqrt %893 : vector<1x32xf32>
    %895 = vector.broadcast %887 : vector<1x32xf32> to vector<8x32xf32>
    %896 = arith.subf %869, %895 : vector<8x32xf32>
    %897 = vector.broadcast %894 : vector<1x32xf32> to vector<8x32xf32>
    %898 = arith.mulf %896, %897 : vector<8x32xf32>
    %899 = vector.broadcast %887 : vector<1x32xf32> to vector<8x32xf32>
    %900 = arith.subf %873, %899 : vector<8x32xf32>
    %901 = vector.broadcast %894 : vector<1x32xf32> to vector<8x32xf32>
    %902 = arith.mulf %900, %901 : vector<8x32xf32>
    %cst_277 = arith.constant 6.600000e-01 : f32
    %903 = vector.broadcast %cst_277 : f32 to vector<8x32xf32>
    %904 = arith.mulf %903, %864 : vector<8x32xf32>
    %905 = arith.addf %904, %898 : vector<8x32xf32>
    %cst_278 = arith.constant 6.600000e-01 : f32
    %906 = vector.broadcast %cst_278 : f32 to vector<8x32xf32>
    %907 = arith.mulf %906, %865 : vector<8x32xf32>
    %908 = arith.addf %907, %902 : vector<8x32xf32>
    %c0_279 = arith.constant 0 : index
    %c0_280 = arith.constant 0 : index
    %909 = vector.load %arg27[%c0_279, %c0_280] : memref<32x16xf32, #tpu.memory_space<vmem>>, vector<32x16xf32>
    %cst_281 = arith.constant dense<0.000000e+00> : vector<8x16xf32>
    %910 = tpu.matmul %905, %909, %cst_281 {dimension_numbers = #tpu.dot_dimension_numbers<[1], [0], [0], [1], [0, 0, 1, 1], [], []>} : vector<8x32xf32>, vector<32x16xf32>, vector<8x16xf32> -> vector<8x16xf32>
    %cst_282 = arith.constant dense<0.000000e+00> : vector<8x16xf32>
    %911 = tpu.matmul %908, %909, %cst_282 {dimension_numbers = #tpu.dot_dimension_numbers<[1], [0], [0], [1], [0, 0, 1, 1], [], []>} : vector<8x32xf32>, vector<32x16xf32>, vector<8x16xf32> -> vector<8x16xf32>
    %c0_283 = arith.constant 0 : index
    %c0_284 = arith.constant 0 : index
    %912 = vector.load %arg28[%c0_283, %c0_284] : memref<16x32xf32, #tpu.memory_space<vmem>>, vector<16x32xf32>
    %c0_285 = arith.constant 0 : index
    %c0_286 = arith.constant 0 : index
    %913 = vector.load %arg29[%c0_285, %c0_286] : memref<1x32xf32, #tpu.memory_space<vmem>>, vector<1x32xf32>
    %c0_287 = arith.constant 0 : index
    %c0_288 = arith.constant 0 : index
    %914 = vector.load %arg30[%c0_287, %c0_288] : memref<32x16xf32, #tpu.memory_space<vmem>>, vector<32x16xf32>
    %c0_289 = arith.constant 0 : index
    %c0_290 = arith.constant 0 : index
    %915 = vector.load %arg31[%c0_289, %c0_290] : memref<16x32xf32, #tpu.memory_space<vmem>>, vector<16x32xf32>
    %c0_291 = arith.constant 0 : index
    %c0_292 = arith.constant 0 : index
    %916 = vector.load %arg32[%c0_291, %c0_292] : memref<1x32xf32, #tpu.memory_space<vmem>>, vector<1x32xf32>
    %c0_293 = arith.constant 0 : index
    %c0_294 = arith.constant 0 : index
    %917 = vector.load %arg33[%c0_293, %c0_294] : memref<32x16xf32, #tpu.memory_space<vmem>>, vector<32x16xf32>
    %c0_295 = arith.constant 0 : index
    %c0_296 = arith.constant 0 : index
    %918 = vector.load %arg34[%c0_295, %c0_296] : memref<16x12xf32, #tpu.memory_space<vmem>>, vector<16x12xf32>
    %c0_297 = arith.constant 0 : index
    %c0_298 = arith.constant 0 : index
    %919 = vector.load %arg35[%c0_297, %c0_298] : memref<1x12xf32, #tpu.memory_space<vmem>>, vector<1x12xf32>
    %c0_299 = arith.constant 0 : index
    %c0_300 = arith.constant 0 : index
    %920 = vector.load %arg36[%c0_299, %c0_300] : memref<16x12xf32, #tpu.memory_space<vmem>>, vector<16x12xf32>
    %c0_301 = arith.constant 0 : index
    %c0_302 = arith.constant 0 : index
    %921 = vector.load %arg37[%c0_301, %c0_302] : memref<1x12xf32, #tpu.memory_space<vmem>>, vector<1x12xf32>
    %cst_303 = arith.constant dense<0.000000e+00> : vector<8x32xf32>
    %922 = tpu.matmul %910, %912, %cst_303 {dimension_numbers = #tpu.dot_dimension_numbers<[1], [0], [0], [1], [0, 0, 1, 1], [], []>} : vector<8x16xf32>, vector<16x32xf32>, vector<8x32xf32> -> vector<8x32xf32>
    %923 = vector.broadcast %913 : vector<1x32xf32> to vector<8x32xf32>
    %924 = arith.addf %922, %923 : vector<8x32xf32>
    %cst_304 = arith.constant 0.000000e+00 : f32
    %925 = vector.broadcast %cst_304 : f32 to vector<8x32xf32>
    %926 = arith.maximumf %924, %925 : vector<8x32xf32>
    %cst_305 = arith.constant dense<0.000000e+00> : vector<8x32xf32>
    %927 = tpu.matmul %911, %912, %cst_305 {dimension_numbers = #tpu.dot_dimension_numbers<[1], [0], [0], [1], [0, 0, 1, 1], [], []>} : vector<8x16xf32>, vector<16x32xf32>, vector<8x32xf32> -> vector<8x32xf32>
    %928 = vector.broadcast %913 : vector<1x32xf32> to vector<8x32xf32>
    %929 = arith.addf %927, %928 : vector<8x32xf32>
    %cst_306 = arith.constant 0.000000e+00 : f32
    %930 = vector.broadcast %cst_306 : f32 to vector<8x32xf32>
    %931 = arith.maximumf %929, %930 : vector<8x32xf32>
    %cst_307 = arith.constant dense<0.000000e+00> : vector<32xf32>
    %932 = vector.multi_reduction <add>, %926, %cst_307 [0] : vector<8x32xf32> to vector<32xf32>
    %933 = vector.shape_cast %932 : vector<32xf32> to vector<1x32xf32>
    %934 = arith.mulf %926, %926 : vector<8x32xf32>
    %cst_308 = arith.constant dense<0.000000e+00> : vector<32xf32>
    %935 = vector.multi_reduction <add>, %934, %cst_308 [0] : vector<8x32xf32> to vector<32xf32>
    %936 = vector.shape_cast %935 : vector<32xf32> to vector<1x32xf32>
    %cst_309 = arith.constant dense<0.000000e+00> : vector<32xf32>
    %937 = vector.multi_reduction <add>, %931, %cst_309 [0] : vector<8x32xf32> to vector<32xf32>
    %938 = vector.shape_cast %937 : vector<32xf32> to vector<1x32xf32>
    %939 = arith.addf %933, %938 : vector<1x32xf32>
    %940 = arith.mulf %931, %931 : vector<8x32xf32>
    %cst_310 = arith.constant dense<0.000000e+00> : vector<32xf32>
    %941 = vector.multi_reduction <add>, %940, %cst_310 [0] : vector<8x32xf32> to vector<32xf32>
    %942 = vector.shape_cast %941 : vector<32xf32> to vector<1x32xf32>
    %943 = arith.addf %936, %942 : vector<1x32xf32>
    %cst_311 = arith.constant 6.250000e-02 : f32
    %944 = vector.broadcast %cst_311 : f32 to vector<1x32xf32>
    %945 = arith.mulf %939, %944 : vector<1x32xf32>
    %cst_312 = arith.constant 6.250000e-02 : f32
    %946 = vector.broadcast %cst_312 : f32 to vector<1x32xf32>
    %947 = arith.mulf %943, %946 : vector<1x32xf32>
    %948 = arith.mulf %945, %945 : vector<1x32xf32>
    %949 = arith.subf %947, %948 : vector<1x32xf32>
    %cst_313 = arith.constant 9.99999974E-6 : f32
    %950 = vector.broadcast %cst_313 : f32 to vector<1x32xf32>
    %951 = arith.addf %949, %950 : vector<1x32xf32>
    %952 = math.rsqrt %951 : vector<1x32xf32>
    %953 = vector.broadcast %945 : vector<1x32xf32> to vector<8x32xf32>
    %954 = arith.subf %926, %953 : vector<8x32xf32>
    %955 = vector.broadcast %952 : vector<1x32xf32> to vector<8x32xf32>
    %956 = arith.mulf %954, %955 : vector<8x32xf32>
    %957 = vector.broadcast %945 : vector<1x32xf32> to vector<8x32xf32>
    %958 = arith.subf %931, %957 : vector<8x32xf32>
    %959 = vector.broadcast %952 : vector<1x32xf32> to vector<8x32xf32>
    %960 = arith.mulf %958, %959 : vector<8x32xf32>
    %cst_314 = arith.constant dense<0.000000e+00> : vector<8x16xf32>
    %961 = tpu.matmul %956, %914, %cst_314 {dimension_numbers = #tpu.dot_dimension_numbers<[1], [0], [0], [1], [0, 0, 1, 1], [], []>} : vector<8x32xf32>, vector<32x16xf32>, vector<8x16xf32> -> vector<8x16xf32>
    %cst_315 = arith.constant dense<0.000000e+00> : vector<8x16xf32>
    %962 = tpu.matmul %960, %914, %cst_315 {dimension_numbers = #tpu.dot_dimension_numbers<[1], [0], [0], [1], [0, 0, 1, 1], [], []>} : vector<8x32xf32>, vector<32x16xf32>, vector<8x16xf32> -> vector<8x16xf32>
    %cst_316 = arith.constant dense<0.000000e+00> : vector<16xf32>
    %963 = vector.multi_reduction <add>, %961, %cst_316 [0] : vector<8x16xf32> to vector<16xf32>
    %964 = vector.shape_cast %963 : vector<16xf32> to vector<1x16xf32>
    %965 = arith.mulf %961, %961 : vector<8x16xf32>
    %cst_317 = arith.constant dense<0.000000e+00> : vector<16xf32>
    %966 = vector.multi_reduction <add>, %965, %cst_317 [0] : vector<8x16xf32> to vector<16xf32>
    %967 = vector.shape_cast %966 : vector<16xf32> to vector<1x16xf32>
    %cst_318 = arith.constant dense<0.000000e+00> : vector<16xf32>
    %968 = vector.multi_reduction <add>, %962, %cst_318 [0] : vector<8x16xf32> to vector<16xf32>
    %969 = vector.shape_cast %968 : vector<16xf32> to vector<1x16xf32>
    %970 = arith.addf %964, %969 : vector<1x16xf32>
    %971 = arith.mulf %962, %962 : vector<8x16xf32>
    %cst_319 = arith.constant dense<0.000000e+00> : vector<16xf32>
    %972 = vector.multi_reduction <add>, %971, %cst_319 [0] : vector<8x16xf32> to vector<16xf32>
    %973 = vector.shape_cast %972 : vector<16xf32> to vector<1x16xf32>
    %974 = arith.addf %967, %973 : vector<1x16xf32>
    %cst_320 = arith.constant 6.250000e-02 : f32
    %975 = vector.broadcast %cst_320 : f32 to vector<1x16xf32>
    %976 = arith.mulf %970, %975 : vector<1x16xf32>
    %cst_321 = arith.constant 6.250000e-02 : f32
    %977 = vector.broadcast %cst_321 : f32 to vector<1x16xf32>
    %978 = arith.mulf %974, %977 : vector<1x16xf32>
    %979 = arith.mulf %976, %976 : vector<1x16xf32>
    %980 = arith.subf %978, %979 : vector<1x16xf32>
    %cst_322 = arith.constant 9.99999974E-6 : f32
    %981 = vector.broadcast %cst_322 : f32 to vector<1x16xf32>
    %982 = arith.addf %980, %981 : vector<1x16xf32>
    %983 = math.rsqrt %982 : vector<1x16xf32>
    %984 = vector.broadcast %976 : vector<1x16xf32> to vector<8x16xf32>
    %985 = arith.subf %961, %984 : vector<8x16xf32>
    %986 = vector.broadcast %983 : vector<1x16xf32> to vector<8x16xf32>
    %987 = arith.mulf %985, %986 : vector<8x16xf32>
    %988 = vector.broadcast %976 : vector<1x16xf32> to vector<8x16xf32>
    %989 = arith.subf %962, %988 : vector<8x16xf32>
    %990 = vector.broadcast %983 : vector<1x16xf32> to vector<8x16xf32>
    %991 = arith.mulf %989, %990 : vector<8x16xf32>
    %cst_323 = arith.constant dense<0.000000e+00> : vector<8x32xf32>
    %992 = tpu.matmul %910, %915, %cst_323 {dimension_numbers = #tpu.dot_dimension_numbers<[1], [0], [0], [1], [0, 0, 1, 1], [], []>} : vector<8x16xf32>, vector<16x32xf32>, vector<8x32xf32> -> vector<8x32xf32>
    %993 = vector.broadcast %916 : vector<1x32xf32> to vector<8x32xf32>
    %994 = arith.addf %992, %993 : vector<8x32xf32>
    %cst_324 = arith.constant 0.000000e+00 : f32
    %995 = vector.broadcast %cst_324 : f32 to vector<8x32xf32>
    %996 = arith.maximumf %994, %995 : vector<8x32xf32>
    %cst_325 = arith.constant dense<0.000000e+00> : vector<8x32xf32>
    %997 = tpu.matmul %911, %915, %cst_325 {dimension_numbers = #tpu.dot_dimension_numbers<[1], [0], [0], [1], [0, 0, 1, 1], [], []>} : vector<8x16xf32>, vector<16x32xf32>, vector<8x32xf32> -> vector<8x32xf32>
    %998 = vector.broadcast %916 : vector<1x32xf32> to vector<8x32xf32>
    %999 = arith.addf %997, %998 : vector<8x32xf32>
    %cst_326 = arith.constant 0.000000e+00 : f32
    %1000 = vector.broadcast %cst_326 : f32 to vector<8x32xf32>
    %1001 = arith.maximumf %999, %1000 : vector<8x32xf32>
    %cst_327 = arith.constant dense<0.000000e+00> : vector<32xf32>
    %1002 = vector.multi_reduction <add>, %996, %cst_327 [0] : vector<8x32xf32> to vector<32xf32>
    %1003 = vector.shape_cast %1002 : vector<32xf32> to vector<1x32xf32>
    %1004 = arith.mulf %996, %996 : vector<8x32xf32>
    %cst_328 = arith.constant dense<0.000000e+00> : vector<32xf32>
    %1005 = vector.multi_reduction <add>, %1004, %cst_328 [0] : vector<8x32xf32> to vector<32xf32>
    %1006 = vector.shape_cast %1005 : vector<32xf32> to vector<1x32xf32>
    %cst_329 = arith.constant dense<0.000000e+00> : vector<32xf32>
    %1007 = vector.multi_reduction <add>, %1001, %cst_329 [0] : vector<8x32xf32> to vector<32xf32>
    %1008 = vector.shape_cast %1007 : vector<32xf32> to vector<1x32xf32>
    %1009 = arith.addf %1003, %1008 : vector<1x32xf32>
    %1010 = arith.mulf %1001, %1001 : vector<8x32xf32>
    %cst_330 = arith.constant dense<0.000000e+00> : vector<32xf32>
    %1011 = vector.multi_reduction <add>, %1010, %cst_330 [0] : vector<8x32xf32> to vector<32xf32>
    %1012 = vector.shape_cast %1011 : vector<32xf32> to vector<1x32xf32>
    %1013 = arith.addf %1006, %1012 : vector<1x32xf32>
    %cst_331 = arith.constant 6.250000e-02 : f32
    %1014 = vector.broadcast %cst_331 : f32 to vector<1x32xf32>
    %1015 = arith.mulf %1009, %1014 : vector<1x32xf32>
    %cst_332 = arith.constant 6.250000e-02 : f32
    %1016 = vector.broadcast %cst_332 : f32 to vector<1x32xf32>
    %1017 = arith.mulf %1013, %1016 : vector<1x32xf32>
    %1018 = arith.mulf %1015, %1015 : vector<1x32xf32>
    %1019 = arith.subf %1017, %1018 : vector<1x32xf32>
    %cst_333 = arith.constant 9.99999974E-6 : f32
    %1020 = vector.broadcast %cst_333 : f32 to vector<1x32xf32>
    %1021 = arith.addf %1019, %1020 : vector<1x32xf32>
    %1022 = math.rsqrt %1021 : vector<1x32xf32>
    %1023 = vector.broadcast %1015 : vector<1x32xf32> to vector<8x32xf32>
    %1024 = arith.subf %996, %1023 : vector<8x32xf32>
    %1025 = vector.broadcast %1022 : vector<1x32xf32> to vector<8x32xf32>
    %1026 = arith.mulf %1024, %1025 : vector<8x32xf32>
    %1027 = vector.broadcast %1015 : vector<1x32xf32> to vector<8x32xf32>
    %1028 = arith.subf %1001, %1027 : vector<8x32xf32>
    %1029 = vector.broadcast %1022 : vector<1x32xf32> to vector<8x32xf32>
    %1030 = arith.mulf %1028, %1029 : vector<8x32xf32>
    %cst_334 = arith.constant dense<0.000000e+00> : vector<8x16xf32>
    %1031 = tpu.matmul %1026, %917, %cst_334 {dimension_numbers = #tpu.dot_dimension_numbers<[1], [0], [0], [1], [0, 0, 1, 1], [], []>} : vector<8x32xf32>, vector<32x16xf32>, vector<8x16xf32> -> vector<8x16xf32>
    %cst_335 = arith.constant dense<0.000000e+00> : vector<8x16xf32>
    %1032 = tpu.matmul %1030, %917, %cst_335 {dimension_numbers = #tpu.dot_dimension_numbers<[1], [0], [0], [1], [0, 0, 1, 1], [], []>} : vector<8x32xf32>, vector<32x16xf32>, vector<8x16xf32> -> vector<8x16xf32>
    %cst_336 = arith.constant dense<0.000000e+00> : vector<16xf32>
    %1033 = vector.multi_reduction <add>, %1031, %cst_336 [0] : vector<8x16xf32> to vector<16xf32>
    %1034 = vector.shape_cast %1033 : vector<16xf32> to vector<1x16xf32>
    %1035 = arith.mulf %1031, %1031 : vector<8x16xf32>
    %cst_337 = arith.constant dense<0.000000e+00> : vector<16xf32>
    %1036 = vector.multi_reduction <add>, %1035, %cst_337 [0] : vector<8x16xf32> to vector<16xf32>
    %1037 = vector.shape_cast %1036 : vector<16xf32> to vector<1x16xf32>
    %cst_338 = arith.constant dense<0.000000e+00> : vector<16xf32>
    %1038 = vector.multi_reduction <add>, %1032, %cst_338 [0] : vector<8x16xf32> to vector<16xf32>
    %1039 = vector.shape_cast %1038 : vector<16xf32> to vector<1x16xf32>
    %1040 = arith.addf %1034, %1039 : vector<1x16xf32>
    %1041 = arith.mulf %1032, %1032 : vector<8x16xf32>
    %cst_339 = arith.constant dense<0.000000e+00> : vector<16xf32>
    %1042 = vector.multi_reduction <add>, %1041, %cst_339 [0] : vector<8x16xf32> to vector<16xf32>
    %1043 = vector.shape_cast %1042 : vector<16xf32> to vector<1x16xf32>
    %1044 = arith.addf %1037, %1043 : vector<1x16xf32>
    %cst_340 = arith.constant 6.250000e-02 : f32
    %1045 = vector.broadcast %cst_340 : f32 to vector<1x16xf32>
    %1046 = arith.mulf %1040, %1045 : vector<1x16xf32>
    %cst_341 = arith.constant 6.250000e-02 : f32
    %1047 = vector.broadcast %cst_341 : f32 to vector<1x16xf32>
    %1048 = arith.mulf %1044, %1047 : vector<1x16xf32>
    %1049 = arith.mulf %1046, %1046 : vector<1x16xf32>
    %1050 = arith.subf %1048, %1049 : vector<1x16xf32>
    %cst_342 = arith.constant 9.99999974E-6 : f32
    %1051 = vector.broadcast %cst_342 : f32 to vector<1x16xf32>
    %1052 = arith.addf %1050, %1051 : vector<1x16xf32>
    %1053 = math.rsqrt %1052 : vector<1x16xf32>
    %1054 = vector.broadcast %1046 : vector<1x16xf32> to vector<8x16xf32>
    %1055 = arith.subf %1031, %1054 : vector<8x16xf32>
    %1056 = vector.broadcast %1053 : vector<1x16xf32> to vector<8x16xf32>
    %1057 = arith.mulf %1055, %1056 : vector<8x16xf32>
    %1058 = vector.broadcast %1046 : vector<1x16xf32> to vector<8x16xf32>
    %1059 = arith.subf %1032, %1058 : vector<8x16xf32>
    %1060 = vector.broadcast %1053 : vector<1x16xf32> to vector<8x16xf32>
    %1061 = arith.mulf %1059, %1060 : vector<8x16xf32>
    %cst_343 = arith.constant dense<0.000000e+00> : vector<8x12xf32>
    %1062 = tpu.matmul %987, %918, %cst_343 {dimension_numbers = #tpu.dot_dimension_numbers<[1], [0], [0], [1], [0, 0, 1, 1], [], []>} : vector<8x16xf32>, vector<16x12xf32>, vector<8x12xf32> -> vector<8x12xf32>
    %1063 = vector.broadcast %919 : vector<1x12xf32> to vector<8x12xf32>
    %1064 = arith.addf %1062, %1063 : vector<8x12xf32>
    %c0_344 = arith.constant 0 : index
    %c0_345 = arith.constant 0 : index
    %c0_346 = arith.constant 0 : index
    %1065 = vector.load %arg38[%c0_344, %c0_345, %c0_346] : memref<2x8x12xf32, #tpu.memory_space<vmem>>, vector<1x8x12xf32>
    %1066 = vector.shape_cast %1065 : vector<1x8x12xf32> to vector<8x12xf32>
    %1067 = vector.shape_cast %1064 : vector<8x12xf32> to vector<1x8x12xf32>
    tpu.vector_store %arg38[%c0_344, %c0_345, %c0_346], %1067 {strides = array<i32>} : memref<2x8x12xf32, #tpu.memory_space<vmem>>, vector<1x8x12xf32>,
    %cst_347 = arith.constant dense<0.000000e+00> : vector<8x12xf32>
    %1068 = tpu.matmul %1057, %920, %cst_347 {dimension_numbers = #tpu.dot_dimension_numbers<[1], [0], [0], [1], [0, 0, 1, 1], [], []>} : vector<8x16xf32>, vector<16x12xf32>, vector<8x12xf32> -> vector<8x12xf32>
    %1069 = vector.broadcast %921 : vector<1x12xf32> to vector<8x12xf32>
    %1070 = arith.addf %1068, %1069 : vector<8x12xf32>
    %cst_348 = arith.constant dense<0xFF800000> : vector<8xf32>
    %1071 = vector.multi_reduction <maximumf>, %1070, %cst_348 [1] : vector<8x12xf32> to vector<8xf32>
    %1072 = vector.shape_cast %1071 : vector<8xf32> to vector<8x1xf32>
    %1073 = vector.broadcast %1072 : vector<8x1xf32> to vector<8x12xf32>
    %1074 = arith.subf %1070, %1073 : vector<8x12xf32>
    %1075 = math.exp %1074 : vector<8x12xf32>
    %1076 = vector.broadcast %1072 : vector<8x1xf32> to vector<8x12xf32>
    %1077 = arith.subf %1070, %1076 : vector<8x12xf32>
    %cst_349 = arith.constant dense<0.000000e+00> : vector<8xf32>
    %1078 = vector.multi_reduction <add>, %1075, %cst_349 [1] : vector<8x12xf32> to vector<8xf32>
    %1079 = vector.shape_cast %1078 : vector<8xf32> to vector<8x1xf32>
    %1080 = math.log %1079 : vector<8x1xf32>
    %1081 = vector.broadcast %1080 : vector<8x1xf32> to vector<8x12xf32>
    %1082 = arith.subf %1077, %1081 : vector<8x12xf32>
    %c0_350 = arith.constant 0 : index
    %c0_351 = arith.constant 0 : index
    %c0_352 = arith.constant 0 : index
    %1083 = vector.load %arg39[%c0_350, %c0_351, %c0_352] : memref<2x8x12xf32, #tpu.memory_space<vmem>>, vector<1x8x12xf32>
    %1084 = vector.shape_cast %1083 : vector<1x8x12xf32> to vector<8x12xf32>
    %1085 = vector.shape_cast %1082 : vector<8x12xf32> to vector<1x8x12xf32>
    tpu.vector_store %arg39[%c0_350, %c0_351, %c0_352], %1085 {strides = array<i32>} : memref<2x8x12xf32, #tpu.memory_space<vmem>>, vector<1x8x12xf32>,
    %cst_353 = arith.constant dense<0.000000e+00> : vector<8x12xf32>
    %1086 = tpu.matmul %991, %918, %cst_353 {dimension_numbers = #tpu.dot_dimension_numbers<[1], [0], [0], [1], [0, 0, 1, 1], [], []>} : vector<8x16xf32>, vector<16x12xf32>, vector<8x12xf32> -> vector<8x12xf32>
    %1087 = vector.broadcast %919 : vector<1x12xf32> to vector<8x12xf32>
    %1088 = arith.addf %1086, %1087 : vector<8x12xf32>
    %c1_354 = arith.constant 1 : index
    %c0_355 = arith.constant 0 : index
    %c0_356 = arith.constant 0 : index
    %1089 = vector.load %arg38[%c1_354, %c0_355, %c0_356] : memref<2x8x12xf32, #tpu.memory_space<vmem>>, vector<1x8x12xf32>
    %1090 = vector.shape_cast %1089 : vector<1x8x12xf32> to vector<8x12xf32>
    %1091 = vector.shape_cast %1088 : vector<8x12xf32> to vector<1x8x12xf32>
    tpu.vector_store %arg38[%c1_354, %c0_355, %c0_356], %1091 {strides = array<i32>} : memref<2x8x12xf32, #tpu.memory_space<vmem>>, vector<1x8x12xf32>,
    %cst_357 = arith.constant dense<0.000000e+00> : vector<8x12xf32>
    %1092 = tpu.matmul %1061, %920, %cst_357 {dimension_numbers = #tpu.dot_dimension_numbers<[1], [0], [0], [1], [0, 0, 1, 1], [], []>} : vector<8x16xf32>, vector<16x12xf32>, vector<8x12xf32> -> vector<8x12xf32>
    %1093 = vector.broadcast %921 : vector<1x12xf32> to vector<8x12xf32>
    %1094 = arith.addf %1092, %1093 : vector<8x12xf32>
    %cst_358 = arith.constant dense<0xFF800000> : vector<8xf32>
    %1095 = vector.multi_reduction <maximumf>, %1094, %cst_358 [1] : vector<8x12xf32> to vector<8xf32>
    %1096 = vector.shape_cast %1095 : vector<8xf32> to vector<8x1xf32>
    %1097 = vector.broadcast %1096 : vector<8x1xf32> to vector<8x12xf32>
    %1098 = arith.subf %1094, %1097 : vector<8x12xf32>
    %1099 = math.exp %1098 : vector<8x12xf32>
    %1100 = vector.broadcast %1096 : vector<8x1xf32> to vector<8x12xf32>
    %1101 = arith.subf %1094, %1100 : vector<8x12xf32>
    %cst_359 = arith.constant dense<0.000000e+00> : vector<8xf32>
    %1102 = vector.multi_reduction <add>, %1099, %cst_359 [1] : vector<8x12xf32> to vector<8xf32>
    %1103 = vector.shape_cast %1102 : vector<8xf32> to vector<8x1xf32>
    %1104 = math.log %1103 : vector<8x1xf32>
    %1105 = vector.broadcast %1104 : vector<8x1xf32> to vector<8x12xf32>
    %1106 = arith.subf %1101, %1105 : vector<8x12xf32>
    %c1_360 = arith.constant 1 : index
    %c0_361 = arith.constant 0 : index
    %c0_362 = arith.constant 0 : index
    %1107 = vector.load %arg39[%c1_360, %c0_361, %c0_362] : memref<2x8x12xf32, #tpu.memory_space<vmem>>, vector<1x8x12xf32>
    %1108 = vector.shape_cast %1107 : vector<1x8x12xf32> to vector<8x12xf32>
    %1109 = vector.shape_cast %1106 : vector<8x12xf32> to vector<1x8x12xf32>
    tpu.vector_store %arg39[%c1_360, %c0_361, %c0_362], %1109 {strides = array<i32>} : memref<2x8x12xf32, #tpu.memory_space<vmem>>, vector<1x8x12xf32>,
    return
  }
}

</mosaic_0001>

<bundles_post_ra>
// kernel: chain_model_forward.1
= control target key start
LH: loop header
LB: loop body
LE: loop exit
PB: predicated region body
PF: predicated region fallthrough
CT: control target
= control target key end

     0   :  { %s15004_s6 = smov 1   ;;  %s15005_s10 = smov 2   ;;  %s19939_s0 = inlined_call_operand.smem [shape: u32[40], index: -1, kind: input, shape index: {}] }
   0x1   :  { %s15057_s5 = sld [smem:[%s19939_s0]]   ;;  %s15006_s14 = smov 3  }
   0x2   :  { %s15062_s9 = sld [smem:[%s19939_s0 + %s15004_s6]]   ;;  %s15007_s18 = smov 4  }
   0x3   :  { %s15067_s13 = sld [smem:[%s19939_s0 + %s15005_s10]]   ;;  %s15008_s22 = smov 5  }
   0x4   :  { %s15072_s17 = sld [smem:[%s19939_s0 + %s15006_s14]]   ;;  %s15009_s26 = smov 6  }
   0x5   :  { %s15077_s21 = sld [smem:[%s19939_s0 + %s15007_s18]]   ;;  %s15010_s30 = smov 7  }
   0x6   :  { %s15082_s25 = sld [smem:[%s19939_s0 + %s15008_s22]]   ;;  %s15011_s4 = smov 8  }
   0x7   :  { %s15087_s29 = sld [smem:[%s19939_s0 + %s15009_s26]]   ;;  %s15012_s10 = smov 9  }
   0x8   :  { %s15092_s3 = sld [smem:[%s19939_s0 + %s15010_s30]]   ;;  %s15013_s15 = smov 10  }
   0x9   :  { %s15097_s8 = sld [smem:[%s19939_s0 + %s15011_s4]]   ;;  %s15014_s20 = smov 11  }
   0xa   :  { %s15102_s14 = sld [smem:[%s19939_s0 + %s15012_s10]]   ;;  %s15015_s26 = smov 12  }
   0xb   :  { %s15107_s19 = sld [smem:[%s19939_s0 + %s15013_s15]]   ;;  %s15016_s1 = smov 13  }
   0xc   :  { %s15112_s24 = sld [smem:[%s19939_s0 + %s15014_s20]]   ;;  %s15017_s7 = smov 14  }
   0xd   :  { %s15117_s30 = sld [smem:[%s19939_s0 + %s15015_s26]]   ;;  %s15018_s15 = smov 15  }
   0xe   :  { %s15122_s6 = sld [smem:[%s19939_s0 + %s15016_s1]]   ;;  %s15019_s22 = smov 16  }
   0xf   :  { %s15127_s12 = sld [smem:[%s19939_s0 + %s15017_s7]]   ;;  %s15020_s28 = smov 17  }
  0x10   :  { %s15132_s20 = sld [smem:[%s19939_s0 + %s15018_s15]]   ;;  %s15021_s7 = smov 18  }
  0x11   :  { %s15137_s27 = sld [smem:[%s19939_s0 + %s15019_s22]]   ;;  %s15022_s15 = smov 19  }
  0x12   :  { %s15142_s4 = sld [smem:[%s19939_s0 + %s15020_s28]]   ;;  %s15023_s22 = smov 20  }
  0x13   :  { %s15024_s28 = smov 21  }
  0x15   :  { %19990 = sst [smem:[#allocation8_spill]] %s15127_s12 }
  0x16   :  { %19991 = sst [smem:[#allocation9_spill]] %s15132_s20 }
  0x17   :  { %19992 = sst [smem:[#allocation10_spill]] %s15137_s27 }
  0x18   :  { %19993 = sst [smem:[#allocation11_spill]] %s15142_s4 }
  0x19   :  { %s15147_s12 = sld [smem:[%s19939_s0 + %s15021_s7]]   ;;  %s15025_s7 = smov 22  }
  0x1a   :  { %s15152_s20 = sld [smem:[%s19939_s0 + %s15022_s15]]   ;;  %s15026_s15 = smov 23  }
  0x1b   :  { %s15157_s27 = sld [smem:[%s19939_s0 + %s15023_s22]]   ;;  %s15027_s22 = smov 24  }
  0x1c   :  { %s15162_s4 = sld [smem:[%s19939_s0 + %s15024_s28]]   ;;  %s15028_s28 = smov 25  }
  0x1f   :  { %19994 = sst [smem:[#allocation12_spill]] %s15147_s12 }
  0x20   :  { %19995 = sst [smem:[#allocation13_spill]] %s15152_s20 }
  0x21   :  { %19996 = sst [smem:[#allocation14_spill]] %s15157_s27 }
  0x22   :  { %19997 = sst [smem:[#allocation15_spill]] %s15162_s4 }
  0x23   :  { %s15167_s12 = sld [smem:[%s19939_s0 + %s15025_s7]]   ;;  %s15029_s7 = smov 26  }
  0x24   :  { %s15172_s20 = sld [smem:[%s19939_s0 + %s15026_s15]]   ;;  %s15030_s15 = smov 27  }
  0x25   :  { %s15177_s27 = sld [smem:[%s19939_s0 + %s15027_s22]]   ;;  %s15031_s22 = smov 28  }
  0x26   :  { %s15182_s4 = sld [smem:[%s19939_s0 + %s15028_s28]]   ;;  %s15032_s28 = smov 29  }
  0x29   :  { %19998 = sst [smem:[#allocation16_spill]] %s15167_s12 }
  0x2a   :  { %19999 = sst [smem:[#allocation17_spill]] %s15172_s20 }
  0x2b   :  { %20000 = sst [smem:[#allocation18_spill]] %s15177_s27 }
  0x2c   :  { %20001 = sst [smem:[#allocation19_spill]] %s15182_s4 }
  0x2d   :  { %s15187_s12 = sld [smem:[%s19939_s0 + %s15029_s7]]   ;;  %s15033_s7 = smov 30  }
  0x2e   :  { %s15192_s20 = sld [smem:[%s19939_s0 + %s15030_s15]]   ;;  %s15034_s15 = smov 31  }
  0x2f   :  { %s15197_s27 = sld [smem:[%s19939_s0 + %s15031_s22]]   ;;  %s15035_s22 = smov 32  }
  0x30   :  { %s15202_s4 = sld [smem:[%s19939_s0 + %s15032_s28]]   ;;  %s15036_s28 = smov 33  }
  0x33   :  { %20002 = sst [smem:[#allocation20_spill]] %s15187_s12 }
  0x34   :  { %20003 = sst [smem:[#allocation21_spill]] %s15192_s20 }
  0x35   :  { %20004 = sst [smem:[#allocation22_spill]] %s15197_s27 }
  0x36   :  { %20005 = sst [smem:[#allocation23_spill]] %s15202_s4 }
  0x37   :  { %s15207_s12 = sld [smem:[%s19939_s0 + %s15033_s7]]   ;;  %s15037_s7 = smov 34  }
  0x38   :  { %s15212_s20 = sld [smem:[%s19939_s0 + %s15034_s15]]   ;;  %s15038_s15 = smov 35  }
  0x39   :  { %s15217_s27 = sld [smem:[%s19939_s0 + %s15035_s22]]   ;;  %s15039_s22 = smov 36  }
  0x3a   :  { %s15222_s4 = sld [smem:[%s19939_s0 + %s15036_s28]]   ;;  %s15040_s28 = smov 37  }
  0x3d   :  { %20006 = sst [smem:[#allocation24_spill]] %s15207_s12 }
  0x3e   :  { %20007 = sst [smem:[#allocation25_spill]] %s15212_s20 }
  0x3f   :  { %20008 = sst [smem:[#allocation26_spill]] %s15217_s27 }
  0x40   :  { %20009 = sst [smem:[#allocation27_spill]] %s15222_s4 }
  0x41   :  { %s15227_s12 = sld [smem:[%s19939_s0 + %s15037_s7]]   ;;  %s15041_s7 = smov 38  }
  0x42   :  { %s15232_s20 = sld [smem:[%s19939_s0 + %s15038_s15]]   ;;  %s15042_s15 = smov 39  }
  0x43   :  { %s15237_s27 = sld [smem:[%s19939_s0 + %s15039_s22]]  }
  0x44   :  { %s15242_s4 = sld [smem:[%s19939_s0 + %s15040_s28]]  }
  0x47   :  { %20010 = sst [smem:[#allocation28_spill]] %s15227_s12 }
  0x48   :  { %20011 = sst [smem:[#allocation29_spill]] %s15232_s20 }
  0x49   :  { %s15247_s12 = sld [smem:[%s19939_s0 + %s15041_s7]]  }
  0x4a   :  { %s15252_s20 = sld [smem:[%s19939_s0 + %s15042_s15]]  }
  0x4b   :  { %85 = vsyncpa [#allocation3], 0  ;;  %v15255_v0 = vld [vmem:[%s15062_s9 + $0x28] sm:$0xff]  ;;  %v15258_v1 = vld [vmem:[%s15062_s9 + $0x10] sm:$0xff]  ;;  %vm184_vm0 = vcmask 195584  }
  0x4c   :  { %v15261_v2 = vld [vmem:[%s15062_s9 + $0x20] sm:$0xff]  ;;  %13405 = vmatprep.subr.mxu0 %v15255_v0  ;;  %13426 = vmatprep.subr.mxu1 %v15258_v1  ;;  %v15266_v3 = vld [vmem:[%s15062_s9 + $0x8] sm:$0xff]  ;;  %v15269_v4 = vld [vmem:[%s15062_s9 + $0x18] sm:$0xff] }
  0x4d   :  { %v15272_v5 = vld [vmem:[%s15062_s9] sm:$0xff]  ;;  %13406 = vmatpush3.msra.mxu0 %v15255_v0  ;;  %13427 = vmatpush3.msra.mxu1 %v15258_v1  ;;  %v15280_v7 = vld [vmem:[%s15057_s5 + $0x8] sm:$0xff]  ;;  %v15283_v8 = vld [vmem:[%s15057_s5 + $0x10] sm:$0xff] }
  0x4e   :  { %v15277_v6 = vld [vmem:[%s15057_s5] sm:$0xff]  ;;  %13407 = vmatprep.subr.mxu0 %v15261_v2  ;;  %13428 = vmatprep.subr.mxu1 %v15266_v3  ;;  %v15288_v9 = vld [vmem:[%s15057_s5 + $0x18] sm:$0xff]  ;;  %v186_v11 = vsel %vm184_vm0, %v15280_v7, 0.0  ;;  %v188_v12 = vsel %vm184_vm0, %v15283_v8, 0.0  ;;  %v15306_v16 = vld [vmem:[%s15057_s5 + $0x28] sm:$0xff]  ;;  %v211_v18 = vmul.f32 %v15280_v7, %v15280_v7  ;;  %v212_v21 = vmul.f32 %v15283_v8, %v15283_v8 }
  0x4f   :  { %v185_v10 = vsel %vm184_vm0, %v15277_v6, 0.0  ;;  %13408 = vmatpush3.msra.mxu0 %v15261_v2  ;;  %13429 = vmatpush3.msra.mxu1 %v15266_v3  ;;  %v15299_v13 = vld [vmem:[%s15057_s5 + $0x20] sm:$0xff]  ;;  %v210_v15 = vmul.f32 %v15277_v6, %v15277_v6  ;;  %v190_v17 = vsel %vm184_vm0, %v15288_v9, 0.0  ;;  %v15314_v19 = vld [vmem:[%s15057_s5 + $0x30] sm:$0xff]  ;;  %v15320_v22 = vld [vmem:[%s15057_s5 + $0x38] sm:$0xff]  ;;  %v213_v25 = vmul.f32 %v15288_v9, %v15288_v9 }
  0x50   :  { %v187_v14 = vadd.f32 %v186_v11, %v185_v10  ;;  %13409 = vmatprep.subr.mxu0 %v15269_v4  ;;  %13430 = vmatprep.subr.mxu1 %v15272_v5  ;;  %v15323_v23 = vld [vmem:[%s15057_s5 + $0x40] sm:$0xff]  ;;  %v192_v24 = vsel %vm184_vm0, %v15299_v13, 0.0  ;;  %v15331_v26 = vld [vmem:[%s15057_s5 + $0x48] sm:$0xff]  ;;  %v15334_v27 = vld [vmem:[%s15057_s5 + $0x50] sm:$0xff]  ;;  %v194_v29 = vsel %vm184_vm0, %v15306_v16, 0.0  ;;  %v196_v34 = vsel %vm184_vm0, %v15314_v19, 0.0 }
  0x51   :  { %13410 = vmatpush3.msra.mxu0 %v15269_v4  ;;  %13431 = vmatpush3.msra.mxu1 %v15272_v5  ;;  %v220_v30 = vsel %vm184_vm0, %v210_v15, 0.0  ;;  %v15340_v31 = vld [vmem:[%s15062_s9 + $0x40] sm:$0xff]  ;;  %v15343_v32 = vld [vmem:[%s15057_s5 + $0x58] sm:$0xff]  ;;  %v214_v35 = vmul.f32 %v15299_v13, %v15299_v13  ;;  %v221_v36 = vsel %vm184_vm0, %v211_v18, 0.0  ;;  %v223_v37 = vsel %vm184_vm0, %v212_v21, 0.0 }
  0x52   :  { %v189_v20 = vadd.f32 %v188_v12, %v187_v14  ;;  %13468 = vmatprep.subr.mxu1 %v15255_v0  ;;  %v15346_v33 = vld [vmem:[%s15057_s5 + $0x60] sm:$0xff]  ;;  %13447 = vmatprep.subr.mxu0 %v15340_v31  ;;  %v198_v39 = vsel %vm184_vm0, %v15320_v22, 0.0  ;;  %v200_v40 = vsel %vm184_vm0, %v15323_v23, 0.0  ;;  %v222_v41 = vadd.f32 %v221_v36, %v220_v30 }
  0x54   :  { %v191_v28 = vadd.f32 %v190_v17, %v189_v20 }
  0x56   :  { %v193_v38 = vadd.f32 %v192_v24, %v191_v28 }
  0x57   :  { %86 = vsyncpa [#allocation5], 0  ;;  %v15360_v42 = vld [vmem:[%s15057_s5 + $0x68] sm:$0xff]  ;;  %v202_v43 = vsel %vm184_vm0, %v15331_v26, 0.0  ;;  %v215_v44 = vmul.f32 %v15306_v16, %v15306_v16  ;;  %v225_v45 = vsel %vm184_vm0, %v213_v25, 0.0  ;;  %v245_v46 = vsel %vm184_vm0, %v15334_v27, 0.0 }
  0x58   :  { %v15370_v47 = vld [vmem:[%s15057_s5 + $0x70] sm:$0xff]  ;;  %v195_v48 = vadd.f32 %v194_v29, %v193_v38  ;;  %v224_v49 = vadd.f32 %v223_v37, %v222_v41  ;;  %v246_v50 = vsel %vm184_vm0, %v15343_v32, 0.0  ;;  %v248_v51 = vsel %vm184_vm0, %v15346_v33, 0.0  ;;  %v15386_v60 = vld [vmem:[%s15057_s5 + $0x78] sm:$0xff]  ;;  %v15394_v11 = vld [vmem:[%s15057_s5 + $0x80] sm:$0xff]  ;;  %s20066_s0 = sld [smem:[#allocation9_spill]] }
  0x59   :  { %v216_v52 = vmul.f32 %v15314_v19, %v15314_v19  ;;  %v217_v53 = vmul.f32 %v15320_v22, %v15320_v22  ;;  %v227_v54 = vsel %vm184_vm0, %v214_v35, 0.0  ;;  %v247_v55 = vadd.f32 %v246_v50, %v245_v46  ;;  %v15405_v25 = vld [vmem:[%s15057_s5 + $0x88] sm:$0xff]  ;;  %s20081_s22 = sld [smem:[#allocation24_spill]] }
  0x5a   :  { %v197_v56 = vadd.f32 %v196_v34, %v195_v48  ;;  %v218_v57 = vmul.f32 %v15323_v23, %v15323_v23  ;;  %v226_v58 = vadd.f32 %v225_v45, %v224_v49  ;;  %v250_v59 = vsel %vm184_vm0, %v15360_v42, 0.0  ;;  %s20082_s23 = sld [smem:[#allocation23_spill]] }
  0x5b   :  { %v229_v61 = vsel %vm184_vm0, %v215_v44, 0.0  ;;  %v249_v62 = vadd.f32 %v248_v51, %v247_v55  ;;  %v252_v63 = vsel %vm184_vm0, %v15370_v47, 0.0  ;;  %v271_v10 = vmul.f32 %v15334_v27, %v15334_v27  ;;  %s20083_s26 = sld [smem:[#allocation25_spill]] }
  0x5c   :  { %v199_v12 = vadd.f32 %v198_v39, %v197_v56  ;;  %v228_v14 = vadd.f32 %v227_v54, %v226_v58  ;;  %v272_v15 = vmul.f32 %v15343_v32, %v15343_v32  ;;  %v273_v17 = vmul.f32 %v15346_v33, %v15346_v33  ;;  %v15417_v39 = vld [vmem:[%s15057_s5 + $0x90] sm:$0xff]  ;;  %s20084_s28 = sld [smem:[#allocation27_spill]] }
  0x5d   :  { %v219_v18 = vmul.f32 %v15331_v26, %v15331_v26  ;;  %v231_v20 = vsel %vm184_vm0, %v216_v52, 0.0  ;;  %v233_v21 = vsel %vm184_vm0, %v217_v53, 0.0  ;;  %v251_v24 = vadd.f32 %v250_v59, %v249_v62  ;;  %s20085_s1 = sld [smem:[#allocation26_spill]] }
  0x5e   :  { %v201_v28 = vadd.f32 %v200_v40, %v199_v12  ;;  %v230_v29 = vadd.f32 %v229_v61, %v228_v14  ;;  %v254_v30 = vsel %vm184_vm0, %v15386_v60, 0.0  ;;  %v274_v34 = vmul.f32 %v15360_v42, %v15360_v42  ;;  %s20086_s2 = sld [smem:[#allocation28_spill]] }
  0x5f   :  { %v253_v35 = vadd.f32 %v252_v63, %v251_v24  ;;  %v256_v36 = vsel %vm184_vm0, %v15394_v11, 0.0  ;;  %v275_v37 = vmul.f32 %v15370_v47, %v15370_v47  ;;  %v281_v38 = vsel %vm184_vm0, %v271_v10, 0.0  ;;  %s20087_s7 = sld [smem:[#allocation29_spill]] }
  0x60   :  { %v203_v40 = vadd.f32 %v202_v43, %v201_v28  ;;  %v232_v41 = vadd.f32 %v231_v20, %v230_v29  ;;  %v282_v44 = vsel %vm184_vm0, %v272_v15, 0.0  ;;  %v284_v45 = vsel %vm184_vm0, %v273_v17, 0.0  ;;  %v15428_v43 = vld [vmem:[%s15057_s5 + $0x98] sm:$0xff]  ;;  %s20067_s5 = sld [smem:[#allocation8_spill]] }
  0x61   :  { %v235_v46 = vsel %vm184_vm0, %v218_v57, 0.0  ;;  %v255_v48 = vadd.f32 %v254_v30, %v253_v35  ;;  %v258_v49 = vsel %vm184_vm0, %v15405_v25, 0.0  ;;  %v283_v50 = vadd.f32 %v282_v44, %v281_v38 }
  0x62   :  { %v204_v51 = vrot.slane %v203_v40, 4  ;;  %v234_v52 = vadd.f32 %v233_v21, %v232_v41  ;;  %v276_v53 = vmul.f32 %v15386_v60, %v15386_v60  ;;  %v286_v54 = vsel %vm184_vm0, %v274_v34, 0.0 }
  0x63   :  { %v237_v55 = vsel %vm184_vm0, %v219_v18, 0.0  ;;  %v257_v56 = vadd.f32 %v256_v36, %v255_v48  ;;  %v260_v57 = vsel %vm184_vm0, %v15417_v39, 0.0  ;;  %v285_v58 = vadd.f32 %v284_v45, %v283_v50 }
  0x64   :  { %v205_v59 = vadd.f32 %v204_v51, %v203_v40  ;;  %v236_v61 = vadd.f32 %v235_v46, %v234_v52  ;;  %v277_v62 = vmul.f32 %v15394_v11, %v15394_v11  ;;  %v288_v63 = vsel %vm184_vm0, %v275_v37, 0.0 }
  0x65   :  { %v259_v10 = vadd.f32 %v258_v49, %v257_v56  ;;  %v287_v12 = vadd.f32 %v286_v54, %v285_v58  ;;  %v262_v15 = vsel %vm184_vm0, %v15428_v43, 0.0  ;;  %v278_v17 = vmul.f32 %v15405_v25, %v15405_v25 }
  0x66   :  { %v238_v14 = vadd.f32 %v237_v55, %v236_v61  ;;  %v290_v18 = vsel %vm184_vm0, %v276_v53, 0.0  ;;  %v206_v20 = vrot.slane %v205_v59, 2  ;;  %v279_v29 = vmul.f32 %v15417_v39, %v15417_v39 }
  0x67   :  { %v261_v21 = vadd.f32 %v260_v57, %v259_v10  ;;  %v289_v24 = vadd.f32 %v288_v63, %v287_v12  ;;  %v292_v30 = vsel %vm184_vm0, %v277_v62, 0.0  ;;  %v280_v36 = vmul.f32 %v15428_v43, %v15428_v43 }
  0x68   :  { %v239_v28 = vrot.slane %v238_v14, 4  ;;  %v294_v37 = vsel %vm184_vm0, %v278_v17, 0.0  ;;  %v207_v38 = vadd.f32 %v206_v20, %v205_v59  ;;  %v296_v45 = vsel %vm184_vm0, %v279_v29, 0.0 }
  0x69   :  { %v263_v34 = vadd.f32 %v262_v15, %v261_v21  ;;  %v291_v35 = vadd.f32 %v290_v18, %v289_v24  ;;  %v298_v49 = vsel %vm184_vm0, %v280_v36, 0.0  ;;  %vm373_vm1 = vcmask 1046528  }
  0x6a   :  { %v240_v40 = vadd.f32 %v239_v28, %v238_v14  ;;  %v208_v50 = vrot.slane %v207_v38, 1  ;;  %vm663_vm2 = vcmask 1045504   ;;  %vm1337_vm3 = vcmask 261120  }
  0x6b   :  { %v264_v41 = vrot.slane %v263_v34, 4  ;;  %v293_v44 = vadd.f32 %v292_v30, %v291_v35  ;;  %vm1355_vm4 = vcmask 259072   ;;  %vm2509_vm5 = vcmask 257024  }
  0x6c   :  { %v241_v51 = vrot.slane %v240_v40, 2  ;;  %v209_v56 = vadd.f32 %v208_v50, %v207_v38  ;;  %vm2681_vm6 = vcmask 1040384   ;;  %vm3111_vm7 = vcmask 1044480  }
  0x6d   :  { %v265_v46 = vadd.f32 %v264_v41, %v263_v34  ;;  %v295_v48 = vadd.f32 %v294_v37, %v293_v44  ;;  %vm15044_vm8 = vmmov 0   ;;  %vm3821_vm9 = vcmask 254976  }
  0x6e   :  { %v242_v57 = vadd.f32 %v241_v51, %v240_v40  ;;  %vm3993_vm10 = vcmask 1041408   ;;  %vm4409_vm11 = vcmask 1043456   ;;  %vm5241_vm12 = vcmask 1042432  }
  0x6f   :  { %v266_v52 = vrot.slane %v265_v46, 2  ;;  %v297_v53 = vadd.f32 %v296_v45, %v295_v48  ;;  %vm5396_vm14 = vcmask 588800  }
  0x70   :  { %v243_v63 = vrot.slane %v242_v57, 1 }
  0x71   :  { %v267_v54 = vadd.f32 %v266_v52, %v265_v46  ;;  %v299_v55 = vadd.f32 %v298_v49, %v297_v53 }
  0x72   :  { %v244_v15 = vadd.f32 %v243_v63, %v242_v57  ;;  %v15535_v63 = vld [vmem:[%s15062_s9 + $0x38] sm:$0xff] }
  0x73   :  { %v268_v58 = vrot.slane %v267_v54, 1  ;;  %v300_v61 = vrot.slane %v299_v55, 4 }
  0x75   :  { %v269_v59 = vadd.f32 %v268_v58, %v267_v54  ;;  %v301_v62 = vadd.f32 %v300_v61, %v299_v55 }
  0x77   :  { %v270_v10 = vadd.f32 %v269_v59, %v209_v56  ;;  %v302_v12 = vrot.slane %v301_v62, 2 }
  0x79   :  { %v303_v14 = vadd.f32 %v302_v12, %v301_v62  ;;  %v15449_v18 = vmul.f32 0.00625, %v270_v10 }
  0x7b   :  { %v304_v17 = vrot.slane %v303_v14, 1  ;;  %v309_v24 = vmul.f32 %v15449_v18, %v15449_v18  ;;  %v313_v34 = vsub.f32 %v15277_v6, %v15449_v18  ;;  %v314_v35 = vsub.f32 %v15280_v7, %v15449_v18 }
  0x7c   :  { %v315_v36 = vsub.f32 %v15283_v8, %v15449_v18  ;;  %v316_v37 = vsub.f32 %v15288_v9, %v15449_v18  ;;  %v317_v38 = vsub.f32 %v15299_v13, %v15449_v18  ;;  %v318_v40 = vsub.f32 %v15306_v16, %v15449_v18 }
  0x7d   :  { %v305_v20 = vadd.f32 %v304_v17, %v303_v14  ;;  %v319_v41 = vsub.f32 %v15314_v19, %v15449_v18  ;;  %v320_v6 = vsub.f32 %v15320_v22, %v15449_v18  ;;  %v321_v7 = vsub.f32 %v15323_v23, %v15449_v18 }
  0x7e   :  { %v322_v8 = vsub.f32 %v15331_v26, %v15449_v18  ;;  %v333_v45 = vsub.f32 %v15334_v27, %v15449_v18  ;;  %v334_v27 = vsub.f32 %v15343_v32, %v15449_v18  ;;  %v335_v53 = vsub.f32 %v15346_v33, %v15449_v18 }
  0x7f   :  { %v306_v21 = vadd.f32 %v305_v20, %v244_v15  ;;  %v336_v32 = vsub.f32 %v15360_v42, %v15449_v18  ;;  %v337_v58 = vsub.f32 %v15370_v47, %v15449_v18  ;;  %v338_v33 = vsub.f32 %v15386_v60, %v15449_v18 }
  0x80   :  { %v339_v42 = vsub.f32 %v15394_v11, %v15449_v18  ;;  %v340_v14 = vsub.f32 %v15405_v25, %v15449_v18  ;;  %v15572_v25 = vld [vmem:[%s15062_s9 + $0x30] sm:$0xff]  ;;  %s20068_s9 = sld [smem:[#allocation11_spill]] }
  0x81   :  { %v308_v28 = vmul.f32 0.00625, %v306_v21  ;;  %v341_v21 = vsub.f32 %v15417_v39, %v15449_v18 }
  0x83   :  { %v310_v29 = vsub.f32 %v308_v28, %v309_v24 }
  0x85   :  { %v311_v30 = vadd.f32 1e-05, %v310_v29  ;;  %v342_v29 = vsub.f32 %v15428_v43, %v15449_v18 }
  0x87   :  { %14908 = vrsqrt.f32 %v311_v30 }
  0x94   :  { %v15467_v44 = vpop.eup %14908 }
  0x95   :  { %v15476_v9 = vmul.f32 %v15467_v44, %v313_v34  ;;  %v15479_v13 = vmul.f32 %v15467_v44, %v314_v35  ;;  %v15482_v16 = vmul.f32 %v15467_v44, %v315_v36  ;;  %v15485_v19 = vmul.f32 %v15467_v44, %v316_v37 }
  0x96   :  { %v15488_v22 = vmul.f32 %v15467_v44, %v317_v38  ;;  %v15491_v23 = vmul.f32 %v15467_v44, %v318_v40  ;;  %v15494_v26 = vmul.f32 %v15467_v44, %v319_v41  ;;  %v15508_v52 = vmul.f32 %v15467_v44, %v320_v6 }
  0x97   :  { %v374_v46 = vrot.slane %v15476_v9, 1  ;;  %v375_v48 = vrot.slane %v15479_v13, 1  ;;  %13432 = vmatprep.mubr.msk.f32.mxu1 %vm184_vm0, %v15476_v9  ;;  %v377_v49 = vrot.slane %v15482_v16, 1  ;;  %v379_v50 = vrot.slane %v15485_v19, 1 }
  0x98   :  { %13433 = vmatmul.mubr.msk.f32.vlgmr.msra.gmra.mxu1 %vm184_vm0, %v15479_v13  ;;  %v381_v51 = vrot.slane %v15488_v22, 1  ;;  %v383_v57 = vrot.slane %v15491_v23, 1  ;;  %v385_v59 = vrot.slane %v15494_v26, 1  ;;  %v15531_v62 = vmul.f32 %v15467_v44, %v321_v7 }
  0x99   :  { %v376_v54 = vsel %vm373_vm1, %v374_v46, %v375_v48  ;;  %v378_v55 = vsel %vm373_vm1, %v375_v48, %v377_v49  ;;  %v380_v56 = vsel %vm373_vm1, %v377_v49, %v379_v50  ;;  %13435 = vmatprep.mubr.msk.f32.mxu1 %vm184_vm0, %v15482_v16  ;;  %13469 = vmatpush3.msra.mxu1 %v15255_v0  ;;  %v387_v11 = vrot.slane %v15508_v52, 1 }
  0x9a   :  { %13411 = vmatprep.mubr.msk.f32.mxu0 %vm184_vm0, %v376_v54  ;;  %v382_v61 = vsel %vm373_vm1, %v379_v50, %v381_v51  ;;  %v15543_v47 = vmul.f32 %v15467_v44, %v333_v45  ;;  %v15546_v60 = vmul.f32 %v15467_v44, %v334_v27  ;;  %v15549_v10 = vmul.f32 %v15467_v44, %v335_v53 }
  0x9b   :  { %13412 = vmatmul.mubr.msk.f32.vlgmr.msra.gmra.mxu0 %vm184_vm0, %v378_v55  ;;  %v384_v0 = vsel %vm373_vm1, %v381_v51, %v383_v57  ;;  %v15556_v12 = vmul.f32 %v15467_v44, %v322_v8  ;;  %13470 = vmatprep.subr.mxu1 %v15261_v2  ;;  %v386_v24 = vsel %vm373_vm1, %v383_v57, %v385_v59  ;;  %v389_v39 = vrot.slane %v15531_v62, 1 }
  0x9c   :  { %13414 = vmatprep.mubr.msk.f32.mxu0 %vm184_vm0, %v380_v56  ;;  %13436 = vmatmul.mubr.msk.f32.gmra.mxu1 %vm184_vm0, %v15485_v19  ;;  %v864_v15 = vrot.slane %v15543_v47, 1  ;;  %v865_v17 = vrot.slane %v15546_v60, 1  ;;  %v867_v20 = vrot.slane %v15549_v10, 1  ;;  %v15575_v28 = vmul.f32 %v15467_v44, %v336_v32 }
  0x9d   :  { %13438 = vmatprep.mubr.msk.f32.mxu1 %vm184_vm0, %v15488_v22  ;;  %13448 = vmatpush3.msra.mxu0 %v15340_v31  ;;  %v388_v35 = vsel %vm373_vm1, %v385_v59, %v387_v11  ;;  %v391_v43 = vrot.slane %v15556_v12, 1  ;;  %v15597_v36 = vmul.f32 %v15467_v44, %v338_v33  ;;  %v664_v37 = vrot.slane %v15476_v9, 2 }
  0x9e   :  { %13449 = vmatprep.subr.mxu0 %v15535_v63  ;;  %13471 = vmatpush3.msra.mxu1 %v15261_v2  ;;  %v866_v30 = vsel %vm373_vm1, %v864_v15, %v865_v17  ;;  %v15585_v34 = vsel %vm373_vm1, %v865_v17, %v867_v20  ;;  %v15588_v2 = vmul.f32 %v15467_v44, %v337_v58  ;;  %v869_v18 = vrot.slane %v15575_v28, 1 }
  0x9f   :  { %13415 = vmatmul.mubr.msk.f32.gmra.mxu0 %vm184_vm0, %v382_v61  ;;  %13472 = vmatprep.subr.mxu1 %v15269_v4  ;;  %v665_v38 = vrot.slane %v15479_v13, 2  ;;  %v15605_v41 = vmul.f32 %v15467_v44, %v339_v42  ;;  %v873_v7 = vrot.slane %v15597_v36, 1  ;;  %v15612_v8 = vmul.f32 %v15467_v44, %v340_v14 }
  0xa0   :  { %13417 = vmatprep.mubr.msk.f32.mxu0 %vm184_vm0, %v384_v0  ;;  %13439 = vmatmul.mubr.msk.f32.gmra.mxu1 %vm184_vm0, %v15491_v23  ;;  %v871_v40 = vrot.slane %v15588_v2, 1  ;;  %v870_v6 = vsel %vm373_vm1, %v867_v20, %v869_v18  ;;  %v390_v9 = vsel %vm373_vm1, %v387_v11, %v389_v39  ;;  %v667_v13 = vrot.slane %v15482_v16, 2 }
  0xa1   :  { %13441 = vmatprep.mubr.msk.f32.mxu1 %vm184_vm0, %v15494_v26  ;;  %13450 = vmatpush3.msra.mxu0 %v15535_v63  ;;  %v392_v46 = vsel %vm373_vm1, %v389_v39, %v391_v43  ;;  %v877_v49 = vrot.slane %v15612_v8, 1  ;;  %v15628_v50 = vmul.f32 %v15467_v44, %v341_v21  ;;  %v666_v16 = vsel %vm663_vm2, %v664_v37, %v665_v38 }
  0xa2   :  { %13451 = vmatprep.subr.mxu0 %v15572_v25  ;;  %13473 = vmatpush3.msra.mxu1 %v15269_v4  ;;  %v872_v45 = vsel %vm373_vm1, %v869_v18, %v871_v40  ;;  %v875_v4 = vrot.slane %v15605_v41, 1  ;;  %v874_v48 = vsel %vm373_vm1, %v871_v40, %v873_v7  ;;  %v15635_v27 = vmul.f32 %v15467_v44, %v342_v29 }
  0xa3   :  { %13418 = vmatmul.mubr.msk.f32.gmra.mxu0 %vm184_vm0, %v386_v24  ;;  %13510 = vmatprep.subr.mxu1 %v15340_v31  ;;  %v1153_v53 = vrot.slane %v15543_v47, 2  ;;  %v669_v54 = vrot.slane %v15485_v19, 2  ;;  %v879_v56 = vrot.slane %v15628_v50, 1  ;;  %v1154_v57 = vrot.slane %v15546_v60, 2 }
  0xa4   :  { %13420 = vmatprep.mubr.msk.f32.mxu0 %vm184_vm0, %v388_v35  ;;  %13442 = vmatmul.mubr.msk.f32.gmra.mxu1 %vm184_vm0, %v15508_v52  ;;  %v876_v51 = vsel %vm373_vm1, %v873_v7, %v875_v4  ;;  %v878_v55 = vsel %vm373_vm1, %v875_v4, %v877_v49  ;;  %v881_v44 = vrot.slane %v15635_v27, 1  ;;  %v1156_v32 = vrot.slane %v15549_v10, 2 }
  0xa5   :  { %13444 = vmatprep.mubr.msk.f32.mxu1 %vm184_vm0, %v15531_v62  ;;  %13452 = vmatpush3.msra.mxu0 %v15572_v25  ;;  %v1158_v58 = vrot.slane %v15575_v28, 2  ;;  %v1160_v33 = vrot.slane %v15588_v2, 2  ;;  %v880_v19 = vsel %vm373_vm1, %v877_v49, %v879_v56  ;;  %v1155_v61 = vsel %vm663_vm2, %v1153_v53, %v1154_v57 }
  0xa6   :  { %13489 = vmatprep.subr.mxu0 %v15258_v1  ;;  %v1162_v59 = vrot.slane %v15597_v36, 2  ;;  %v1164_v42 = vrot.slane %v15605_v41, 2  ;;  %v882_v0 = vsel %vm373_vm1, %v879_v56, %v881_v44  ;;  %v1157_v11 = vsel %vm663_vm2, %v1154_v57, %v1156_v32 }
  0xa7   :  { %13421 = vmatmul.mubr.msk.f32.gmra.mxu0 %vm184_vm0, %v390_v9  ;;  %v1159_v14 = vsel %vm663_vm2, %v1156_v32, %v1158_v58  ;;  %v1161_v15 = vsel %vm663_vm2, %v1158_v58, %v1160_v33  ;;  %v1166_v21 = vrot.slane %v15612_v8, 2  ;;  %v1168_v24 = vrot.slane %v15628_v50, 2  ;;  %v15804_v58 = vld [vmem:[%s15067_s13] ss:$0 sm:$0xff]  ;;  %s20069_s13 = sld [smem:[#allocation10_spill]] }
  0xa8   :  { %13423 = vmatprep.mubr.msk.f32.mxu0 %vm184_vm0, %v392_v46  ;;  %13445 = vmatmul.mubr.msk.f32.gmra.mxu1 %vm184_vm0, %v15556_v12  ;;  %v1163_v17 = vsel %vm663_vm2, %v1160_v33, %v1162_v59  ;;  %v1165_v20 = vsel %vm663_vm2, %v1162_v59, %v1164_v42  ;;  %v668_v29 = vsel %vm663_vm2, %v665_v38, %v667_v13  ;;  %v671_v39 = vrot.slane %v15488_v22, 2 }
  0xa9   :  { %13474 = vmatprep.mubr.msk.f32.mxu1 %vm184_vm0, %v866_v30  ;;  %v1170_v30 = vrot.slane %v15635_v27, 2  ;;  %v670_v35 = vsel %vm663_vm2, %v667_v13, %v669_v54  ;;  %v1167_v18 = vsel %vm663_vm2, %v1164_v42, %v1166_v21  ;;  %v1169_v37 = vsel %vm663_vm2, %v1166_v21, %v1168_v24  ;;  %v15788_v13 = vld [vmem:[%s15072_s17 + $0x58] sm:$0xff] }
  0xaa   :  { %v672_v22 = vsel %vm663_vm2, %v669_v54, %v671_v39  ;;  %v677_v38 = vrot.slane %v15508_v52, 2 }
  0xab   :  { %13424 = vmatmul.mubr.msk.f32.gmra.mxu0 %vm184_vm0, %v391_v43  ;;  %v673_v43 = vrot.slane %v15491_v23, 2 }
  0xac   :  { %13453 = vmatprep.mubr.msk.f32.mxu0 %vm184_vm0, %v666_v16  ;;  %13475 = vmatmul.mubr.msk.f32.vlgmr.msra.gmra.mxu1 %vm184_vm0, %v15585_v34  ;;  %v1171_v34 = vsel %vm663_vm2, %v1168_v24, %v1170_v30 }
  0xad   :  { %13477 = vmatprep.mubr.msk.f32.mxu1 %vm184_vm0, %v870_v6  ;;  %13511 = vmatpush3.msra.mxu1 %v15340_v31  ;;  %v675_v31 = vrot.slane %v15494_v26, 2  ;;  %v674_v23 = vsel %vm663_vm2, %v671_v39, %v673_v43 }
  0xae   :  { %13512 = vmatprep.subr.mxu1 %v15535_v63 }
  0xaf   :  { %13454 = vmatmul.mubr.msk.f32.vlgmr.msra.gmra.mxu0 %vm184_vm0, %v668_v29  ;;  %13513 = vmatpush3.msra.mxu1 %v15535_v63  ;;  %v676_v26 = vsel %vm663_vm2, %v673_v43, %v675_v31  ;;  %v679_v63 = vrot.slane %v15531_v62, 2  ;;  %v678_v52 = vsel %vm663_vm2, %v675_v31, %v677_v38 }
  0xb0   :  { %13456 = vmatprep.mubr.msk.f32.mxu0 %vm184_vm0, %v670_v35  ;;  %13478 = vmatmul.mubr.msk.f32.gmra.mxu1 %vm184_vm0, %v872_v45 }
  0xb1   :  { %13480 = vmatprep.mubr.msk.f32.mxu1 %vm184_vm0, %v874_v48  ;;  %13490 = vmatpush3.msra.mxu0 %v15258_v1  ;;  %v681_v1 = vrot.slane %v15556_v12, 2  ;;  %v15771_v12 = vld [vmem:[%s15072_s17] sm:$0xff] }
  0xb2   :  { %13491 = vmatprep.subr.mxu0 %v15266_v3  ;;  %13514 = vmatprep.subr.mxu1 %v15572_v25 }
  0xb3   :  { %13457 = vmatmul.mubr.msk.f32.gmra.mxu0 %vm184_vm0, %v672_v22  ;;  %13515 = vmatpush3.msra.mxu1 %v15572_v25  ;;  %v680_v25 = vsel %vm663_vm2, %v677_v38, %v679_v63  ;;  %v682_v62 = vsel %vm663_vm2, %v679_v63, %v681_v1 }
  0xb4   :  { %13459 = vmatprep.mubr.msk.f32.mxu0 %vm184_vm0, %v674_v23  ;;  %13481 = vmatmul.mubr.msk.f32.gmra.mxu1 %vm184_vm0, %v876_v51 }
  0xb5   :  { %13483 = vmatprep.mubr.msk.f32.mxu1 %vm184_vm0, %v878_v55  ;;  %13492 = vmatpush3.msra.mxu0 %v15266_v3  ;;  %v15747_v3 = vld [vmem:[%s15072_s17 + $0x18] sm:$0xff] }
  0xb6   :  { %13493 = vmatprep.subr.mxu0 %v15272_v5  ;;  %13554 = vmatprep.subr.mxu1 %v15747_v3 }
  0xb7   :  { %13460 = vmatmul.mubr.msk.f32.gmra.mxu0 %vm184_vm0, %v676_v26 }
  0xb8   :  { %13462 = vmatprep.mubr.msk.f32.mxu0 %vm184_vm0, %v678_v52  ;;  %13484 = vmatmul.mubr.msk.f32.gmra.mxu1 %vm184_vm0, %v880_v19 }
  0xb9   :  { %13486 = vmatprep.mubr.msk.f32.mxu1 %vm184_vm0, %v882_v0  ;;  %13494 = vmatpush3.msra.mxu0 %v15272_v5  ;;  %v15752_v5 = vld [vmem:[%s15072_s17 + $0x10] sm:$0xff] }
  0xbb   :  { %13463 = vmatmul.mubr.msk.f32.gmra.mxu0 %vm184_vm0, %v680_v25 }
  0xbc   :  { %13465 = vmatprep.mubr.msk.f32.mxu0 %vm184_vm0, %v682_v62  ;;  %13487 = vmatmul.mubr.msk.f32.gmra.mxu1 %vm184_vm0, %v881_v44 }
  0xbd   :  { %13516 = vmatprep.mubr.msk.f32.mxu1 %vm184_vm0, %v1155_v61 }
  0xbf   :  { %13466 = vmatmul.mubr.msk.f32.gmra.mxu0 %vm184_vm0, %v681_v1 }
  0xc0   :  { %13495 = vmatprep.mubr.msk.f32.mxu0 %vm184_vm0, %v15543_v47  ;;  %13517 = vmatmul.mubr.msk.f32.vlgmr.msra.gmra.mxu1 %vm184_vm0, %v1157_v11  ;;  %v15756_v47 = vld [vmem:[%s15072_s17 + $0x38] sm:$0xff] }
  0xc1   :  { %13519 = vmatprep.mubr.msk.f32.mxu1 %vm184_vm0, %v1159_v14  ;;  %13555 = vmatpush3.msra.mxu1 %v15747_v3 }
  0xc2   :  { %13556 = vmatprep.subr.mxu1 %v15752_v5  ;;  %13531 = vmatprep.subr.mxu0 %v15756_v47 }
  0xc3   :  { %13496 = vmatmul.mubr.msk.f32.vlgmr.msra.gmra.mxu0 %vm184_vm0, %v15546_v60  ;;  %13557 = vmatpush3.msra.mxu1 %v15752_v5  ;;  %v15761_v60 = vld [vmem:[%s15072_s17 + $0x8] sm:$0xff] }
  0xc4   :  { %13498 = vmatprep.mubr.msk.f32.mxu0 %vm184_vm0, %v15549_v10  ;;  %13520 = vmatmul.mubr.msk.f32.gmra.mxu1 %vm184_vm0, %v1161_v15  ;;  %v15766_v10 = vld [vmem:[%s15072_s17 + $0x30] sm:$0xff] }
  0xc5   :  { %13522 = vmatprep.mubr.msk.f32.mxu1 %vm184_vm0, %v1163_v17  ;;  %13532 = vmatpush3.msra.mxu0 %v15756_v47 }
  0xc6   :  { %13558 = vmatprep.subr.mxu1 %v15761_v60  ;;  %13533 = vmatprep.subr.mxu0 %v15766_v10 }
  0xc7   :  { %13499 = vmatmul.mubr.msk.f32.gmra.mxu0 %vm184_vm0, %v15575_v28  ;;  %13559 = vmatpush3.msra.mxu1 %v15761_v60  ;;  %v15774_v28 = vld [vmem:[%s15072_s17 + $0x28] sm:$0xff] }
  0xc8   :  { %13501 = vmatprep.mubr.msk.f32.mxu0 %vm184_vm0, %v15588_v2  ;;  %13523 = vmatmul.mubr.msk.f32.gmra.mxu1 %vm184_vm0, %v1165_v20  ;;  %v15782_v2 = vld [vmem:[%s15072_s17 + $0x20] sm:$0xff] }
  0xc9   :  { %13525 = vmatprep.mubr.msk.f32.mxu1 %vm184_vm0, %v1167_v18  ;;  %13534 = vmatpush3.msra.mxu0 %v15766_v10 }
  0xca   :  { %13560 = vmatprep.subr.mxu1 %v15771_v12  ;;  %13535 = vmatprep.subr.mxu0 %v15774_v28 }
  0xcb   :  { %13502 = vmatmul.mubr.msk.f32.gmra.mxu0 %vm184_vm0, %v15597_v36  ;;  %13561 = vmatpush3.msra.mxu1 %v15771_v12 }
  0xcc   :  { %13504 = vmatprep.mubr.msk.f32.mxu0 %vm184_vm0, %v15605_v41  ;;  %13526 = vmatmul.mubr.msk.f32.gmra.mxu1 %vm184_vm0, %v1169_v37 }
  0xcd   :  { %13528 = vmatprep.mubr.msk.f32.mxu1 %vm184_vm0, %v1171_v34  ;;  %13536 = vmatpush3.msra.mxu0 %v15774_v28 }
  0xce   :  { %13600 = vmatprep.subr.mxu1 %v15756_v47  ;;  %13537 = vmatprep.subr.mxu0 %v15782_v2 }
  0xcf   :  { %13505 = vmatmul.mubr.msk.f32.gmra.mxu0 %vm184_vm0, %v15612_v8 }
  0xd0   :  { %13507 = vmatprep.mubr.msk.f32.mxu0 %vm184_vm0, %v15628_v50  ;;  %13529 = vmatmul.mubr.msk.f32.gmra.mxu1 %vm184_vm0, %v1170_v30 }
  0xd1   :  { %13538 = vmatpush3.msra.mxu0 %v15782_v2 }
  0xd2   :  { %13577 = vmatprep.subr.mxu0 %v15788_v13 }
  0xd3   :  { %13508 = vmatmul.mubr.msk.f32.gmra.mxu0 %vm184_vm0, %v15635_v27 }
 0x158   :  { %v13434_v36 = vpop.f32.mrf.mxu1 }
 0x15a   :  { %v614_v40 = vpop.f32.mrf.mxu1 }
 0x15b   :  { %v13413_v41 = vpop.f32.mrf.mxu0 }
 0x15c   :  { %v13437_v6 = vpop.f32.mrf.mxu1  ;;  %v620_v44 = vadd.f32 %v13434_v36, %v13413_v41 }
 0x15d   :  { %v479_v7 = vpop.f32.mrf.mxu0 }
 0x15e   :  { %v624_v8 = vpop.f32.mrf.mxu1  ;;  %v615_v19 = vadd.f32 %v614_v40, %v479_v7 }
 0x15f   :  { %v13416_v9 = vpop.f32.mrf.mxu0 }
 0x160   :  { %v13440_v45 = vpop.f32.mrf.mxu1  ;;  %v630_v0 = vadd.f32 %v13437_v6, %v13416_v9 }
 0x161   :  { %v489_v4 = vpop.f32.mrf.mxu0 }
 0x162   :  { %v634_v46 = vpop.f32.mrf.mxu1  ;;  %v625_v39 = vadd.f32 %v624_v8, %v489_v4 }
 0x163   :  { %v13419_v48 = vpop.f32.mrf.mxu0 }
 0x164   :  { %v13443_v49 = vpop.f32.mrf.mxu1  ;;  %v640_v37 = vadd.f32 %v13440_v45, %v13419_v48 }
 0x165   :  { %v499_v50 = vpop.f32.mrf.mxu0 }
 0x166   :  { %v644_v16 = vpop.f32.mrf.mxu1  ;;  %v635_v31 = vadd.f32 %v634_v46, %v499_v50 }
 0x167   :  { %v13422_v51 = vpop.f32.mrf.mxu0 }
 0x168   :  { %v15791_v27 = vpop.f32.mrf.mxu1  ;;  %v650_v6 = vadd.f32 %v13443_v49, %v13422_v51 }
 0x169   :  { %v509_v53 = vpop.f32.mrf.mxu0 }
 0x16a   :  { %v15793_v54 = vpop.f32.mrf.mxu1  ;;  %v645_v7 = vadd.f32 %v644_v16, %v509_v53 }
 0x16b   :  { %v15795_v55 = vpop.f32.mrf.mxu0 }
 0x16c   :  { %v15797_v56 = vpop.f32.mrf.mxu1 }
 0x16d   :  { %v15799_v57 = vpop.f32.mrf.mxu0 }
 0x16e   :  { %v15801_v32 = vpop.f32.mrf.mxu1 }
 0x16f   :  { %v13455_v33 = vpop.f32.mrf.mxu0 }
 0x170   :  { %v819_v61 = vadd.f32 %v13455_v33, %v620_v44  ;;  %v15806_v59 = vpop.f32.mrf.mxu1 }
 0x171   :  { %v769_v42 = vpop.f32.mrf.mxu0 }
 0x172   :  { %v835_v11 = vadd.f32 %v15804_v58, %v819_v61  ;;  %v818_v14 = vadd.f32 %v769_v42, %v615_v19  ;;  %v15809_v15 = vpop.f32.mrf.mxu1 }
 0x173   :  { %v13458_v17 = vpop.f32.mrf.mxu0 }
 0x174   :  { %v15811_v20 = vmax.f32 %v835_v11, 0.0  ;;  %v834_v21 = vadd.f32 %v15804_v58, %v818_v14  ;;  %v821_v24 = vadd.f32 %v13458_v17, %v630_v0  ;;  %v15814_v29 = vpop.f32.mrf.mxu1 }
 0x175   :  { %v779_v30 = vpop.f32.mrf.mxu0 }
 0x176   :  { %v15816_v35 = vmax.f32 %v834_v21, 0.0  ;;  %v837_v43 = vadd.f32 %v15804_v58, %v821_v24  ;;  %v15819_v18 = vpop.f32.mrf.mxu1  ;;  %v820_v34 = vadd.f32 %v779_v30, %v625_v39  ;;  %v1365_v23 = vmul.f32 %v15811_v20, %v15811_v20 }
 0x177   :  { %v13461_v22 = vpop.f32.mrf.mxu0  ;;  %v1339_v8 = vsel %vm1337_vm3, %v15811_v20, 0.0 }
 0x178   :  { %v1364_v38 = vmul.f32 %v15816_v35, %v15816_v35  ;;  %v15825_v26 = vmax.f32 %v837_v43, 0.0  ;;  %v15827_v63 = vpop.f32.mrf.mxu1  ;;  %v1338_v52 = vsel %vm1337_vm3, %v15816_v35, 0.0  ;;  %v836_v1 = vadd.f32 %v15804_v58, %v820_v34 }
 0x179   :  { %v823_v25 = vadd.f32 %v13461_v22, %v640_v37  ;;  %v789_v62 = vpop.f32.mrf.mxu0  ;;  %v1375_v4 = vsel %vm1337_vm3, %v1365_v23, 0.0  ;;  %v1340_v46 = vadd.f32 %v1339_v8, %v1338_v52 }
 0x17a   :  { %v1374_v36 = vsel %vm1337_vm3, %v1364_v38, 0.0  ;;  %v822_v40 = vadd.f32 %v789_v62, %v635_v31  ;;  %v15833_v41 = vpop.f32.mrf.mxu1  ;;  %v15837_v9 = vmax.f32 %v836_v1, 0.0  ;;  %v1367_v48 = vmul.f32 %v15825_v26, %v15825_v26 }
 0x17b   :  { %v13464_v45 = vpop.f32.mrf.mxu0  ;;  %v1376_v33 = vadd.f32 %v1375_v4, %v1374_v36  ;;  %v839_v51 = vadd.f32 %v15804_v58, %v823_v25  ;;  %v1343_v14 = vsel %vm1337_vm3, %v15825_v26, 0.0  ;;  %v655_v1 = vadd.f32 %v15793_v54, %v15799_v57 }
 0x17c   :  { %v838_v50 = vadd.f32 %v15804_v58, %v822_v40  ;;  %v15843_v44 = vpop.f32.mrf.mxu1  ;;  %v1341_v49 = vsel %vm1337_vm3, %v15837_v9, 0.0  ;;  %v1366_v16 = vmul.f32 %v15837_v9, %v15837_v9  ;;  %v825_v42 = vadd.f32 %v13464_v45, %v650_v6 }
 0x17d   :  { %v799_v53 = vpop.f32.mrf.mxu0  ;;  %v1342_v19 = vadd.f32 %v1341_v49, %v1340_v46  ;;  %v15861_v34 = vmax.f32 %v839_v51, 0.0  ;;  %v1379_v23 = vsel %vm1337_vm3, %v1367_v48, 0.0  ;;  %v660_v40 = vadd.f32 %v15791_v27, %v15795_v55 }
 0x17e   :  { %v15850_v61 = vmax.f32 %v838_v50, 0.0  ;;  %v824_v0 = vadd.f32 %v799_v53, %v645_v7  ;;  %v15852_v11 = vpop.f32.mrf.mxu1  ;;  %v1377_v17 = vsel %vm1337_vm3, %v1366_v16, 0.0  ;;  %v841_v38 = vadd.f32 %v15804_v58, %v825_v42 }
 0x17f   :  { %v13467_v21 = vpop.f32.mrf.mxu0  ;;  %v1378_v24 = vadd.f32 %v1377_v17, %v1376_v33  ;;  %v1344_v39 = vadd.f32 %v1343_v14, %v1342_v19  ;;  %v1347_v4 = vsel %vm1337_vm3, %v15861_v34, 0.0  ;;  %v1369_v54 = vmul.f32 %v15861_v34, %v15861_v34 }
 0x180   :  { %v1345_v30 = vsel %vm1337_vm3, %v15850_v61, 0.0  ;;  %v1368_v43 = vmul.f32 %v15850_v61, %v15850_v61  ;;  %v13518_v37 = vpop.f32.mrf.mxu1  ;;  %v840_v22 = vadd.f32 %v15804_v58, %v824_v0  ;;  %v15878_v57 = vmax.f32 %v841_v38, 0.0 }
 0x181   :  { %v809_v31 = vpop.f32.mrf.mxu0  ;;  %v1346_v25 = vadd.f32 %v1345_v30, %v1344_v39  ;;  %v1380_v62 = vadd.f32 %v1379_v23, %v1378_v24  ;;  %v827_v50 = vadd.f32 %v13467_v21, %v660_v40  ;;  %v1383_v24 = vsel %vm1337_vm3, %v1369_v54, 0.0 }
 0x182   :  { %v1258_v52 = vpop.f32.mrf.mxu1  ;;  %v1381_v6 = vsel %vm1337_vm3, %v1368_v43, 0.0  ;;  %v15871_v7 = vmax.f32 %v840_v22, 0.0  ;;  %v826_v46 = vadd.f32 %v809_v31, %v655_v1 }
 0x183   :  { %v13497_v36 = vpop.f32.mrf.mxu0  ;;  %v1382_v55 = vadd.f32 %v1381_v6, %v1380_v62  ;;  %v1348_v49 = vadd.f32 %v1347_v4, %v1346_v25  ;;  %v843_v39 = vadd.f32 %v15804_v58, %v827_v50  ;;  %v1351_v6 = vsel %vm1337_vm3, %v15878_v57, 0.0 }
 0x184   :  { %v1110_v8 = vadd.f32 %v13497_v36, %v15797_v56  ;;  %v13521_v45 = vpop.f32.mrf.mxu1  ;;  %v1349_v56 = vsel %vm1337_vm3, %v15871_v7, 0.0  ;;  %v1370_v53 = vmul.f32 %v15871_v7, %v15871_v7  ;;  %v842_v42 = vadd.f32 %v15804_v58, %v826_v46 }
 0x185   :  { %v1104_v48 = vpop.f32.mrf.mxu0  ;;  %v1384_v22 = vadd.f32 %v1383_v24, %v1382_v55 }
 0x186   :  { %v1308_v33 = vadd.f32 %v13518_v37, %v1110_v8  ;;  %v1268_v27 = vpop.f32.mrf.mxu1  ;;  %v1105_v16 = vadd.f32 %v1104_v48, %v15801_v32  ;;  %v1371_v32 = vmul.f32 %v15878_v57, %v15878_v57  ;;  %v1350_v37 = vadd.f32 %v1349_v56, %v1348_v49 }
 0x187   :  { %v13500_v51 = vpop.f32.mrf.mxu0  ;;  %v15898_v62 = vmax.f32 %v842_v42, 0.0  ;;  %v15906_v48 = vmax.f32 %v843_v39, 0.0 }
 0x188   :  { %v13524_v19 = vpop.f32.mrf.mxu1  ;;  %v1318_v0 = vadd.f32 %v15804_v58, %v1308_v33  ;;  %v1307_v14 = vadd.f32 %v1258_v52, %v1105_v16  ;;  %v1120_v17 = vadd.f32 %v13500_v51, %v15806_v59  ;;  %v1385_v52 = vsel %vm1337_vm3, %v1370_v53, 0.0 }
 0x189   :  { %v1114_v21 = vpop.f32.mrf.mxu0  ;;  %v1386_v46 = vadd.f32 %v1385_v52, %v1384_v22  ;;  %v1387_v33 = vsel %vm1337_vm3, %v1371_v32, 0.0  ;;  %v1353_v16 = vsel %vm1337_vm3, %v15898_v62, 0.0  ;;  %v1372_v51 = vmul.f32 %v15898_v62, %v15898_v62 }
 0x18a   :  { %v1115_v30 = vadd.f32 %v1114_v21, %v15809_v15  ;;  %v1278_v43 = vpop.f32.mrf.mxu1  ;;  %v1317_v31 = vadd.f32 %v15804_v58, %v1307_v14  ;;  %v1310_v23 = vadd.f32 %v13521_v45, %v1120_v17  ;;  %v15895_v59 = vmax.f32 %v1318_v0, 0.0 }
 0x18b   :  { %v13503_v38 = vpop.f32.mrf.mxu0  ;;  %v1373_v24 = vmul.f32 %v15906_v48, %v15906_v48  ;;  %v1388_v32 = vadd.f32 %v1387_v33, %v1386_v46  ;;  %v1389_v52 = vsel %vm1337_vm3, %v1372_v51, 0.0 }
 0x18c   :  { %v1309_v1 = vadd.f32 %v1268_v27, %v1115_v30  ;;  %v1130_v25 = vadd.f32 %v13503_v38, %v15814_v29  ;;  %v15900_v36 = vmax.f32 %v1317_v31, 0.0  ;;  %v1320_v15 = vadd.f32 %v15804_v58, %v1310_v23  ;;  %v13527_v4 = vpop.f32.mrf.mxu1 }
 0x18d   :  { %v1124_v40 = vpop.f32.mrf.mxu0  ;;  %v1352_v27 = vadd.f32 %v1351_v6, %v1350_v37  ;;  %v1426_v55 = vmul.f32 %v15895_v59, %v15895_v59  ;;  %v1400_v56 = vsel %vm1337_vm3, %v15895_v59, 0.0  ;;  %v1390_v33 = vadd.f32 %v1389_v52, %v1388_v32 }
 0x18e   :  { %v1319_v8 = vadd.f32 %v15804_v58, %v1309_v1  ;;  %v1312_v45 = vadd.f32 %v13524_v19, %v1130_v25  ;;  %v1399_v29 = vsel %vm1337_vm3, %v15900_v36, 0.0  ;;  %v1425_v54 = vmul.f32 %v15900_v36, %v15900_v36  ;;  %v1288_v21 = vpop.f32.mrf.mxu1 }
 0x18f   :  { %v13506_v50 = vpop.f32.mrf.mxu0  ;;  %v15923_v53 = vmax.f32 %v1320_v15, 0.0  ;;  %v1401_v42 = vadd.f32 %v1400_v56, %v1399_v29  ;;  %v1436_v37 = vsel %vm1337_vm3, %v1426_v55, 0.0  ;;  %v1125_v31 = vadd.f32 %v1124_v40, %v15819_v18 }
 0x190   :  { %v15915_v49 = vmax.f32 %v1319_v8, 0.0  ;;  %v1435_v0 = vsel %vm1337_vm3, %v1425_v54, 0.0  ;;  %v1322_v17 = vadd.f32 %v15804_v58, %v1312_v45  ;;  %v1140_v23 = vadd.f32 %v13506_v50, %v15827_v63  ;;  %v13530_v46 = vpop.f32.mrf.mxu1 }
 0x191   :  { %v1134_v19 = vpop.f32.mrf.mxu0  ;;  %v1354_v38 = vadd.f32 %v1353_v16, %v1352_v27  ;;  %v1437_v1 = vadd.f32 %v1436_v37, %v1435_v0  ;;  %v1404_v15 = vsel %vm1337_vm3, %v15923_v53, 0.0  ;;  %v1428_v6 = vmul.f32 %v15923_v53, %v15923_v53 }
 0x192   :  { %v1402_v14 = vsel %vm1337_vm3, %v15915_v49, 0.0  ;;  %v1427_v39 = vmul.f32 %v15915_v49, %v15915_v49  ;;  %v15942_v8 = vmax.f32 %v1322_v17, 0.0  ;;  %v1311_v45 = vadd.f32 %v1278_v43, %v1125_v31 }
 0x193   :  { %v13509_v30 = vpop.f32.mrf.mxu0  ;;  %v1403_v22 = vadd.f32 %v1402_v14, %v1401_v42  ;;  %v1314_v40 = vadd.f32 %v13527_v4, %v1140_v23  ;;  %v1135_v63 = vadd.f32 %v1134_v19, %v15833_v41  ;;  %v1356_v50 = vsel %vm1355_vm4, %v15906_v48, 0.0 }
 0x194   :  { %v1438_v25 = vsel %vm1337_vm3, %v1427_v39, 0.0  ;;  %v1150_v54 = vadd.f32 %v13509_v30, %v15843_v44  ;;  %v1321_v27 = vadd.f32 %v15804_v58, %v1311_v45  ;;  %v1391_v42 = vsel %vm1355_vm4, %v1373_v24, 0.0  ;;  %v1298_v44 = vpop.f32.mrf.mxu1 }
 0x195   :  { %v1144_v29 = vpop.f32.mrf.mxu0  ;;  %v1439_v18 = vadd.f32 %v1438_v25, %v1437_v1  ;;  %v1405_v55 = vadd.f32 %v1404_v15, %v1403_v22  ;;  %v1324_v16 = vadd.f32 %v15804_v58, %v1314_v40  ;;  %v1313_v51 = vadd.f32 %v1288_v21, %v1135_v63 }
 0x196   :  { %v1316_v56 = vadd.f32 %v13530_v46, %v1150_v54  ;;  %v1145_v43 = vadd.f32 %v1144_v29, %v15852_v11  ;;  %v1357_v4 = vadd.f32 %v1356_v50, %v1354_v38  ;;  %v1440_v41 = vsel %vm1337_vm3, %v1428_v6, 0.0 }
 0x197   :  { %v15953_v19 = vmax.f32 %v1321_v27, 0.0  ;;  %v1430_v0 = vmul.f32 %v15942_v8, %v15942_v8  ;;  %v1441_v14 = vadd.f32 %v1440_v41, %v1439_v18  ;;  %v1323_v17 = vadd.f32 %v15804_v58, %v1313_v51 }
 0x198   :  { %v1315_v32 = vadd.f32 %v1298_v44, %v1145_v43  ;;  %v15962_v24 = vmax.f32 %v1324_v16, 0.0  ;;  %v1326_v39 = vadd.f32 %v15804_v58, %v1316_v56  ;;  %v1392_v30 = vadd.f32 %v1391_v42, %v1390_v33 }
 0x199   :  { %v1406_v21 = vsel %vm1337_vm3, %v15953_v19, 0.0  ;;  %v1429_v11 = vmul.f32 %v15953_v19, %v15953_v19  ;;  %v15965_v22 = vmax.f32 %v1323_v17, 0.0  ;;  %v1358_v31 = vrot.slane %v1357_v4, 4 }
 0x19a   :  { %v1407_v37 = vadd.f32 %v1406_v21, %v1405_v55  ;;  %v1408_v23 = vsel %vm1337_vm3, %v15942_v8, 0.0  ;;  %v1325_v52 = vadd.f32 %v15804_v58, %v1315_v32  ;;  %v1444_v1 = vsel %vm1337_vm3, %v1430_v0, 0.0 }
 0x19b   :  { %v1442_v38 = vsel %vm1337_vm3, %v1429_v11, 0.0  ;;  %v1410_v6 = vsel %vm1337_vm3, %v15965_v22, 0.0  ;;  %v1432_v45 = vmul.f32 %v15962_v24, %v15962_v24  ;;  %v1431_v46 = vmul.f32 %v15965_v22, %v15965_v22 }
 0x19c   :  { %v1443_v25 = vadd.f32 %v1442_v38, %v1441_v14  ;;  %v1409_v15 = vadd.f32 %v1408_v23, %v1407_v37  ;;  %v15978_v29 = vmax.f32 %v1326_v39, 0.0  ;;  %v15980_v18 = vmax.f32 %v1325_v52, 0.0 }
 0x19d   :  { %v1393_v40 = vrot.slane %v1392_v30, 4  ;;  %v1412_v54 = vsel %vm1337_vm3, %v15962_v24, 0.0  ;;  %v1446_v50 = vsel %vm1337_vm3, %v1431_v46, 0.0  ;;  %v1359_v55 = vadd.f32 %v1358_v31, %v1357_v4 }
 0x19e   :  { %v1411_v63 = vadd.f32 %v1410_v6, %v1409_v15  ;;  %v1445_v58 = vadd.f32 %v1444_v1, %v1443_v25  ;;  %v1414_v33 = vsel %vm1337_vm3, %v15980_v18, 0.0  ;;  %v1433_v27 = vmul.f32 %v15980_v18, %v15980_v18 }
 0x19f   :  { %v1448_v56 = vsel %vm1337_vm3, %v1432_v45, 0.0  ;;  %v1434_v43 = vmul.f32 %v15978_v29, %v15978_v29  ;;  %v1394_v41 = vadd.f32 %v1393_v40, %v1392_v30  ;;  %v1416_v14 = vsel %vm1355_vm4, %v15978_v29, 0.0 }
 0x1a0   :  { %v1447_v16 = vadd.f32 %v1446_v50, %v1445_v58  ;;  %v1413_v51 = vadd.f32 %v1412_v54, %v1411_v63  ;;  %v1450_v42 = vsel %vm1337_vm3, %v1433_v27, 0.0  ;;  %v1360_v17 = vrot.slane %v1359_v55, 2 }
 0x1a1   :  { %v1452_v4 = vsel %vm1355_vm4, %v1434_v43, 0.0  ;;  %v1395_v11 = vrot.slane %v1394_v41, 2 }
 0x1a2   :  { %v1415_v44 = vadd.f32 %v1414_v33, %v1413_v51  ;;  %v1449_v0 = vadd.f32 %v1448_v56, %v1447_v16  ;;  %v1361_v31 = vadd.f32 %v1360_v17, %v1359_v55 }
 0x1a3   :  { %v1396_v52 = vadd.f32 %v1395_v11, %v1394_v41 }
 0x1a4   :  { %v1417_v32 = vadd.f32 %v1416_v14, %v1415_v44  ;;  %v1451_v21 = vadd.f32 %v1450_v42, %v1449_v0  ;;  %v1362_v30 = vrot.slane %v1361_v31, 1 }
 0x1a5   :  { %v1397_v45 = vrot.slane %v1396_v52, 1 }
 0x1a6   :  { %v1418_v39 = vrot.slane %v1417_v32, 4  ;;  %v1453_v37 = vadd.f32 %v1452_v4, %v1451_v21  ;;  %v1363_v63 = vadd.f32 %v1362_v30, %v1361_v31 }
 0x1a7   :  { %v1398_v50 = vadd.f32 %v1397_v45, %v1396_v52 }
 0x1a8   :  { %v1419_v23 = vadd.f32 %v1418_v39, %v1417_v32  ;;  %v1454_v38 = vrot.slane %v1453_v37, 4 }
 0x1aa   :  { %v1420_v1 = vrot.slane %v1419_v23, 2  ;;  %v1455_v25 = vadd.f32 %v1454_v38, %v1453_v37 }
 0x1ac   :  { %v1421_v15 = vadd.f32 %v1420_v1, %v1419_v23  ;;  %v1456_v6 = vrot.slane %v1455_v25, 2 }
 0x1ae   :  { %v1422_v46 = vrot.slane %v1421_v15, 1  ;;  %v1457_v40 = vadd.f32 %v1456_v6, %v1455_v25 }
 0x1b0   :  { %v1423_v58 = vadd.f32 %v1422_v46, %v1421_v15  ;;  %v1458_v54 = vrot.slane %v1457_v40, 1 }
 0x1b2   :  { %v1424_v33 = vadd.f32 %v1423_v58, %v1363_v63  ;;  %v1459_v27 = vadd.f32 %v1458_v54, %v1457_v40 }
 0x1b4   :  { %v1460_v16 = vadd.f32 %v1459_v27, %v1398_v50  ;;  %v15996_v51 = vmul.f32 0.0064102565, %v1424_v33 }
 0x1b6   :  { %v1462_v55 = vmul.f32 0.0064102565, %v1460_v16  ;;  %v1463_v56 = vmul.f32 %v15996_v51, %v15996_v51  ;;  %v1467_v41 = vsub.f32 %v15816_v35, %v15996_v51  ;;  %v1468_v44 = vsub.f32 %v15811_v20, %v15996_v51 }
 0x1b7   :  { %v1469_v0 = vsub.f32 %v15837_v9, %v15996_v51  ;;  %v1495_v17 = vsub.f32 %v15980_v18, %v15996_v51  ;;  %v1470_v32 = vsub.f32 %v15825_v26, %v15996_v51  ;;  %v1471_v21 = vsub.f32 %v15850_v61, %v15996_v51 }
 0x1b8   :  { %v1464_v43 = vsub.f32 %v1462_v55, %v1463_v56  ;;  %v1472_v9 = vsub.f32 %v15861_v34, %v15996_v51  ;;  %v1473_v61 = vsub.f32 %v15871_v7, %v15996_v51  ;;  %v1474_v11 = vsub.f32 %v15878_v57, %v15996_v51 }
 0x1b9   :  { %v1475_v31 = vsub.f32 %v15898_v62, %v15996_v51  ;;  %v1476_v38 = vsub.f32 %v15906_v48, %v15996_v51  ;;  %v1487_v1 = vsub.f32 %v15900_v36, %v15996_v51  ;;  %v1488_v25 = vsub.f32 %v15895_v59, %v15996_v51 }
 0x1ba   :  { %v1465_v42 = vadd.f32 1e-05, %v1464_v43  ;;  %v1489_v15 = vsub.f32 %v15915_v49, %v15996_v51  ;;  %v1491_v59 = vsub.f32 %v15953_v19, %v15996_v51  ;;  %v1492_v45 = vsub.f32 %v15942_v8, %v15996_v51 }
 0x1bb   :  { %v1493_v19 = vsub.f32 %v15965_v22, %v15996_v51  ;;  %v1494_v55 = vsub.f32 %v15962_v24, %v15996_v51 }
 0x1bc   :  { %14910 = vrsqrt.f32 %v1465_v42 }
 0x1c9   :  { %v16006_v14 = vpop.eup %14910 }
 0x1ca   :  { %v16015_v4 = vmul.f32 %v16006_v14, %v1467_v41  ;;  %v16018_v35 = vmul.f32 %v16006_v14, %v1468_v44  ;;  %v16021_v20 = vmul.f32 %v16006_v14, %v1469_v0  ;;  %v16026_v18 = vmul.f32 %v16006_v14, %v1470_v32  ;;  %v16130_v41 = vld [vmem:[%s15072_s17 + $0x48] sm:$0xff] }
 0x1cb   :  { %v16029_v26 = vmul.f32 %v16006_v14, %v1471_v21  ;;  %v16040_v34 = vmul.f32 %v16006_v14, %v1472_v9  ;;  %v16049_v23 = vmul.f32 %v16006_v14, %v1473_v61  ;;  %v16065_v30 = vmul.f32 %v16006_v14, %v1474_v11 }
 0x1cc   :  { %13562 = vmatprep.mubr.msk.f32.mxu1 %vm1337_vm3, %v16015_v4  ;;  %v1530_v39 = vrot.slane %v16015_v4, 1  ;;  %v1531_v37 = vrot.slane %v16018_v35, 1  ;;  %v1533_v7 = vrot.slane %v16021_v20, 1  ;;  %v1535_v57 = vrot.slane %v16026_v18, 1 }
 0x1cd   :  { %13563 = vmatmul.mubr.msk.f32.vlgmr.msra.gmra.mxu1 %vm1337_vm3, %v16018_v35  ;;  %v1537_v62 = vrot.slane %v16029_v26, 1  ;;  %v1539_v6 = vrot.slane %v16040_v34, 1  ;;  %v1541_v49 = vrot.slane %v16049_v23, 1  ;;  %v16087_v46 = vmul.f32 %v16006_v14, %v1487_v1 }
 0x1ce   :  { %13565 = vmatprep.mubr.msk.f32.mxu1 %vm1337_vm3, %v16021_v20  ;;  %v1532_v52 = vsel %vm373_vm1, %v1530_v39, %v1531_v37  ;;  %13601 = vmatpush3.msra.mxu1 %v15756_v47  ;;  %v1534_v48 = vsel %vm373_vm1, %v1531_v37, %v1533_v7  ;;  %v1490_v47 = vsub.f32 %v15923_v53, %v15996_v51  ;;  %v16084_v53 = vld [vmem:[%s15072_s17 + $0x50] sm:$0xff]  ;;  %v1543_v54 = vrot.slane %v16065_v30, 1 }
 0x1cf   :  { %13539 = vmatprep.mubr.msk.f32.mxu0 %vm1337_vm3, %v1532_v52  ;;  %v1536_v36 = vsel %vm373_vm1, %v1533_v7, %v1535_v57  ;;  %13602 = vmatprep.subr.mxu1 %v15766_v10  ;;  %v16090_v40 = vmul.f32 %v16006_v14, %v1488_v25  ;;  %v1538_v8 = vsel %vm373_vm1, %v1535_v57, %v1537_v62  ;;  %v1993_v22 = vrot.slane %v16087_v46, 1  ;;  %v16162_v7 = vld [vmem:[%s15072_s17 + $0x40] sm:$0xff]  ;;  %s20070_s17 = sld [smem:[#allocation13_spill]] }
 0x1d0   :  { %13540 = vmatmul.mubr.msk.f32.vlgmr.msra.gmra.mxu0 %vm1337_vm3, %v1534_v48  ;;  %v16098_v63 = vmul.f32 %v16006_v14, %v1475_v31  ;;  %13603 = vmatpush3.msra.mxu1 %v15766_v10  ;;  %v16102_v58 = vmul.f32 %v16006_v14, %v1489_v15  ;;  %v16106_v50 = vmul.f32 %v16006_v14, %v1476_v38  ;;  %v1819_v44 = vrot.slane %v16015_v4, 2 }
 0x1d1   :  { %13542 = vmatprep.mubr.msk.f32.mxu0 %vm1337_vm3, %v1536_v36  ;;  %13566 = vmatmul.mubr.msk.f32.gmra.mxu1 %vm1337_vm3, %v16026_v18  ;;  %v1994_v33 = vrot.slane %v16090_v40, 1  ;;  %v1540_v10 = vsel %vm373_vm1, %v1537_v62, %v1539_v6  ;;  %v16117_v16 = vmul.f32 %v16006_v14, %v1490_v47  ;;  %v16122_v56 = vmul.f32 %v16006_v14, %v1495_v17 }
 0x1d2   :  { %13568 = vmatprep.mubr.msk.f32.mxu1 %vm1337_vm3, %v16029_v26  ;;  %13578 = vmatpush3.msra.mxu0 %v15788_v13  ;;  %v1996_v27 = vrot.slane %v16102_v58, 1  ;;  %v1542_v43 = vsel %vm373_vm1, %v1539_v6, %v1541_v49  ;;  %v16139_v17 = vmul.f32 %v16006_v14, %v1491_v59  ;;  %v16142_v32 = vmul.f32 %v16006_v14, %v1492_v45 }
 0x1d3   :  { %13604 = vmatprep.subr.mxu1 %v15774_v28  ;;  %13579 = vmatprep.subr.mxu0 %v16084_v53  ;;  %v1995_v42 = vsel %vm373_vm1, %v1993_v22, %v1994_v33  ;;  %v1998_v0 = vrot.slane %v16117_v16, 1  ;;  %v1544_v21 = vsel %vm373_vm1, %v1541_v49, %v1543_v54  ;;  %v1545_v9 = vrot.slane %v16098_v63, 1 }
 0x1d4   :  { %13543 = vmatmul.mubr.msk.f32.gmra.mxu0 %vm1337_vm3, %v1538_v8  ;;  %13605 = vmatpush3.msra.mxu1 %v15774_v28  ;;  %v1997_v24 = vsel %vm373_vm1, %v1994_v33, %v1996_v27  ;;  %v1547_v61 = vrot.slane %v16106_v50, 1  ;;  %v1820_v28 = vrot.slane %v16018_v35, 2  ;;  %v2000_v39 = vrot.slane %v16139_v17, 1 }
 0x1d5   :  { %13545 = vmatprep.mubr.msk.f32.mxu0 %vm1337_vm3, %v1540_v10  ;;  %13569 = vmatmul.mubr.msk.f32.gmra.mxu1 %vm1337_vm3, %v16040_v34  ;;  %v1999_v11 = vsel %vm373_vm1, %v1996_v27, %v1998_v0  ;;  %v2002_v37 = vrot.slane %v16142_v32, 1  ;;  %v16156_v31 = vmul.f32 %v16006_v14, %v1493_v19  ;;  %v16165_v57 = vmul.f32 %v16006_v14, %v1494_v55 }
 0x1d6   :  { %13571 = vmatprep.mubr.msk.f32.mxu1 %vm1337_vm3, %v16049_v23  ;;  %13580 = vmatpush3.msra.mxu0 %v16084_v53  ;;  %v1496_v38 = vsub.f32 %v15978_v29, %v15996_v51  ;;  %v2001_v52 = vsel %vm373_vm1, %v1998_v0, %v2000_v39  ;;  %v1546_v25 = vsel %vm373_vm1, %v1543_v54, %v1545_v9  ;;  %v2008_v15 = vrot.slane %v16122_v56, 1 }
 0x1d7   :  { %13606 = vmatprep.subr.mxu1 %v15782_v2  ;;  %13581 = vmatprep.subr.mxu0 %v16130_v41  ;;  %v2003_v62 = vsel %vm373_vm1, %v2000_v39, %v2002_v37  ;;  %v2004_v1 = vrot.slane %v16156_v31, 1  ;;  %v2006_v48 = vrot.slane %v16165_v57, 1  ;;  %v1821_v51 = vsel %vm663_vm2, %v1819_v44, %v1820_v28 }
 0x1d8   :  { %13546 = vmatmul.mubr.msk.f32.gmra.mxu0 %vm1337_vm3, %v1542_v43  ;;  %13607 = vmatpush3.msra.mxu1 %v15782_v2  ;;  %v16181_v29 = vmul.f32 %v16006_v14, %v1496_v38  ;;  %v1548_v2 = vsel %vm373_vm1, %v1545_v9, %v1547_v61  ;;  %v2282_v59 = vrot.slane %v16087_v46, 2  ;;  %v1822_v45 = vrot.slane %v16021_v20, 2 }
 0x1d9   :  { %13548 = vmatprep.mubr.msk.f32.mxu0 %vm1337_vm3, %v1544_v21  ;;  %13572 = vmatmul.mubr.msk.f32.gmra.mxu1 %vm1337_vm3, %v16065_v30  ;;  %v2005_v47 = vsel %vm373_vm1, %v2002_v37, %v2004_v1  ;;  %v2007_v36 = vsel %vm373_vm1, %v2004_v1, %v2006_v48  ;;  %v16193_v14 = vsel %vm373_vm1, %v2006_v48, %v2008_v15  ;;  %v1824_v49 = vrot.slane %v16026_v18, 2 }
 0x1da   :  { %13574 = vmatprep.mubr.msk.f32.mxu1 %vm1337_vm3, %v16098_v63  ;;  %13582 = vmatpush3.msra.mxu0 %v16130_v41  ;;  %v2010_v6 = vrot.slane %v16181_v29, 1  ;;  %v2283_v19 = vrot.slane %v16090_v40, 2  ;;  %v2285_v8 = vrot.slane %v16102_v58, 2  ;;  %v2287_v22 = vrot.slane %v16117_v16, 2 }
 0x1db   :  { %13646 = vmatprep.subr.mxu1 %v15788_v13  ;;  %13583 = vmatprep.subr.mxu0 %v16162_v7  ;;  %v2289_v33 = vrot.slane %v16139_v17, 2  ;;  %v2291_v10 = vrot.slane %v16142_v32, 2  ;;  %v2293_v43 = vrot.slane %v16156_v31, 2  ;;  %v2297_v9 = vrot.slane %v16122_v56, 2 }
 0x1dc   :  { %13549 = vmatmul.mubr.msk.f32.gmra.mxu0 %vm1337_vm3, %v1546_v25  ;;  %v2011_v54 = vsel %vm373_vm1, %v2008_v15, %v2010_v6  ;;  %v2284_v27 = vsel %vm663_vm2, %v2282_v59, %v2283_v19  ;;  %v2286_v55 = vsel %vm663_vm2, %v2283_v19, %v2285_v8  ;;  %v2288_v44 = vsel %vm663_vm2, %v2285_v8, %v2287_v22 }
 0x1dd   :  { %13551 = vmatprep.mubr.msk.f32.mxu0 %vm1337_vm3, %v1548_v2  ;;  %13575 = vmatmul.mubr.msk.f32.gmra.mxu1 %vm1337_vm3, %v16106_v50  ;;  %v2290_v0 = vsel %vm663_vm2, %v2287_v22, %v2289_v33  ;;  %v2292_v21 = vsel %vm663_vm2, %v2289_v33, %v2291_v10  ;;  %v2299_v37 = vrot.slane %v16181_v29, 2  ;;  %v1826_v38 = vrot.slane %v16029_v26, 2 }
 0x1de   :  { %13608 = vmatprep.mubr.msk.f32.mxu1 %vm1337_vm3, %v1995_v42  ;;  %13584 = vmatpush3.msra.mxu0 %v16162_v7  ;;  %v2295_v42 = vrot.slane %v16165_v57, 2  ;;  %v1830_v48 = vrot.slane %v16049_v23, 2  ;;  %v1832_v15 = vrot.slane %v16065_v30, 2 }
 0x1df   :  { %13623 = vmatprep.subr.mxu0 %v15747_v3  ;;  %v2300_v25 = vsel %vm663_vm2, %v2297_v9, %v2299_v37 }
 0x1e0   :  { %13552 = vmatmul.mubr.msk.f32.gmra.mxu0 %vm1337_vm3, %v1547_v61  ;;  %v2294_v61 = vsel %vm663_vm2, %v2291_v10, %v2293_v43  ;;  %v2296_v39 = vsel %vm663_vm2, %v2293_v43, %v2295_v42  ;;  %v2298_v1 = vsel %vm663_vm2, %v2295_v42, %v2297_v9  ;;  %v16338_v42 = vld [vmem:[%s15082_s25 + $0x58] sm:$0xff] }
 0x1e1   :  { %13585 = vmatprep.mubr.msk.f32.mxu0 %vm1337_vm3, %v1821_v51  ;;  %13609 = vmatmul.mubr.msk.f32.vlgmr.msra.gmra.mxu1 %vm1337_vm3, %v1997_v24  ;;  %v1823_v24 = vsel %vm663_vm2, %v1820_v28, %v1822_v45  ;;  %v1827_v28 = vsel %vm663_vm2, %v1824_v49, %v1826_v38  ;;  %v2782_v51 = vld [vmem:[%s15082_s25 + $0x10] sm:$0xff]  ;;  %20017 = vst [vmem:[#allocation35_spill] sm:$0xff] %v16338_v42 }
 0x1e2   :  { %13611 = vmatprep.mubr.msk.f32.mxu1 %vm1337_vm3, %v1999_v11  ;;  %13647 = vmatpush3.msra.mxu1 %v15788_v13  ;;  %v1825_v11 = vsel %vm663_vm2, %v1822_v45, %v1824_v49  ;;  %v1828_v13 = vrot.slane %v16040_v34, 2 }
 0x1e3   :  { %13648 = vmatprep.subr.mxu1 %v16084_v53 }
 0x1e4   :  { %13586 = vmatmul.mubr.msk.f32.vlgmr.msra.gmra.mxu0 %vm1337_vm3, %v1823_v24  ;;  %13649 = vmatpush3.msra.mxu1 %v16084_v53  ;;  %v1829_v53 = vsel %vm663_vm2, %v1826_v38, %v1828_v13 }
 0x1e5   :  { %13588 = vmatprep.mubr.msk.f32.mxu0 %vm1337_vm3, %v1825_v11  ;;  %13612 = vmatmul.mubr.msk.f32.gmra.mxu1 %vm1337_vm3, %v2001_v52  ;;  %v1834_v52 = vrot.slane %v16098_v63, 2 }
 0x1e6   :  { %13614 = vmatprep.mubr.msk.f32.mxu1 %vm1337_vm3, %v2003_v62  ;;  %13624 = vmatpush3.msra.mxu0 %v15747_v3  ;;  %v1831_v3 = vsel %vm663_vm2, %v1828_v13, %v1830_v48  ;;  %v1836_v62 = vrot.slane %v16106_v50, 2  ;;  %v16354_v13 = vld [vmem:[%s15077_s21] ss:$0 sm:$0xff]  ;;  %s20071_s21 = sld [smem:[#allocation12_spill]] }
 0x1e7   :  { %13650 = vmatprep.subr.mxu1 %v16130_v41  ;;  %13625 = vmatprep.subr.mxu0 %v15752_v5 }
 0x1e8   :  { %13589 = vmatmul.mubr.msk.f32.gmra.mxu0 %vm1337_vm3, %v1827_v28  ;;  %13651 = vmatpush3.msra.mxu1 %v16130_v41  ;;  %v1833_v41 = vsel %vm663_vm2, %v1830_v48, %v1832_v15  ;;  %v1837_v2 = vsel %vm663_vm2, %v1834_v52, %v1836_v62 }
 0x1e9   :  { %13591 = vmatprep.mubr.msk.f32.mxu0 %vm1337_vm3, %v1829_v53  ;;  %13615 = vmatmul.mubr.msk.f32.gmra.mxu1 %vm1337_vm3, %v2005_v47  ;;  %v16323_v47 = vld [vmem:[%s15082_s25 + $0x28] sm:$0xff] }
 0x1ea   :  { %13617 = vmatprep.mubr.msk.f32.mxu1 %vm1337_vm3, %v2007_v36  ;;  %13626 = vmatpush3.msra.mxu0 %v15752_v5  ;;  %v1835_v5 = vsel %vm663_vm2, %v1832_v15, %v1834_v52  ;;  %20015 = vst [vmem:[#allocation33_spill] sm:$0xff] %v16323_v47  ;;  %v2781_v36 = vld [vmem:[%s15082_s25 + $0x8] sm:$0xff] }
 0x1eb   :  { %13652 = vmatprep.subr.mxu1 %v16162_v7  ;;  %13627 = vmatprep.subr.mxu0 %v15761_v60 }
 0x1ec   :  { %13592 = vmatmul.mubr.msk.f32.gmra.mxu0 %vm1337_vm3, %v1831_v3  ;;  %13653 = vmatpush3.msra.mxu1 %v16162_v7  ;;  %v16315_v7 = vld [vmem:[%s15082_s25 + $0x30] sm:$0xff] }
 0x1ed   :  { %13594 = vmatprep.mubr.msk.f32.mxu0 %vm1337_vm3, %v1833_v41  ;;  %13618 = vmatmul.mubr.msk.f32.gmra.mxu1 %vm1337_vm3, %v16193_v14  ;;  %20014 = vst [vmem:[#allocation32_spill] sm:$0xff] %v16315_v7  ;;  %v16329_v14 = vld [vmem:[%s15082_s25 + $0x20] sm:$0xff] }
 0x1ee   :  { %13620 = vmatprep.mubr.msk.f32.mxu1 %vm1337_vm3, %v2011_v54  ;;  %13628 = vmatpush3.msra.mxu0 %v15761_v60  ;;  %v16309_v60 = vld [vmem:[%s15082_s25 + $0x38] sm:$0xff]  ;;  %20016 = vst [vmem:[#allocation34_spill] sm:$0xff] %v16329_v14 }
 0x1ef   :  { %13629 = vmatprep.subr.mxu0 %v15771_v12  ;;  %20012 = vst [vmem:[#allocation30_spill] sm:$0xff] %v16309_v60 }
 0x1f0   :  { %13595 = vmatmul.mubr.msk.f32.gmra.mxu0 %vm1337_vm3, %v1835_v5 }
 0x1f1   :  { %13597 = vmatprep.mubr.msk.f32.mxu0 %vm1337_vm3, %v1837_v2  ;;  %13621 = vmatmul.mubr.msk.f32.gmra.mxu1 %vm1337_vm3, %v2010_v6  ;;  %v2780_v6 = vld [vmem:[%s15082_s25] sm:$0xff] }
 0x1f2   :  { %13654 = vmatprep.mubr.msk.f32.mxu1 %vm1337_vm3, %v2284_v27  ;;  %13630 = vmatpush3.msra.mxu0 %v15771_v12  ;;  %v16312_v12 = vld [vmem:[%s15082_s25 + $0x18] sm:$0xff] }
 0x1f3   :  { %20013 = vst [vmem:[#allocation31_spill] sm:$0xff] %v16312_v12  ;;  %13669 = vmatprep.subr.mxu0 %v16309_v60  ;;  %13692 = vmatprep.subr.mxu1 %v16312_v12 }
 0x1f4   :  { %13598 = vmatmul.mubr.msk.f32.gmra.mxu0 %vm1337_vm3, %v1836_v62 }
 0x1f5   :  { %13631 = vmatprep.mubr.msk.f32.mxu0 %vm1337_vm3, %v16087_v46  ;;  %13655 = vmatmul.mubr.msk.f32.vlgmr.msra.gmra.mxu1 %vm1337_vm3, %v2286_v55 }
 0x1f6   :  { %13657 = vmatprep.mubr.msk.f32.mxu1 %vm1337_vm3, %v2288_v44  ;;  %13693 = vmatpush3.msra.mxu1 %v16312_v12 }
 0x1f7   :  { %13694 = vmatprep.subr.mxu1 %v2782_v51 }
 0x1f8   :  { %13632 = vmatmul.mubr.msk.f32.vlgmr.msra.gmra.mxu0 %vm1337_vm3, %v16090_v40  ;;  %13695 = vmatpush3.msra.mxu1 %v2782_v51 }
 0x1f9   :  { %13634 = vmatprep.mubr.msk.f32.mxu0 %vm1337_vm3, %v16102_v58  ;;  %13658 = vmatmul.mubr.msk.f32.gmra.mxu1 %vm1337_vm3, %v2290_v0 }
 0x1fa   :  { %13660 = vmatprep.mubr.msk.f32.mxu1 %vm1337_vm3, %v2292_v21  ;;  %13670 = vmatpush3.msra.mxu0 %v16309_v60 }
 0x1fb   :  { %13671 = vmatprep.subr.mxu0 %v16315_v7  ;;  %13696 = vmatprep.subr.mxu1 %v2781_v36 }
 0x1fc   :  { %13635 = vmatmul.mubr.msk.f32.gmra.mxu0 %vm1337_vm3, %v16117_v16  ;;  %13697 = vmatpush3.msra.mxu1 %v2781_v36 }
 0x1fd   :  { %13637 = vmatprep.mubr.msk.f32.mxu0 %vm1337_vm3, %v16139_v17  ;;  %13661 = vmatmul.mubr.msk.f32.gmra.mxu1 %vm1337_vm3, %v2294_v61 }
 0x1fe   :  { %13663 = vmatprep.mubr.msk.f32.mxu1 %vm1337_vm3, %v2296_v39  ;;  %13672 = vmatpush3.msra.mxu0 %v16315_v7 }
 0x1ff   :  { %13673 = vmatprep.subr.mxu0 %v16323_v47  ;;  %13698 = vmatprep.subr.mxu1 %v2780_v6 }
 0x200   :  { %13638 = vmatmul.mubr.msk.f32.gmra.mxu0 %vm1337_vm3, %v16142_v32  ;;  %13699 = vmatpush3.msra.mxu1 %v2780_v6 }
 0x201   :  { %13640 = vmatprep.mubr.msk.f32.mxu0 %vm1337_vm3, %v16156_v31  ;;  %13664 = vmatmul.mubr.msk.f32.gmra.mxu1 %vm1337_vm3, %v2298_v1 }
 0x202   :  { %13666 = vmatprep.mubr.msk.f32.mxu1 %vm1337_vm3, %v2300_v25  ;;  %13674 = vmatpush3.msra.mxu0 %v16323_v47 }
 0x203   :  { %13675 = vmatprep.subr.mxu0 %v16329_v14  ;;  %13738 = vmatprep.subr.mxu1 %v16309_v60 }
 0x204   :  { %13641 = vmatmul.mubr.msk.f32.gmra.mxu0 %vm1337_vm3, %v16165_v57 }
 0x205   :  { %13643 = vmatprep.mubr.msk.f32.mxu0 %vm1337_vm3, %v16122_v56  ;;  %13667 = vmatmul.mubr.msk.f32.gmra.mxu1 %vm1337_vm3, %v2299_v37 }
 0x206   :  { %13676 = vmatpush3.msra.mxu0 %v16329_v14 }
 0x207   :  { %13715 = vmatprep.subr.mxu0 %v16338_v42 }
 0x208   :  { %13644 = vmatmul.mubr.msk.f32.gmra.mxu0 %vm1337_vm3, %v16181_v29 }
 0x28d   :  { %v13564_v59 = vpop.f32.mrf.mxu1 }
 0x28f   :  { %v1770_v45 = vpop.f32.mrf.mxu1 }
 0x290   :  { %v13541_v49 = vpop.f32.mrf.mxu0 }
 0x291   :  { %v13567_v19 = vpop.f32.mrf.mxu1  ;;  %v1776_v1 = vadd.f32 %v13564_v59, %v13541_v49 }
 0x292   :  { %v1635_v8 = vpop.f32.mrf.mxu0 }
 0x293   :  { %v1780_v54 = vpop.f32.mrf.mxu1  ;;  %v1771_v28 = vadd.f32 %v1770_v45, %v1635_v8 }
 0x294   :  { %v13544_v22 = vpop.f32.mrf.mxu0 }
 0x295   :  { %v13570_v33 = vpop.f32.mrf.mxu1  ;;  %v1786_v3 = vadd.f32 %v13567_v19, %v13544_v22 }
 0x296   :  { %v1645_v10 = vpop.f32.mrf.mxu0 }
 0x297   :  { %v1790_v27 = vpop.f32.mrf.mxu1  ;;  %v1781_v59 = vadd.f32 %v1780_v54, %v1645_v10 }
 0x298   :  { %v13547_v55 = vpop.f32.mrf.mxu0 }
 0x299   :  { %v13573_v43 = vpop.f32.mrf.mxu1  ;;  %v1796_v22 = vadd.f32 %v13570_v33, %v13547_v55 }
 0x29a   :  { %v1655_v44 = vpop.f32.mrf.mxu0 }
 0x29b   :  { %v1800_v0 = vpop.f32.mrf.mxu1 }
 0x29c   :  { %v13550_v21 = vpop.f32.mrf.mxu0 }
 0x29d   :  { %v16341_v9 = vpop.f32.mrf.mxu1 }
 0x29e   :  { %v1665_v61 = vpop.f32.mrf.mxu0 }
 0x29f   :  { %v16343_v39 = vpop.f32.mrf.mxu1 }
 0x2a0   :  { %v16345_v37 = vpop.f32.mrf.mxu0 }
 0x2a1   :  { %v16347_v24 = vpop.f32.mrf.mxu1 }
 0x2a2   :  { %v16349_v38 = vpop.f32.mrf.mxu0 }
 0x2a3   :  { %v16351_v11 = vpop.f32.mrf.mxu1 }
 0x2a4   :  { %v13587_v25 = vpop.f32.mrf.mxu0 }
 0x2a5   :  { %v1974_v48 = vadd.f32 %v13587_v25, %v1776_v1  ;;  %v16356_v53 = vpop.f32.mrf.mxu1 }
 0x2a6   :  { %v1924_v15 = vpop.f32.mrf.mxu0 }
 0x2a7   :  { %v2453_v52 = vadd.f32 %v16354_v13, %v1974_v48  ;;  %v1973_v41 = vadd.f32 %v1924_v15, %v1771_v28  ;;  %v16359_v62 = vpop.f32.mrf.mxu1  ;;  %v1791_v28 = vadd.f32 %v1790_v27, %v1655_v44 }
 0x2a8   :  { %v13590_v5 = vpop.f32.mrf.mxu0 }
 0x2a9   :  { %v16361_v2 = vmax.f32 %v2453_v52, 0.0  ;;  %v2452_v51 = vadd.f32 %v16354_v13, %v1973_v41  ;;  %v1976_v36 = vadd.f32 %v13590_v5, %v1786_v3  ;;  %v16364_v6 = vpop.f32.mrf.mxu1  ;;  %v1806_v5 = vadd.f32 %v13573_v43, %v13550_v21 }
 0x2aa   :  { %v1934_v45 = vpop.f32.mrf.mxu0 }
 0x2ab   :  { %v16366_v49 = vmax.f32 %v2452_v51, 0.0  ;;  %v2455_v8 = vadd.f32 %v16354_v13, %v1976_v36  ;;  %v16369_v19 = vpop.f32.mrf.mxu1  ;;  %v1975_v1 = vadd.f32 %v1934_v45, %v1781_v59  ;;  %v2519_v48 = vmul.f32 %v16361_v2, %v16361_v2 }
 0x2ac   :  { %v13593_v25 = vpop.f32.mrf.mxu0  ;;  %v1801_v51 = vadd.f32 %v1800_v0, %v1665_v61  ;;  %v2493_v36 = vsel %vm1337_vm3, %v16361_v2, 0.0 }
 0x2ad   :  { %v2518_v15 = vmul.f32 %v16366_v49, %v16366_v49  ;;  %v16375_v3 = vmax.f32 %v2455_v8, 0.0  ;;  %v16377_v54 = vpop.f32.mrf.mxu1  ;;  %v2492_v10 = vsel %vm1337_vm3, %v16366_v49, 0.0  ;;  %v2454_v52 = vadd.f32 %v16354_v13, %v1975_v1 }
 0x2ae   :  { %v1978_v41 = vadd.f32 %v13593_v25, %v1796_v22  ;;  %v1944_v33 = vpop.f32.mrf.mxu0  ;;  %v2529_v8 = vsel %vm1337_vm3, %v2519_v48, 0.0  ;;  %v2494_v12 = vadd.f32 %v2493_v36, %v2492_v10 }
 0x2af   :  { %v2528_v55 = vsel %vm1337_vm3, %v2518_v15, 0.0  ;;  %v1977_v27 = vadd.f32 %v1944_v33, %v1791_v28  ;;  %v16383_v44 = vpop.f32.mrf.mxu1  ;;  %v16387_v59 = vmax.f32 %v2454_v52, 0.0  ;;  %v2521_v22 = vmul.f32 %v16375_v3, %v16375_v3 }
 0x2b0   :  { %v13596_v45 = vpop.f32.mrf.mxu0  ;;  %v2530_v28 = vadd.f32 %v2529_v8, %v2528_v55  ;;  %v2457_v21 = vadd.f32 %v16354_v13, %v1978_v41 }
 0x2b1   :  { %v2456_v1 = vadd.f32 %v16354_v13, %v1977_v27  ;;  %v16393_v25 = vpop.f32.mrf.mxu1  ;;  %v2495_v43 = vsel %vm1337_vm3, %v16387_v59, 0.0  ;;  %v2520_v0 = vmul.f32 %v16387_v59, %v16387_v59  ;;  %v1980_v10 = vadd.f32 %v13596_v45, %v1806_v5 }
 0x2b2   :  { %v1954_v61 = vpop.f32.mrf.mxu0  ;;  %v2496_v15 = vadd.f32 %v2495_v43, %v2494_v12  ;;  %v2497_v27 = vsel %vm1337_vm3, %v16375_v3, 0.0  ;;  %v2533_v45 = vsel %vm1337_vm3, %v2521_v22, 0.0 }
 0x2b3   :  { %v16400_v48 = vmax.f32 %v2456_v1, 0.0  ;;  %v1979_v52 = vadd.f32 %v1954_v61, %v1801_v51  ;;  %v16402_v33 = vpop.f32.mrf.mxu1  ;;  %v2531_v55 = vsel %vm1337_vm3, %v2520_v0, 0.0  ;;  %v16411_v1 = vmax.f32 %v2457_v21, 0.0 }
 0x2b4   :  { %v13599_v36 = vpop.f32.mrf.mxu0  ;;  %v2532_v8 = vadd.f32 %v2531_v55, %v2530_v28  ;;  %v2498_v14 = vadd.f32 %v2497_v27, %v2496_v15  ;;  %v2459_v43 = vadd.f32 %v16354_v13, %v1980_v10  ;;  %v1811_v28 = vadd.f32 %v16343_v39, %v16349_v38 }
 0x2b5   :  { %v2499_v47 = vsel %vm1337_vm3, %v16400_v48, 0.0  ;;  %v2522_v12 = vmul.f32 %v16400_v48, %v16400_v48  ;;  %v13656_v41 = vpop.f32.mrf.mxu1  ;;  %v2458_v5 = vadd.f32 %v16354_v13, %v1979_v52  ;;  %v1816_v55 = vadd.f32 %v16341_v9, %v16345_v37 }
 0x2b6   :  { %v1964_v51 = vpop.f32.mrf.mxu0  ;;  %v2500_v61 = vadd.f32 %v2499_v47, %v2498_v14  ;;  %v2534_v15 = vadd.f32 %v2533_v45, %v2532_v8  ;;  %v2501_v22 = vsel %vm1337_vm3, %v16411_v1, 0.0  ;;  %v2523_v47 = vmul.f32 %v16411_v1, %v16411_v1 }
 0x2b7   :  { %v2387_v0 = vpop.f32.mrf.mxu1  ;;  %v2535_v21 = vsel %vm1337_vm3, %v2522_v12, 0.0  ;;  %v16421_v7 = vmax.f32 %v2458_v5, 0.0  ;;  %v1981_v10 = vadd.f32 %v1964_v51, %v1811_v28  ;;  %v16428_v14 = vmax.f32 %v2459_v43, 0.0 }
 0x2b8   :  { %v13633_v27 = vpop.f32.mrf.mxu0  ;;  %v1982_v39 = vadd.f32 %v13599_v36, %v1816_v55  ;;  %v2536_v37 = vadd.f32 %v2535_v21, %v2534_v15  ;;  %v2502_v8 = vadd.f32 %v2501_v22, %v2500_v61  ;;  %v2537_v61 = vsel %vm1337_vm3, %v2523_v47, 0.0 }
 0x2b9   :  { %20018 = vst [vmem:[#allocation36_spill] sm:$0xff] %v16421_v7  ;;  %v2239_v52 = vadd.f32 %v13633_v27, %v16347_v24  ;;  %v13659_v60 = vpop.f32.mrf.mxu1  ;;  %v2503_v24 = vsel %vm1337_vm3, %v16421_v7, 0.0  ;;  %v2524_v51 = vmul.f32 %v16421_v7, %v16421_v7  ;;  %v2460_v28 = vadd.f32 %v16354_v13, %v1981_v10 }
 0x2ba   :  { %v2233_v42 = vpop.f32.mrf.mxu0  ;;  %v2504_v21 = vadd.f32 %v2503_v24, %v2502_v8 }
 0x2bb   :  { %v2437_v38 = vadd.f32 %v13656_v41, %v2239_v52  ;;  %v2397_v9 = vpop.f32.mrf.mxu1  ;;  %v2234_v12 = vadd.f32 %v2233_v42, %v16351_v11  ;;  %v2525_v42 = vmul.f32 %v16428_v14, %v16428_v14  ;;  %v2461_v11 = vadd.f32 %v16354_v13, %v1982_v39 }
 0x2bc   :  { %v13636_v5 = vpop.f32.mrf.mxu0  ;;  %v2538_v52 = vadd.f32 %v2537_v61, %v2536_v37  ;;  %v2505_v37 = vsel %vm1337_vm3, %v16428_v14, 0.0 }
 0x2bd   :  { %v13662_v45 = vpop.f32.mrf.mxu1  ;;  %v2473_v43 = vadd.f32 %v16354_v13, %v2437_v38  ;;  %v2436_v27 = vadd.f32 %v2387_v0, %v2234_v12  ;;  %v2249_v36 = vadd.f32 %v13636_v5, %v16356_v53  ;;  %v2539_v0 = vsel %vm1337_vm3, %v2524_v51, 0.0 }
 0x2be   :  { %v2243_v41 = vpop.f32.mrf.mxu0  ;;  %v16448_v5 = vmax.f32 %v2460_v28, 0.0  ;;  %v2540_v51 = vadd.f32 %v2539_v0, %v2538_v52 }
 0x2bf   :  { %v2244_v15 = vadd.f32 %v2243_v41, %v16359_v62  ;;  %v2407_v55 = vpop.f32.mrf.mxu1  ;;  %v2472_v22 = vadd.f32 %v16354_v13, %v2436_v27  ;;  %v2439_v10 = vadd.f32 %v13659_v60, %v2249_v36  ;;  %v16445_v53 = vmax.f32 %v2473_v43, 0.0 }
 0x2c0   :  { %v13639_v38 = vpop.f32.mrf.mxu0  ;;  %20020 = vst [vmem:[#allocation38_spill] sm:$0xff] %v16448_v5  ;;  %v16456_v43 = vmax.f32 %v2461_v11, 0.0  ;;  %v2541_v27 = vsel %vm1337_vm3, %v2525_v42, 0.0  ;;  %v2506_v36 = vadd.f32 %v2505_v37, %v2504_v21  ;;  %v2526_v11 = vmul.f32 %v16448_v5, %v16448_v5 }
 0x2c1   :  { %20019 = vst [vmem:[#allocation37_spill] sm:$0xff] %v16445_v53  ;;  %v2438_v12 = vadd.f32 %v2397_v9, %v2244_v15  ;;  %v2259_v47 = vadd.f32 %v13639_v38, %v16364_v6  ;;  %v16450_v7 = vmax.f32 %v2472_v22, 0.0  ;;  %v2475_v62 = vadd.f32 %v16354_v13, %v2439_v10  ;;  %v13665_v24 = vpop.f32.mrf.mxu1 }
 0x2c2   :  { %v2253_v39 = vpop.f32.mrf.mxu0  ;;  %v2580_v41 = vmul.f32 %v16445_v53, %v16445_v53  ;;  %v2554_v15 = vsel %vm1337_vm3, %v16445_v53, 0.0 }
 0x2c3   :  { %20021 = vst [vmem:[#allocation39_spill] sm:$0xff] %v16450_v7  ;;  %v2474_v60 = vadd.f32 %v16354_v13, %v2438_v12  ;;  %v2441_v8 = vadd.f32 %v13662_v45, %v2259_v47  ;;  %v2553_v6 = vsel %vm1337_vm3, %v16450_v7, 0.0  ;;  %v2579_v9 = vmul.f32 %v16450_v7, %v16450_v7  ;;  %v2417_v0 = vpop.f32.mrf.mxu1 }
 0x2c4   :  { %v13642_v28 = vpop.f32.mrf.mxu0  ;;  %v2507_v45 = vsel %vm1337_vm3, %v16448_v5, 0.0  ;;  %v16473_v52 = vmax.f32 %v2475_v62, 0.0  ;;  %v2555_v10 = vadd.f32 %v2554_v15, %v2553_v6  ;;  %v2527_v12 = vmul.f32 %v16456_v43, %v16456_v43 }
 0x2c5   :  { %v16465_v61 = vmax.f32 %v2474_v60, 0.0  ;;  %v2589_v42 = vsel %vm1337_vm3, %v2579_v9, 0.0  ;;  %v2477_v38 = vadd.f32 %v16354_v13, %v2441_v8  ;;  %v2542_v47 = vadd.f32 %v2541_v27, %v2540_v51 }
 0x2c6   :  { %v2263_v22 = vpop.f32.mrf.mxu0  ;;  %v2590_v60 = vsel %vm1337_vm3, %v2580_v41, 0.0  ;;  %v2254_v9 = vadd.f32 %v2253_v39, %v16369_v19  ;;  %v2269_v15 = vadd.f32 %v13642_v28, %v16377_v54  ;;  %v2508_v53 = vadd.f32 %v2507_v45, %v2506_v36 }
 0x2c7   :  { %20022 = vst [vmem:[#allocation40_spill] sm:$0xff] %v16465_v61  ;;  %v2556_v21 = vsel %vm1337_vm3, %v16465_v61, 0.0  ;;  %v2581_v37 = vmul.f32 %v16465_v61, %v16465_v61  ;;  %v2543_v8 = vsel %vm1337_vm3, %v2526_v11, 0.0  ;;  %v2591_v7 = vadd.f32 %v2590_v60, %v2589_v42 }
 0x2c8   :  { %v13645_v62 = vpop.f32.mrf.mxu0  ;;  %v2557_v6 = vadd.f32 %v2556_v21, %v2555_v10  ;;  %v2558_v51 = vsel %vm1337_vm3, %v16473_v52, 0.0  ;;  %v2582_v27 = vmul.f32 %v16473_v52, %v16473_v52  ;;  %v16492_v61 = vmax.f32 %v2477_v38, 0.0  ;;  %v13668_v10 = vpop.f32.mrf.mxu1 }
 0x2c9   :  { %v2592_v5 = vsel %vm1337_vm3, %v2581_v37, 0.0  ;;  %v2440_v41 = vadd.f32 %v2407_v55, %v2254_v9  ;;  %v2443_v39 = vadd.f32 %v13665_v24, %v2269_v15  ;;  %v2264_v54 = vadd.f32 %v2263_v22, %v16383_v44 }
 0x2ca   :  { %v2273_v21 = vpop.f32.mrf.mxu0  ;;  %v2593_v19 = vadd.f32 %v2592_v5, %v2591_v7  ;;  %v2279_v28 = vadd.f32 %v13645_v62, %v16393_v25  ;;  %v2510_v36 = vsel %vm2509_vm5, %v16456_v43, 0.0  ;;  %v2544_v45 = vadd.f32 %v2543_v8, %v2542_v47  ;;  %v2427_v25 = vpop.f32.mrf.mxu1 }
 0x2cb   :  { %v2476_v11 = vadd.f32 %v16354_v13, %v2440_v41  ;;  %v2559_v42 = vadd.f32 %v2558_v51, %v2557_v6  ;;  %v2479_v37 = vadd.f32 %v16354_v13, %v2443_v39  ;;  %v2442_v38 = vadd.f32 %v2417_v0, %v2264_v54 }
 0x2cc   :  { %v2445_v60 = vadd.f32 %v13668_v10, %v2279_v28  ;;  %v2274_v55 = vadd.f32 %v2273_v21, %v16402_v33  ;;  %v2545_v7 = vsel %vm2509_vm5, %v2527_v12, 0.0  ;;  %v2511_v5 = vadd.f32 %v2510_v36, %v2508_v53 }
 0x2cd   :  { %v2594_v44 = vsel %vm1337_vm3, %v2582_v27, 0.0  ;;  %v16503_v24 = vmax.f32 %v2476_v11, 0.0  ;;  %v2584_v22 = vmul.f32 %v16492_v61, %v16492_v61  ;;  %v2478_v62 = vadd.f32 %v16354_v13, %v2442_v38 }
 0x2ce   :  { %v2595_v47 = vadd.f32 %v2594_v44, %v2593_v19  ;;  %v2444_v6 = vadd.f32 %v2427_v25, %v2274_v55  ;;  %v16512_v12 = vmax.f32 %v2479_v37, 0.0  ;;  %v2481_v53 = vadd.f32 %v16354_v13, %v2445_v60 }
 0x2cf   :  { %v2560_v0 = vsel %vm1337_vm3, %v16503_v24, 0.0  ;;  %v2583_v33 = vmul.f32 %v16503_v24, %v16503_v24  ;;  %v2546_v9 = vadd.f32 %v2545_v7, %v2544_v45  ;;  %v16515_v8 = vmax.f32 %v2478_v62, 0.0 }
 0x2d0   :  { %v2561_v15 = vadd.f32 %v2560_v0, %v2559_v42  ;;  %v2512_v51 = vrot.slane %v2511_v5, 4  ;;  %v2562_v27 = vsel %vm1337_vm3, %v16492_v61, 0.0  ;;  %v2480_v10 = vadd.f32 %v16354_v13, %v2444_v6 }
 0x2d1   :  { %v2596_v41 = vsel %vm1337_vm3, %v2583_v33, 0.0  ;;  %v2598_v21 = vsel %vm1337_vm3, %v2584_v22, 0.0  ;;  %v2564_v54 = vsel %vm1337_vm3, %v16515_v8, 0.0  ;;  %v2586_v28 = vmul.f32 %v16512_v12, %v16512_v12 }
 0x2d2   :  { %v2597_v19 = vadd.f32 %v2596_v41, %v2595_v47  ;;  %v2563_v39 = vadd.f32 %v2562_v27, %v2561_v15  ;;  %v2585_v36 = vmul.f32 %v16515_v8, %v16515_v8  ;;  %v16528_v45 = vmax.f32 %v2481_v53, 0.0 }
 0x2d3   :  { %v16530_v11 = vmax.f32 %v2480_v10, 0.0  ;;  %v2547_v42 = vrot.slane %v2546_v9, 4  ;;  %v2566_v38 = vsel %vm1337_vm3, %v16512_v12, 0.0  ;;  %v2513_v44 = vadd.f32 %v2512_v51, %v2511_v5 }
 0x2d4   :  { %v2565_v37 = vadd.f32 %v2564_v54, %v2563_v39  ;;  %v2599_v13 = vadd.f32 %v2598_v21, %v2597_v19  ;;  %v2600_v60 = vsel %vm1337_vm3, %v2585_v36, 0.0  ;;  %v2602_v47 = vsel %vm1337_vm3, %v2586_v28, 0.0 }
 0x2d5   :  { %v2568_v55 = vsel %vm1337_vm3, %v16530_v11, 0.0  ;;  %v2587_v7 = vmul.f32 %v16530_v11, %v16530_v11  ;;  %v2588_v62 = vmul.f32 %v16528_v45, %v16528_v45  ;;  %v2548_v0 = vadd.f32 %v2547_v42, %v2546_v9 }
 0x2d6   :  { %v2601_v25 = vadd.f32 %v2600_v60, %v2599_v13  ;;  %v2567_v22 = vadd.f32 %v2566_v38, %v2565_v37  ;;  %v2570_v15 = vsel %vm2509_vm5, %v16528_v45, 0.0  ;;  %v2514_v27 = vrot.slane %v2513_v44, 2 }
 0x2d7   :  { %v2604_v6 = vsel %vm1337_vm3, %v2587_v7, 0.0  ;;  %v2606_v5 = vsel %vm2509_vm5, %v2588_v62, 0.0  ;;  %v2549_v51 = vrot.slane %v2548_v0, 2 }
 0x2d8   :  { %v2569_v33 = vadd.f32 %v2568_v55, %v2567_v22  ;;  %v2603_v53 = vadd.f32 %v2602_v47, %v2601_v25  ;;  %v2515_v39 = vadd.f32 %v2514_v27, %v2513_v44 }
 0x2d9   :  { %v2550_v36 = vadd.f32 %v2549_v51, %v2548_v0  ;;  %v16553_v51 = vmul.f32 0.66, %v16029_v26  ;;  %v16573_v26 = vmul.f32 0.66, %v16087_v46  ;;  %v16594_v46 = vmul.f32 0.66, %v16165_v57 }
 0x2da   :  { %v2571_v41 = vadd.f32 %v2570_v15, %v2569_v33  ;;  %v2605_v10 = vadd.f32 %v2604_v6, %v2603_v53  ;;  %v2516_v9 = vrot.slane %v2515_v39, 1 }
 0x2db   :  { %v2551_v60 = vrot.slane %v2550_v36, 1 }
 0x2dc   :  { %v2572_v21 = vrot.slane %v2571_v41, 4  ;;  %v2607_v19 = vadd.f32 %v2606_v5, %v2605_v10  ;;  %v2517_v25 = vadd.f32 %v2516_v9, %v2515_v39  ;;  %v2661_v10 = vmul.f32 0.66, %v16015_v4 }
 0x2dd   :  { %v2552_v6 = vadd.f32 %v2551_v60, %v2550_v36  ;;  %v2663_v5 = vmul.f32 0.66, %v16021_v20  ;;  %v2662_v39 = vmul.f32 0.66, %v16018_v35  ;;  %v16567_v4 = vmul.f32 0.66, %v16065_v30 }
 0x2de   :  { %v2573_v54 = vadd.f32 %v2572_v21, %v2571_v41  ;;  %v2608_v28 = vrot.slane %v2607_v19, 4  ;;  %v16556_v21 = vmul.f32 0.66, %v16049_v23  ;;  %v16570_v20 = vmul.f32 0.66, %v16106_v50 }
 0x2df   :  { %v16576_v23 = vmul.f32 0.66, %v16090_v40  ;;  %v16582_v35 = vmul.f32 0.66, %v16117_v16  ;;  %v16591_v30 = vmul.f32 0.66, %v16156_v31 }
 0x2e0   :  { %v2574_v37 = vrot.slane %v2573_v54, 2  ;;  %v2609_v13 = vadd.f32 %v2608_v28, %v2607_v19  ;;  %v16559_v19 = vmul.f32 0.66, %v16098_v63  ;;  %v16564_v28 = vmul.f32 0.66, %v16040_v34 }
 0x2e1   :  { %v16579_v63 = vmul.f32 0.66, %v16102_v58  ;;  %v16588_v34 = vmul.f32 0.66, %v16142_v32  ;;  %v16597_v40 = vmul.f32 0.66, %v16122_v56 }
 0x2e2   :  { %v2575_v42 = vadd.f32 %v2574_v37, %v2573_v54  ;;  %v2610_v38 = vrot.slane %v2609_v13, 2  ;;  %v2664_v54 = vmul.f32 0.66, %v16026_v18  ;;  %v16585_v18 = vmul.f32 0.66, %v16139_v17 }
 0x2e3   :  { %v16600_v58 = vmul.f32 0.66, %v16181_v29  ;;  %v20023_v29 = vld [vmem:[#allocation36_spill] sm:$0xff] }
 0x2e4   :  { %v2576_v55 = vrot.slane %v2575_v42, 1  ;;  %v2611_v7 = vadd.f32 %v2610_v38, %v2609_v13 }
 0x2e6   :  { %v2577_v22 = vadd.f32 %v2576_v55, %v2575_v42  ;;  %v2612_v47 = vrot.slane %v2611_v7, 1 }
 0x2e8   :  { %v2578_v62 = vadd.f32 %v2577_v22, %v2517_v25  ;;  %v2613_v33 = vadd.f32 %v2612_v47, %v2611_v7 }
 0x2ea   :  { %v2614_v53 = vadd.f32 %v2613_v33, %v2552_v6  ;;  %v16546_v15 = vmul.f32 0.0065789474, %v2578_v62 }
 0x2ec   :  { %v2616_v44 = vmul.f32 0.0065789474, %v2614_v53  ;;  %v2617_v0 = vmul.f32 %v16546_v15, %v16546_v15  ;;  %v2649_v50 = vsub.f32 %v16530_v11, %v16546_v15  ;;  %v2621_v16 = vsub.f32 %v16366_v49, %v16546_v15 }
 0x2ed   :  { %v2622_v17 = vsub.f32 %v16361_v2, %v16546_v15  ;;  %v2623_v32 = vsub.f32 %v16387_v59, %v16546_v15  ;;  %v2624_v31 = vsub.f32 %v16375_v3, %v16546_v15  ;;  %v2625_v56 = vsub.f32 %v16400_v48, %v16546_v15  ;;  %v20024_v2 = vld [vmem:[#allocation38_spill] sm:$0xff]  ;;  %v20025_v3 = vld [vmem:[#allocation39_spill] sm:$0xff]  ;;  %v20026_v48 = vld [vmem:[#allocation37_spill] sm:$0xff] }
 0x2ee   :  { %v2618_v27 = vsub.f32 %v2616_v44, %v2617_v0  ;;  %v2626_v57 = vsub.f32 %v16411_v1, %v16546_v15  ;;  %v2627_v11 = vsub.f32 %v20023_v29, %v16546_v15  ;;  %v2628_v49 = vsub.f32 %v16428_v14, %v16546_v15  ;;  %v20027_v1 = vld [vmem:[#allocation40_spill] sm:$0xff] }
 0x2ef   :  { %v2629_v36 = vsub.f32 %v20024_v2, %v16546_v15  ;;  %v2630_v59 = vsub.f32 %v16456_v43, %v16546_v15  ;;  %v2641_v37 = vsub.f32 %v20025_v3, %v16546_v15  ;;  %v2642_v13 = vsub.f32 %v20026_v48, %v16546_v15  ;;  %v20030_v43 = vld [vmem:[#allocation32_spill] sm:$0xff] }
 0x2f0   :  { %v2619_v41 = vadd.f32 1e-05, %v2618_v27  ;;  %v2643_v9 = vsub.f32 %v20027_v1, %v16546_v15  ;;  %v2644_v42 = vsub.f32 %v16473_v52, %v16546_v15  ;;  %v2645_v14 = vsub.f32 %v16503_v24, %v16546_v15  ;;  %v20033_v52 = vld [vmem:[#allocation31_spill] sm:$0xff] }
 0x2f1   :  { %v2646_v60 = vsub.f32 %v16492_v61, %v16546_v15 }
 0x2f2   :  { %14912 = vrsqrt.f32 %v2619_v41 }
 0x2ff   :  { %v16634_v38 = vpop.eup %14912 }
 0x300   :  { %v16645_v22 = vmul.f32 %v16634_v38, %v2649_v50  ;;  %v2631_v47 = vmul.f32 %v16634_v38, %v2621_v16  ;;  %v2632_v6 = vmul.f32 %v16634_v38, %v2622_v17  ;;  %v2633_v62 = vmul.f32 %v16634_v38, %v2623_v32 }
 0x301   :  { %v2634_v33 = vmul.f32 %v16634_v38, %v2624_v31  ;;  %v2635_v53 = vmul.f32 %v16634_v38, %v2625_v56  ;;  %v2636_v44 = vmul.f32 %v16634_v38, %v2626_v57  ;;  %v2637_v0 = vmul.f32 %v16634_v38, %v2627_v11 }
 0x302   :  { %v2682_v41 = vrot.slane %v2631_v47, 7  ;;  %v2683_v29 = vrot.slane %v2632_v6, 7  ;;  %v2685_v50 = vrot.slane %v2633_v62, 7  ;;  %v16660_v56 = vmul.f32 %v16634_v38, %v2628_v49 }
 0x303   :  { %v2687_v25 = vrot.slane %v2634_v33, 7  ;;  %v2689_v7 = vrot.slane %v2635_v53, 7  ;;  %v2691_v16 = vrot.slane %v2636_v44, 7  ;;  %v2693_v55 = vrot.slane %v2637_v0, 7 }
 0x304   :  { %v2684_v17 = vsel %vm2681_vm6, %v2682_v41, %v2683_v29  ;;  %v16656_v32 = vadd.f32 %v2682_v41, %v2661_v10  ;;  %v2686_v31 = vsel %vm2681_vm6, %v2683_v29, %v2685_v50  ;;  %v2695_v27 = vrot.slane %v16660_v56, 7 }
 0x305   :  { %v16662_v57 = vadd.f32 %v2684_v17, %v2662_v39  ;;  %v16664_v11 = vadd.f32 %v2686_v31, %v2663_v5  ;;  %v2688_v47 = vsel %vm2681_vm6, %v2685_v50, %v2687_v25  ;;  %v2690_v6 = vsel %vm2681_vm6, %v2687_v25, %v2689_v7 }
 0x306   :  { %v2803_v62 = vrot.slane %v16656_v32, 2  ;;  %v2957_v33 = vrot.slane %v16656_v32, 1  ;;  %v16670_v53 = vadd.f32 %v2688_v47, %v2664_v54  ;;  %v16673_v10 = vadd.f32 %v2690_v6, %v16553_v51 }
 0x307   :  { %v2804_v49 = vrot.slane %v16662_v57, 2  ;;  %v2958_v39 = vrot.slane %v16662_v57, 1  ;;  %v2806_v5 = vrot.slane %v16664_v11, 2  ;;  %v2960_v44 = vrot.slane %v16664_v11, 1 }
 0x308   :  { %v2808_v25 = vrot.slane %v16670_v53, 2  ;;  %v2962_v0 = vrot.slane %v16670_v53, 1  ;;  %v2810_v41 = vrot.slane %v16673_v10, 2  ;;  %v2964_v54 = vrot.slane %v16673_v10, 1 }
 0x309   :  { %v2805_v51 = vsel %vm663_vm2, %v2803_v62, %v2804_v49  ;;  %v2959_v29 = vsel %vm373_vm1, %v2957_v33, %v2958_v39  ;;  %v2807_v50 = vsel %vm663_vm2, %v2804_v49, %v2806_v5  ;;  %v2961_v17 = vsel %vm373_vm1, %v2958_v39, %v2960_v44  ;;  %v16699_v39 = vld [vmem:[%s15082_s25 + $0x50] sm:$0xff] }
 0x30a   :  { %13677 = vmatprep.mubr.msk.f32.mxu0 %vm1337_vm3, %v2805_v51  ;;  %13700 = vmatprep.mubr.msk.f32.mxu1 %vm1337_vm3, %v2959_v29  ;;  %v2809_v31 = vsel %vm663_vm2, %v2806_v5, %v2808_v25  ;;  %v2963_v47 = vsel %vm373_vm1, %v2960_v44, %v2962_v0  ;;  %v2811_v6 = vsel %vm663_vm2, %v2808_v25, %v2810_v41  ;;  %v3112_v5 = vrot.slane %v16656_v32, 3  ;;  %v20028_v51 = vld [vmem:[#allocation35_spill] sm:$0xff] }
 0x30b   :  { %13678 = vmatmul.mubr.msk.f32.vlgmr.msra.gmra.mxu0 %vm1337_vm3, %v2807_v50  ;;  %13701 = vmatmul.mubr.msk.f32.vlgmr.msra.gmra.mxu1 %vm1337_vm3, %v2961_v17  ;;  %v2965_v62 = vsel %vm373_vm1, %v2962_v0, %v2964_v54  ;;  %v2692_v33 = vsel %vm2681_vm6, %v2689_v7, %v2691_v16  ;;  %v2694_v49 = vsel %vm2681_vm6, %v2691_v16, %v2693_v55  ;;  %v3113_v7 = vrot.slane %v16662_v57, 3 }
 0x30c   :  { %13680 = vmatprep.mubr.msk.f32.mxu0 %vm1337_vm3, %v2809_v31  ;;  %13703 = vmatprep.mubr.msk.f32.mxu1 %vm1337_vm3, %v2963_v47  ;;  %v16705_v56 = vadd.f32 %v2692_v33, %v16564_v28  ;;  %v16708_v44 = vadd.f32 %v2694_v49, %v16556_v21  ;;  %v2696_v25 = vsel %vm2681_vm6, %v2693_v55, %v2695_v27  ;;  %v20029_v21 = vld [vmem:[#allocation30_spill] sm:$0xff]  ;;  %v3115_v55 = vrot.slane %v16664_v11, 3  ;;  %v16737_v47 = vld [vmem:[%s15082_s25 + $0x48] sm:$0xff] }
 0x30d   :  { %v16713_v16 = vadd.f32 %v2696_v25, %v16567_v4  ;;  %v2639_v0 = vmul.f32 %v16634_v38, %v2629_v36  ;;  %v2640_v28 = vmul.f32 %v16634_v38, %v2630_v59  ;;  %13716 = vmatpush3.msra.mxu0 %v20028_v51  ;;  %13739 = vmatpush3.msra.mxu1 %v20029_v21 }
 0x30e   :  { %v2812_v4 = vrot.slane %v16705_v56, 2  ;;  %v2966_v29 = vrot.slane %v16705_v56, 1  ;;  %v2814_v2 = vrot.slane %v16708_v44, 2  ;;  %v2968_v36 = vrot.slane %v16708_v44, 1  ;;  %13717 = vmatprep.subr.mxu0 %v16699_v39  ;;  %13740 = vmatprep.subr.mxu1 %v20030_v43 }
 0x30f   :  { %13681 = vmatmul.mubr.msk.f32.gmra.mxu0 %vm1337_vm3, %v2811_v6  ;;  %13704 = vmatmul.mubr.msk.f32.gmra.mxu1 %vm1337_vm3, %v2965_v62  ;;  %v2816_v59 = vrot.slane %v16713_v16, 2  ;;  %v2970_v50 = vrot.slane %v16713_v16, 1  ;;  %v2697_v17 = vrot.slane %v2639_v0, 7  ;;  %v2699_v31 = vrot.slane %v2640_v28, 7 }
 0x310   :  { %v2813_v33 = vsel %vm663_vm2, %v2810_v41, %v2812_v4  ;;  %v2967_v49 = vsel %vm373_vm1, %v2964_v54, %v2966_v29  ;;  %v2815_v25 = vsel %vm663_vm2, %v2812_v4, %v2814_v2  ;;  %v2969_v21 = vsel %vm373_vm1, %v2966_v29, %v2968_v36  ;;  %13718 = vmatpush3.msra.mxu0 %v16699_v39 }
 0x311   :  { %13683 = vmatprep.mubr.msk.f32.mxu0 %vm1337_vm3, %v2813_v33  ;;  %13706 = vmatprep.mubr.msk.f32.mxu1 %vm1337_vm3, %v2967_v49  ;;  %v2817_v6 = vsel %vm663_vm2, %v2814_v2, %v2816_v59  ;;  %v2971_v62 = vsel %vm373_vm1, %v2968_v36, %v2970_v50  ;;  %v2698_v0 = vsel %vm2681_vm6, %v2695_v27, %v2697_v17  ;;  %v3117_v41 = vrot.slane %v16670_v53, 3 }
 0x312   :  { %v16751_v54 = vadd.f32 %v2698_v0, %v16559_v19  ;;  %v2700_v28 = vsel %vm2681_vm6, %v2697_v17, %v2699_v31  ;;  %13741 = vmatpush3.msra.mxu1 %v20030_v43  ;;  %13719 = vmatprep.subr.mxu0 %v16737_v47  ;;  %v3114_v4 = vsel %vm3111_vm7, %v3112_v5, %v3113_v7  ;;  %v3119_v29 = vrot.slane %v16673_v10, 3  ;;  %v16772_v5 = vld [vmem:[%s15082_s25 + $0x40] sm:$0xff]  ;;  %v20031_v17 = vld [vmem:[#allocation33_spill] sm:$0xff] }
 0x313   :  { %13684 = vmatmul.mubr.msk.f32.gmra.mxu0 %vm1337_vm3, %v2815_v25  ;;  %13707 = vmatmul.mubr.msk.f32.gmra.mxu1 %vm1337_vm3, %v2969_v21  ;;  %v16761_v27 = vadd.f32 %v2700_v28, %v16570_v20  ;;  %v2651_v19 = vmul.f32 %v16634_v38, %v2641_v37  ;;  %v2652_v2 = vmul.f32 %v16634_v38, %v2642_v13  ;;  %v3121_v36 = vrot.slane %v16705_v56, 3  ;;  %v20032_v28 = vld [vmem:[#allocation34_spill] sm:$0xff] }
 0x314   :  { %13686 = vmatprep.mubr.msk.f32.mxu0 %vm1337_vm3, %v2817_v6  ;;  %13709 = vmatprep.mubr.msk.f32.mxu1 %vm1337_vm3, %v2971_v62  ;;  %v2818_v20 = vrot.slane %v16751_v54, 2  ;;  %v2972_v43 = vrot.slane %v16751_v54, 1  ;;  %v3116_v3 = vsel %vm3111_vm7, %v3113_v7, %v3115_v55  ;;  %v2653_v37 = vmul.f32 %v16634_v38, %v2643_v9 }
 0x315   :  { %v2820_v48 = vrot.slane %v16761_v27, 2  ;;  %v2974_v13 = vrot.slane %v16761_v27, 1  ;;  %13742 = vmatprep.subr.mxu1 %v20031_v17  ;;  %13720 = vmatpush3.msra.mxu0 %v16737_v47  ;;  %v2741_v31 = vrot.slane %v2651_v19, 7  ;;  %v2742_v33 = vrot.slane %v2652_v2, 7 }
 0x316   :  { %v2819_v49 = vsel %vm663_vm2, %v2816_v59, %v2818_v20  ;;  %v2973_v25 = vsel %vm373_vm1, %v2970_v50, %v2972_v43  ;;  %13743 = vmatpush3.msra.mxu1 %v20031_v17  ;;  %13721 = vmatprep.subr.mxu0 %v16772_v5  ;;  %v2744_v1 = vrot.slane %v2653_v37, 7  ;;  %v3118_v9 = vsel %vm3111_vm7, %v3115_v55, %v3117_v41 }
 0x317   :  { %13687 = vmatmul.mubr.msk.f32.gmra.mxu0 %vm1337_vm3, %v2819_v49  ;;  %13710 = vmatmul.mubr.msk.f32.gmra.mxu1 %vm1337_vm3, %v2973_v25  ;;  %v2821_v7 = vsel %vm663_vm2, %v2818_v20, %v2820_v48  ;;  %v2975_v21 = vsel %vm373_vm1, %v2972_v43, %v2974_v13  ;;  %v2743_v6 = vsel %vm2681_vm6, %v2741_v31, %v2742_v33  ;;  %v3123_v59 = vrot.slane %v16708_v44, 3 }
 0x318   :  { %13689 = vmatprep.mubr.msk.f32.mxu0 %vm1337_vm3, %v2821_v7  ;;  %13712 = vmatprep.mubr.msk.f32.mxu1 %vm1337_vm3, %v2975_v21  ;;  %v16802_v50 = vadd.f32 %v2741_v31, %v16573_v26  ;;  %v16805_v55 = vadd.f32 %v2743_v6, %v16576_v23  ;;  %v2745_v62 = vsel %vm2681_vm6, %v2742_v33, %v2744_v1  ;;  %v3125_v0 = vrot.slane %v16713_v16, 3 }
 0x319   :  { %13744 = vmatprep.subr.mxu1 %v20032_v28  ;;  %13722 = vmatpush3.msra.mxu0 %v16772_v5  ;;  %v16812_v19 = vadd.f32 %v2745_v62, %v16579_v63  ;;  %v2654_v26 = vmul.f32 %v16634_v38, %v2644_v42  ;;  %v3120_v2 = vsel %vm3111_vm7, %v3117_v41, %v3119_v29  ;;  %v3127_v23 = vrot.slane %v16751_v54, 3 }
 0x31a   :  { %v3286_v20 = vrot.slane %v16802_v50, 2  ;;  %v3287_v43 = vrot.slane %v16805_v55, 2  ;;  %13745 = vmatpush3.msra.mxu1 %v20032_v28  ;;  %v2655_v63 = vmul.f32 %v16634_v38, %v2645_v14  ;;  %v3122_v37 = vsel %vm3111_vm7, %v3119_v29, %v3121_v36  ;;  %13761 = vmatprep.subr.mxu0 %v20033_v52 }
 0x31b   :  { %13690 = vmatmul.mubr.msk.f32.gmra.mxu0 %vm1337_vm3, %v2820_v48  ;;  %13713 = vmatmul.mubr.msk.f32.gmra.mxu1 %vm1337_vm3, %v2974_v13  ;;  %v3289_v42 = vrot.slane %v16812_v19, 2  ;;  %v2746_v41 = vrot.slane %v2654_v26, 7  ;;  %v2656_v17 = vmul.f32 %v16634_v38, %v2646_v60  ;;  %v16837_v24 = vsel %vm3111_vm7, %v3121_v36, %v3123_v59 }
 0x31c   :  { %13723 = vmatprep.mubr.msk.f32.mxu0 %vm1337_vm3, %v3114_v4  ;;  %v3288_v14 = vsel %vm663_vm2, %v3286_v20, %v3287_v43  ;;  %v2748_v29 = vrot.slane %v2655_v63, 7  ;;  %v20034_v48 = vsub.f32 %v16515_v8, %v16546_v15  ;;  %v16846_v31 = vsel %vm3111_vm7, %v3123_v59, %v3125_v0  ;;  %13784 = vmatprep.subr.mxu1 %v20028_v51 }
 0x31d   :  { %13746 = vmatprep.mubr.msk.f32.mxu1 %vm1337_vm3, %v3288_v14  ;;  %v3290_v61 = vsel %vm663_vm2, %v3287_v43, %v3289_v42  ;;  %v2747_v60 = vsel %vm2681_vm6, %v2744_v1, %v2746_v41  ;;  %v2750_v4 = vrot.slane %v2656_v17, 7  ;;  %v20035_v36 = vsub.f32 %v16512_v12, %v16546_v15  ;;  %v14953_v43 = vld [vmem:[%s15082_s25 + $0x10] sm:$0xff] }
 0x31e   :  { %v2657_v13 = vmul.f32 %v16634_v38, %v20034_v48  ;;  %v16857_v8 = vadd.f32 %v2747_v60, %v16582_v35  ;;  %v2749_v49 = vsel %vm2681_vm6, %v2746_v41, %v2748_v29  ;;  %v16861_v7 = vsel %vm3111_vm7, %v3125_v0, %v3127_v23  ;;  %v14952_v0 = vld [vmem:[%s15082_s25 + $0x18] sm:$0xff]  ;;  %v14954_v60 = vld [vmem:[%s15082_s25 + $0x8] sm:$0xff] }
 0x31f   :  { %v2658_v33 = vmul.f32 %v16634_v38, %v20035_v36  ;;  %13724 = vmatmul.mubr.msk.f32.vlgmr.msra.gmra.mxu0 %vm1337_vm3, %v3116_v3  ;;  %13747 = vmatmul.mubr.msk.f32.vlgmr.msra.gmra.mxu1 %vm1337_vm3, %v3290_v61  ;;  %v16866_v1 = vadd.f32 %v2749_v49, %v16585_v18  ;;  %v2751_v12 = vsel %vm2681_vm6, %v2748_v29, %v2750_v4  ;;  %v3129_v35 = vrot.slane %v16761_v27, 3 }
 0x320   :  { %v2752_v25 = vrot.slane %v2657_v13, 7  ;;  %13726 = vmatprep.mubr.msk.f32.mxu0 %vm1337_vm3, %v3118_v9  ;;  %v3291_v6 = vrot.slane %v16857_v8, 2  ;;  %v16873_v59 = vadd.f32 %v2751_v12, %v16588_v34  ;;  %v20036_v62 = vsub.f32 %v16528_v45, %v16546_v15  ;;  %13762 = vmatpush3.msra.mxu0 %v14952_v0 }
 0x321   :  { %v2754_v21 = vrot.slane %v2658_v33, 7  ;;  %v3293_v28 = vrot.slane %v16866_v1, 2  ;;  %v20037_v20 = vrot.slane %v16645_v22, 7  ;;  %13785 = vmatpush3.msra.mxu1 %v20028_v51  ;;  %13763 = vmatprep.subr.mxu0 %v14953_v43  ;;  %v3130_v52 = vsel %vm3111_vm7, %v3127_v23, %v3129_v35 }
 0x322   :  { %v2753_v3 = vsel %vm2681_vm6, %v2750_v4, %v2752_v25  ;;  %v2660_v18 = vmul.f32 %v16634_v38, %v20036_v62  ;;  %v3292_v45 = vsel %vm663_vm2, %v3289_v42, %v3291_v6  ;;  %v3295_v15 = vrot.slane %v16873_v59, 2  ;;  %13786 = vmatprep.subr.mxu1 %v16699_v39  ;;  %13764 = vmatpush3.msra.mxu0 %v14953_v43 }
 0x323   :  { %v16883_v26 = vadd.f32 %v2753_v3, %v16591_v30  ;;  %v2755_v9 = vsel %vm2681_vm6, %v2752_v25, %v2754_v21  ;;  %v2757_v34 = vsel %vm2681_vm6, %v2754_v21, %v20037_v20  ;;  %13749 = vmatprep.mubr.msk.f32.mxu1 %vm1337_vm3, %v3292_v45  ;;  %13727 = vmatmul.mubr.msk.f32.gmra.mxu0 %vm1337_vm3, %v3120_v2  ;;  %v3440_v41 = vrot.slane %v16802_v50, 1  ;;  %v14955_v3 = vld [vmem:[%s15082_s25] sm:$0xff]  ;;  %s20072_s25 = sld [smem:[#allocation15_spill]] }
 0x324   :  { %v16894_v38 = vadd.f32 %v2755_v9, %v16594_v46  ;;  %v16897_v30 = vadd.f32 %v2757_v34, %v16597_v40  ;;  %v3294_v51 = vsel %vm663_vm2, %v3291_v6, %v3293_v28  ;;  %v2758_v46 = vrot.slane %v2660_v18, 7  ;;  %13729 = vmatprep.mubr.msk.f32.mxu0 %vm1337_vm3, %v3122_v37  ;;  %13787 = vmatpush3.msra.mxu1 %v16699_v39 }
 0x325   :  { %v3297_v63 = vrot.slane %v16883_v26, 2  ;;  %13750 = vmatmul.mubr.msk.f32.gmra.mxu1 %vm1337_vm3, %v3294_v51  ;;  %v3296_v40 = vsel %vm663_vm2, %v3293_v28, %v3295_v15  ;;  %v20038_v23 = vmov %v20037_v20  ;;  %v3441_v37 = vrot.slane %v16805_v55, 1  ;;  %13765 = vmatprep.subr.mxu0 %v14954_v60 }
 0x326   :  { %v3299_v42 = vrot.slane %v16894_v38, 2  ;;  %v3301_v2 = vrot.slane %v16897_v30, 2  ;;  %13752 = vmatprep.mubr.msk.f32.mxu1 %vm1337_vm3, %v3296_v40  ;;  %v2759_v14 = vsel %vm2681_vm6, %v20038_v23, %v2758_v46  ;;  %v3594_v29 = vrot.slane %v16802_v50, 3  ;;  %13788 = vmatprep.subr.mxu1 %v16737_v47 }
 0x327   :  { %v3298_v17 = vsel %vm663_vm2, %v3295_v15, %v3297_v63  ;;  %v16924_v61 = vadd.f32 %v2759_v14, %v16600_v58  ;;  %v3595_v22 = vrot.slane %v16805_v55, 3  ;;  %13730 = vmatmul.mubr.msk.f32.gmra.mxu0 %vm1337_vm3, %v16837_v24  ;;  %v3442_v39 = vsel %vm373_vm1, %v3440_v41, %v3441_v37  ;;  %13789 = vmatpush3.msra.mxu1 %v16737_v47 }
 0x328   :  { %v3300_v48 = vsel %vm663_vm2, %v3297_v63, %v3299_v42  ;;  %v3302_v13 = vsel %vm663_vm2, %v3299_v42, %v3301_v2  ;;  %v3443_v4 = vrot.slane %v16812_v19, 1  ;;  %v3597_v36 = vrot.slane %v16812_v19, 3  ;;  %13732 = vmatprep.mubr.msk.f32.mxu0 %vm1337_vm3, %v16846_v31  ;;  %13766 = vmatpush3.msra.mxu0 %v14954_v60  ;;  %v17018_v60 = vld [vmem:[%s15092_s3 + $0x28] sm:$0xff] }
 0x329   :  { %v3445_v58 = vrot.slane %v16857_v8, 1  ;;  %13753 = vmatmul.mubr.msk.f32.gmra.mxu1 %vm1337_vm3, %v3298_v17  ;;  %v3303_v33 = vrot.slane %v16924_v61, 2  ;;  %v3596_v24 = vsel %vm3111_vm7, %v3594_v29, %v3595_v22  ;;  %v3599_v49 = vrot.slane %v16857_v8, 3  ;;  %13767 = vmatprep.subr.mxu0 %v14955_v3  ;;  %20041 = vst [vmem:[#allocation39_spill] sm:$0xff] %v17018_v60 }
 0x32a   :  { %v3447_v47 = vrot.slane %v16866_v1, 1  ;;  %13755 = vmatprep.mubr.msk.f32.mxu1 %vm1337_vm3, %v3300_v48  ;;  %v3444_v25 = vsel %vm373_vm1, %v3441_v37, %v3443_v4  ;;  %v3598_v12 = vsel %vm3111_vm7, %v3595_v22, %v3597_v36  ;;  %v3601_v6 = vrot.slane %v16866_v1, 3  ;;  %13790 = vmatprep.subr.mxu1 %v16772_v5  ;;  %v4095_v37 = vld [vmem:[%s15092_s3 + $0x18] sm:$0xff]  ;;  %v17011_v48 = vld [vmem:[%s15092_s3 + $0x30] sm:$0xff]  ;;  %v4093_v22 = vld [vmem:[%s15092_s3 + $0x8] sm:$0xff] }
 0x32b   :  { %v3446_v21 = vsel %vm373_vm1, %v3443_v4, %v3445_v58  ;;  %v3304_v31 = vsel %vm663_vm2, %v3301_v2, %v3303_v33  ;;  %v3600_v62 = vsel %vm3111_vm7, %v3597_v36, %v3599_v49  ;;  %v3449_v0 = vrot.slane %v16873_v59, 1  ;;  %13733 = vmatmul.mubr.msk.f32.gmra.mxu0 %vm1337_vm3, %v16861_v7  ;;  %13791 = vmatpush3.msra.mxu1 %v16772_v5  ;;  %v4092_v4 = vld [vmem:[%s15092_s3] sm:$0xff] }
 0x32c   :  { %v3448_v18 = vsel %vm373_vm1, %v3445_v58, %v3447_v47  ;;  %v3602_v28 = vsel %vm3111_vm7, %v3599_v49, %v3601_v6  ;;  %v3603_v9 = vrot.slane %v16873_v59, 3  ;;  %v3451_v20 = vrot.slane %v16883_v26, 1  ;;  %13735 = vmatprep.mubr.msk.f32.mxu0 %vm1337_vm3, %v3130_v52  ;;  %13768 = vmatpush3.msra.mxu0 %v14955_v3  ;;  %20040 = vst [vmem:[#allocation38_spill] sm:$0xff] %v17011_v48 }
 0x32d   :  { %v3605_v34 = vrot.slane %v16883_v26, 3  ;;  %13756 = vmatmul.mubr.msk.f32.gmra.mxu1 %vm1337_vm3, %v3302_v13  ;;  %v3450_v43 = vsel %vm373_vm1, %v3447_v47, %v3449_v0  ;;  %v3453_v45 = vrot.slane %v16894_v38, 1  ;;  %v3607_v7 = vrot.slane %v16894_v38, 3  ;;  %v4094_v13 = vld [vmem:[%s15092_s3 + $0x10] sm:$0xff] }
 0x32e   :  { %v3455_v5 = vrot.slane %v16897_v30, 1  ;;  %13758 = vmatprep.mubr.msk.f32.mxu1 %vm1337_vm3, %v3304_v31  ;;  %v3604_v15 = vsel %vm3111_vm7, %v3601_v6, %v3603_v9  ;;  %v3452_v51 = vsel %vm373_vm1, %v3449_v0, %v3451_v20  ;;  %v3609_v46 = vrot.slane %v16897_v30, 3 }
 0x32f   :  { %v3606_v63 = vsel %vm3111_vm7, %v3603_v9, %v3605_v34  ;;  %v3454_v52 = vsel %vm373_vm1, %v3451_v20, %v3453_v45  ;;  %v3608_v40 = vsel %vm3111_vm7, %v3605_v34, %v3607_v7  ;;  %v3457_v2 = vrot.slane %v16924_v61, 1  ;;  %13736 = vmatmul.mubr.msk.f32.gmra.mxu0 %vm1337_vm3, %v3129_v35  ;;  %v17005_v35 = vld [vmem:[%s15092_s3 + $0x38] sm:$0xff] }
 0x330   :  { %v3456_v42 = vsel %vm373_vm1, %v3453_v45, %v3455_v5  ;;  %v3610_v41 = vsel %vm3111_vm7, %v3607_v7, %v3609_v46  ;;  %v3611_v17 = vrot.slane %v16924_v61, 3  ;;  %13769 = vmatprep.mubr.msk.f32.mxu0 %vm1337_vm3, %v3442_v39  ;;  %20039 = vst [vmem:[#allocation36_spill] sm:$0xff] %v17005_v35  ;;  %v19971_v29 = vmov 0.0   ;;  %v17025_v39 = vld [vmem:[%s15092_s3 + $0x20] sm:$0xff] }
 0x331   :  { %13759 = vmatmul.mubr.msk.f32.gmra.mxu1 %vm1337_vm3, %v3303_v33  ;;  %v3458_v23 = vsel %vm373_vm1, %v3455_v5, %v3457_v2  ;;  %13807 = vmatprep.subr.mxu0 %v19971_v29  ;;  %20042 = vst [vmem:[#allocation37_spill] sm:$0xff] %v17025_v39  ;;  %v17047_v7 = vld [vmem:[%s15087_s29] ss:$0 sm:$0xff]  ;;  %s20073_s29 = sld [smem:[#allocation14_spill]] }
 0x332   :  { %13792 = vmatprep.mubr.msk.f32.mxu1 %vm1337_vm3, %v3596_v24  ;;  %v3612_v14 = vsel %vm3111_vm7, %v3609_v46, %v3611_v17  ;;  %13842 = vmatprep.subr.mxu1 %v19971_v29 }
 0x333   :  { %13770 = vmatmul.mubr.msk.f32.vlgmr.msra.gmra.mxu0 %vm1337_vm3, %v3444_v25 }
 0x334   :  { %13772 = vmatprep.mubr.msk.f32.mxu0 %vm1337_vm3, %v3446_v21  ;;  %13808 = vmatpush3.msra.mxu0 %v17005_v35 }
 0x335   :  { %13793 = vmatmul.mubr.msk.f32.vlgmr.msra.gmra.mxu1 %vm1337_vm3, %v3598_v12  ;;  %13809 = vmatprep.subr.mxu0 %v19971_v29 }
 0x336   :  { %13795 = vmatprep.mubr.msk.f32.mxu1 %vm1337_vm3, %v3600_v62  ;;  %13843 = vmatpush3.msra.mxu1 %v4095_v37 }
 0x337   :  { %13773 = vmatmul.mubr.msk.f32.gmra.mxu0 %vm1337_vm3, %v3448_v18  ;;  %13844 = vmatprep.subr.mxu1 %v19971_v29 }
 0x338   :  { %13775 = vmatprep.mubr.msk.f32.mxu0 %vm1337_vm3, %v3450_v43  ;;  %13810 = vmatpush3.msra.mxu0 %v17011_v48 }
 0x339   :  { %13796 = vmatmul.mubr.msk.f32.gmra.mxu1 %vm1337_vm3, %v3602_v28  ;;  %13811 = vmatprep.subr.mxu0 %v19971_v29 }
 0x33a   :  { %13798 = vmatprep.mubr.msk.f32.mxu1 %vm1337_vm3, %v3604_v15  ;;  %13845 = vmatpush3.msra.mxu1 %v4094_v13 }
 0x33b   :  { %13776 = vmatmul.mubr.msk.f32.gmra.mxu0 %vm1337_vm3, %v3452_v51  ;;  %13846 = vmatprep.subr.mxu1 %v19971_v29 }
 0x33c   :  { %13778 = vmatprep.mubr.msk.f32.mxu0 %vm1337_vm3, %v3454_v52  ;;  %13812 = vmatpush3.msra.mxu0 %v17018_v60 }
 0x33d   :  { %13799 = vmatmul.mubr.msk.f32.gmra.mxu1 %vm1337_vm3, %v3606_v63  ;;  %13813 = vmatprep.subr.mxu0 %v19971_v29 }
 0x33e   :  { %13801 = vmatprep.mubr.msk.f32.mxu1 %vm1337_vm3, %v3608_v40  ;;  %13847 = vmatpush3.msra.mxu1 %v4093_v22 }
 0x33f   :  { %13779 = vmatmul.mubr.msk.f32.gmra.mxu0 %vm1337_vm3, %v3456_v42  ;;  %13848 = vmatprep.subr.mxu1 %v19971_v29 }
 0x340   :  { %13781 = vmatprep.mubr.msk.f32.mxu0 %vm1337_vm3, %v3458_v23  ;;  %13814 = vmatpush3.msra.mxu0 %v17025_v39 }
 0x341   :  { %13802 = vmatmul.mubr.msk.f32.gmra.mxu1 %vm1337_vm3, %v3610_v41  ;;  %13877 = vmatprep.subr.mxu0 %v19971_v29 }
 0x342   :  { %13804 = vmatprep.mubr.msk.f32.mxu1 %vm1337_vm3, %v3612_v14  ;;  %13849 = vmatpush3.msra.mxu1 %v4092_v4 }
 0x343   :  { %13782 = vmatmul.mubr.msk.f32.gmra.mxu0 %vm1337_vm3, %v3457_v2  ;;  %13912 = vmatprep.subr.mxu1 %v19971_v29 }
 0x344   :  { %13815 = vmatprep.mubr.msk.f32.mxu0 %vm15044_vm8, %v19971_v29 }
 0x345   :  { %13805 = vmatmul.mubr.msk.f32.gmra.mxu1 %vm1337_vm3, %v3611_v17 }
 0x346   :  { %13850 = vmatprep.mubr.msk.f32.mxu1 %vm15044_vm8, %v19971_v29 }
 0x3cb   :  { %v13679_v36 = vpop.f32.mrf.mxu0  ;;  %v13702_v58 = vpop.f32.mrf.mxu1 }
 0x3cc   :  { %v3068_v45 = vadd.f32 %v13702_v58, %v13679_v36 }
 0x3cd   :  { %v2908_v33 = vpop.f32.mrf.mxu0  ;;  %v3062_v24 = vpop.f32.mrf.mxu1 }
 0x3ce   :  { %v3063_v51 = vadd.f32 %v3062_v24, %v2908_v33 }
 0x3cf   :  { %v13682_v49 = vpop.f32.mrf.mxu0  ;;  %v13705_v47 = vpop.f32.mrf.mxu1 }
 0x3d0   :  { %v3078_v40 = vadd.f32 %v13705_v47, %v13682_v49 }
 0x3d1   :  { %v2918_v25 = vpop.f32.mrf.mxu0  ;;  %v3072_v12 = vpop.f32.mrf.mxu1 }
 0x3d2   :  { %v3073_v13 = vadd.f32 %v3072_v12, %v2918_v25 }
 0x3d3   :  { %v13685_v21 = vpop.f32.mrf.mxu0  ;;  %v13708_v6 = vpop.f32.mrf.mxu1 }
 0x3d4   :  { %v3088_v33 = vadd.f32 %v13708_v6, %v13685_v21 }
 0x3d5   :  { %v2928_v31 = vpop.f32.mrf.mxu0  ;;  %v3082_v3 = vpop.f32.mrf.mxu1 }
 0x3d6   :  { %v3083_v47 = vadd.f32 %v3082_v3, %v2928_v31 }
 0x3d7   :  { %v13688_v62 = vpop.f32.mrf.mxu0  ;;  %v13711_v18 = vpop.f32.mrf.mxu1 }
 0x3d9   :  { %v2938_v0 = vpop.f32.mrf.mxu0  ;;  %v3092_v28 = vpop.f32.mrf.mxu1 }
 0x3db   :  { %v17038_v9 = vpop.f32.mrf.mxu0  ;;  %v17040_v20 = vpop.f32.mrf.mxu1 }
 0x3dd   :  { %v17042_v34 = vpop.f32.mrf.mxu0  ;;  %v17044_v43 = vpop.f32.mrf.mxu1 }
 0x3df   :  { %v13725_v5 = vpop.f32.mrf.mxu0  ;;  %v17049_v15 = vpop.f32.mrf.mxu1 }
 0x3e0   :  { %v3267_v63 = vadd.f32 %v13725_v5, %v3068_v45 }
 0x3e1   :  { %v3217_v46 = vpop.f32.mrf.mxu0  ;;  %v17051_v52 = vpop.f32.mrf.mxu1 }
 0x3e2   :  { %v3765_v42 = vadd.f32 %v17047_v7, %v3267_v63  ;;  %v3266_v2 = vadd.f32 %v3217_v46, %v3063_v51 }
 0x3e3   :  { %v13728_v41 = vpop.f32.mrf.mxu0 }
 0x3e4   :  { %v17054_v17 = vmax.f32 %v3765_v42, 0.0  ;;  %v3764_v23 = vadd.f32 %v17047_v7, %v3266_v2  ;;  %v3269_v14 = vadd.f32 %v13728_v41, %v3078_v40  ;;  %v3098_v40 = vadd.f32 %v13711_v18, %v13688_v62 }
 0x3e5   :  { %v17057_v37 = vpop.f32.mrf.mxu1  ;;  %v3227_v22 = vpop.f32.mrf.mxu0  ;;  %v3093_v42 = vadd.f32 %v3092_v28, %v2938_v0 }
 0x3e6   :  { %v17059_v4 = vmax.f32 %v3764_v23, 0.0  ;;  %v3767_v36 = vadd.f32 %v17047_v7, %v3269_v14  ;;  %v3268_v24 = vadd.f32 %v3227_v22, %v3073_v13  ;;  %v3831_v45 = vmul.f32 %v17054_v17, %v17054_v17 }
 0x3e7   :  { %v17062_v58 = vpop.f32.mrf.mxu1  ;;  %v13731_v49 = vpop.f32.mrf.mxu0  ;;  %v3805_v2 = vsel %vm1337_vm3, %v17054_v17, 0.0 }
 0x3e8   :  { %v3830_v5 = vmul.f32 %v17059_v4, %v17059_v4  ;;  %v17068_v51 = vmax.f32 %v3767_v36, 0.0  ;;  %v3804_v12 = vsel %vm1337_vm3, %v17059_v4, 0.0  ;;  %v3766_v63 = vadd.f32 %v17047_v7, %v3268_v24 }
 0x3e9   :  { %v17070_v25 = vpop.f32.mrf.mxu1  ;;  %v3271_v46 = vadd.f32 %v13731_v49, %v3088_v33  ;;  %v3237_v21 = vpop.f32.mrf.mxu0  ;;  %v3841_v14 = vsel %vm1337_vm3, %v3831_v45, 0.0  ;;  %v3806_v13 = vadd.f32 %v3805_v2, %v3804_v12 }
 0x3ea   :  { %v3840_v6 = vsel %vm1337_vm3, %v3830_v5, 0.0  ;;  %v3270_v31 = vadd.f32 %v3237_v21, %v3083_v47  ;;  %v17080_v41 = vmax.f32 %v3766_v63, 0.0  ;;  %v3833_v22 = vmul.f32 %v17068_v51, %v17068_v51 }
 0x3eb   :  { %v17076_v3 = vpop.f32.mrf.mxu1  ;;  %v13734_v23 = vpop.f32.mrf.mxu0  ;;  %v3842_v24 = vadd.f32 %v3841_v14, %v3840_v6  ;;  %v3769_v0 = vadd.f32 %v17047_v7, %v3271_v46  ;;  %v3809_v63 = vsel %vm1337_vm3, %v17068_v51, 0.0 }
 0x3ec   :  { %v3768_v36 = vadd.f32 %v17047_v7, %v3270_v31  ;;  %v3807_v62 = vsel %vm1337_vm3, %v17080_v41, 0.0  ;;  %v3832_v18 = vmul.f32 %v17080_v41, %v17080_v41  ;;  %v3273_v45 = vadd.f32 %v13734_v23, %v3098_v40 }
 0x3ed   :  { %v17086_v33 = vpop.f32.mrf.mxu1  ;;  %v3247_v28 = vpop.f32.mrf.mxu0  ;;  %v3808_v49 = vadd.f32 %v3807_v62, %v3806_v13  ;;  %v17106_v40 = vmax.f32 %v3769_v0, 0.0 }
 0x3ee   :  { %v17093_v47 = vmax.f32 %v3768_v36, 0.0  ;;  %v3272_v5 = vadd.f32 %v3247_v28, %v3093_v42  ;;  %v3843_v21 = vsel %vm1337_vm3, %v3832_v18, 0.0  ;;  %v3845_v36 = vsel %vm1337_vm3, %v3833_v22, 0.0 }
 0x3ef   :  { %v17095_v12 = vpop.f32.mrf.mxu1  ;;  %v13737_v6 = vpop.f32.mrf.mxu0  ;;  %v3844_v31 = vadd.f32 %v3843_v21, %v3842_v24  ;;  %v3810_v2 = vadd.f32 %v3809_v63, %v3808_v49  ;;  %v3771_v62 = vadd.f32 %v17047_v7, %v3273_v45  ;;  %v3103_v24 = vadd.f32 %v17044_v43, %v17042_v34 }
 0x3f0   :  { %v3811_v14 = vsel %vm1337_vm3, %v17093_v47, 0.0  ;;  %v3834_v46 = vmul.f32 %v17093_v47, %v17093_v47  ;;  %v3770_v42 = vadd.f32 %v17047_v7, %v3272_v5  ;;  %v3108_v21 = vadd.f32 %v17040_v20, %v17038_v9 }
 0x3f1   :  { %v17104_v13 = vpop.f32.mrf.mxu1  ;;  %v3257_v23 = vpop.f32.mrf.mxu0  ;;  %v3812_v28 = vadd.f32 %v3811_v14, %v3810_v2  ;;  %v3846_v49 = vadd.f32 %v3845_v36, %v3844_v31  ;;  %v3813_v45 = vsel %vm1337_vm3, %v17106_v40, 0.0  ;;  %v3835_v34 = vmul.f32 %v17106_v40, %v17106_v40 }
 0x3f2   :  { %v3847_v0 = vsel %vm1337_vm3, %v3834_v46, 0.0  ;;  %v17118_v29 = vmax.f32 %v3770_v42, 0.0  ;;  %v3274_v39 = vadd.f32 %v3257_v23, %v3103_v24  ;;  %v17125_v43 = vmax.f32 %v3771_v62, 0.0 }
 0x3f3   :  { %v17111_v18 = vpop.f32.mrf.mxu1  ;;  %v13771_v63 = vpop.f32.mrf.mxu0  ;;  %v3275_v31 = vadd.f32 %v13737_v6, %v3108_v21  ;;  %v3848_v20 = vadd.f32 %v3847_v0, %v3846_v49  ;;  %v3814_v14 = vadd.f32 %v3813_v45, %v3812_v28  ;;  %v3849_v28 = vsel %vm1337_vm3, %v3835_v34, 0.0 }
 0x3f4   :  { %v3551_v5 = vadd.f32 %v13771_v63, %v17049_v15  ;;  %20043 = vst [vmem:[#allocation40_spill] sm:$0xff] %v17125_v43  ;;  %v3815_v15 = vsel %vm1337_vm3, %v17118_v29, 0.0  ;;  %v3836_v23 = vmul.f32 %v17118_v29, %v17118_v29  ;;  %v3772_v24 = vadd.f32 %v17047_v7, %v3274_v39 }
 0x3f5   :  { %v13794_v22 = vpop.f32.mrf.mxu1  ;;  %v3545_v60 = vpop.f32.mrf.mxu0 }
 0x3f6   :  { %v3749_v2 = vadd.f32 %v13794_v22, %v3551_v5  ;;  %v3546_v46 = vadd.f32 %v3545_v60, %v17051_v52  ;;  %v3837_v60 = vmul.f32 %v17125_v43, %v17125_v43  ;;  %v3773_v52 = vadd.f32 %v17047_v7, %v3275_v31 }
 0x3f7   :  { %v3699_v9 = vpop.f32.mrf.mxu1  ;;  %v13774_v42 = vpop.f32.mrf.mxu0  ;;  %v3816_v5 = vadd.f32 %v3815_v15, %v3814_v14  ;;  %v3850_v22 = vadd.f32 %v3849_v28, %v3848_v20  ;;  %v17145_v48 = vmax.f32 %v3772_v24, 0.0  ;;  %v3817_v20 = vsel %vm1337_vm3, %v17125_v43, 0.0 }
 0x3f8   :  { %v3785_v62 = vadd.f32 %v17047_v7, %v3749_v2  ;;  %v3748_v63 = vadd.f32 %v3699_v9, %v3546_v46  ;;  %v3561_v6 = vadd.f32 %v13774_v42, %v17057_v37  ;;  %v3851_v9 = vsel %vm1337_vm3, %v3836_v23, 0.0 }
 0x3f9   :  { %v13797_v36 = vpop.f32.mrf.mxu1  ;;  %v3555_v21 = vpop.f32.mrf.mxu0  ;;  %20045 = vst [vmem:[#allocation30_spill] sm:$0xff] %v17145_v48  ;;  %v3818_v28 = vadd.f32 %v3817_v20, %v3816_v5 }
 0x3fa   :  { %v3556_v49 = vadd.f32 %v3555_v21, %v17062_v58  ;;  %v3784_v39 = vadd.f32 %v17047_v7, %v3748_v63  ;;  %v3751_v45 = vadd.f32 %v13797_v36, %v3561_v6  ;;  %v17142_v37 = vmax.f32 %v3785_v62, 0.0 }
 0x3fb   :  { %v3709_v0 = vpop.f32.mrf.mxu1  ;;  %v13777_v2 = vpop.f32.mrf.mxu0  ;;  %v3852_v62 = vadd.f32 %v3851_v9, %v3850_v22  ;;  %v17153_v63 = vmax.f32 %v3773_v52, 0.0  ;;  %v3853_v21 = vsel %vm1337_vm3, %v3837_v60, 0.0  ;;  %v3819_v52 = vsel %vm1337_vm3, %v17145_v48, 0.0 }
 0x3fc   :  { %20044 = vst [vmem:[#allocation35_spill] sm:$0xff] %v17142_v37  ;;  %v3750_v46 = vadd.f32 %v3709_v0, %v3556_v49  ;;  %v3571_v34 = vadd.f32 %v13777_v2, %v17070_v25  ;;  %v17147_v31 = vmax.f32 %v3784_v39, 0.0  ;;  %v3787_v58 = vadd.f32 %v17047_v7, %v3751_v45 }
 0x3fd   :  { %v13800_v42 = vpop.f32.mrf.mxu1  ;;  %v3565_v14 = vpop.f32.mrf.mxu0  ;;  %v3892_v49 = vmul.f32 %v17142_v37, %v17142_v37  ;;  %v3838_v22 = vmul.f32 %v17145_v48, %v17145_v48  ;;  %v3866_v45 = vsel %vm1337_vm3, %v17142_v37, 0.0  ;;  %v3839_v20 = vmul.f32 %v17153_v63, %v17153_v63 }
 0x3fe   :  { %20046 = vst [vmem:[#allocation32_spill] sm:$0xff] %v17147_v31  ;;  %v3786_v15 = vadd.f32 %v17047_v7, %v3750_v46  ;;  %v3753_v36 = vadd.f32 %v13800_v42, %v3571_v34  ;;  %v3865_v25 = vsel %vm1337_vm3, %v17147_v31, 0.0  ;;  %v3891_v24 = vmul.f32 %v17147_v31, %v17147_v31 }
 0x3ff   :  { %v3719_v23 = vpop.f32.mrf.mxu1  ;;  %v13780_v6 = vpop.f32.mrf.mxu0  ;;  %v17170_v2 = vmax.f32 %v3787_v58, 0.0  ;;  %v3867_v60 = vadd.f32 %v3866_v45, %v3865_v25  ;;  %v3902_v37 = vsel %vm1337_vm3, %v3892_v49, 0.0  ;;  %v3820_v31 = vadd.f32 %v3819_v52, %v3818_v28 }
 0x400   :  { %v17162_v0 = vmax.f32 %v3786_v15, 0.0  ;;  %v3901_v5 = vsel %vm1337_vm3, %v3891_v24, 0.0  ;;  %v3789_v34 = vadd.f32 %v17047_v7, %v3753_v36  ;;  %v3854_v15 = vadd.f32 %v3853_v21, %v3852_v62 }
 0x401   :  { %v13803_v39 = vpop.f32.mrf.mxu1  ;;  %v3575_v9 = vpop.f32.mrf.mxu0  ;;  %v3566_v24 = vadd.f32 %v3565_v14, %v17076_v3  ;;  %v3581_v45 = vadd.f32 %v13780_v6, %v17086_v33  ;;  %v3855_v36 = vsel %vm1337_vm3, %v3838_v22, 0.0  ;;  %v3903_v48 = vadd.f32 %v3902_v37, %v3901_v5 }
 0x402   :  { %20047 = vst [vmem:[#allocation33_spill] sm:$0xff] %v17162_v0  ;;  %v3868_v46 = vsel %vm1337_vm3, %v17162_v0, 0.0  ;;  %v3893_v35 = vmul.f32 %v17162_v0, %v17162_v0  ;;  %v3870_v62 = vsel %vm1337_vm3, %v17170_v2, 0.0  ;;  %v3894_v21 = vmul.f32 %v17170_v2, %v17170_v2 }
 0x403   :  { %v3729_v42 = vpop.f32.mrf.mxu1  ;;  %v13783_v58 = vpop.f32.mrf.mxu0  ;;  %v3869_v25 = vadd.f32 %v3868_v46, %v3867_v60  ;;  %v17189_v0 = vmax.f32 %v3789_v34, 0.0  ;;  %v3752_v49 = vadd.f32 %v3719_v23, %v3566_v24  ;;  %v3755_v14 = vadd.f32 %v13803_v39, %v3581_v45 }
 0x404   :  { %v3904_v43 = vsel %vm1337_vm3, %v3893_v35, 0.0  ;;  %v3576_v33 = vadd.f32 %v3575_v9, %v17095_v12  ;;  %v3591_v6 = vadd.f32 %v13783_v58, %v17104_v13  ;;  %v3822_v35 = vsel %vm3821_vm9, %v17153_v63, 0.0 }
 0x405   :  { %v13806_v60 = vpop.f32.mrf.mxu1  ;;  %v3585_v46 = vpop.f32.mrf.mxu0  ;;  %v3905_v3 = vadd.f32 %v3904_v43, %v3903_v48  ;;  %v3856_v37 = vadd.f32 %v3855_v36, %v3854_v15  ;;  %v3788_v28 = vadd.f32 %v17047_v7, %v3752_v49  ;;  %v3871_v52 = vadd.f32 %v3870_v62, %v3869_v25 }
 0x406   :  { %v3791_v22 = vadd.f32 %v17047_v7, %v3755_v14  ;;  %v3754_v5 = vadd.f32 %v3729_v42, %v3576_v33  ;;  %v3757_v34 = vadd.f32 %v13806_v60, %v3591_v6  ;;  %v3586_v23 = vadd.f32 %v3585_v46, %v17111_v18 }
 0x407   :  { %v3857_v48 = vsel %vm3821_vm9, %v3839_v20, 0.0  ;;  %v3823_v43 = vadd.f32 %v3822_v35, %v3820_v31  ;;  %v3906_v12 = vsel %vm1337_vm3, %v3894_v21, 0.0  ;;  %v17200_v39 = vmax.f32 %v3788_v28, 0.0  ;;  %v3739_v13 = vpop.f32.mrf.mxu1 }
 0x408   :  { %v3896_v9 = vmul.f32 %v17189_v0, %v17189_v0  ;;  %v3907_v15 = vadd.f32 %v3906_v12, %v3905_v3  ;;  %v3790_v58 = vadd.f32 %v17047_v7, %v3754_v5  ;;  %v3756_v25 = vadd.f32 %v3739_v13, %v3586_v23 }
 0x409   :  { %v3872_v42 = vsel %vm1337_vm3, %v17200_v39, 0.0  ;;  %v3895_v18 = vmul.f32 %v17200_v39, %v17200_v39  ;;  %v17209_v20 = vmax.f32 %v3791_v22, 0.0  ;;  %v3793_v31 = vadd.f32 %v17047_v7, %v3757_v34 }
 0x40a   :  { %v3858_v24 = vadd.f32 %v3857_v48, %v3856_v37  ;;  %v3873_v45 = vadd.f32 %v3872_v42, %v3871_v52  ;;  %v17212_v36 = vmax.f32 %v3790_v58, 0.0  ;;  %v3824_v62 = vrot.slane %v3823_v43, 4 }
 0x40b   :  { %v3874_v21 = vsel %vm1337_vm3, %v17189_v0, 0.0  ;;  %v3908_v49 = vsel %vm1337_vm3, %v3895_v18, 0.0  ;;  %v3792_v60 = vadd.f32 %v17047_v7, %v3756_v25  ;;  %v3910_v46 = vsel %vm1337_vm3, %v3896_v9, 0.0 }
 0x40c   :  { %v3909_v3 = vadd.f32 %v3908_v49, %v3907_v15  ;;  %v3875_v14 = vadd.f32 %v3874_v21, %v3873_v45  ;;  %v3876_v33 = vsel %vm1337_vm3, %v17212_v36, 0.0  ;;  %v3898_v6 = vmul.f32 %v17209_v20, %v17209_v20 }
 0x40d   :  { %v3897_v35 = vmul.f32 %v17212_v36, %v17212_v36  ;;  %v17225_v37 = vmax.f32 %v3793_v31, 0.0  ;;  %v17227_v28 = vmax.f32 %v3792_v60, 0.0  ;;  %v3859_v52 = vrot.slane %v3858_v24, 4 }
 0x40e   :  { %v3877_v22 = vadd.f32 %v3876_v33, %v3875_v14  ;;  %v3911_v7 = vadd.f32 %v3910_v46, %v3909_v3  ;;  %v3878_v5 = vsel %vm1337_vm3, %v17209_v20, 0.0  ;;  %v3825_v12 = vadd.f32 %v3824_v62, %v3823_v43 }
 0x40f   :  { %v3912_v34 = vsel %vm1337_vm3, %v3897_v35, 0.0  ;;  %v3880_v23 = vsel %vm1337_vm3, %v17227_v28, 0.0  ;;  %v3899_v48 = vmul.f32 %v17227_v28, %v17227_v28  ;;  %v3914_v15 = vsel %vm1337_vm3, %v3898_v6, 0.0 }
 0x410   :  { %v3913_v13 = vadd.f32 %v3912_v34, %v3911_v7  ;;  %v3879_v9 = vadd.f32 %v3878_v5, %v3877_v22  ;;  %v3900_v58 = vmul.f32 %v17225_v37, %v17225_v37  ;;  %v3860_v42 = vadd.f32 %v3859_v52, %v3858_v24 }
 0x411   :  { %v3916_v25 = vsel %vm1337_vm3, %v3899_v48, 0.0  ;;  %v3882_v45 = vsel %vm3821_vm9, %v17225_v37, 0.0  ;;  %v3826_v21 = vrot.slane %v3825_v12, 2 }
 0x412   :  { %v3881_v18 = vadd.f32 %v3880_v23, %v3879_v9  ;;  %v3915_v31 = vadd.f32 %v3914_v15, %v3913_v13  ;;  %v3918_v43 = vsel %vm3821_vm9, %v3900_v58, 0.0  ;;  %v3861_v62 = vrot.slane %v3860_v42, 2 }
 0x413   :  { %v3827_v14 = vadd.f32 %v3826_v21, %v3825_v12 }
 0x414   :  { %v3883_v49 = vadd.f32 %v3882_v45, %v3881_v18  ;;  %v3917_v60 = vadd.f32 %v3916_v25, %v3915_v31  ;;  %v3862_v35 = vadd.f32 %v3861_v62, %v3860_v42 }
 0x415   :  { %v3828_v24 = vrot.slane %v3827_v14, 1 }
 0x416   :  { %v3884_v46 = vrot.slane %v3883_v49, 4  ;;  %v3919_v3 = vadd.f32 %v3918_v43, %v3917_v60  ;;  %v3863_v34 = vrot.slane %v3862_v35, 1 }
 0x417   :  { %v3829_v13 = vadd.f32 %v3828_v24, %v3827_v14  ;;  %v17274_v24 = vmul.f32 0.66, %v16708_v44  ;;  %v17298_v44 = vmul.f32 0.66, %v16866_v1 }
 0x418   :  { %v3885_v33 = vadd.f32 %v3884_v46, %v3883_v49  ;;  %v3920_v6 = vrot.slane %v3919_v3, 4  ;;  %v3864_v25 = vadd.f32 %v3863_v34, %v3862_v35  ;;  %v17265_v35 = vmul.f32 0.66, %v16670_v53  ;;  %v20052_v34 = vld [vmem:[#allocation33_spill] sm:$0xff] }
 0x419   :  { %v17289_v53 = vmul.f32 0.66, %v16805_v55  ;;  %v17311_v55 = vmul.f32 0.66, %v16894_v38  ;;  %v20049_v38 = vld [vmem:[#allocation30_spill] sm:$0xff] }
 0x41a   :  { %v3886_v22 = vrot.slane %v3885_v33, 2  ;;  %v3921_v7 = vadd.f32 %v3920_v6, %v3919_v3  ;;  %v3975_v6 = vmul.f32 0.66, %v16664_v11  ;;  %v17286_v11 = vmul.f32 0.66, %v16802_v50 }
 0x41c   :  { %v3887_v52 = vadd.f32 %v3886_v22, %v3885_v33  ;;  %v3922_v5 = vrot.slane %v3921_v7, 2  ;;  %v4042_v33 = vmul.f32 0.66, %v16924_v61  ;;  %v17268_v22 = vmul.f32 0.66, %v16673_v10  ;;  %v20048_v61 = vld [vmem:[#allocation40_spill] sm:$0xff] }
 0x41d   :  { %v17292_v10 = vmul.f32 0.66, %v16812_v19 }
 0x41e   :  { %v3888_v23 = vrot.slane %v3887_v52, 1  ;;  %v3923_v48 = vadd.f32 %v3922_v5, %v3921_v7  ;;  %v17271_v7 = vmul.f32 0.66, %v16705_v56  ;;  %v17295_v56 = vmul.f32 0.66, %v16857_v8  ;;  %v20051_v5 = vld [vmem:[#allocation35_spill] sm:$0xff] }
 0x420   :  { %v3889_v9 = vadd.f32 %v3888_v23, %v3887_v52  ;;  %v3924_v15 = vrot.slane %v3923_v48, 1 }
 0x422   :  { %v3890_v58 = vadd.f32 %v3889_v9, %v3829_v13  ;;  %v3925_v18 = vadd.f32 %v3924_v15, %v3923_v48 }
 0x424   :  { %v3926_v31 = vadd.f32 %v3925_v18, %v3864_v25  ;;  %v17243_v45 = vmul.f32 0.006756757, %v3890_v58 }
 0x426   :  { %v3928_v12 = vmul.f32 0.006756757, %v3926_v31  ;;  %v3929_v42 = vmul.f32 %v17243_v45, %v17243_v45  ;;  %v3960_v21 = vsub.f32 %v17209_v20, %v17243_v45  ;;  %v3961_v49 = vsub.f32 %v17227_v28, %v17243_v45 }
 0x427   :  { %v3962_v60 = vsub.f32 %v17225_v37, %v17243_v45  ;;  %v3957_v46 = vsub.f32 %v17200_v39, %v17243_v45  ;;  %v4041_v20 = vmul.f32 0.66, %v16897_v30  ;;  %v3973_v28 = vmul.f32 0.66, %v16656_v32 }
 0x428   :  { %v3930_v43 = vsub.f32 %v3928_v12, %v3929_v42  ;;  %v3974_v37 = vmul.f32 0.66, %v16662_v57  ;;  %v17277_v30 = vmul.f32 0.66, %v16713_v16  ;;  %v17280_v32 = vmul.f32 0.66, %v16751_v54 }
 0x429   :  { %v17283_v57 = vmul.f32 0.66, %v16761_v27  ;;  %v17301_v16 = vmul.f32 0.66, %v16873_v59  ;;  %v17304_v54 = vmul.f32 0.66, %v16883_v26  ;;  %v3933_v27 = vsub.f32 %v17059_v4, %v17243_v45 }
 0x42a   :  { %v3931_v62 = vadd.f32 1e-05, %v3930_v43  ;;  %v3934_v50 = vsub.f32 %v17054_v17, %v17243_v45  ;;  %v3935_v19 = vsub.f32 %v17080_v41, %v17243_v45  ;;  %v3936_v8 = vsub.f32 %v17068_v51, %v17243_v45  ;;  %v20050_v51 = vld [vmem:[#allocation32_spill] sm:$0xff] }
 0x42b   :  { %v3937_v1 = vsub.f32 %v17093_v47, %v17243_v45  ;;  %v3938_v59 = vsub.f32 %v17106_v40, %v17243_v45  ;;  %v3939_v26 = vsub.f32 %v17118_v29, %v17243_v45  ;;  %v3940_v17 = vsub.f32 %v20048_v61, %v17243_v45 }
 0x42c   :  { %14914 = vrsqrt.f32 %v3931_v62  ;;  %v3941_v4 = vsub.f32 %v20049_v38, %v17243_v45  ;;  %v3942_v41 = vsub.f32 %v17153_v63, %v17243_v45  ;;  %v3953_v47 = vsub.f32 %v20050_v51, %v17243_v45 }
 0x42d   :  { %v3954_v40 = vsub.f32 %v20051_v5, %v17243_v45  ;;  %v3955_v29 = vsub.f32 %v20052_v34, %v17243_v45  ;;  %v3956_v23 = vsub.f32 %v17170_v2, %v17243_v45 }
 0x439   :  { %v17329_v52 = vpop.eup %14914 }
 0x43a   :  { %v17340_v48 = vmul.f32 %v17329_v52, %v3960_v21  ;;  %v3971_v13 = vmul.f32 %v17329_v52, %v3961_v49  ;;  %v3972_v9 = vmul.f32 %v17329_v52, %v3962_v60  ;;  %v3943_v15 = vmul.f32 %v17329_v52, %v3933_v27 }
 0x43b   :  { %v3944_v25 = vmul.f32 %v17329_v52, %v3934_v50  ;;  %v3945_v58 = vmul.f32 %v17329_v52, %v3935_v19  ;;  %v3946_v18 = vmul.f32 %v17329_v52, %v3936_v8  ;;  %v3947_v31 = vmul.f32 %v17329_v52, %v3937_v1 }
 0x43c   :  { %v4066_v12 = vrot.slane %v17340_v48, 6  ;;  %v4068_v42 = vrot.slane %v3971_v13, 6  ;;  %v4070_v43 = vrot.slane %v3972_v9, 6  ;;  %v3994_v21 = vrot.slane %v3943_v15, 6 }
 0x43d   :  { %v3995_v62 = vrot.slane %v3944_v25, 6  ;;  %v3997_v14 = vrot.slane %v3945_v58, 6  ;;  %v3999_v49 = vrot.slane %v3946_v18, 6  ;;  %v4001_v3 = vrot.slane %v3947_v31, 6 }
 0x43e   :  { %v4069_v60 = vsel %vm3993_vm10, %v4066_v12, %v4068_v42  ;;  %v4071_v27 = vsel %vm3993_vm10, %v4068_v42, %v4070_v43  ;;  %v17354_v50 = vadd.f32 %v3994_v21, %v3973_v28  ;;  %v3948_v19 = vmul.f32 %v17329_v52, %v3938_v59 }
 0x43f   :  { %v17357_v8 = vadd.f32 %v4069_v60, %v4041_v20  ;;  %v17359_v1 = vadd.f32 %v4071_v27, %v4042_v33  ;;  %v3996_v13 = vsel %vm3993_vm10, %v3994_v21, %v3995_v62  ;;  %v3998_v9 = vsel %vm3993_vm10, %v3995_v62, %v3997_v14 }
 0x440   :  { %20053 = vst [vmem:[#allocation34_spill] sm:$0xff] %v17354_v50  ;;  %v17363_v15 = vadd.f32 %v3996_v13, %v3974_v37  ;;  %v4115_v25 = vrot.slane %v17354_v50, 3  ;;  %v4262_v58 = vrot.slane %v17354_v50, 2  ;;  %v17367_v18 = vadd.f32 %v3998_v9, %v3975_v6 }
 0x441   :  { %v4000_v28 = vsel %vm3993_vm10, %v3997_v14, %v3999_v49  ;;  %v4002_v20 = vsel %vm3993_vm10, %v3999_v49, %v4001_v3  ;;  %v4003_v33 = vrot.slane %v3948_v19, 6  ;;  %v3949_v59 = vmul.f32 %v17329_v52, %v3939_v26  ;;  %v17388_v19 = vld [vmem:[%s15092_s3 + $0x58] sm:$0xff] }
 0x442   :  { %v4116_v31 = vrot.slane %v17363_v15, 3  ;;  %v4263_v37 = vrot.slane %v17363_v15, 2  ;;  %v4118_v42 = vrot.slane %v17367_v18, 3  ;;  %v4265_v43 = vrot.slane %v17367_v18, 2 }
 0x443   :  { %v17377_v6 = vadd.f32 %v4000_v28, %v17265_v35  ;;  %v17380_v21 = vadd.f32 %v4002_v20, %v17268_v22  ;;  %v4004_v14 = vsel %vm3993_vm10, %v4001_v3, %v4003_v33  ;;  %v4005_v62 = vrot.slane %v3949_v59, 6 }
 0x444   :  { %v4117_v49 = vsel %vm3111_vm7, %v4115_v25, %v4116_v31  ;;  %v4264_v26 = vsel %vm663_vm2, %v4262_v58, %v4263_v37  ;;  %v4119_v60 = vsel %vm3111_vm7, %v4116_v31, %v4118_v42  ;;  %v4266_v27 = vsel %vm663_vm2, %v4263_v37, %v4265_v43 }
 0x445   :  { %13816 = vmatmul.mubr.msk.f32.vlgmr.msra.gmra.mxu0 %vm1337_vm3, %v4117_v49  ;;  %13851 = vmatmul.mubr.msk.f32.vlgmr.msra.gmra.mxu1 %vm1337_vm3, %v4264_v26  ;;  %v4120_v35 = vrot.slane %v17377_v6, 3  ;;  %v4267_v22 = vrot.slane %v17377_v6, 2  ;;  %v4122_v3 = vrot.slane %v17380_v21, 3  ;;  %v4269_v13 = vrot.slane %v17380_v21, 2 }
 0x446   :  { %v20054_v9 = vmov 0.0   ;;  %v17401_v25 = vadd.f32 %v4004_v14, %v17271_v7  ;;  %v4006_v58 = vsel %vm3993_vm10, %v4003_v33, %v4005_v62  ;;  %v3950_v28 = vmul.f32 %v17329_v52, %v3940_v17  ;;  %13878 = vmatpush3.msra.mxu0 %v17388_v19  ;;  %v20055_v17 = vld [vmem:[#allocation36_spill] sm:$0xff] }
 0x447   :  { %13818 = vmatprep.mubr.msk.f32.mxu0 %vm15044_vm8, %v20054_v9  ;;  %13853 = vmatprep.mubr.msk.f32.mxu1 %vm15044_vm8, %v20054_v9  ;;  %v4410_v20 = vrot.slane %v17354_v50, 4  ;;  %v4121_v59 = vsel %vm3111_vm7, %v4118_v42, %v4120_v35  ;;  %v4268_v31 = vsel %vm663_vm2, %v4265_v43, %v4267_v22  ;;  %v4123_v37 = vsel %vm3111_vm7, %v4120_v35, %v4122_v3  ;;  %v17422_v42 = vld [vmem:[%s15092_s3 + $0x50] sm:$0xff] }
 0x448   :  { %v4270_v49 = vsel %vm663_vm2, %v4267_v22, %v4269_v13  ;;  %v4124_v7 = vrot.slane %v17401_v25, 3  ;;  %v4271_v33 = vrot.slane %v17401_v25, 2  ;;  %v17417_v61 = vadd.f32 %v4006_v58, %v17274_v24  ;;  %13913 = vmatpush3.msra.mxu1 %v20055_v17  ;;  %13879 = vmatprep.subr.mxu0 %v20054_v9  ;;  %v20056_v58 = vld [vmem:[#allocation38_spill] sm:$0xff] }
 0x449   :  { %v4007_v14 = vrot.slane %v3950_v28, 6  ;;  %13819 = vmatmul.mubr.msk.f32.gmra.mxu0 %vm1337_vm3, %v4119_v60  ;;  %13854 = vmatmul.mubr.msk.f32.gmra.mxu1 %vm1337_vm3, %v4266_v27  ;;  %v3951_v43 = vmul.f32 %v17329_v52, %v3941_v4  ;;  %v3952_v24 = vmul.f32 %v17329_v52, %v3942_v41  ;;  %v4411_v26 = vrot.slane %v17363_v15, 4 }
 0x44a   :  { %v3963_v35 = vmul.f32 %v17329_v52, %v3953_v47  ;;  %13821 = vmatprep.mubr.msk.f32.mxu0 %vm15044_vm8, %v20054_v9  ;;  %13856 = vmatprep.mubr.msk.f32.mxu1 %vm15044_vm8, %v20054_v9  ;;  %v17444_v38 = vsel %vm3111_vm7, %v4122_v3, %v4124_v7  ;;  %v17447_v63 = vsel %vm663_vm2, %v4269_v13, %v4271_v33  ;;  %v4126_v4 = vrot.slane %v17417_v61, 3 }
 0x44b   :  { %v4273_v41 = vrot.slane %v17417_v61, 2  ;;  %v4008_v51 = vsel %vm3993_vm10, %v4005_v62, %v4007_v14  ;;  %v4009_v47 = vrot.slane %v3951_v43, 6  ;;  %13880 = vmatpush3.msra.mxu0 %v17422_v42  ;;  %13914 = vmatprep.subr.mxu1 %v20054_v9  ;;  %v4011_v60 = vrot.slane %v3952_v24, 6  ;;  %v17469_v62 = vld [vmem:[%s15092_s3 + $0x48] sm:$0xff] }
 0x44c   :  { %v17455_v27 = vsel %vm4409_vm11, %v4410_v20, %v4411_v26  ;;  %v17458_v22 = vsel %vm3111_vm7, %v4124_v7, %v4126_v4  ;;  %v17464_v13 = vadd.f32 %v4008_v51, %v17277_v30  ;;  %13915 = vmatpush3.msra.mxu1 %v20056_v58  ;;  %13881 = vmatprep.subr.mxu0 %v20054_v9  ;;  %v4053_v28 = vrot.slane %v3963_v35, 6 }
 0x44d   :  { %v17461_v3 = vsel %vm663_vm2, %v4271_v33, %v4273_v41  ;;  %13822 = vmatmul.mubr.msk.f32.gmra.mxu0 %vm1337_vm3, %v4121_v59  ;;  %13857 = vmatmul.mubr.msk.f32.gmra.mxu1 %vm1337_vm3, %v4268_v31  ;;  %v4010_v20 = vsel %vm3993_vm10, %v4007_v14, %v4009_v47  ;;  %v4012_v7 = vsel %vm3993_vm10, %v4009_v47, %v4011_v60  ;;  %v4413_v33 = vrot.slane %v17367_v18, 4 }
 0x44e   :  { %v3964_v30 = vmul.f32 %v17329_v52, %v3954_v40  ;;  %13824 = vmatprep.mubr.msk.f32.mxu0 %vm15044_vm8, %v20054_v9  ;;  %13859 = vmatprep.mubr.msk.f32.mxu1 %vm15044_vm8, %v20054_v9  ;;  %v4128_v59 = vrot.slane %v17464_v13, 3  ;;  %v4275_v31 = vrot.slane %v17464_v13, 2  ;;  %v17487_v17 = vadd.f32 %v4010_v20, %v17280_v32 }
 0x44f   :  { %v17490_v5 = vadd.f32 %v4012_v7, %v17283_v57  ;;  %13916 = vmatprep.subr.mxu1 %v20054_v9  ;;  %13882 = vmatpush3.msra.mxu0 %v17469_v62  ;;  %v17495_v14 = vadd.f32 %v4053_v28, %v17286_v11  ;;  %v17498_v43 = vsel %vm4409_vm11, %v4411_v26, %v4413_v33  ;;  %v20058_v11 = vld [vmem:[#allocation39_spill] sm:$0xff]  ;;  %v17515_v26 = vld [vmem:[%s15092_s3 + $0x40] sm:$0xff]  ;;  %v4415_v20 = vrot.slane %v17377_v6, 4 }
 0x450   :  { %v4054_v40 = vrot.slane %v3964_v30, 6  ;;  %v3965_v32 = vmul.f32 %v17329_v52, %v3955_v29  ;;  %v17505_v24 = vsel %vm3111_vm7, %v4126_v4, %v4128_v59  ;;  %v17508_v57 = vsel %vm663_vm2, %v4273_v41, %v4275_v31  ;;  %13917 = vmatpush3.msra.mxu1 %v20058_v11  ;;  %13883 = vmatprep.subr.mxu0 %v20054_v9 }
 0x451   :  { %20057 = vst [vmem:[#allocation31_spill] sm:$0xff] %v17495_v14  ;;  %v4130_v35 = vrot.slane %v17487_v17, 3  ;;  %v4277_v51 = vrot.slane %v17487_v17, 2  ;;  %13825 = vmatmul.mubr.msk.f32.gmra.mxu0 %vm1337_vm3, %v4123_v37  ;;  %13860 = vmatmul.mubr.msk.f32.gmra.mxu1 %vm1337_vm3, %v4270_v49  ;;  %v4132_v34 = vrot.slane %v17490_v5, 3  ;;  %v4279_v29 = vrot.slane %v17490_v5, 2 }
 0x452   :  { %v4055_v4 = vsel %vm3993_vm10, %v4053_v28, %v4054_v40  ;;  %v4576_v41 = vrot.slane %v17495_v14, 3  ;;  %13827 = vmatprep.mubr.msk.f32.mxu0 %vm15044_vm8, %v20054_v9  ;;  %13862 = vmatprep.mubr.msk.f32.mxu1 %vm15044_vm8, %v20054_v9  ;;  %v4056_v60 = vrot.slane %v3965_v32, 6  ;;  %v3966_v7 = vmul.f32 %v17329_v52, %v3956_v23 }
 0x453   :  { %v17528_v47 = vsel %vm3111_vm7, %v4128_v59, %v4130_v35  ;;  %v17531_v37 = vsel %vm663_vm2, %v4275_v31, %v4277_v51  ;;  %v17534_v49 = vadd.f32 %v4055_v4, %v17289_v53  ;;  %v17537_v58 = vsel %vm3111_vm7, %v4130_v35, %v4132_v34  ;;  %13918 = vmatprep.subr.mxu1 %v20054_v9  ;;  %v20060_v53 = vld [vmem:[#allocation37_spill] sm:$0xff] }
 0x454   :  { %v17540_v28 = vsel %vm663_vm2, %v4277_v51, %v4279_v29  ;;  %13884 = vmatpush3.msra.mxu0 %v17515_v26  ;;  %13919 = vmatpush3.msra.mxu1 %v20060_v53  ;;  %v4057_v59 = vsel %vm3993_vm10, %v4054_v40, %v4056_v60  ;;  %v4417_v31 = vrot.slane %v17380_v21, 4  ;;  %v3967_v32 = vmul.f32 %v17329_v52, %v3957_v46 }
 0x455   :  { %20059 = vst [vmem:[#allocation40_spill] sm:$0xff] %v17534_v49  ;;  %v4577_v30 = vrot.slane %v17534_v49, 3  ;;  %13947 = vmatprep.subr.mxu0 %v20054_v9  ;;  %13828 = vmatmul.mubr.msk.f32.gmra.mxu0 %vm1337_vm3, %v17444_v38  ;;  %v17563_v2 = vadd.f32 %v4057_v59, %v17292_v10  ;;  %v17566_v23 = vsel %vm4409_vm11, %v4413_v33, %v4415_v20  ;;  %v4058_v40 = vrot.slane %v3966_v7, 6 }
 0x456   :  { %13863 = vmatmul.mubr.msk.f32.gmra.mxu1 %vm1337_vm3, %v17447_v63  ;;  %v4419_v35 = vrot.slane %v17401_v25, 4  ;;  %13830 = vmatprep.mubr.msk.f32.mxu0 %vm15044_vm8, %v20054_v9  ;;  %v17577_v46 = vsel %vm4409_vm11, %v4415_v20, %v4417_v31  ;;  %v4060_v10 = vrot.slane %v3967_v32, 6  ;;  %v20061_v38 = vsub.f32 %v17189_v0, %v17243_v45 }
 0x457   :  { %13865 = vmatprep.mubr.msk.f32.mxu1 %vm15044_vm8, %v20054_v9  ;;  %v17574_v39 = vsel %vm3111_vm7, %v4576_v41, %v4577_v30  ;;  %v4579_v33 = vrot.slane %v17563_v2, 3  ;;  %v4059_v51 = vsel %vm3993_vm10, %v4056_v60, %v4058_v40  ;;  %v4421_v34 = vrot.slane %v17417_v61, 4  ;;  %13982 = vmatprep.subr.mxu1 %v20054_v9 }
 0x458   :  { %v3968_v63 = vmul.f32 %v17329_v52, %v20061_v38  ;;  %v17586_v11 = vsel %vm4409_vm11, %v4417_v31, %v4419_v35  ;;  %v17591_v29 = vadd.f32 %v4059_v51, %v17295_v56  ;;  %v4061_v4 = vsel %vm3993_vm10, %v4058_v40, %v4060_v10 }
 0x459   :  { %v20062_v0 = vsub.f32 %v17212_v36, %v17243_v45  ;;  %13831 = vmatmul.mubr.msk.f32.gmra.mxu0 %vm1337_vm3, %v17458_v22  ;;  %v17603_v60 = vsel %vm3111_vm7, %v4577_v30, %v4579_v33  ;;  %v17606_v56 = vadd.f32 %v4061_v4, %v17298_v44  ;;  %v17609_v7 = vsel %vm4409_vm11, %v4419_v35, %v4421_v34 }
 0x45a   :  { %v4062_v41 = vrot.slane %v3968_v63, 6  ;;  %13866 = vmatmul.mubr.msk.f32.gmra.mxu1 %vm1337_vm3, %v17461_v3  ;;  %v4423_v53 = vrot.slane %v17464_v13, 4  ;;  %13833 = vmatprep.mubr.msk.f32.mxu0 %vm15044_vm8, %v20054_v9  ;;  %v4581_v36 = vrot.slane %v17591_v29, 3  ;;  %v4425_v22 = vrot.slane %v17487_v17, 4 }
 0x45b   :  { %v3969_v20 = vmul.f32 %v17329_v52, %v20062_v0  ;;  %13868 = vmatprep.mubr.msk.f32.mxu1 %vm15044_vm8, %v20054_v9  ;;  %v4583_v44 = vrot.slane %v17606_v56, 3  ;;  %v4591_v59 = vrot.slane %v17357_v8, 3  ;;  %v4724_v63 = vrot.slane %v17534_v49, 2 }
 0x45c   :  { %v4063_v45 = vsel %vm3993_vm10, %v4060_v10, %v4062_v41  ;;  %v17624_v30 = vsel %vm4409_vm11, %v4421_v34, %v4423_v53  ;;  %v17628_v31 = vsel %vm3111_vm7, %v4579_v33, %v4581_v36  ;;  %v17635_v35 = vsel %vm4409_vm11, %v4423_v53, %v4425_v22 }
 0x45d   :  { %v4064_v52 = vrot.slane %v3969_v20, 6  ;;  %v17621_v3 = vadd.f32 %v4063_v45, %v17301_v16  ;;  %13834 = vmatmul.mubr.msk.f32.gmra.mxu0 %vm1337_vm3, %v17505_v24  ;;  %v17642_v16 = vsel %vm3111_vm7, %v4581_v36, %v4583_v44  ;;  %v4593_v24 = vrot.slane %v17359_v1, 3 }
 0x45e   :  { %13869 = vmatmul.mubr.msk.f32.gmra.mxu1 %vm1337_vm3, %v17508_v57  ;;  %13836 = vmatprep.mubr.msk.f32.mxu0 %vm15044_vm8, %v20054_v9  ;;  %v4723_v57 = vrot.slane %v17495_v14, 2  ;;  %v4870_v51 = vrot.slane %v17495_v14, 4  ;;  %v4871_v0 = vrot.slane %v17534_v49, 4  ;;  %v4726_v45 = vrot.slane %v17563_v2, 2 }
 0x45f   :  { %v4065_v32 = vsel %vm3993_vm10, %v4062_v41, %v4064_v52  ;;  %v4067_v40 = vsel %vm3993_vm10, %v4064_v52, %v4066_v12  ;;  %v4585_v10 = vrot.slane %v17621_v3, 3  ;;  %13871 = vmatprep.mubr.msk.f32.mxu1 %vm15044_vm8, %v20054_v9  ;;  %v4427_v12 = vrot.slane %v17490_v5, 4 }
 0x460   :  { %v17646_v38 = vadd.f32 %v4065_v32, %v17304_v54  ;;  %v17649_v48 = vadd.f32 %v4067_v40, %v17311_v55  ;;  %v17669_v4 = vsel %vm3111_vm7, %v4591_v59, %v4593_v24  ;;  %v17672_v41 = vsel %vm663_vm2, %v4723_v57, %v4724_v63 }
 0x461   :  { %v17660_v54 = vsel %vm3111_vm7, %v4583_v44, %v4585_v10  ;;  %v17666_v34 = vsel %vm4409_vm11, %v4425_v22, %v4427_v12  ;;  %13837 = vmatmul.mubr.msk.f32.gmra.mxu0 %vm1337_vm3, %v17528_v47  ;;  %v17694_v47 = vsel %vm4409_vm11, %v4870_v51, %v4871_v0  ;;  %v4728_v52 = vrot.slane %v17591_v29, 2 }
 0x462   :  { %v4587_v55 = vrot.slane %v17646_v38, 3  ;;  %v4589_v33 = vrot.slane %v17649_v48, 3  ;;  %13872 = vmatmul.mubr.msk.f32.gmra.mxu1 %vm1337_vm3, %v17531_v37  ;;  %13839 = vmatprep.mubr.msk.f32.mxu0 %vm15044_vm8, %v20054_v9  ;;  %v4873_v37 = vrot.slane %v17563_v2, 4  ;;  %v4875_v22 = vrot.slane %v17591_v29, 4 }
 0x463   :  { %13874 = vmatprep.mubr.msk.f32.mxu1 %vm15044_vm8, %v20054_v9  ;;  %v17700_v44 = vsel %vm663_vm2, %v4724_v63, %v4726_v45  ;;  %v4877_v32 = vrot.slane %v17606_v56, 4  ;;  %v4732_v40 = vrot.slane %v17621_v3, 2  ;;  %v17709_v12 = vsel %vm663_vm2, %v4726_v45, %v4728_v52 }
 0x464   :  { %v17680_v20 = vsel %vm3111_vm7, %v4585_v10, %v4587_v55  ;;  %v17683_v53 = vsel %vm3111_vm7, %v4587_v55, %v4589_v33  ;;  %v17686_v36 = vsel %vm3111_vm7, %v4589_v33, %v4591_v59  ;;  %v4730_v59 = vrot.slane %v17606_v56, 2 }
 0x465   :  { %v17706_v10 = vsel %vm4409_vm11, %v4871_v0, %v4873_v37  ;;  %v17712_v24 = vsel %vm4409_vm11, %v4873_v37, %v4875_v22  ;;  %v4879_v57 = vrot.slane %v17621_v3, 4  ;;  %13840 = vmatmul.mubr.msk.f32.gmra.mxu0 %vm1337_vm3, %v17537_v58  ;;  %v17723_v55 = vsel %vm4409_vm11, %v4875_v22, %v4877_v32 }
 0x466   :  { %13875 = vmatmul.mubr.msk.f32.gmra.mxu1 %vm1337_vm3, %v17540_v28  ;;  %v17720_v63 = vsel %vm663_vm2, %v4728_v52, %v4730_v59  ;;  %v17726_v33 = vsel %vm663_vm2, %v4730_v59, %v4732_v40  ;;  %v4734_v51 = vrot.slane %v17646_v38, 2  ;;  %13885 = vmatprep.mubr.msk.f32.mxu0 %vm15044_vm8, %v20054_v9  ;;  %v4881_v28 = vrot.slane %v17646_v38, 4 }
 0x467   :  { %13920 = vmatprep.mubr.msk.f32.mxu1 %vm15044_vm8, %v20054_v9  ;;  %v17734_v58 = vsel %vm4409_vm11, %v4877_v32, %v4879_v57  ;;  %v4736_v0 = vrot.slane %v17649_v48, 2  ;;  %v4883_v45 = vrot.slane %v17649_v48, 4  ;;  %v4738_v52 = vrot.slane %v17357_v8, 2 }
 0x468   :  { %v17740_v37 = vsel %vm663_vm2, %v4732_v40, %v4734_v51  ;;  %v4885_v22 = vrot.slane %v17357_v8, 4  ;;  %v4740_v59 = vrot.slane %v17359_v1, 2  ;;  %v17746_v14 = vsel %vm4409_vm11, %v4879_v57, %v4881_v28 }
 0x469   :  { %v17749_v32 = vsel %vm663_vm2, %v4734_v51, %v4736_v0  ;;  %v17752_v50 = vsel %vm4409_vm11, %v4881_v28, %v4883_v45  ;;  %v4887_v49 = vrot.slane %v17359_v1, 4  ;;  %13886 = vmatmul.mubr.msk.f32.vlgmr.msra.gmra.mxu0 %vm1337_vm3, %v17455_v27  ;;  %v17760_v40 = vsel %vm663_vm2, %v4736_v0, %v4738_v52 }
 0x46a   :  { %13921 = vmatmul.mubr.msk.f32.vlgmr.msra.gmra.mxu1 %vm1337_vm3, %v17574_v39  ;;  %v17763_v57 = vsel %vm4409_vm11, %v4883_v45, %v4885_v22  ;;  %v17766_v51 = vsel %vm663_vm2, %v4738_v52, %v4740_v59  ;;  %13888 = vmatprep.mubr.msk.f32.mxu0 %vm15044_vm8, %v20054_v9  ;;  %v14956_v39 = vld [vmem:[%s15092_s3 + $0x18] sm:$0xff] }
 0x46b   :  { %13923 = vmatprep.mubr.msk.f32.mxu1 %vm15044_vm8, %v20054_v9  ;;  %v17773_v27 = vsel %vm4409_vm11, %v4885_v22, %v4887_v49  ;;  %13948 = vmatpush3.msra.mxu0 %v14956_v39  ;;  %v14957_v49 = vld [vmem:[%s15092_s3 + $0x10] sm:$0xff] }
 0x46c   :  { %13983 = vmatpush3.msra.mxu1 %v17388_v19  ;;  %13949 = vmatprep.subr.mxu0 %v20054_v9  ;;  %v14958_v19 = vld [vmem:[%s15092_s3 + $0x8] sm:$0xff] }
 0x46d   :  { %13984 = vmatprep.subr.mxu1 %v20054_v9  ;;  %13889 = vmatmul.mubr.msk.f32.gmra.mxu0 %vm1337_vm3, %v17498_v43 }
 0x46e   :  { %13924 = vmatmul.mubr.msk.f32.gmra.mxu1 %vm1337_vm3, %v17603_v60  ;;  %13891 = vmatprep.mubr.msk.f32.mxu0 %vm15044_vm8, %v20054_v9 }
 0x46f   :  { %13926 = vmatprep.mubr.msk.f32.mxu1 %vm15044_vm8, %v20054_v9  ;;  %13950 = vmatpush3.msra.mxu0 %v14957_v49 }
 0x470   :  { %13985 = vmatpush3.msra.mxu1 %v17422_v42  ;;  %13951 = vmatprep.subr.mxu0 %v20054_v9  ;;  %v14959_v42 = vld [vmem:[%s15092_s3] sm:$0xff]  ;;  %s20074_s3 = sld [smem:[#allocation17_spill]] }
 0x471   :  { %13986 = vmatprep.subr.mxu1 %v20054_v9  ;;  %13892 = vmatmul.mubr.msk.f32.gmra.mxu0 %vm1337_vm3, %v17566_v23 }
 0x472   :  { %13927 = vmatmul.mubr.msk.f32.gmra.mxu1 %vm1337_vm3, %v17628_v31  ;;  %13894 = vmatprep.mubr.msk.f32.mxu0 %vm15044_vm8, %v20054_v9 }
 0x473   :  { %13929 = vmatprep.mubr.msk.f32.mxu1 %vm15044_vm8, %v20054_v9  ;;  %13952 = vmatpush3.msra.mxu0 %v14958_v19 }
 0x474   :  { %13987 = vmatpush3.msra.mxu1 %v17469_v62  ;;  %13953 = vmatprep.subr.mxu0 %v20054_v9 }
 0x475   :  { %13988 = vmatprep.subr.mxu1 %v20054_v9  ;;  %13895 = vmatmul.mubr.msk.f32.gmra.mxu0 %vm1337_vm3, %v17577_v46 }
 0x476   :  { %13930 = vmatmul.mubr.msk.f32.gmra.mxu1 %vm1337_vm3, %v17642_v16  ;;  %13897 = vmatprep.mubr.msk.f32.mxu0 %vm15044_vm8, %v20054_v9 }
 0x477   :  { %13932 = vmatprep.mubr.msk.f32.mxu1 %vm15044_vm8, %v20054_v9  ;;  %13954 = vmatpush3.msra.mxu0 %v14959_v42 }
 0x478   :  { %13989 = vmatpush3.msra.mxu1 %v17515_v26  ;;  %14017 = vmatprep.subr.mxu0 %v20054_v9 }
 0x479   :  { %14044 = vmatprep.subr.mxu1 %v20054_v9  ;;  %13898 = vmatmul.mubr.msk.f32.gmra.mxu0 %vm1337_vm3, %v17586_v11 }
 0x47a   :  { %13933 = vmatmul.mubr.msk.f32.gmra.mxu1 %vm1337_vm3, %v17660_v54  ;;  %13900 = vmatprep.mubr.msk.f32.mxu0 %vm15044_vm8, %v20054_v9 }
 0x47b   :  { %13935 = vmatprep.mubr.msk.f32.mxu1 %vm15044_vm8, %v20054_v9 }
 0x47d   :  { %13901 = vmatmul.mubr.msk.f32.gmra.mxu0 %vm1337_vm3, %v17609_v7 }
 0x47e   :  { %13936 = vmatmul.mubr.msk.f32.gmra.mxu1 %vm1337_vm3, %v17680_v20  ;;  %13903 = vmatprep.mubr.msk.f32.mxu0 %vm15044_vm8, %v20054_v9 }
 0x47f   :  { %13938 = vmatprep.mubr.msk.f32.mxu1 %vm15044_vm8, %v20054_v9 }
 0x481   :  { %13904 = vmatmul.mubr.msk.f32.gmra.mxu0 %vm1337_vm3, %v17624_v30 }
 0x482   :  { %13939 = vmatmul.mubr.msk.f32.gmra.mxu1 %vm1337_vm3, %v17683_v53  ;;  %13906 = vmatprep.mubr.msk.f32.mxu0 %vm15044_vm8, %v20054_v9 }
 0x483   :  { %13941 = vmatprep.mubr.msk.f32.mxu1 %vm15044_vm8, %v20054_v9 }
 0x485   :  { %13907 = vmatmul.mubr.msk.f32.gmra.mxu0 %vm1337_vm3, %v17635_v35 }
 0x486   :  { %13942 = vmatmul.mubr.msk.f32.gmra.mxu1 %vm1337_vm3, %v17686_v36  ;;  %13909 = vmatprep.mubr.msk.f32.mxu0 %vm15044_vm8, %v20054_v9 }
 0x487   :  { %13944 = vmatprep.mubr.msk.f32.mxu1 %vm15044_vm8, %v20054_v9 }
 0x489   :  { %13910 = vmatmul.mubr.msk.f32.gmra.mxu0 %vm1337_vm3, %v17666_v34 }
 0x48a   :  { %13945 = vmatmul.mubr.msk.f32.gmra.mxu1 %vm1337_vm3, %v17669_v4  ;;  %13955 = vmatprep.mubr.msk.f32.mxu0 %vm15044_vm8, %v20054_v9 }
 0x48b   :  { %13990 = vmatprep.mubr.msk.f32.mxu1 %vm15044_vm8, %v20054_v9 }
 0x48d   :  { %13956 = vmatmul.mubr.msk.f32.vlgmr.msra.gmra.mxu0 %vm1337_vm3, %v17672_v41 }
 0x48e   :  { %13991 = vmatmul.mubr.msk.f32.vlgmr.msra.gmra.mxu1 %vm1337_vm3, %v17694_v47  ;;  %13958 = vmatprep.mubr.msk.f32.mxu0 %vm15044_vm8, %v20054_v9 }
 0x48f   :  { %13993 = vmatprep.mubr.msk.f32.mxu1 %vm15044_vm8, %v20054_v9 }
 0x491   :  { %13959 = vmatmul.mubr.msk.f32.gmra.mxu0 %vm1337_vm3, %v17700_v44 }
 0x492   :  { %13994 = vmatmul.mubr.msk.f32.gmra.mxu1 %vm1337_vm3, %v17706_v10  ;;  %13961 = vmatprep.mubr.msk.f32.mxu0 %vm15044_vm8, %v20054_v9 }
 0x493   :  { %13996 = vmatprep.mubr.msk.f32.mxu1 %vm15044_vm8, %v20054_v9 }
 0x495   :  { %13962 = vmatmul.mubr.msk.f32.gmra.mxu0 %vm1337_vm3, %v17709_v12 }
 0x496   :  { %13997 = vmatmul.mubr.msk.f32.gmra.mxu1 %vm1337_vm3, %v17712_v24  ;;  %13964 = vmatprep.mubr.msk.f32.mxu0 %vm15044_vm8, %v20054_v9 }
 0x497   :  { %13999 = vmatprep.mubr.msk.f32.mxu1 %vm15044_vm8, %v20054_v9 }
 0x499   :  { %13965 = vmatmul.mubr.msk.f32.gmra.mxu0 %vm1337_vm3, %v17720_v63 }
 0x49a   :  { %14000 = vmatmul.mubr.msk.f32.gmra.mxu1 %vm1337_vm3, %v17723_v55  ;;  %13967 = vmatprep.mubr.msk.f32.mxu0 %vm15044_vm8, %v20054_v9 }
 0x49b   :  { %14002 = vmatprep.mubr.msk.f32.mxu1 %vm15044_vm8, %v20054_v9 }
 0x49d   :  { %13968 = vmatmul.mubr.msk.f32.gmra.mxu0 %vm1337_vm3, %v17726_v33 }
 0x49e   :  { %14003 = vmatmul.mubr.msk.f32.gmra.mxu1 %vm1337_vm3, %v17734_v58  ;;  %13970 = vmatprep.mubr.msk.f32.mxu0 %vm15044_vm8, %v20054_v9 }
 0x49f   :  { %14005 = vmatprep.mubr.msk.f32.mxu1 %vm15044_vm8, %v20054_v9 }
 0x4a1   :  { %13971 = vmatmul.mubr.msk.f32.gmra.mxu0 %vm1337_vm3, %v17740_v37 }
 0x4a2   :  { %14006 = vmatmul.mubr.msk.f32.gmra.mxu1 %vm1337_vm3, %v17746_v14  ;;  %13973 = vmatprep.mubr.msk.f32.mxu0 %vm15044_vm8, %v20054_v9 }
 0x4a3   :  { %14008 = vmatprep.mubr.msk.f32.mxu1 %vm15044_vm8, %v20054_v9 }
 0x4a5   :  { %13974 = vmatmul.mubr.msk.f32.gmra.mxu0 %vm1337_vm3, %v17749_v32 }
 0x4a6   :  { %14009 = vmatmul.mubr.msk.f32.gmra.mxu1 %vm1337_vm3, %v17752_v50  ;;  %13976 = vmatprep.mubr.msk.f32.mxu0 %vm15044_vm8, %v20054_v9 }
 0x4a7   :  { %14011 = vmatprep.mubr.msk.f32.mxu1 %vm15044_vm8, %v20054_v9 }
 0x4a9   :  { %13977 = vmatmul.mubr.msk.f32.gmra.mxu0 %vm1337_vm3, %v17760_v40 }
 0x4aa   :  { %14012 = vmatmul.mubr.msk.f32.gmra.mxu1 %vm1337_vm3, %v17763_v57  ;;  %13979 = vmatprep.mubr.msk.f32.mxu0 %vm15044_vm8, %v20054_v9 }
 0x4ab   :  { %14014 = vmatprep.mubr.msk.f32.mxu1 %vm15044_vm8, %v20054_v9 }
 0x4ad   :  { %13980 = vmatmul.mubr.msk.f32.gmra.mxu0 %vm1337_vm3, %v17766_v51 }
 0x4ae   :  { %14015 = vmatmul.mubr.msk.f32.gmra.mxu1 %vm1337_vm3, %v17773_v27  ;;  %14035 = vmatprep.mubr.msk.f32.mxu0 %vm15044_vm8, %v20054_v9 }
 0x4af   :  { %14062 = vmatprep.mubr.msk.f32.mxu1 %vm15044_vm8, %v20054_v9 }
 0x505   :  { %v4218_v50 = vpop.f32.mrf.mxu0  ;;  %v4365_v62 = vpop.f32.mrf.mxu1 }
 0x506   :  { %v4366_v14 = vadd.f32 %v4365_v62, %v4218_v50 }
 0x507   :  { %v13817_v43 = vpop.f32.mrf.mxu0  ;;  %v13852_v26 = vpop.f32.mrf.mxu1 }
 0x508   :  { %v17940_v43 = vld [vmem:[%s15097_s8] ss:$0 sm:$0xff]  ;;  %s20075_s8 = sld [smem:[#allocation16_spill]] }
 0x509   :  { %v4223_v23 = vpop.f32.mrf.mxu0  ;;  %v4370_v46 = vpop.f32.mrf.mxu1 }
 0x50a   :  { %v4371_v11 = vadd.f32 %v4370_v46, %v4223_v23 }
 0x50b   :  { %v13820_v60 = vpop.f32.mrf.mxu0  ;;  %v13855_v7 = vpop.f32.mrf.mxu1 }
 0x50d   :  { %v4228_v30 = vpop.f32.mrf.mxu0  ;;  %v4375_v31 = vpop.f32.mrf.mxu1 }
 0x50e   :  { %v4376_v35 = vadd.f32 %v4375_v31, %v4228_v30 }
 0x50f   :  { %v13823_v16 = vpop.f32.mrf.mxu0  ;;  %v13858_v54 = vpop.f32.mrf.mxu1 }
 0x511   :  { %v4233_v34 = vpop.f32.mrf.mxu0  ;;  %v4380_v4 = vpop.f32.mrf.mxu1 }
 0x512   :  { %v4381_v41 = vadd.f32 %v4380_v4, %v4233_v34 }
 0x513   :  { %v13826_v20 = vpop.f32.mrf.mxu0  ;;  %v13861_v53 = vpop.f32.mrf.mxu1 }
 0x515   :  { %v4238_v36 = vpop.f32.mrf.mxu0 }
 0x516   :  { %v4385_v47 = vpop.f32.mrf.mxu1 }
 0x517   :  { %v17927_v44 = vadd.f32 %v4385_v47, %v4238_v36  ;;  %v13829_v10 = vpop.f32.mrf.mxu0 }
 0x518   :  { %v13864_v12 = vpop.f32.mrf.mxu1 }
 0x519   :  { %v4243_v24 = vpop.f32.mrf.mxu0 }
 0x51a   :  { %v4390_v63 = vpop.f32.mrf.mxu1 }
 0x51b   :  { %v17929_v55 = vadd.f32 %v4390_v63, %v4243_v24  ;;  %v13832_v33 = vpop.f32.mrf.mxu0 }
 0x51c   :  { %v13867_v58 = vpop.f32.mrf.mxu1 }
 0x51d   :  { %v4248_v28 = vpop.f32.mrf.mxu0 }
 0x51e   :  { %v4395_v0 = vpop.f32.mrf.mxu1 }
 0x51f   :  { %v17931_v45 = vadd.f32 %v4395_v0, %v4248_v28  ;;  %v13835_v37 = vpop.f32.mrf.mxu0 }
 0x520   :  { %v13870_v52 = vpop.f32.mrf.mxu1 }
 0x521   :  { %v4253_v22 = vpop.f32.mrf.mxu0 }
 0x522   :  { %v4400_v59 = vpop.f32.mrf.mxu1 }
 0x523   :  { %v17933_v32 = vadd.f32 %v4400_v59, %v4253_v22  ;;  %v13838_v40 = vpop.f32.mrf.mxu0 }
 0x524   :  { %v13873_v57 = vpop.f32.mrf.mxu1 }
 0x525   :  { %v4258_v51 = vpop.f32.mrf.mxu0 }
 0x526   :  { %v4405_v27 = vpop.f32.mrf.mxu1 }
 0x527   :  { %v17935_v39 = vadd.f32 %v4405_v27, %v4258_v51  ;;  %v13841_v49 = vpop.f32.mrf.mxu0 }
 0x528   :  { %v13876_v19 = vpop.f32.mrf.mxu1 }
 0x529   :  { %v4513_v42 = vpop.f32.mrf.mxu0 }
 0x52a   :  { %v17937_v50 = vpop.f32.mrf.mxu1  ;;  %v4557_v62 = vadd.f32 %v4513_v42, %v4366_v14 }
 0x52b   :  { %v13887_v26 = vpop.f32.mrf.mxu0 }
 0x52c   :  { %v13922_v23 = vpop.f32.mrf.mxu1  ;;  %v5032_v7 = vadd.f32 %v17940_v43, %v4557_v62 }
 0x52d   :  { %v4518_v46 = vpop.f32.mrf.mxu0 }
 0x52e   :  { %v17942_v60 = vpop.f32.mrf.mxu1  ;;  %v4558_v30 = vadd.f32 %v4518_v46, %v4371_v11  ;;  %v17948_v20 = vmax.f32 %v5032_v7, 0.0 }
 0x52f   :  { %v13890_v31 = vpop.f32.mrf.mxu0 }
 0x530   :  { %v13925_v16 = vpop.f32.mrf.mxu1  ;;  %v5033_v54 = vadd.f32 %v17940_v43, %v4558_v30  ;;  %v5091_v63 = vmul.f32 %v17948_v20, %v17948_v20 }
 0x531   :  { %v4523_v34 = vpop.f32.mrf.mxu0 }
 0x532   :  { %v17946_v4 = vpop.f32.mrf.mxu1  ;;  %v17950_v14 = vmax.f32 %v5033_v54, 0.0  ;;  %v4559_v53 = vadd.f32 %v4523_v34, %v4376_v35  ;;  %v5068_v35 = vsel %vm1337_vm3, %v17948_v20, 0.0 }
 0x533   :  { %v13893_v36 = vpop.f32.mrf.mxu0 }
 0x534   :  { %v13928_v47 = vpop.f32.mrf.mxu1  ;;  %v5092_v10 = vmul.f32 %v17950_v14, %v17950_v14  ;;  %v5034_v12 = vadd.f32 %v17940_v43, %v4559_v53  ;;  %v5069_v33 = vsel %vm1337_vm3, %v17950_v14, 0.0 }
 0x535   :  { %v4528_v11 = vpop.f32.mrf.mxu0  ;;  %v5070_v57 = vadd.f32 %v5069_v33, %v5068_v35 }
 0x536   :  { %v17955_v24 = vpop.f32.mrf.mxu1  ;;  %v17961_v58 = vmax.f32 %v5034_v12, 0.0  ;;  %v4560_v28 = vadd.f32 %v4528_v11, %v4381_v41  ;;  %v5101_v52 = vsel %vm1337_vm3, %v5092_v10, 0.0  ;;  %v5100_v41 = vsel %vm1337_vm3, %v5091_v63, 0.0 }
 0x537   :  { %v13896_v0 = vpop.f32.mrf.mxu0  ;;  %v5102_v62 = vadd.f32 %v5101_v52, %v5100_v41 }
 0x538   :  { %v13931_v37 = vpop.f32.mrf.mxu1  ;;  %v5071_v22 = vsel %vm1337_vm3, %v17961_v58, 0.0  ;;  %v5093_v59 = vmul.f32 %v17961_v58, %v17961_v58  ;;  %v5035_v40 = vadd.f32 %v17940_v43, %v4560_v28 }
 0x539   :  { %v4533_v51 = vpop.f32.mrf.mxu0  ;;  %v5072_v26 = vadd.f32 %v5071_v22, %v5070_v57 }
 0x53a   :  { %v17971_v27 = vpop.f32.mrf.mxu1  ;;  %v5103_v49 = vsel %vm1337_vm3, %v5093_v59, 0.0  ;;  %v17975_v19 = vmax.f32 %v5035_v40, 0.0  ;;  %v4561_v42 = vadd.f32 %v4533_v51, %v17927_v44 }
 0x53b   :  { %v13899_v23 = vpop.f32.mrf.mxu0  ;;  %v5104_v16 = vadd.f32 %v5103_v49, %v5102_v62 }
 0x53c   :  { %v13934_v46 = vpop.f32.mrf.mxu1  ;;  %v5073_v7 = vsel %vm1337_vm3, %v17975_v19, 0.0  ;;  %v5094_v30 = vmul.f32 %v17975_v19, %v17975_v19  ;;  %v5036_v31 = vadd.f32 %v17940_v43, %v4561_v42 }
 0x53d   :  { %v5074_v54 = vadd.f32 %v5073_v7, %v5072_v26  ;;  %v4538_v34 = vpop.f32.mrf.mxu0 }
 0x53e   :  { %v17983_v53 = vpop.f32.mrf.mxu1  ;;  %v5105_v36 = vsel %vm1337_vm3, %v5094_v30, 0.0  ;;  %v17986_v44 = vmax.f32 %v5036_v31, 0.0  ;;  %v4562_v47 = vadd.f32 %v4538_v34, %v17929_v55 }
 0x53f   :  { %v5106_v10 = vadd.f32 %v5105_v36, %v5104_v16  ;;  %v13902_v12 = vpop.f32.mrf.mxu0 }
 0x540   :  { %v13937_v11 = vpop.f32.mrf.mxu1  ;;  %v5075_v63 = vsel %vm1337_vm3, %v17986_v44, 0.0  ;;  %v5095_v33 = vmul.f32 %v17986_v44, %v17986_v44  ;;  %v5037_v28 = vadd.f32 %v17940_v43, %v4562_v47 }
 0x541   :  { %v5076_v35 = vadd.f32 %v5075_v63, %v5074_v54  ;;  %v4543_v0 = vpop.f32.mrf.mxu0 }
 0x542   :  { %v17994_v37 = vpop.f32.mrf.mxu1  ;;  %v5107_v52 = vsel %vm1337_vm3, %v5095_v33, 0.0  ;;  %v17997_v22 = vmax.f32 %v5037_v28, 0.0  ;;  %v4563_v55 = vadd.f32 %v4543_v0, %v17931_v45 }
 0x543   :  { %v5108_v59 = vadd.f32 %v5107_v52, %v5106_v10  ;;  %v13905_v40 = vpop.f32.mrf.mxu0 }
 0x544   :  { %v13940_v57 = vpop.f32.mrf.mxu1  ;;  %v5077_v51 = vsel %vm1337_vm3, %v17997_v22, 0.0  ;;  %v5096_v41 = vmul.f32 %v17997_v22, %v17997_v22  ;;  %v5038_v49 = vadd.f32 %v17940_v43, %v4563_v55 }
 0x545   :  { %v5078_v42 = vadd.f32 %v5077_v51, %v5076_v35  ;;  %v4548_v62 = vpop.f32.mrf.mxu0 }
 0x546   :  { %v18005_v26 = vpop.f32.mrf.mxu1  ;;  %v5109_v23 = vsel %vm1337_vm3, %v5096_v41, 0.0  ;;  %v18008_v46 = vmax.f32 %v5038_v49, 0.0  ;;  %v4564_v45 = vadd.f32 %v4548_v62, %v17933_v32 }
 0x547   :  { %v5110_v7 = vadd.f32 %v5109_v23, %v5108_v59  ;;  %v13908_v30 = vpop.f32.mrf.mxu0 }
 0x548   :  { %v13943_v31 = vpop.f32.mrf.mxu1  ;;  %v5079_v16 = vsel %vm1337_vm3, %v18008_v46, 0.0  ;;  %v5097_v54 = vmul.f32 %v18008_v46, %v18008_v46  ;;  %v5039_v34 = vadd.f32 %v17940_v43, %v4564_v45 }
 0x549   :  { %v5080_v36 = vadd.f32 %v5079_v16, %v5078_v42  ;;  %v4553_v47 = vpop.f32.mrf.mxu0 }
 0x54a   :  { %v18016_v10 = vpop.f32.mrf.mxu1  ;;  %v5111_v12 = vsel %vm1337_vm3, %v5097_v54, 0.0  ;;  %v18019_v11 = vmax.f32 %v5039_v34, 0.0  ;;  %v4565_v32 = vadd.f32 %v4553_v47, %v17935_v39 }
 0x54b   :  { %v5112_v63 = vadd.f32 %v5111_v12, %v5110_v7  ;;  %v13911_v33 = vpop.f32.mrf.mxu0 }
 0x54c   :  { %v13946_v28 = vpop.f32.mrf.mxu1  ;;  %v5081_v35 = vsel %vm1337_vm3, %v18019_v11, 0.0  ;;  %v5098_v0 = vmul.f32 %v18019_v11, %v18019_v11  ;;  %v5040_v52 = vadd.f32 %v17940_v43, %v4565_v32 }
 0x54d   :  { %v5082_v55 = vadd.f32 %v5081_v35, %v5080_v36  ;;  %v4826_v59 = vpop.f32.mrf.mxu0 }
 0x54e   :  { %v4973_v40 = vpop.f32.mrf.mxu1  ;;  %v5113_v57 = vsel %vm1337_vm3, %v5098_v0, 0.0  ;;  %v18028_v51 = vmax.f32 %v5040_v52, 0.0  ;;  %v4827_v36 = vadd.f32 %v4826_v59, %v17937_v50 }
 0x54f   :  { %v5114_v41 = vadd.f32 %v5113_v57, %v5112_v63  ;;  %v13957_v39 = vpop.f32.mrf.mxu0 }
 0x550   :  { %v13992_v49 = vpop.f32.mrf.mxu1  ;;  %v5083_v42 = vsel %vm1337_vm3, %v18028_v51, 0.0  ;;  %v5099_v62 = vmul.f32 %v18028_v51, %v18028_v51  ;;  %v5017_v35 = vadd.f32 %v4973_v40, %v4827_v36 }
 0x551   :  { %v18034_v23 = vadd.f32 %v5083_v42, %v5082_v55  ;;  %v4831_v45 = vpop.f32.mrf.mxu0 }
 0x552   :  { %v4978_v7 = vpop.f32.mrf.mxu1  ;;  %v5115_v30 = vsel %vm1337_vm3, %v5099_v62, 0.0  ;;  %v4832_v34 = vadd.f32 %v4831_v45, %v17942_v60  ;;  %v5050_v50 = vadd.f32 %v17940_v43, %v5017_v35 }
 0x553   :  { %v18037_v31 = vadd.f32 %v5115_v30, %v5114_v41  ;;  %v13960_v16 = vpop.f32.mrf.mxu0 }
 0x554   :  { %v13995_v54 = vpop.f32.mrf.mxu1  ;;  %v5018_v28 = vadd.f32 %v4978_v7, %v4832_v34  ;;  %v18050_v16 = vmax.f32 %v5050_v50, 0.0 }
 0x555   :  { %v4836_v47 = vpop.f32.mrf.mxu0 }
 0x556   :  { %v4983_v12 = vpop.f32.mrf.mxu1  ;;  %v4837_v32 = vadd.f32 %v4836_v47, %v17946_v4  ;;  %v5051_v49 = vadd.f32 %v17940_v43, %v5018_v28  ;;  %v5147_v35 = vmul.f32 %v18050_v16, %v18050_v16 }
 0x557   :  { %v13963_v63 = vpop.f32.mrf.mxu0 }
 0x558   :  { %v13998_v33 = vpop.f32.mrf.mxu1  ;;  %v5019_v55 = vadd.f32 %v4983_v12, %v4837_v32  ;;  %v18048_v30 = vmax.f32 %v5051_v49, 0.0  ;;  %v5123_v49 = vsel %vm1337_vm3, %v18050_v16, 0.0 }
 0x559   :  { %v4841_v0 = vpop.f32.mrf.mxu0 }
 0x55a   :  { %v4988_v52 = vpop.f32.mrf.mxu1  ;;  %v4842_v57 = vadd.f32 %v4841_v0, %v17955_v24  ;;  %v5052_v4 = vadd.f32 %v17940_v43, %v5019_v55  ;;  %v5148_v33 = vmul.f32 %v18048_v30, %v18048_v30 }
 0x55b   :  { %v13966_v41 = vpop.f32.mrf.mxu0 }
 0x55c   :  { %v14001_v39 = vpop.f32.mrf.mxu1  ;;  %v5020_v60 = vadd.f32 %v4988_v52, %v4842_v57  ;;  %v18052_v36 = vmax.f32 %v5052_v4, 0.0  ;;  %v5124_v57 = vsel %vm1337_vm3, %v18048_v30, 0.0 }
 0x55d   :  { %v4846_v59 = vpop.f32.mrf.mxu0 }
 0x55e   :  { %v4993_v42 = vpop.f32.mrf.mxu1  ;;  %v4847_v62 = vadd.f32 %v4846_v59, %v17971_v27  ;;  %v5053_v40 = vadd.f32 %v17940_v43, %v5020_v60  ;;  %v5126_v4 = vsel %vm1337_vm3, %v18052_v36, 0.0 }
 0x55f   :  { %v13969_v45 = vpop.f32.mrf.mxu0 }
 0x560   :  { %v14004_v7 = vpop.f32.mrf.mxu1  ;;  %v5021_v24 = vadd.f32 %v4993_v42, %v4847_v62  ;;  %v18056_v32 = vmax.f32 %v5053_v40, 0.0  ;;  %v5157_v42 = vsel %vm1337_vm3, %v5148_v33, 0.0  ;;  %v5156_v45 = vsel %vm1337_vm3, %v5147_v35, 0.0 }
 0x561   :  { %v4851_v54 = vpop.f32.mrf.mxu0  ;;  %v5125_v7 = vadd.f32 %v5124_v57, %v5123_v49 }
 0x562   :  { %v4998_v34 = vpop.f32.mrf.mxu1  ;;  %v5054_v47 = vadd.f32 %v17940_v43, %v5021_v24  ;;  %v4852_v12 = vadd.f32 %v4851_v54, %v17983_v53  ;;  %v5149_v53 = vmul.f32 %v18052_v36, %v18052_v36  ;;  %v5150_v60 = vmul.f32 %v18056_v32, %v18056_v32 }
 0x563   :  { %v13972_v27 = vpop.f32.mrf.mxu0  ;;  %v5127_v33 = vadd.f32 %v5126_v4, %v5125_v7 }
 0x564   :  { %v14007_v63 = vpop.f32.mrf.mxu1  ;;  %v5022_v28 = vadd.f32 %v4998_v34, %v4852_v12  ;;  %v18062_v0 = vmax.f32 %v5054_v47, 0.0  ;;  %v5159_v34 = vsel %vm1337_vm3, %v5149_v53, 0.0  ;;  %v5128_v47 = vsel %vm1337_vm3, %v18056_v32, 0.0 }
 0x565   :  { %v4856_v52 = vpop.f32.mrf.mxu0  ;;  %v5158_v63 = vadd.f32 %v5157_v42, %v5156_v45  ;;  %v5129_v49 = vadd.f32 %v5128_v47, %v5127_v33  ;;  %v5085_v45 = vrot.slane %v18034_v23, 4 }
 0x566   :  { %v5003_v55 = vpop.f32.mrf.mxu1  ;;  %v5055_v41 = vadd.f32 %v17940_v43, %v5022_v28  ;;  %v4857_v39 = vadd.f32 %v4856_v52, %v17994_v37  ;;  %v5151_v37 = vmul.f32 %v18062_v0, %v18062_v0  ;;  %v5161_v28 = vsel %vm1337_vm3, %v5150_v60, 0.0 }
 0x567   :  { %v13975_v50 = vpop.f32.mrf.mxu0 }
 0x568   :  { %v14010_v59 = vpop.f32.mrf.mxu1  ;;  %v18077_v62 = vmax.f32 %v5055_v41, 0.0  ;;  %v5023_v40 = vadd.f32 %v5003_v55, %v4857_v39  ;;  %v5130_v55 = vsel %vm1337_vm3, %v18062_v0, 0.0  ;;  %v5160_v39 = vadd.f32 %v5159_v34, %v5158_v63 }
 0x569   :  { %v4861_v24 = vpop.f32.mrf.mxu0  ;;  %v5163_v50 = vsel %vm1337_vm3, %v5151_v37, 0.0  ;;  %v5117_v63 = vrot.slane %v18037_v31, 4 }
 0x56a   :  { %v5008_v54 = vpop.f32.mrf.mxu1  ;;  %v5056_v12 = vadd.f32 %v17940_v43, %v5023_v40  ;;  %v4862_v27 = vadd.f32 %v4861_v24, %v18005_v26  ;;  %v5152_v57 = vmul.f32 %v18077_v62, %v18077_v62  ;;  %v5132_v60 = vsel %vm1337_vm3, %v18077_v62, 0.0 }
 0x56b   :  { %v13978_v35 = vpop.f32.mrf.mxu0  ;;  %v5162_v7 = vadd.f32 %v5161_v28, %v5160_v39  ;;  %v5131_v24 = vadd.f32 %v5130_v55, %v5129_v49 }
 0x56c   :  { %v14013_v52 = vpop.f32.mrf.mxu1  ;;  %v18092_v53 = vmax.f32 %v5056_v12, 0.0  ;;  %v5024_v41 = vadd.f32 %v5008_v54, %v4862_v27  ;;  %v5165_v37 = vsel %vm1337_vm3, %v5152_v57, 0.0  ;;  %v5086_v57 = vadd.f32 %v5085_v45, %v18034_v23 }
 0x56d   :  { %v4866_v26 = vpop.f32.mrf.mxu0  ;;  %v5164_v33 = vadd.f32 %v5163_v50, %v5162_v7  ;;  %v5133_v35 = vadd.f32 %v5132_v60, %v5131_v24  ;;  %v5118_v50 = vadd.f32 %v5117_v63, %v18037_v31 }
 0x56e   :  { %v5013_v59 = vpop.f32.mrf.mxu1  ;;  %v5153_v42 = vmul.f32 %v18092_v53, %v18092_v53  ;;  %v5057_v4 = vadd.f32 %v17940_v43, %v5024_v41  ;;  %v4867_v40 = vadd.f32 %v4866_v26, %v18016_v10  ;;  %v5134_v47 = vsel %vm1337_vm3, %v18092_v53, 0.0 }
 0x56f   :  { %v13981_v54 = vpop.f32.mrf.mxu0  ;;  %v5166_v41 = vadd.f32 %v5165_v37, %v5164_v33  ;;  %v5135_v39 = vadd.f32 %v5134_v47, %v5133_v35  ;;  %v5119_v45 = vrot.slane %v5118_v50, 2 }
 0x570   :  { %v14016_v34 = vpop.f32.mrf.mxu1  ;;  %v18105_v12 = vmax.f32 %v5057_v4, 0.0  ;;  %v5025_v27 = vadd.f32 %v5013_v59, %v4867_v40  ;;  %v5167_v10 = vsel %vm1337_vm3, %v5153_v42, 0.0  ;;  %v5087_v40 = vrot.slane %v5086_v57, 2 }
 0x571   :  { %v5168_v59 = vadd.f32 %v5167_v10, %v5166_v41  ;;  %v5120_v31 = vadd.f32 %v5119_v45, %v5118_v50 }
 0x572   :  { %v5136_v28 = vsel %vm1337_vm3, %v18105_v12, 0.0  ;;  %v5154_v52 = vmul.f32 %v18105_v12, %v18105_v12  ;;  %v5058_v55 = vadd.f32 %v17940_v43, %v5025_v27  ;;  %v5088_v34 = vadd.f32 %v5087_v40, %v5086_v57 }
 0x573   :  { %v5137_v60 = vadd.f32 %v5136_v28, %v5135_v39  ;;  %v5121_v28 = vrot.slane %v5120_v31, 1 }
 0x574   :  { %v5169_v49 = vsel %vm1337_vm3, %v5154_v52, 0.0  ;;  %v18116_v26 = vmax.f32 %v5058_v55, 0.0  ;;  %v5089_v33 = vrot.slane %v5088_v34, 1 }
 0x575   :  { %v5170_v43 = vadd.f32 %v5169_v49, %v5168_v59  ;;  %v5122_v59 = vadd.f32 %v5121_v28, %v5120_v31  ;;  %v5231_v31 = vmul.f32 0.66, %v17490_v5  ;;  %v5285_v28 = vmul.f32 0.66, %v17646_v38 }
 0x576   :  { %v5138_v42 = vsel %vm1337_vm3, %v18116_v26, 0.0  ;;  %v5155_v4 = vmul.f32 %v18116_v26, %v18116_v26  ;;  %v5090_v41 = vadd.f32 %v5089_v33, %v5088_v34  ;;  %v5229_v33 = vmul.f32 0.66, %v17464_v13 }
 0x577   :  { %v5139_v7 = vadd.f32 %v5138_v42, %v5137_v60  ;;  %v18172_v13 = vmul.f32 0.66, %v17591_v29  ;;  %v18181_v5 = vmul.f32 0.66, %v17363_v15 }
 0x578   :  { %v5171_v23 = vsel %vm1337_vm3, %v5155_v4, 0.0 }
 0x579   :  { %v5140_v24 = vrot.slane %v5139_v7, 4  ;;  %v5172_v54 = vadd.f32 %v5171_v23, %v5170_v43 }
 0x57b   :  { %v5141_v37 = vadd.f32 %v5140_v24, %v5139_v7  ;;  %v5173_v47 = vrot.slane %v5172_v54, 4 }
 0x57d   :  { %v5142_v27 = vrot.slane %v5141_v37, 2  ;;  %v5174_v63 = vadd.f32 %v5173_v47, %v5172_v54 }
 0x57f   :  { %v5143_v35 = vadd.f32 %v5142_v27, %v5141_v37  ;;  %v5175_v10 = vrot.slane %v5174_v63, 2  ;;  %v5287_v27 = vmul.f32 0.66, %v17357_v8  ;;  %v18166_v8 = vmul.f32 0.66, %v17606_v56 }
 0x581   :  { %v5144_v52 = vrot.slane %v5143_v35, 1  ;;  %v5176_v55 = vadd.f32 %v5175_v10, %v5174_v63  ;;  %v5288_v63 = vmul.f32 0.66, %v17359_v1  ;;  %v5228_v10 = vmul.f32 0.66, %v17417_v61 }
 0x582   :  { %v18169_v1 = vmul.f32 0.66, %v17377_v6  ;;  %v18175_v61 = vmul.f32 0.66, %v17367_v18 }
 0x583   :  { %v5145_v39 = vadd.f32 %v5144_v52, %v5143_v35  ;;  %v5177_v49 = vrot.slane %v5176_v55, 1  ;;  %v5286_v35 = vmul.f32 0.66, %v17649_v48  ;;  %v18157_v52 = vmul.f32 0.66, %v17401_v25 }
 0x584   :  { %v18178_v25 = vmul.f32 0.66, %v17563_v2 }
 0x585   :  { %v5146_v60 = vadd.f32 %v5145_v39, %v5090_v41  ;;  %v5178_v42 = vadd.f32 %v5177_v49, %v5176_v55  ;;  %v18160_v55 = vmul.f32 0.66, %v17621_v3 }
 0x587   :  { %v5179_v4 = vadd.f32 %v5178_v42, %v5122_v59  ;;  %v18124_v43 = vmul.f32 0.0069444445, %v5146_v60 }
 0x589   :  { %v5181_v57 = vmul.f32 0.0069444445, %v5179_v4  ;;  %v5182_v50 = vmul.f32 %v18124_v43, %v18124_v43  ;;  %v5193_v40 = vsub.f32 %v18019_v11, %v18124_v43  ;;  %v5194_v7 = vsub.f32 %v18028_v51, %v18124_v43 }
 0x58a   :  { %v5192_v23 = vsub.f32 %v18008_v46, %v18124_v43  ;;  %v5191_v24 = vsub.f32 %v17997_v22, %v18124_v43  ;;  %v5190_v54 = vsub.f32 %v17986_v44, %v18124_v43  ;;  %v5189_v34 = vsub.f32 %v17975_v19, %v18124_v43 }
 0x58b   :  { %v5183_v45 = vsub.f32 %v5181_v57, %v5182_v50  ;;  %v5188_v37 = vsub.f32 %v17961_v58, %v18124_v43  ;;  %v5206_v51 = vsub.f32 %v18052_v36, %v18124_v43  ;;  %v5205_v46 = vsub.f32 %v18048_v30, %v18124_v43 }
 0x58c   :  { %v5204_v47 = vsub.f32 %v18050_v16, %v18124_v43  ;;  %v5230_v22 = vmul.f32 0.66, %v17487_v17  ;;  %v18163_v17 = vmul.f32 0.66, %v17380_v21  ;;  %v5340_v21 = vlaneseq }
 0x58d   :  { %v5184_v11 = vadd.f32 1e-05, %v5183_v45  ;;  %v5212_v56 = vsub.f32 %v18116_v26, %v18124_v43  ;;  %v5211_v6 = vsub.f32 %v18105_v12, %v18124_v43  ;;  %v5210_v29 = vsub.f32 %v18092_v53, %v18124_v43 }
 0x58e   :  { %v5209_v18 = vsub.f32 %v18077_v62, %v18124_v43  ;;  %v5208_v2 = vsub.f32 %v18062_v0, %v18124_v43  ;;  %v5207_v15 = vsub.f32 %v18056_v32, %v18124_v43  ;;  %v5187_v38 = vsub.f32 %v17950_v14, %v18124_v43 }
 0x58f   :  { %14916 = vrsqrt.f32 %v5184_v11  ;;  %v5186_v48 = vsub.f32 %v17948_v20, %v18124_v43 }
 0x59c   :  { %v18191_v3 = vpop.eup %14916 }
 0x59d   :  { %v5221_v12 = vmul.f32 %v18191_v3, %v5212_v56  ;;  %v5202_v53 = vmul.f32 %v18191_v3, %v5193_v40  ;;  %v5203_v62 = vmul.f32 %v18191_v3, %v5194_v7  ;;  %v5220_v26 = vmul.f32 %v18191_v3, %v5211_v6 }
 0x59e   :  { %v5201_v41 = vmul.f32 %v18191_v3, %v5192_v23  ;;  %v5219_v0 = vmul.f32 %v18191_v3, %v5210_v29  ;;  %v5200_v32 = vmul.f32 %v18191_v3, %v5191_v24  ;;  %v5218_v39 = vmul.f32 %v18191_v3, %v5209_v18 }
 0x59f   :  { %v5313_v49 = vrot.slane %v5221_v12, 5  ;;  %v5255_v59 = vrot.slane %v5202_v53, 5  ;;  %v5257_v60 = vrot.slane %v5203_v62, 5  ;;  %v5311_v42 = vrot.slane %v5220_v26, 5 }
 0x5a0   :  { %v5253_v4 = vrot.slane %v5201_v41, 5  ;;  %v5309_v57 = vrot.slane %v5219_v0, 5  ;;  %v5251_v50 = vrot.slane %v5200_v32, 5  ;;  %v5307_v40 = vrot.slane %v5218_v39, 5 }
 0x5a1   :  { %v5258_v7 = vsel %vm5241_vm12, %v5255_v59, %v5257_v60  ;;  %v5278_v45 = vadd.f32 %v5257_v60, %v5231_v31  ;;  %v5314_v11 = vsel %vm5241_vm12, %v5311_v42, %v5313_v49  ;;  %v5334_v23 = vadd.f32 %v5313_v49, %v5288_v63 }
 0x5a2   :  { %v5277_v56 = vadd.f32 %v5258_v7, %v5230_v22  ;;  %v5333_v6 = vadd.f32 %v5314_v11, %v5287_v27  ;;  %v5256_v24 = vsel %vm5241_vm12, %v5253_v4, %v5255_v59  ;;  %v5312_v29 = vsel %vm5241_vm12, %v5309_v57, %v5311_v42 }
 0x5a3   :  { %v5385_v18 = vrot.slane %v5278_v45, 3  ;;  %v5513_v12 = vrot.slane %v5334_v23, 3  ;;  %v5276_v53 = vadd.f32 %v5256_v24, %v5229_v33  ;;  %v5332_v62 = vadd.f32 %v5312_v29, %v5286_v35  ;;  %v20063_v45 = vld [vmem:[#allocation40_spill] sm:$0xff] }
 0x5a4   :  { %v5383_v26 = vrot.slane %v5277_v56, 3  ;;  %v5511_v41 = vrot.slane %v5333_v6, 3  ;;  %v5254_v0 = vsel %vm5241_vm12, %v5251_v50, %v5253_v4  ;;  %v5310_v32 = vsel %vm5241_vm12, %v5307_v40, %v5309_v57 }
 0x5a5   :  { %v5381_v31 = vrot.slane %v5276_v53, 3  ;;  %v5509_v39 = vrot.slane %v5332_v62, 3  ;;  %v5275_v60 = vadd.f32 %v5254_v0, %v5228_v10  ;;  %v5331_v63 = vadd.f32 %v5310_v32, %v5285_v28 }
 0x5a6   :  { %v5386_v22 = vsel %vm3111_vm7, %v5383_v26, %v5385_v18  ;;  %v5514_v27 = vsel %vm3111_vm7, %v5511_v41, %v5513_v12  ;;  %v5199_v33 = vmul.f32 %v18191_v3, %v5190_v54  ;;  %v5217_v35 = vmul.f32 %v18191_v3, %v5208_v2 }
 0x5a7   :  { %14018 = vmatpush3.msra.mxu0 %v5386_v22  ;;  %14045 = vmatpush3.msra.mxu1 %v5514_v27  ;;  %v5384_v49 = vsel %vm3111_vm7, %v5381_v31, %v5383_v26  ;;  %v5512_v59 = vsel %vm3111_vm7, %v5509_v39, %v5511_v41  ;;  %v5379_v42 = vrot.slane %v5275_v60, 3  ;;  %v5507_v10 = vrot.slane %v5331_v63, 3 }
 0x5a8   :  { %14019 = vmatprep.subr.mxu0 %v20054_v9  ;;  %14046 = vmatprep.subr.mxu1 %v20054_v9  ;;  %v5249_v28 = vrot.slane %v5199_v33, 5  ;;  %v5305_v4 = vrot.slane %v5217_v35, 5  ;;  %v5198_v44 = vmul.f32 %v18191_v3, %v5189_v34  ;;  %v5216_v54 = vmul.f32 %v18191_v3, %v5207_v15 }
 0x5a9   :  { %14020 = vmatpush3.msra.mxu0 %v5384_v49  ;;  %14047 = vmatpush3.msra.mxu1 %v5512_v59  ;;  %v5382_v2 = vsel %vm3111_vm7, %v5379_v42, %v5381_v31  ;;  %v5510_v57 = vsel %vm3111_vm7, %v5507_v10, %v5509_v39  ;;  %v5197_v7 = vmul.f32 %v18191_v3, %v5188_v37  ;;  %v18238_v11 = vmul.f32 0.66, %v20063_v45  ;;  %v20064_v39 = vld [vmem:[#allocation34_spill] sm:$0xff] }
 0x5aa   :  { %14021 = vmatprep.subr.mxu0 %v20054_v9  ;;  %14048 = vmatprep.subr.mxu1 %v20054_v9  ;;  %v5252_v19 = vsel %vm5241_vm12, %v5249_v28, %v5251_v50  ;;  %v5308_v34 = vsel %vm5241_vm12, %v5305_v4, %v5307_v40  ;;  %v5247_v15 = vrot.slane %v5198_v44, 5  ;;  %v5303_v23 = vrot.slane %v5216_v54, 5 }
 0x5ab   :  { %14022 = vmatpush3.msra.mxu0 %v5382_v2  ;;  %14049 = vmatpush3.msra.mxu1 %v5510_v57  ;;  %v5274_v56 = vadd.f32 %v5252_v19, %v18157_v52  ;;  %v5330_v58 = vadd.f32 %v5308_v34, %v18160_v55  ;;  %v5245_v37 = vrot.slane %v5197_v7, 5  ;;  %v5215_v6 = vmul.f32 %v18191_v3, %v5206_v51 }
 0x5ac   :  { %14023 = vmatprep.subr.mxu0 %v20054_v9  ;;  %14050 = vmatprep.subr.mxu1 %v20054_v9  ;;  %v5250_v50 = vsel %vm5241_vm12, %v5247_v15, %v5249_v28  ;;  %v5306_v40 = vsel %vm5241_vm12, %v5303_v23, %v5305_v4  ;;  %v5196_v52 = vmul.f32 %v18191_v3, %v5187_v38  ;;  %v18259_v55 = vshrl.u32 %v5340_v21, 7 }
 0x5ad   :  { %v5377_v24 = vrot.slane %v5274_v56, 3  ;;  %v5505_v36 = vrot.slane %v5330_v58, 3  ;;  %v5273_v51 = vadd.f32 %v5250_v50, %v18163_v17  ;;  %v5329_v29 = vadd.f32 %v5306_v40, %v18166_v8  ;;  %v5338_v50 = vld [vmem:[%s15102_s14 + $0x18] sm:$0xff] }
 0x5ae   :  { %v5248_v18 = vsel %vm5241_vm12, %v5245_v37, %v5247_v15  ;;  %v5301_v12 = vrot.slane %v5215_v6, 5  ;;  %v5243_v53 = vrot.slane %v5196_v52, 5  ;;  %v5214_v14 = vmul.f32 %v18191_v3, %v5205_v46  ;;  %v5337_v52 = vld [vmem:[%s15102_s14 + $0x10] sm:$0xff] }
 0x5af   :  { %v5380_v38 = vsel %vm3111_vm7, %v5377_v24, %v5379_v42  ;;  %v5508_v62 = vsel %vm3111_vm7, %v5505_v36, %v5507_v10  ;;  %v5375_v26 = vrot.slane %v5273_v51, 3  ;;  %v5503_v41 = vrot.slane %v5329_v29, 3 }
 0x5b0   :  { %14024 = vmatpush3.msra.mxu0 %v5380_v38  ;;  %14051 = vmatpush3.msra.mxu1 %v5508_v62  ;;  %v5272_v17 = vadd.f32 %v5248_v18, %v18169_v1  ;;  %v5304_v8 = vsel %vm5241_vm12, %v5301_v12, %v5303_v23  ;;  %v5246_v0 = vsel %vm5241_vm12, %v5243_v53, %v5245_v37  ;;  %v5299_v32 = vrot.slane %v5214_v14, 5 }
 0x5b1   :  { %14025 = vmatprep.subr.mxu0 %v20054_v9  ;;  %14052 = vmatprep.subr.mxu1 %v20054_v9  ;;  %v5378_v30 = vsel %vm3111_vm7, %v5375_v26, %v5377_v24  ;;  %v5506_v46 = vsel %vm3111_vm7, %v5503_v41, %v5505_v36  ;;  %v5328_v31 = vadd.f32 %v5304_v8, %v18172_v13  ;;  %v5222_v60 = vmul.f32 0.66, %v20064_v39  ;;  %v5336_v24 = vld [vmem:[%s15102_s14 + $0x8] sm:$0xff]  ;;  %v5335_v36 = vld [vmem:[%s15102_s14] sm:$0xff]  ;;  %s20076_s14 = sld [smem:[#allocation19_spill]] }
 0x5b2   :  { %14026 = vmatpush3.msra.mxu0 %v5378_v30  ;;  %14053 = vmatpush3.msra.mxu1 %v5506_v46  ;;  %v5373_v1 = vrot.slane %v5272_v17, 3  ;;  %v5271_v63 = vadd.f32 %v5246_v0, %v18175_v61  ;;  %v5302_v22 = vsel %vm5241_vm12, %v5299_v32, %v5301_v12  ;;  %v5195_v27 = vmul.f32 %v18191_v3, %v5186_v48  ;;  %v18387_v0 = vld [vmem:[%s15112_s24 + $0x18] sm:$0xff]  ;;  %v18398_v46 = vld [vmem:[%s15112_s24 + $0x30] sm:$0xff]  ;;  %v18406_v39 = vld [vmem:[%s15112_s24 + $0x28] sm:$0xff] }
 0x5b3   :  { %14027 = vmatprep.subr.mxu0 %v20054_v9  ;;  %14054 = vmatprep.subr.mxu1 %v20054_v9  ;;  %v5501_v33 = vrot.slane %v5328_v31, 3  ;;  %v5327_v13 = vadd.f32 %v5302_v22, %v18178_v25  ;;  %v5213_v35 = vmul.f32 %v18191_v3, %v5204_v47  ;;  %v5345_v61 = vand.u32 127, %v5340_v21  ;;  %v20065_v21 = vld [vmem:[#allocation31_spill] sm:$0xff]  ;;  %v18393_v30 = vld [vmem:[%s15112_s24 + $0x38] sm:$0xff] }
 0x5b4   :  { %v5376_v49 = vsel %vm3111_vm7, %v5373_v1, %v5375_v26  ;;  %v5371_v59 = vrot.slane %v5271_v63, 3  ;;  %v5242_v20 = vrot.slane %v5195_v27, 5  ;;  %v5346_v48 = vmul.u32 3, %v18259_v55  ;;  %v18403_v31 = vld [vmem:[%s15112_s24 + $0x8] sm:$0xff]  ;;  %v12548_v63 = vld [vmem:[%s15107_s19] ss:$0 sm:$0xff] }
 0x5b5   :  { %14028 = vmatpush3.msra.mxu0 %v5376_v49  ;;  %v5504_v42 = vsel %vm3111_vm7, %v5501_v33, %v5503_v41  ;;  %v5499_v10 = vrot.slane %v5327_v13, 3  ;;  %v5298_v28 = vrot.slane %v5213_v35, 5  ;;  %v5342_v25 = vadd.s32 8, %v18259_v55  ;;  %s20077_s19 = sld [smem:[#allocation18_spill]] }
 0x5b6   :  { %14055 = vmatpush3.msra.mxu1 %v5504_v42  ;;  %14029 = vmatprep.subr.mxu0 %v20054_v9  ;;  %v5374_v16 = vsel %vm3111_vm7, %v5371_v59, %v5373_v1  ;;  %v5244_v43 = vsel %vm5241_vm12, %v5242_v20, %v5243_v53  ;;  %v5269_v47 = vadd.f32 %v5242_v20, %v5222_v60  ;;  %v5279_v3 = vmul.f32 0.66, %v20065_v21  ;;  %v18413_v60 = vld [vmem:[%s15112_s24] sm:$0xff] }
 0x5b7   :  { %14056 = vmatprep.subr.mxu1 %v20054_v9  ;;  %14030 = vmatpush3.msra.mxu0 %v5374_v16  ;;  %v5502_v4 = vsel %vm3111_vm7, %v5499_v10, %v5501_v33  ;;  %v5270_v44 = vadd.f32 %v5244_v43, %v18181_v5  ;;  %v5300_v54 = vsel %vm5241_vm12, %v5298_v28, %v5299_v32  ;;  %v5347_v19 = vmul.u32 3, %v5342_v25  ;;  %v18390_v32 = vld [vmem:[%s15112_s24 + $0x10] sm:$0xff]  ;;  %v18416_v1 = vld [vmem:[%s15112_s24 + $0x20] sm:$0xff] }
 0x5b8   :  { %14057 = vmatpush3.msra.mxu1 %v5502_v4  ;;  %14031 = vmatprep.subr.mxu0 %v20054_v9  ;;  %v5326_v2 = vadd.f32 %v5300_v54, %v18238_v11  ;;  %v5368_v57 = vrot.slane %v5269_v47, 3  ;;  %v5325_v7 = vadd.f32 %v5298_v28, %v5279_v3  ;;  %vm5349_vm13 = vcmp.eq.s32.totalorder %v5345_v61, %v5346_v48 }
 0x5b9   :  { %14058 = vmatprep.subr.mxu1 %v20054_v9  ;;  %v5369_v45 = vrot.slane %v5270_v44, 3  ;;  %v5343_v34 = vadd.s32 16, %v18259_v55  ;;  %v12539_v37 = vsel %vm5349_vm13, 1.0, %v20054_v9  ;;  %vm5350_vm15 = vcmp.eq.s32.totalorder %v5345_v61, %v5347_v19 }
 0x5ba   :  { %v5497_v15 = vrot.slane %v5326_v2, 3  ;;  %v5496_v23 = vrot.slane %v5325_v7, 3  ;;  %v12540_v40 = vsel %vm5350_vm15, 1.0, %v20054_v9 }
 0x5bb   :  { %v5372_v5 = vsel %vm3111_vm7, %v5369_v45, %v5371_v59  ;;  %v5370_v56 = vsel %vm3111_vm7, %v5368_v57, %v5369_v45  ;;  %v5348_v6 = vmul.u32 3, %v5343_v34 }
 0x5bc   :  { %14032 = vmatpush3.msra.mxu0 %v5372_v5  ;;  %v5500_v58 = vsel %vm3111_vm7, %v5497_v15, %v5499_v10  ;;  %v5498_v11 = vsel %vm3111_vm7, %v5496_v23, %v5497_v15 }
 0x5bd   :  { %14059 = vmatpush3.msra.mxu1 %v5500_v58  ;;  %14033 = vmatprep.subr.mxu0 %v20054_v9  ;;  %vm5351_vm0 = vcmp.eq.s32.totalorder %v5345_v61, %v5348_v6 }
 0x5be   :  { %14060 = vmatprep.subr.mxu1 %v20054_v9  ;;  %14034 = vmatpush3.msra.mxu0 %v5370_v56  ;;  %v12541_v55 = vsel %vm5351_vm0, 1.0, %v20054_v9 }
 0x5bf   :  { %14061 = vmatpush3.msra.mxu1 %v5498_v11  ;;  %14036 = vmatmul.mubr.msk.f32.vlgmr.msra.gmra.mxu0 %vm5396_vm14, %v12539_v37 }
 0x5c0   :  { %14063 = vmatmul.mubr.msk.f32.vlgmr.msra.gmra.mxu1 %vm5396_vm14, %v12539_v37  ;;  %14038 = vmatprep.mubr.msk.f32.mxu0 %vm15044_vm8, %v20054_v9 }
 0x5c1   :  { %14065 = vmatprep.mubr.msk.f32.mxu1 %vm15044_vm8, %v20054_v9  ;;  %14071 = vmatprep.subr.mxu0 %v20054_v9 }
 0x5c2   :  { %14088 = vmatprep.subr.mxu1 %v20054_v9  ;;  %14072 = vmatpush3.msra.mxu0 %v5338_v50 }
 0x5c3   :  { %14039 = vmatmul.mubr.msk.f32.gmra.mxu0 %vm5396_vm14, %v12540_v40  ;;  %14089 = vmatpush3.msra.mxu1 %v5338_v50 }
 0x5c4   :  { %14066 = vmatmul.mubr.msk.f32.gmra.mxu1 %vm5396_vm14, %v12540_v40  ;;  %14041 = vmatprep.mubr.msk.f32.mxu0 %vm15044_vm8, %v20054_v9 }
 0x5c5   :  { %14068 = vmatprep.mubr.msk.f32.mxu1 %vm15044_vm8, %v20054_v9  ;;  %14073 = vmatprep.subr.mxu0 %v20054_v9 }
 0x5c6   :  { %14090 = vmatprep.subr.mxu1 %v20054_v9  ;;  %14074 = vmatpush3.msra.mxu0 %v5337_v52 }
 0x5c7   :  { %14042 = vmatmul.mubr.msk.f32.gmra.mxu0 %vm5396_vm14, %v12541_v55  ;;  %14091 = vmatpush3.msra.mxu1 %v5337_v52 }
 0x5c8   :  { %14069 = vmatmul.mubr.msk.f32.gmra.mxu1 %vm5396_vm14, %v12541_v55  ;;  %14075 = vmatprep.subr.mxu0 %v20054_v9 }
 0x5c9   :  { %14092 = vmatprep.subr.mxu1 %v20054_v9  ;;  %14076 = vmatpush3.msra.mxu0 %v5336_v24 }
 0x5ca   :  { %14093 = vmatpush3.msra.mxu1 %v5336_v24  ;;  %14077 = vmatprep.subr.mxu0 %v20054_v9 }
 0x5cb   :  { %14094 = vmatprep.subr.mxu1 %v20054_v9  ;;  %14079 = vmatprep.mubr.msk.f32.mxu0 %vm15044_vm8, %v20054_v9 }
 0x5cc   :  { %14096 = vmatprep.mubr.msk.f32.mxu1 %vm15044_vm8, %v20054_v9  ;;  %14078 = vmatpush3.msra.mxu0 %v5335_v36 }
 0x5cd   :  { %14095 = vmatpush3.msra.mxu1 %v5335_v36  ;;  %14105 = vmatprep.subr.mxu0 %v20054_v9 }
 0x5ce   :  { %14122 = vmatprep.subr.mxu1 %v20054_v9 }
 0x67f   :  { %v18350_v51 = vpop.f32.mrf.mxu0 }
 0x680   :  { %v18352_v29 = vpop.f32.mrf.mxu1  ;;  %14080 = vmatmul.mubr.msk.f32.vlgmr.msra.gmra.mxu0 %vm1337_vm3, %v18350_v51 }
 0x681   :  { %14097 = vmatmul.mubr.msk.f32.vlgmr.msra.gmra.mxu1 %vm1337_vm3, %v18352_v29  ;;  %v14037_v18 = vpop.f32.mrf.mxu0  ;;  %14082 = vmatprep.mubr.msk.f32.mxu0 %vm15044_vm8, %v20054_v9 }
 0x682   :  { %v14064_v12 = vpop.f32.mrf.mxu1  ;;  %14099 = vmatprep.mubr.msk.f32.mxu1 %vm15044_vm8, %v20054_v9  ;;  %14123 = vmatpush3.msra.mxu1 %v18387_v0 }
 0x683   :  { %v18362_v53 = vpop.f32.mrf.mxu0  ;;  %14106 = vmatpush3.msra.mxu0 %v18393_v30  ;;  %14124 = vmatprep.subr.mxu1 %v20054_v9 }
 0x684   :  { %v18364_v14 = vpop.f32.mrf.mxu1  ;;  %14083 = vmatmul.mubr.msk.f32.gmra.mxu0 %vm1337_vm3, %v18362_v53  ;;  %14107 = vmatprep.subr.mxu0 %v20054_v9 }
 0x685   :  { %14100 = vmatmul.mubr.msk.f32.gmra.mxu1 %vm1337_vm3, %v18364_v14  ;;  %v14040_v38 = vpop.f32.mrf.mxu0  ;;  %14085 = vmatprep.mubr.msk.f32.mxu0 %vm15044_vm8, %v20054_v9 }
 0x686   :  { %v14067_v62 = vpop.f32.mrf.mxu1  ;;  %14102 = vmatprep.mubr.msk.f32.mxu1 %vm15044_vm8, %v20054_v9  ;;  %14125 = vmatpush3.msra.mxu1 %v18390_v32 }
 0x687   :  { %v18374_v26 = vpop.f32.mrf.mxu0  ;;  %14108 = vmatpush3.msra.mxu0 %v18398_v46  ;;  %14126 = vmatprep.subr.mxu1 %v20054_v9 }
 0x688   :  { %v18376_v41 = vpop.f32.mrf.mxu1  ;;  %14086 = vmatmul.mubr.msk.f32.gmra.mxu0 %vm1337_vm3, %v18374_v26  ;;  %14109 = vmatprep.subr.mxu0 %v20054_v9 }
 0x689   :  { %14103 = vmatmul.mubr.msk.f32.gmra.mxu1 %vm1337_vm3, %v18376_v41  ;;  %v14043_v17 = vpop.f32.mrf.mxu0  ;;  %14113 = vmatprep.mubr.msk.f32.mxu0 %vm15044_vm8, %v20054_v9 }
 0x68a   :  { %v14070_v8 = vpop.f32.mrf.mxu1  ;;  %14130 = vmatprep.mubr.msk.f32.mxu1 %vm15044_vm8, %v20054_v9  ;;  %14127 = vmatpush3.msra.mxu1 %v18403_v31 }
 0x68b   :  { %14110 = vmatpush3.msra.mxu0 %v18406_v39  ;;  %14128 = vmatprep.subr.mxu1 %v20054_v9 }
 0x68c   :  { %14111 = vmatprep.subr.mxu0 %v20054_v9  ;;  %14129 = vmatpush3.msra.mxu1 %v18413_v60 }
 0x68d   :  { %14112 = vmatpush3.msra.mxu0 %v18416_v1  ;;  %14156 = vmatprep.subr.mxu1 %v20054_v9 }
 0x68e   :  { %14139 = vmatprep.subr.mxu0 %v20054_v9 }
 0x740   :  { %v5685_v22 = vpop.f32.mrf.mxu0 }
 0x741   :  { %v5686_v27 = vadd.f32 %v12548_v63, %v5685_v22  ;;  %v5777_v33 = vpop.f32.mrf.mxu1 }
 0x742   :  { %v5778_v13 = vadd.f32 %v12548_v63, %v5777_v33  ;;  %v14081_v35 = vpop.f32.mrf.mxu0 }
 0x743   :  { %v14098_v61 = vpop.f32.mrf.mxu1  ;;  %v18427_v49 = vmax.f32 %v5686_v27, 0.0 }
 0x744   :  { %v5690_v59 = vpop.f32.mrf.mxu0  ;;  %v18429_v20 = vmax.f32 %v5778_v13, 0.0 }
 0x745   :  { %v5691_v48 = vadd.f32 %v12548_v63, %v5690_v59  ;;  %v5782_v42 = vpop.f32.mrf.mxu1  ;;  %v5805_v43 = vmul.f32 %v18427_v49, %v18427_v49  ;;  %v5794_v34 = vsel %vm1337_vm3, %v18427_v49, 0.0 }
 0x746   :  { %v5783_v10 = vadd.f32 %v12548_v63, %v5782_v42  ;;  %v14084_v28 = vpop.f32.mrf.mxu0  ;;  %v5831_v3 = vmul.f32 %v18429_v20, %v18429_v20  ;;  %v5819_v15 = vsel %vm1337_vm3, %v18429_v20, 0.0 }
 0x747   :  { %v18431_v25 = vmax.f32 %v5691_v48, 0.0  ;;  %v14101_v16 = vpop.f32.mrf.mxu1  ;;  %v5808_v58 = vsel %vm1337_vm3, %v5805_v43, 0.0 }
 0x748   :  { %v18435_v47 = vmax.f32 %v5783_v10, 0.0  ;;  %v5695_v21 = vpop.f32.mrf.mxu0  ;;  %v5834_v50 = vsel %vm1337_vm3, %v5831_v3, 0.0 }
 0x749   :  { %v5795_v4 = vsel %vm1337_vm3, %v18431_v25, 0.0  ;;  %v5806_v44 = vmul.f32 %v18431_v25, %v18431_v25  ;;  %v5696_v54 = vadd.f32 %v12548_v63, %v5695_v21  ;;  %v5787_v2 = vpop.f32.mrf.mxu1 }
 0x74a   :  { %v5820_v57 = vsel %vm1337_vm3, %v18435_v47, 0.0  ;;  %v5832_v7 = vmul.f32 %v18435_v47, %v18435_v47  ;;  %v5788_v45 = vadd.f32 %v12548_v63, %v5787_v2  ;;  %v14087_v19 = vpop.f32.mrf.mxu0  ;;  %v5796_v11 = vadd.f32 %v5795_v4, %v5794_v34 }
 0x74b   :  { %v5809_v23 = vsel %vm1337_vm3, %v5806_v44, 0.0  ;;  %v18452_v5 = vmax.f32 %v5696_v54, 0.0  ;;  %v14104_v56 = vpop.f32.mrf.mxu1  ;;  %v5821_v40 = vadd.f32 %v5820_v57, %v5819_v15 }
 0x74c   :  { %v5835_v37 = vsel %vm1337_vm3, %v5832_v7, 0.0  ;;  %v5793_v6 = vmax.f32 %v5788_v45, 0.0  ;;  %v5810_v24 = vadd.f32 %v5809_v23, %v5808_v58 }
 0x74d   :  { %v5797_v52 = vsel %vm1337_vm3, %v18452_v5, 0.0  ;;  %v5807_v55 = vmul.f32 %v18452_v5, %v18452_v5  ;;  %v5836_v38 = vadd.f32 %v5835_v37, %v5834_v50 }
 0x74e   :  { %v5798_v36 = vadd.f32 %v5797_v52, %v5796_v11  ;;  %v5822_v18 = vsel %vm1337_vm3, %v5793_v6, 0.0  ;;  %v5833_v12 = vmul.f32 %v5793_v6, %v5793_v6  ;;  %v5864_v52 = vmul.f32 0.66, %v18350_v51 }
 0x74f   :  { %v5811_v62 = vsel %vm1337_vm3, %v5807_v55, 0.0  ;;  %v5823_v17 = vadd.f32 %v5822_v18, %v5821_v40  ;;  %v5865_v55 = vmul.f32 0.66, %v18362_v53 }
 0x750   :  { %v5799_v8 = vrot.slane %v5798_v36, 4  ;;  %v5812_v63 = vadd.f32 %v5811_v62, %v5810_v24  ;;  %v5837_v22 = vsel %vm1337_vm3, %v5833_v12, 0.0  ;;  %v5866_v62 = vmul.f32 0.66, %v18374_v26 }
 0x751   :  { %v5824_v27 = vrot.slane %v5823_v17, 4  ;;  %v5838_v33 = vadd.f32 %v5837_v22, %v5836_v38 }
 0x752   :  { %v5800_v13 = vadd.f32 %v5799_v8, %v5798_v36  ;;  %v5813_v35 = vrot.slane %v5812_v63, 4 }
 0x753   :  { %v5825_v61 = vadd.f32 %v5824_v27, %v5823_v17  ;;  %v5839_v59 = vrot.slane %v5838_v33, 4  ;;  %v5872_v17 = vmul.f32 0.66, %v18376_v41 }
 0x754   :  { %v5801_v48 = vrot.slane %v5800_v13, 2  ;;  %v5814_v42 = vadd.f32 %v5813_v35, %v5812_v63 }
 0x755   :  { %v5826_v10 = vrot.slane %v5825_v61, 2  ;;  %v5840_v28 = vadd.f32 %v5839_v59, %v5838_v33 }
 0x756   :  { %v5802_v16 = vadd.f32 %v5801_v48, %v5800_v13  ;;  %v5815_v43 = vrot.slane %v5814_v42, 2 }
 0x757   :  { %v5827_v21 = vadd.f32 %v5826_v10, %v5825_v61  ;;  %v5841_v3 = vrot.slane %v5840_v28, 2 }
 0x758   :  { %v5803_v4 = vrot.slane %v5802_v16, 1  ;;  %v5816_v44 = vadd.f32 %v5815_v43, %v5814_v42 }
 0x759   :  { %v5828_v54 = vrot.slane %v5827_v21, 1  ;;  %v5842_v2 = vadd.f32 %v5841_v3, %v5840_v28 }
 0x75a   :  { %v5804_v57 = vadd.f32 %v5803_v4, %v5802_v16  ;;  %v5817_v7 = vrot.slane %v5816_v44, 1  ;;  %v5887_v16 = vld [vmem:[%s15112_s24 + $0x58] sm:$0xff] }
 0x75b   :  { %v5829_v45 = vadd.f32 %v5828_v54, %v5827_v21  ;;  %v5843_v19 = vrot.slane %v5842_v2, 1 }
 0x75c   :  { %v5818_v34 = vadd.f32 %v5817_v7, %v5816_v44  ;;  %v5886_v7 = vld [vmem:[%s15112_s24 + $0x50] sm:$0xff] }
 0x75d   :  { %v5830_v15 = vadd.f32 %v5829_v45, %v5804_v57  ;;  %v5844_v23 = vadd.f32 %v5843_v19, %v5842_v2  ;;  %v5885_v19 = vld [vmem:[%s15112_s24 + $0x48] sm:$0xff] }
 0x75f   :  { %v5845_v56 = vadd.f32 %v5844_v23, %v5818_v34  ;;  %v5846_v58 = vmul.f32 0.020833334, %v5830_v15  ;;  %v18615_v34 = vld [vmem:[%s15122_s6 + $0x8] sm:$0xff]  ;;  %v18622_v15 = vld [vmem:[%s15122_s6 + $0x20] sm:$0xff] }
 0x760   :  { %v18625_v23 = vld [vmem:[%s15122_s6] sm:$0xff] }
 0x761   :  { %v5847_v11 = vmul.f32 0.020833334, %v5845_v56  ;;  %v5848_v37 = vmul.f32 %v5846_v58, %v5846_v58  ;;  %v5860_v24 = vsub.f32 %v5793_v6, %v5846_v58  ;;  %v5852_v36 = vsub.f32 %v18427_v49, %v5846_v58 }
 0x762   :  { %v5853_v18 = vsub.f32 %v18431_v25, %v5846_v58  ;;  %v5854_v12 = vsub.f32 %v18452_v5, %v5846_v58  ;;  %v5858_v8 = vsub.f32 %v18429_v20, %v5846_v58  ;;  %v5859_v63 = vsub.f32 %v18435_v47, %v5846_v58 }
 0x763   :  { %v5849_v50 = vsub.f32 %v5847_v11, %v5848_v37  ;;  %v5870_v6 = vmul.f32 0.66, %v18352_v29  ;;  %v5871_v49 = vmul.f32 0.66, %v18364_v14 }
 0x765   :  { %v5850_v40 = vadd.f32 1e-05, %v5849_v50 }
 0x767   :  { %14918 = vrsqrt.f32 %v5850_v40 }
 0x774   :  { %v14919_v38 = vpop.eup %14918 }
 0x775   :  { %v5863_v22 = vmul.f32 %v14919_v38, %v5860_v24  ;;  %v5855_v51 = vmul.f32 %v14919_v38, %v5852_v36  ;;  %v5856_v27 = vmul.f32 %v14919_v38, %v5853_v18  ;;  %v5857_v53 = vmul.f32 %v14919_v38, %v5854_v12 }
 0x776   :  { %v5861_v25 = vmul.f32 %v14919_v38, %v5858_v8  ;;  %v5862_v33 = vmul.f32 %v14919_v38, %v5859_v63 }
 0x777   :  { %v18475_v5 = vadd.f32 %v5872_v17, %v5863_v22  ;;  %v18477_v13 = vadd.f32 %v5864_v52, %v5855_v51  ;;  %v18479_v26 = vadd.f32 %v5865_v55, %v5856_v27  ;;  %v18481_v41 = vadd.f32 %v5866_v62, %v5857_v53 }
 0x778   :  { %v18483_v20 = vadd.f32 %v5870_v6, %v5861_v25  ;;  %v18485_v47 = vadd.f32 %v5871_v49, %v5862_v33  ;;  %v12573_v49 = vld [vmem:[%s15117_s30] ss:$0 sm:$0xff]  ;;  %s20079_s30 = sld [smem:[#allocation20_spill]] }
 0x779   :  { %14131 = vmatmul.mubr.msk.f32.vlgmr.msra.gmra.mxu1 %vm1337_vm3, %v18477_v13  ;;  %v5892_v29 = vrot.slane %v18477_v13, 1  ;;  %v5893_v14 = vrot.slane %v18479_v26, 1  ;;  %v5895_v35 = vrot.slane %v18481_v41, 1  ;;  %v6069_v48 = vrot.slane %v18477_v13, 2 }
 0x77a   :  { %14133 = vmatprep.mubr.msk.f32.mxu1 %vm15044_vm8, %v20054_v9  ;;  %14157 = vmatpush3.msra.mxu1 %v18393_v30  ;;  %v6166_v61 = vrot.slane %v18483_v20, 1  ;;  %v6167_v59 = vrot.slane %v18485_v47, 1  ;;  %v6070_v42 = vrot.slane %v18479_v26, 2  ;;  %v6169_v43 = vrot.slane %v18475_v5, 1 }
 0x77b   :  { %v5894_v10 = vsel %vm373_vm1, %v5892_v29, %v5893_v14  ;;  %14158 = vmatprep.subr.mxu1 %v20054_v9  ;;  %v5896_v28 = vsel %vm373_vm1, %v5893_v14, %v5895_v35  ;;  %v6072_v21 = vrot.slane %v18481_v41, 2  ;;  %v6343_v4 = vrot.slane %v18483_v20, 2 }
 0x77c   :  { %14114 = vmatmul.mubr.msk.f32.vlgmr.msra.gmra.mxu0 %vm1337_vm3, %v5894_v10  ;;  %14159 = vmatpush3.msra.mxu1 %v18398_v46  ;;  %v6168_v30 = vsel %vm373_vm1, %v6166_v61, %v6167_v59  ;;  %v6071_v3 = vsel %vm663_vm2, %v6069_v48, %v6070_v42  ;;  %v6344_v44 = vrot.slane %v18485_v47, 2  ;;  %v6170_v54 = vsel %vm373_vm1, %v6167_v59, %v6169_v43 }
 0x77d   :  { %14134 = vmatmul.mubr.msk.f32.gmra.mxu1 %vm1337_vm3, %v18479_v26  ;;  %14116 = vmatprep.mubr.msk.f32.mxu0 %vm15044_vm8, %v20054_v9  ;;  %v6073_v2 = vsel %vm663_vm2, %v6070_v42, %v6072_v21  ;;  %v6346_v46 = vrot.slane %v18475_v5, 2 }
 0x77e   :  { %14136 = vmatprep.mubr.msk.f32.mxu1 %vm15044_vm8, %v20054_v9  ;;  %14140 = vmatpush3.msra.mxu0 %v5887_v16  ;;  %v6345_v57 = vsel %vm663_vm2, %v6343_v4, %v6344_v44 }
 0x77f   :  { %14160 = vmatprep.subr.mxu1 %v20054_v9  ;;  %14141 = vmatprep.subr.mxu0 %v20054_v9  ;;  %v6347_v45 = vsel %vm663_vm2, %v6344_v44, %v6346_v46 }
 0x780   :  { %14117 = vmatmul.mubr.msk.f32.gmra.mxu0 %vm1337_vm3, %v5896_v28  ;;  %14161 = vmatpush3.msra.mxu1 %v18406_v39  ;;  %v5884_v39 = vld [vmem:[%s15112_s24 + $0x40] sm:$0xff]  ;;  %s20078_s24 = sld [smem:[#allocation21_spill]] }
 0x781   :  { %14137 = vmatmul.mubr.msk.f32.gmra.mxu1 %vm1337_vm3, %v18481_v41  ;;  %14119 = vmatprep.mubr.msk.f32.mxu0 %vm15044_vm8, %v20054_v9 }
 0x782   :  { %14142 = vmatpush3.msra.mxu0 %v5886_v7  ;;  %14162 = vmatprep.subr.mxu1 %v20054_v9 }
 0x783   :  { %14143 = vmatprep.subr.mxu0 %v20054_v9  ;;  %14163 = vmatpush3.msra.mxu1 %v18416_v1  ;;  %v18612_v1 = vld [vmem:[%s15122_s6 + $0x28] sm:$0xff] }
 0x784   :  { %14120 = vmatmul.mubr.msk.f32.gmra.mxu0 %vm1337_vm3, %v5895_v35  ;;  %14164 = vmatprep.mubr.msk.f32.mxu1 %vm15044_vm8, %v20054_v9 }
 0x785   :  { %14144 = vmatpush3.msra.mxu0 %v5885_v19  ;;  %14165 = vmatmul.mubr.msk.f32.vlgmr.msra.gmra.mxu1 %vm1337_vm3, %v6168_v30 }
 0x786   :  { %14145 = vmatprep.subr.mxu0 %v20054_v9  ;;  %14147 = vmatprep.mubr.msk.f32.mxu0 %vm15044_vm8, %v20054_v9 }
 0x787   :  { %14146 = vmatpush3.msra.mxu0 %v5884_v39  ;;  %14167 = vmatprep.mubr.msk.f32.mxu1 %vm15044_vm8, %v20054_v9 }
 0x788   :  { %14148 = vmatmul.mubr.msk.f32.vlgmr.msra.gmra.mxu0 %vm1337_vm3, %v6071_v3  ;;  %14190 = vmatprep.subr.mxu1 %v20054_v9 }
 0x789   :  { %14168 = vmatmul.mubr.msk.f32.gmra.mxu1 %vm1337_vm3, %v6170_v54  ;;  %14150 = vmatprep.mubr.msk.f32.mxu0 %vm15044_vm8, %v20054_v9 }
 0x78a   :  { %14191 = vmatpush3.msra.mxu1 %v5887_v16  ;;  %14170 = vmatprep.mubr.msk.f32.mxu1 %vm15044_vm8, %v20054_v9 }
 0x78b   :  { %14192 = vmatprep.subr.mxu1 %v20054_v9  ;;  %14173 = vmatprep.subr.mxu0 %v20054_v9 }
 0x78c   :  { %14151 = vmatmul.mubr.msk.f32.gmra.mxu0 %vm1337_vm3, %v6073_v2  ;;  %14193 = vmatpush3.msra.mxu1 %v5886_v7 }
 0x78d   :  { %14171 = vmatmul.mubr.msk.f32.gmra.mxu1 %vm1337_vm3, %v6169_v43  ;;  %14174 = vmatpush3.msra.mxu0 %v18387_v0  ;;  %v18596_v0 = vld [vmem:[%s15122_s6 + $0x38] sm:$0xff] }
 0x78e   :  { %14194 = vmatprep.subr.mxu1 %v20054_v9  ;;  %14175 = vmatprep.subr.mxu0 %v20054_v9 }
 0x78f   :  { %14195 = vmatpush3.msra.mxu1 %v5885_v19  ;;  %14153 = vmatprep.mubr.msk.f32.mxu0 %vm15044_vm8, %v20054_v9 }
 0x790   :  { %14176 = vmatpush3.msra.mxu0 %v18390_v32  ;;  %14196 = vmatprep.subr.mxu1 %v20054_v9  ;;  %v18599_v32 = vld [vmem:[%s15122_s6 + $0x18] sm:$0xff] }
 0x791   :  { %14154 = vmatmul.mubr.msk.f32.gmra.mxu0 %vm1337_vm3, %v6072_v21  ;;  %14177 = vmatprep.subr.mxu0 %v20054_v9 }
 0x792   :  { %14197 = vmatpush3.msra.mxu1 %v5884_v39  ;;  %14198 = vmatprep.mubr.msk.f32.mxu1 %vm15044_vm8, %v20054_v9 }
 0x793   :  { %14178 = vmatpush3.msra.mxu0 %v18403_v31  ;;  %14199 = vmatmul.mubr.msk.f32.vlgmr.msra.gmra.mxu1 %vm1337_vm3, %v6345_v57  ;;  %v18602_v31 = vld [vmem:[%s15122_s6 + $0x30] sm:$0xff] }
 0x794   :  { %14179 = vmatprep.subr.mxu0 %v20054_v9  ;;  %14181 = vmatprep.mubr.msk.f32.mxu0 %vm15044_vm8, %v20054_v9 }
 0x795   :  { %14180 = vmatpush3.msra.mxu0 %v18413_v60  ;;  %14201 = vmatprep.mubr.msk.f32.mxu1 %vm15044_vm8, %v20054_v9  ;;  %v18607_v60 = vld [vmem:[%s15122_s6 + $0x10] sm:$0xff] }
 0x796   :  { %14182 = vmatmul.mubr.msk.f32.vlgmr.msra.gmra.mxu0 %vm1337_vm3, %v18483_v20  ;;  %14207 = vmatprep.subr.mxu0 %v20054_v9 }
 0x797   :  { %14202 = vmatmul.mubr.msk.f32.gmra.mxu1 %vm1337_vm3, %v6347_v45  ;;  %14184 = vmatprep.mubr.msk.f32.mxu0 %vm15044_vm8, %v20054_v9 }
 0x798   :  { %14204 = vmatprep.mubr.msk.f32.mxu1 %vm15044_vm8, %v20054_v9  ;;  %14224 = vmatprep.subr.mxu1 %v20054_v9 }
 0x799   :  { %14208 = vmatpush3.msra.mxu0 %v18596_v0  ;;  %14225 = vmatpush3.msra.mxu1 %v18599_v32 }
 0x79a   :  { %14185 = vmatmul.mubr.msk.f32.gmra.mxu0 %vm1337_vm3, %v18485_v47  ;;  %14209 = vmatprep.subr.mxu0 %v20054_v9 }
 0x79b   :  { %14205 = vmatmul.mubr.msk.f32.gmra.mxu1 %vm1337_vm3, %v6346_v46  ;;  %14187 = vmatprep.mubr.msk.f32.mxu0 %vm15044_vm8, %v20054_v9 }
 0x79c   :  { %14232 = vmatprep.mubr.msk.f32.mxu1 %vm15044_vm8, %v20054_v9  ;;  %14226 = vmatprep.subr.mxu1 %v20054_v9 }
 0x79d   :  { %14210 = vmatpush3.msra.mxu0 %v18602_v31  ;;  %14227 = vmatpush3.msra.mxu1 %v18607_v60 }
 0x79e   :  { %14188 = vmatmul.mubr.msk.f32.gmra.mxu0 %vm1337_vm3, %v18475_v5  ;;  %14211 = vmatprep.subr.mxu0 %v20054_v9 }
 0x79f   :  { %14215 = vmatprep.mubr.msk.f32.mxu0 %vm15044_vm8, %v20054_v9  ;;  %14228 = vmatprep.subr.mxu1 %v20054_v9 }
 0x7a0   :  { %14212 = vmatpush3.msra.mxu0 %v18612_v1  ;;  %14229 = vmatpush3.msra.mxu1 %v18615_v34 }
 0x7a1   :  { %14213 = vmatprep.subr.mxu0 %v20054_v9  ;;  %14230 = vmatprep.subr.mxu1 %v20054_v9 }
 0x7a2   :  { %14214 = vmatpush3.msra.mxu0 %v18622_v15  ;;  %14231 = vmatpush3.msra.mxu1 %v18625_v23 }
 0x7a3   :  { %14241 = vmatprep.subr.mxu0 %v20054_v9  ;;  %14258 = vmatprep.subr.mxu1 %v20054_v9 }
 0x839   :  { %v6055_v56 = vpop.f32.mrf.mxu1 }
 0x83b   :  { %v14132_v58 = vpop.f32.mrf.mxu1 }
 0x83c   :  { %v5969_v11 = vpop.f32.mrf.mxu0 }
 0x83d   :  { %v6060_v37 = vpop.f32.mrf.mxu1  ;;  %v6056_v63 = vadd.f32 %v6055_v56, %v5969_v11 }
 0x83e   :  { %v14115_v50 = vpop.f32.mrf.mxu0 }
 0x83f   :  { %v14135_v40 = vpop.f32.mrf.mxu1 }
 0x840   :  { %v5974_v52 = vpop.f32.mrf.mxu0 }
 0x841   :  { %v6065_v55 = vpop.f32.mrf.mxu1  ;;  %v6061_v51 = vadd.f32 %v6060_v37, %v5974_v52 }
 0x842   :  { %v14118_v24 = vpop.f32.mrf.mxu0 }
 0x843   :  { %v14138_v36 = vpop.f32.mrf.mxu1 }
 0x844   :  { %v5979_v18 = vpop.f32.mrf.mxu0 }
 0x845   :  { %v6243_v12 = vpop.f32.mrf.mxu1  ;;  %v6066_v61 = vadd.f32 %v6065_v55, %v5979_v18 }
 0x846   :  { %v14121_v38 = vpop.f32.mrf.mxu0 }
 0x847   :  { %v14166_v62 = vpop.f32.mrf.mxu1 }
 0x848   :  { %v6146_v17 = vpop.f32.mrf.mxu0 }
 0x849   :  { %v6248_v8 = vpop.f32.mrf.mxu1  ;;  %v6160_v53 = vadd.f32 %v6146_v17, %v6056_v63 }
 0x84a   :  { %v14149_v22 = vpop.f32.mrf.mxu0 }
 0x84b   :  { %v14169_v27 = vpop.f32.mrf.mxu1  ;;  %v6443_v59 = vadd.f32 %v12573_v49, %v6160_v53 }
 0x84c   :  { %v6151_v6 = vpop.f32.mrf.mxu0 }
 0x84d   :  { %v6161_v25 = vadd.f32 %v6151_v6, %v6061_v51  ;;  %v6253_v33 = vpop.f32.mrf.mxu1  ;;  %v18638_v43 = vmax.f32 %v6443_v59, 0.0 }
 0x84e   :  { %v14152_v29 = vpop.f32.mrf.mxu0 }
 0x84f   :  { %v6444_v14 = vadd.f32 %v12573_v49, %v6161_v25  ;;  %v14172_v35 = vpop.f32.mrf.mxu1  ;;  %v6466_v46 = vmul.f32 %v18638_v43, %v18638_v43  ;;  %v6455_v56 = vsel %vm1337_vm3, %v18638_v43, 0.0 }
 0x851   :  { %v6156_v48 = vpop.f32.mrf.mxu0  ;;  %v18636_v42 = vmax.f32 %v6444_v14, 0.0  ;;  %v6469_v55 = vsel %vm1337_vm3, %v6466_v46, 0.0 }
 0x852   :  { %v6162_v10 = vadd.f32 %v6156_v48, %v6066_v61 }
 0x853   :  { %v6420_v28 = vpop.f32.mrf.mxu1  ;;  %v14155_v16 = vpop.f32.mrf.mxu0  ;;  %v6467_v3 = vmul.f32 %v18636_v42, %v18636_v42  ;;  %v6456_v57 = vsel %vm1337_vm3, %v18636_v42, 0.0 }
 0x854   :  { %v6445_v21 = vadd.f32 %v12573_v49, %v6162_v10  ;;  %v6457_v50 = vadd.f32 %v6456_v57, %v6455_v56 }
 0x855   :  { %v14200_v30 = vpop.f32.mrf.mxu1  ;;  %v6470_v58 = vsel %vm1337_vm3, %v6467_v3, 0.0 }
 0x856   :  { %v18642_v4 = vmax.f32 %v6445_v21, 0.0  ;;  %v6329_v44 = vpop.f32.mrf.mxu0 }
 0x857   :  { %v6330_v54 = vadd.f32 %v6329_v44, %v6243_v12  ;;  %v6425_v2 = vpop.f32.mrf.mxu1  ;;  %v6471_v12 = vadd.f32 %v6470_v58, %v6469_v55 }
 0x858   :  { %v6468_v7 = vmul.f32 %v18642_v4, %v18642_v4  ;;  %v14183_v45 = vpop.f32.mrf.mxu0  ;;  %v6458_v11 = vsel %vm1355_vm4, %v18642_v4, 0.0 }
 0x859   :  { %v6434_v19 = vadd.f32 %v6420_v28, %v6330_v54  ;;  %v14203_v39 = vpop.f32.mrf.mxu1  ;;  %v6459_v38 = vadd.f32 %v6458_v11, %v6457_v50 }
 0x85a   :  { %v6334_v37 = vpop.f32.mrf.mxu0  ;;  %v6472_v24 = vsel %vm1355_vm4, %v6468_v7, 0.0 }
 0x85b   :  { %v6335_v40 = vadd.f32 %v6334_v37, %v6248_v8  ;;  %v6430_v52 = vpop.f32.mrf.mxu1  ;;  %v6449_v36 = vadd.f32 %v12573_v49, %v6434_v19  ;;  %v6473_v22 = vadd.f32 %v6472_v24, %v6471_v12  ;;  %v6460_v25 = vrot.slane %v6459_v38, 4 }
 0x85c   :  { %v14186_v18 = vpop.f32.mrf.mxu0 }
 0x85d   :  { %v6435_v62 = vadd.f32 %v6425_v2, %v6335_v40  ;;  %v14206_v17 = vpop.f32.mrf.mxu1  ;;  %v18657_v51 = vmax.f32 %v6449_v36, 0.0  ;;  %v6474_v14 = vrot.slane %v6473_v22, 4  ;;  %v6461_v10 = vadd.f32 %v6460_v25, %v6459_v38 }
 0x85e   :  { %v6339_v63 = vpop.f32.mrf.mxu0 }
 0x85f   :  { %v6450_v27 = vadd.f32 %v12573_v49, %v6435_v62  ;;  %v6340_v53 = vadd.f32 %v6339_v63, %v6253_v33  ;;  %v6492_v35 = vmul.f32 %v18657_v51, %v18657_v51  ;;  %v6480_v28 = vsel %vm1337_vm3, %v18657_v51, 0.0 }
 0x860   :  { %v14189_v6 = vpop.f32.mrf.mxu0  ;;  %v6475_v33 = vadd.f32 %v6474_v14, %v6473_v22  ;;  %v6462_v2 = vrot.slane %v6461_v10, 2 }
 0x861   :  { %v6453_v8 = vmax.f32 %v6450_v27, 0.0  ;;  %v6436_v29 = vadd.f32 %v6430_v52, %v6340_v53  ;;  %v6495_v3 = vsel %vm1337_vm3, %v6492_v35, 0.0 }
 0x862   :  { %v6463_v39 = vadd.f32 %v6462_v2, %v6461_v10  ;;  %v6525_v2 = vmul.f32 0.66, %v18477_v13  ;;  %v6543_v13 = vmul.f32 0.66, %v18485_v47 }
 0x863   :  { %v6481_v61 = vsel %vm1337_vm3, %v6453_v8, 0.0  ;;  %v6493_v59 = vmul.f32 %v6453_v8, %v6453_v8  ;;  %v6451_v48 = vadd.f32 %v12573_v49, %v6436_v29  ;;  %v6476_v49 = vrot.slane %v6475_v33, 2 }
 0x864   :  { %v6482_v30 = vadd.f32 %v6481_v61, %v6480_v28  ;;  %v6464_v40 = vrot.slane %v6463_v39, 1  ;;  %v6544_v28 = vmul.f32 0.66, %v18475_v5  ;;  %v6527_v5 = vmul.f32 0.66, %v18481_v41 }
 0x865   :  { %v6496_v16 = vsel %vm1337_vm3, %v6493_v59, 0.0  ;;  %v6454_v21 = vmax.f32 %v6451_v48, 0.0  ;;  %v6477_v11 = vadd.f32 %v6476_v49, %v6475_v33 }
 0x866   :  { %v6497_v46 = vadd.f32 %v6496_v16, %v6495_v3  ;;  %v6465_v12 = vadd.f32 %v6464_v40, %v6463_v39 }
 0x867   :  { %v6483_v44 = vsel %vm1355_vm4, %v6454_v21, 0.0  ;;  %v6494_v54 = vmul.f32 %v6454_v21, %v6454_v21  ;;  %v6478_v24 = vrot.slane %v6477_v11, 1 }
 0x868   :  { %v6484_v57 = vadd.f32 %v6483_v44, %v6482_v30 }
 0x869   :  { %v6498_v7 = vsel %vm1355_vm4, %v6494_v54, 0.0  ;;  %v6479_v17 = vadd.f32 %v6478_v24, %v6477_v11 }
 0x86a   :  { %v6485_v45 = vrot.slane %v6484_v57, 4  ;;  %v6499_v19 = vadd.f32 %v6498_v7, %v6497_v46 }
 0x86c   :  { %v6486_v56 = vadd.f32 %v6485_v45, %v6484_v57  ;;  %v6500_v58 = vrot.slane %v6499_v19, 4 }
 0x86e   :  { %v6487_v37 = vrot.slane %v6486_v56, 2  ;;  %v6501_v50 = vadd.f32 %v6500_v58, %v6499_v19 }
 0x870   :  { %v6488_v52 = vadd.f32 %v6487_v37, %v6486_v56  ;;  %v6502_v55 = vrot.slane %v6501_v50, 2 }
 0x872   :  { %v6489_v36 = vrot.slane %v6488_v52, 1  ;;  %v6503_v18 = vadd.f32 %v6502_v55, %v6501_v50 }
 0x874   :  { %v6490_v38 = vadd.f32 %v6489_v36, %v6488_v52  ;;  %v6504_v62 = vrot.slane %v6503_v18, 1 }
 0x876   :  { %v6491_v63 = vadd.f32 %v6490_v38, %v6465_v12  ;;  %v6505_v22 = vadd.f32 %v6504_v62, %v6503_v18 }
 0x878   :  { %v6506_v27 = vadd.f32 %v6505_v22, %v6479_v17  ;;  %v6507_v53 = vmul.f32 0.022727273, %v6491_v63  ;;  %v6570_v17 = vld [vmem:[%s15122_s6 + $0x58] sm:$0xff] }
 0x87a   :  { %v6508_v6 = vmul.f32 0.022727273, %v6506_v27  ;;  %v6509_v25 = vmul.f32 %v6507_v53, %v6507_v53  ;;  %v6520_v35 = vsub.f32 %v6453_v8, %v6507_v53  ;;  %v6521_v61 = vsub.f32 %v6454_v21, %v6507_v53 }
 0x87b   :  { %v6513_v59 = vsub.f32 %v18638_v43, %v6507_v53  ;;  %v6514_v48 = vsub.f32 %v18636_v42, %v6507_v53  ;;  %v6515_v16 = vsub.f32 %v18642_v4, %v6507_v53  ;;  %v6519_v33 = vsub.f32 %v18657_v51, %v6507_v53 }
 0x87c   :  { %v6510_v29 = vsub.f32 %v6508_v6, %v6509_v25  ;;  %v6526_v8 = vmul.f32 0.66, %v18479_v26  ;;  %v6542_v4 = vmul.f32 0.66, %v18483_v20 }
 0x87e   :  { %v6511_v14 = vadd.f32 1e-05, %v6510_v29 }
 0x880   :  { %14920 = vrsqrt.f32 %v6511_v14 }
 0x88d   :  { %v14921_v10 = vpop.eup %14920 }
 0x88e   :  { %v6523_v30 = vmul.f32 %v14921_v10, %v6520_v35  ;;  %v6524_v3 = vmul.f32 %v14921_v10, %v6521_v61  ;;  %v6516_v44 = vmul.f32 %v14921_v10, %v6513_v59  ;;  %v6517_v54 = vmul.f32 %v14921_v10, %v6514_v48 }
 0x88f   :  { %v6518_v21 = vmul.f32 %v14921_v10, %v6515_v16  ;;  %v6522_v46 = vmul.f32 %v14921_v10, %v6519_v33  ;;  %v6569_v16 = vld [vmem:[%s15122_s6 + $0x50] sm:$0xff] }
 0x890   :  { %v6549_v43 = vrot.slane %v6523_v30, 7  ;;  %v6551_v57 = vrot.slane %v6524_v3, 7  ;;  %v6531_v42 = vrot.slane %v6516_v44, 7  ;;  %v6532_v7 = vrot.slane %v6517_v54, 7  ;;  %v6568_v54 = vld [vmem:[%s15122_s6 + $0x48] sm:$0xff] }
 0x891   :  { %v6534_v49 = vrot.slane %v6518_v21, 7  ;;  %v6548_v51 = vrot.slane %v6522_v46, 7 }
 0x892   :  { %v6552_v45 = vsel %vm2681_vm6, %v6549_v43, %v6551_v57  ;;  %v6533_v19 = vsel %vm2681_vm6, %v6531_v42, %v6532_v7  ;;  %v18679_v39 = vadd.f32 %v6531_v42, %v6525_v2  ;;  %v6567_v2 = vld [vmem:[%s15122_s6 + $0x40] sm:$0xff]  ;;  %s20080_s6 = sld [smem:[#allocation22_spill]] }
 0x893   :  { %v18682_v26 = vadd.f32 %v6552_v45, %v6544_v28  ;;  %v18684_v56 = vadd.f32 %v6533_v19, %v6526_v8  ;;  %v6535_v58 = vsel %vm2681_vm6, %v6532_v7, %v6534_v49  ;;  %v6550_v41 = vsel %vm2681_vm6, %v6548_v51, %v6549_v43  ;;  %v18848_v8 = vld [vmem:[%s20066_s0] sm:$0xff] }
 0x894   :  { %v6575_v20 = vrot.slane %v18679_v39, 2  ;;  %v6666_v11 = vrot.slane %v18679_v39, 1  ;;  %v18690_v37 = vadd.f32 %v6535_v58, %v6527_v5  ;;  %v6757_v50 = vrot.slane %v18679_v39, 3 }
 0x895   :  { %v6576_v40 = vrot.slane %v18684_v56, 2  ;;  %v6667_v47 = vrot.slane %v18684_v56, 1  ;;  %v6758_v52 = vrot.slane %v18684_v56, 3  ;;  %v18696_v55 = vadd.f32 %v6548_v51, %v6542_v4 }
 0x896   :  { %v6578_v24 = vrot.slane %v18690_v37, 2  ;;  %v6669_v36 = vrot.slane %v18690_v37, 1  ;;  %v18700_v18 = vadd.f32 %v6550_v41, %v6543_v13  ;;  %v6760_v12 = vrot.slane %v18690_v37, 3 }
 0x897   :  { %v6577_v38 = vsel %vm663_vm2, %v6575_v20, %v6576_v40  ;;  %v6668_v62 = vsel %vm373_vm1, %v6666_v11, %v6667_v47  ;;  %v6759_v63 = vsel %vm3111_vm7, %v6757_v50, %v6758_v52  ;;  %v6854_v22 = vrot.slane %v18696_v55, 2 }
 0x898   :  { %14216 = vmatmul.mubr.msk.f32.vlgmr.msra.gmra.mxu0 %vm1337_vm3, %v6577_v38  ;;  %14233 = vmatmul.mubr.msk.f32.vlgmr.msra.gmra.mxu1 %vm1337_vm3, %v6668_v62  ;;  %v6579_v27 = vsel %vm663_vm2, %v6576_v40, %v6578_v24  ;;  %v6670_v53 = vsel %vm373_vm1, %v6667_v47, %v6669_v36  ;;  %v6855_v6 = vrot.slane %v18700_v18, 2  ;;  %v6761_v25 = vsel %vm3111_vm7, %v6758_v52, %v6760_v12  ;;  %v12592_v47 = vld [vmem:[%s20067_s5] ss:$0 sm:$0xff] }
 0x899   :  { %14218 = vmatprep.mubr.msk.f32.mxu0 %vm15044_vm8, %v20054_v9  ;;  %14235 = vmatprep.mubr.msk.f32.mxu1 %vm15044_vm8, %v20054_v9  ;;  %v6857_v29 = vrot.slane %v18682_v26, 2  ;;  %v6945_v14 = vrot.slane %v18696_v55, 1  ;;  %v6946_v35 = vrot.slane %v18700_v18, 1  ;;  %v7036_v61 = vrot.slane %v18696_v55, 3 }
 0x89a   :  { %14242 = vmatpush3.msra.mxu0 %v6570_v17  ;;  %14259 = vmatpush3.msra.mxu1 %v18596_v0  ;;  %v6856_v59 = vsel %vm663_vm2, %v6854_v22, %v6855_v6  ;;  %v7037_v48 = vrot.slane %v18700_v18, 3  ;;  %v6948_v10 = vrot.slane %v18682_v26, 1  ;;  %v7039_v28 = vrot.slane %v18682_v26, 3 }
 0x89b   :  { %14243 = vmatprep.subr.mxu0 %v20054_v9  ;;  %14260 = vmatprep.subr.mxu1 %v20054_v9  ;;  %v6858_v33 = vsel %vm663_vm2, %v6855_v6, %v6857_v29  ;;  %v6947_v30 = vsel %vm373_vm1, %v6945_v14, %v6946_v35 }
 0x89c   :  { %14219 = vmatmul.mubr.msk.f32.gmra.mxu0 %vm1337_vm3, %v6579_v27  ;;  %14236 = vmatmul.mubr.msk.f32.gmra.mxu1 %vm1337_vm3, %v6670_v53  ;;  %v7038_v0 = vsel %vm3111_vm7, %v7036_v61, %v7037_v48  ;;  %v6949_v3 = vsel %vm373_vm1, %v6946_v35, %v6948_v10  ;;  %v7040_v44 = vsel %vm3111_vm7, %v7037_v48, %v7039_v28 }
 0x89d   :  { %14221 = vmatprep.mubr.msk.f32.mxu0 %vm15044_vm8, %v20054_v9  ;;  %14238 = vmatprep.mubr.msk.f32.mxu1 %vm15044_vm8, %v20054_v9 }
 0x89e   :  { %14244 = vmatpush3.msra.mxu0 %v6569_v16  ;;  %14261 = vmatpush3.msra.mxu1 %v18602_v31  ;;  %v18822_v31 = vld [vmem:[%s20066_s0 + $0x18] sm:$0xff] }
 0x89f   :  { %14245 = vmatprep.subr.mxu0 %v20054_v9  ;;  %14262 = vmatprep.subr.mxu1 %v20054_v9 }
 0x8a0   :  { %14222 = vmatmul.mubr.msk.f32.gmra.mxu0 %vm1337_vm3, %v6578_v24  ;;  %14239 = vmatmul.mubr.msk.f32.gmra.mxu1 %vm1337_vm3, %v6669_v36 }
 0x8a1   :  { %14246 = vmatpush3.msra.mxu0 %v6568_v54  ;;  %14263 = vmatpush3.msra.mxu1 %v18612_v1  ;;  %v18830_v1 = vld [vmem:[%s20066_s0 + $0x10] sm:$0xff] }
 0x8a2   :  { %14247 = vmatprep.subr.mxu0 %v20054_v9  ;;  %14264 = vmatprep.subr.mxu1 %v20054_v9 }
 0x8a3   :  { %14248 = vmatpush3.msra.mxu0 %v6567_v2  ;;  %14249 = vmatprep.mubr.msk.f32.mxu0 %vm15044_vm8, %v20054_v9 }
 0x8a4   :  { %14265 = vmatpush3.msra.mxu1 %v18622_v15  ;;  %14266 = vmatprep.mubr.msk.f32.mxu1 %vm15044_vm8, %v20054_v9  ;;  %v18838_v15 = vld [vmem:[%s20066_s0 + $0x8] sm:$0xff] }
 0x8a5   :  { %14250 = vmatmul.mubr.msk.f32.vlgmr.msra.gmra.mxu0 %vm1337_vm3, %v6759_v63  ;;  %14267 = vmatmul.mubr.msk.f32.vlgmr.msra.gmra.mxu1 %vm1337_vm3, %v6856_v59 }
 0x8a6   :  { %14252 = vmatprep.mubr.msk.f32.mxu0 %vm15044_vm8, %v20054_v9  ;;  %14269 = vmatprep.mubr.msk.f32.mxu1 %vm15044_vm8, %v20054_v9 }
 0x8a7   :  { %14275 = vmatprep.subr.mxu0 %v20054_v9  ;;  %14292 = vmatprep.subr.mxu1 %v20054_v9 }
 0x8a8   :  { %14276 = vmatpush3.msra.mxu0 %v18599_v32  ;;  %14293 = vmatpush3.msra.mxu1 %v6570_v17  ;;  %v18819_v32 = vld [vmem:[%s20066_s0 + $0x38] sm:$0xff] }
 0x8a9   :  { %14253 = vmatmul.mubr.msk.f32.gmra.mxu0 %vm1337_vm3, %v6761_v25  ;;  %14270 = vmatmul.mubr.msk.f32.gmra.mxu1 %vm1337_vm3, %v6858_v33 }
 0x8aa   :  { %14277 = vmatprep.subr.mxu0 %v20054_v9  ;;  %14294 = vmatprep.subr.mxu1 %v20054_v9 }
 0x8ab   :  { %14255 = vmatprep.mubr.msk.f32.mxu0 %vm15044_vm8, %v20054_v9  ;;  %14272 = vmatprep.mubr.msk.f32.mxu1 %vm15044_vm8, %v20054_v9 }
 0x8ac   :  { %14278 = vmatpush3.msra.mxu0 %v18607_v60  ;;  %14295 = vmatpush3.msra.mxu1 %v6569_v16  ;;  %v18825_v60 = vld [vmem:[%s20066_s0 + $0x30] sm:$0xff] }
 0x8ad   :  { %14256 = vmatmul.mubr.msk.f32.gmra.mxu0 %vm1337_vm3, %v6760_v12  ;;  %14273 = vmatmul.mubr.msk.f32.gmra.mxu1 %vm1337_vm3, %v6857_v29 }
 0x8ae   :  { %14279 = vmatprep.subr.mxu0 %v20054_v9  ;;  %14296 = vmatprep.subr.mxu1 %v20054_v9 }
 0x8af   :  { %14280 = vmatpush3.msra.mxu0 %v18615_v34  ;;  %14297 = vmatpush3.msra.mxu1 %v6568_v54  ;;  %v18835_v34 = vld [vmem:[%s20066_s0 + $0x28] sm:$0xff] }
 0x8b0   :  { %14281 = vmatprep.subr.mxu0 %v20054_v9  ;;  %14298 = vmatprep.subr.mxu1 %v20054_v9 }
 0x8b1   :  { %14282 = vmatpush3.msra.mxu0 %v18625_v23  ;;  %14283 = vmatprep.mubr.msk.f32.mxu0 %vm15044_vm8, %v20054_v9  ;;  %v18845_v23 = vld [vmem:[%s20066_s0 + $0x20] sm:$0xff] }
 0x8b2   :  { %14299 = vmatpush3.msra.mxu1 %v6567_v2  ;;  %14300 = vmatprep.mubr.msk.f32.mxu1 %vm15044_vm8, %v20054_v9 }
 0x8b3   :  { %14284 = vmatmul.mubr.msk.f32.vlgmr.msra.gmra.mxu0 %vm1337_vm3, %v6947_v30  ;;  %14301 = vmatmul.mubr.msk.f32.vlgmr.msra.gmra.mxu1 %vm1337_vm3, %v7038_v0 }
 0x8b4   :  { %14286 = vmatprep.mubr.msk.f32.mxu0 %vm15044_vm8, %v20054_v9  ;;  %14303 = vmatprep.mubr.msk.f32.mxu1 %vm15044_vm8, %v20054_v9 }
 0x8b5   :  { %14309 = vmatprep.subr.mxu0 %v20054_v9  ;;  %14326 = vmatprep.subr.mxu1 %v20054_v9 }
 0x8b6   :  { %14310 = vmatpush3.msra.mxu0 %v18819_v32  ;;  %14327 = vmatpush3.msra.mxu1 %v18822_v31 }
 0x8b7   :  { %14287 = vmatmul.mubr.msk.f32.gmra.mxu0 %vm1337_vm3, %v6949_v3  ;;  %14304 = vmatmul.mubr.msk.f32.gmra.mxu1 %vm1337_vm3, %v7040_v44 }
 0x8b8   :  { %14289 = vmatprep.mubr.msk.f32.mxu0 %vm15044_vm8, %v20054_v9  ;;  %14306 = vmatprep.mubr.msk.f32.mxu1 %vm15044_vm8, %v20054_v9 }
 0x8b9   :  { %14311 = vmatprep.subr.mxu0 %v20054_v9  ;;  %14328 = vmatprep.subr.mxu1 %v20054_v9 }
 0x8ba   :  { %14312 = vmatpush3.msra.mxu0 %v18825_v60  ;;  %14329 = vmatpush3.msra.mxu1 %v18830_v1 }
 0x8bb   :  { %14290 = vmatmul.mubr.msk.f32.gmra.mxu0 %vm1337_vm3, %v6948_v10  ;;  %14307 = vmatmul.mubr.msk.f32.gmra.mxu1 %vm1337_vm3, %v7039_v28 }
 0x8bc   :  { %14317 = vmatprep.mubr.msk.f32.mxu0 %vm15044_vm8, %v20054_v9  ;;  %14334 = vmatprep.mubr.msk.f32.mxu1 %vm15044_vm8, %v20054_v9 }
 0x8bd   :  { %14313 = vmatprep.subr.mxu0 %v20054_v9  ;;  %14330 = vmatprep.subr.mxu1 %v20054_v9 }
 0x8be   :  { %14314 = vmatpush3.msra.mxu0 %v18835_v34  ;;  %14331 = vmatpush3.msra.mxu1 %v18838_v15 }
 0x8bf   :  { %14315 = vmatprep.subr.mxu0 %v20054_v9  ;;  %14332 = vmatprep.subr.mxu1 %v20054_v9 }
 0x8c0   :  { %14316 = vmatpush3.msra.mxu0 %v18845_v23  ;;  %14333 = vmatpush3.msra.mxu1 %v18848_v8 }
 0x8c1   :  { %14343 = vmatprep.subr.mxu0 %v20054_v9  ;;  %14360 = vmatprep.subr.mxu1 %v20054_v9 }
 0x958   :  { %v6652_v21 = vpop.f32.mrf.mxu0  ;;  %v6743_v46 = vpop.f32.mrf.mxu1 }
 0x959   :  { %v6744_v41 = vadd.f32 %v6743_v46, %v6652_v21 }
 0x95a   :  { %v14217_v43 = vpop.f32.mrf.mxu0  ;;  %v14234_v57 = vpop.f32.mrf.mxu1 }
 0x95c   :  { %v6657_v42 = vpop.f32.mrf.mxu0  ;;  %v6748_v7 = vpop.f32.mrf.mxu1 }
 0x95d   :  { %v6749_v50 = vadd.f32 %v6748_v7, %v6657_v42 }
 0x95e   :  { %v14220_v5 = vpop.f32.mrf.mxu0  ;;  %v14237_v49 = vpop.f32.mrf.mxu1 }
 0x960   :  { %v6662_v4 = vpop.f32.mrf.mxu0  ;;  %v6753_v51 = vpop.f32.mrf.mxu1 }
 0x961   :  { %v6754_v62 = vadd.f32 %v6753_v51, %v6662_v4 }
 0x962   :  { %v14223_v45 = vpop.f32.mrf.mxu0  ;;  %v14240_v19 = vpop.f32.mrf.mxu1 }
 0x965   :  { %v6834_v13 = vpop.f32.mrf.mxu0  ;;  %v6931_v58 = vpop.f32.mrf.mxu1 }
 0x966   :  { %v6848_v40 = vadd.f32 %v6834_v13, %v6744_v41 }
 0x967   :  { %v14251_v20 = vpop.f32.mrf.mxu0  ;;  %v14268_v11 = vpop.f32.mrf.mxu1 }
 0x968   :  { %v7136_v17 = vadd.f32 %v12592_v47, %v6848_v40 }
 0x969   :  { %v6839_v52 = vpop.f32.mrf.mxu0  ;;  %v6936_v24 = vpop.f32.mrf.mxu1 }
 0x96a   :  { %v6849_v36 = vadd.f32 %v6839_v52, %v6749_v50  ;;  %v18861_v14 = vmax.f32 %v7136_v17, 0.0 }
 0x96b   :  { %v14254_v12 = vpop.f32.mrf.mxu0  ;;  %v14271_v38 = vpop.f32.mrf.mxu1 }
 0x96c   :  { %v7137_v63 = vadd.f32 %v12592_v47, %v6849_v36  ;;  %v7159_v28 = vmul.f32 %v18861_v14, %v18861_v14  ;;  %v7148_v44 = vsel %vm1337_vm3, %v18861_v14, 0.0 }
 0x96d   :  { %v6844_v22 = vpop.f32.mrf.mxu0  ;;  %v6941_v27 = vpop.f32.mrf.mxu1 }
 0x96e   :  { %v18859_v53 = vmax.f32 %v7137_v63, 0.0  ;;  %v6850_v6 = vadd.f32 %v6844_v22, %v6754_v62  ;;  %v7162_v42 = vsel %vm1337_vm3, %v7159_v28, 0.0 }
 0x96f   :  { %v14257_v25 = vpop.f32.mrf.mxu0  ;;  %v14274_v29 = vpop.f32.mrf.mxu1 }
 0x970   :  { %v7138_v35 = vadd.f32 %v12592_v47, %v6850_v6  ;;  %v7160_v61 = vmul.f32 %v18859_v53, %v18859_v53  ;;  %v7149_v16 = vsel %vm1337_vm3, %v18859_v53, 0.0 }
 0x971   :  { %v7150_v46 = vadd.f32 %v7149_v16, %v7148_v44 }
 0x972   :  { %v18865_v59 = vmax.f32 %v7138_v35, 0.0  ;;  %v7163_v54 = vsel %vm1337_vm3, %v7160_v61, 0.0 }
 0x973   :  { %v7022_v48 = vpop.f32.mrf.mxu0  ;;  %v7113_v10 = vpop.f32.mrf.mxu1  ;;  %v7164_v4 = vadd.f32 %v7163_v54, %v7162_v42 }
 0x974   :  { %v7161_v33 = vmul.f32 %v18865_v59, %v18865_v59  ;;  %v7023_v30 = vadd.f32 %v7022_v48, %v6931_v58  ;;  %v7151_v2 = vsel %vm2509_vm5, %v18865_v59, 0.0 }
 0x975   :  { %v14285_v0 = vpop.f32.mrf.mxu0  ;;  %v14302_v3 = vpop.f32.mrf.mxu1  ;;  %v7152_v51 = vadd.f32 %v7151_v2, %v7150_v46 }
 0x976   :  { %v7127_v21 = vadd.f32 %v7113_v10, %v7023_v30  ;;  %v7165_v7 = vsel %vm2509_vm5, %v7161_v33, 0.0 }
 0x977   :  { %v7027_v43 = vpop.f32.mrf.mxu0  ;;  %v7118_v57 = vpop.f32.mrf.mxu1  ;;  %v7166_v58 = vadd.f32 %v7165_v7, %v7164_v4  ;;  %v7153_v52 = vrot.slane %v7152_v51, 4 }
 0x978   :  { %v7142_v5 = vadd.f32 %v12592_v47, %v7127_v21  ;;  %v7028_v49 = vadd.f32 %v7027_v43, %v6936_v24 }
 0x979   :  { %v14288_v45 = vpop.f32.mrf.mxu0  ;;  %v14305_v19 = vpop.f32.mrf.mxu1  ;;  %v7167_v17 = vrot.slane %v7166_v58, 4  ;;  %v7154_v25 = vadd.f32 %v7153_v52, %v7152_v51 }
 0x97a   :  { %v7128_v13 = vadd.f32 %v7118_v57, %v7028_v49  ;;  %v18880_v11 = vmax.f32 %v7142_v5, 0.0 }
 0x97b   :  { %v7032_v41 = vpop.f32.mrf.mxu0  ;;  %v7123_v20 = vpop.f32.mrf.mxu1  ;;  %v7168_v61 = vadd.f32 %v7167_v17, %v7166_v58  ;;  %v7155_v33 = vrot.slane %v7154_v25, 2 }
 0x97c   :  { %v7143_v50 = vadd.f32 %v12592_v47, %v7128_v13  ;;  %v7033_v40 = vadd.f32 %v7032_v41, %v6941_v27  ;;  %v7185_v24 = vmul.f32 %v18880_v11, %v18880_v11  ;;  %v7173_v29 = vsel %vm1337_vm3, %v18880_v11, 0.0 }
 0x97d   :  { %v14291_v36 = vpop.f32.mrf.mxu0  ;;  %v14308_v12 = vpop.f32.mrf.mxu1  ;;  %v7156_v2 = vadd.f32 %v7155_v33, %v7154_v25 }
 0x97e   :  { %v7146_v38 = vmax.f32 %v7143_v50, 0.0  ;;  %v7129_v62 = vadd.f32 %v7123_v20, %v7033_v40  ;;  %v7188_v10 = vsel %vm1337_vm3, %v7185_v24, 0.0 }
 0x97f   :  { %v7157_v7 = vrot.slane %v7156_v2, 1 }
 0x980   :  { %v7174_v63 = vsel %vm1337_vm3, %v7146_v38, 0.0  ;;  %v7186_v22 = vmul.f32 %v7146_v38, %v7146_v38  ;;  %v7144_v6 = vadd.f32 %v12592_v47, %v7129_v62  ;;  %v7169_v47 = vrot.slane %v7168_v61, 2 }
 0x981   :  { %v7175_v48 = vadd.f32 %v7174_v63, %v7173_v29  ;;  %v7158_v19 = vadd.f32 %v7157_v7, %v7156_v2  ;;  %v7237_v29 = vmul.f32 0.66, %v18682_v26 }
 0x982   :  { %v7189_v35 = vsel %vm1337_vm3, %v7186_v22, 0.0  ;;  %v7147_v27 = vmax.f32 %v7144_v6, 0.0  ;;  %v7170_v43 = vadd.f32 %v7169_v47, %v7168_v61  ;;  %v7218_v61 = vmul.f32 0.66, %v18679_v39 }
 0x983   :  { %v7190_v30 = vadd.f32 %v7189_v35, %v7188_v10 }
 0x984   :  { %v7176_v28 = vsel %vm2509_vm5, %v7147_v27, 0.0  ;;  %v7187_v16 = vmul.f32 %v7147_v27, %v7147_v27  ;;  %v7171_v4 = vrot.slane %v7170_v43, 1 }
 0x985   :  { %v7177_v0 = vadd.f32 %v7176_v28, %v7175_v48 }
 0x986   :  { %v7191_v3 = vsel %vm2509_vm5, %v7187_v16, 0.0  ;;  %v7172_v41 = vadd.f32 %v7171_v4, %v7170_v43 }
 0x987   :  { %v7178_v44 = vrot.slane %v7177_v0, 4  ;;  %v7192_v54 = vadd.f32 %v7191_v3, %v7190_v30 }
 0x989   :  { %v7179_v21 = vadd.f32 %v7178_v44, %v7177_v0  ;;  %v7193_v46 = vrot.slane %v7192_v54, 4 }
 0x98b   :  { %v7180_v57 = vrot.slane %v7179_v21, 2  ;;  %v7194_v42 = vadd.f32 %v7193_v46, %v7192_v54 }
 0x98d   :  { %v7181_v5 = vadd.f32 %v7180_v57, %v7179_v21  ;;  %v7195_v49 = vrot.slane %v7194_v42, 2 }
 0x98f   :  { %v7182_v51 = vrot.slane %v7181_v5, 1  ;;  %v7196_v45 = vadd.f32 %v7195_v49, %v7194_v42 }
 0x991   :  { %v7183_v13 = vadd.f32 %v7182_v51, %v7181_v5  ;;  %v7197_v58 = vrot.slane %v7196_v45, 1 }
 0x993   :  { %v7184_v20 = vadd.f32 %v7183_v13, %v7158_v19  ;;  %v7198_v50 = vadd.f32 %v7197_v58, %v7196_v45 }
 0x995   :  { %v7199_v40 = vadd.f32 %v7198_v50, %v7172_v41  ;;  %v7200_v52 = vmul.f32 0.025, %v7184_v20 }
 0x997   :  { %v7201_v36 = vmul.f32 0.025, %v7199_v40  ;;  %v7202_v12 = vmul.f32 %v7200_v52, %v7200_v52  ;;  %v7212_v24 = vsub.f32 %v18880_v11, %v7200_v52  ;;  %v7213_v63 = vsub.f32 %v7146_v38, %v7200_v52 }
 0x998   :  { %v7214_v22 = vsub.f32 %v7147_v27, %v7200_v52  ;;  %v7206_v6 = vsub.f32 %v18861_v14, %v7200_v52  ;;  %v7207_v35 = vsub.f32 %v18859_v53, %v7200_v52  ;;  %v7208_v48 = vsub.f32 %v18865_v59, %v7200_v52 }
 0x999   :  { %v7203_v62 = vsub.f32 %v7201_v36, %v7202_v12  ;;  %v7219_v11 = vmul.f32 0.66, %v18684_v56  ;;  %v7235_v27 = vmul.f32 0.66, %v18696_v55  ;;  %v7220_v53 = vmul.f32 0.66, %v18690_v37 }
 0x99a   :  { %v7236_v59 = vmul.f32 0.66, %v18700_v18 }
 0x99b   :  { %v7204_v17 = vadd.f32 1e-05, %v7203_v62  ;;  %v7263_v62 = vld [vmem:[%s20066_s0 + $0x58] sm:$0xff] }
 0x99d   :  { %14922 = vrsqrt.f32 %v7204_v17 }
 0x9aa   :  { %v14923_v25 = vpop.eup %14922 }
 0x9ab   :  { %v7215_v10 = vmul.f32 %v14923_v25, %v7212_v24  ;;  %v7216_v28 = vmul.f32 %v14923_v25, %v7213_v63  ;;  %v7217_v16 = vmul.f32 %v14923_v25, %v7214_v22  ;;  %v7209_v33 = vmul.f32 %v14923_v25, %v7206_v6 }
 0x9ac   :  { %v7210_v30 = vmul.f32 %v14923_v25, %v7207_v35  ;;  %v7211_v38 = vmul.f32 %v14923_v25, %v7208_v48  ;;  %v7262_v48 = vld [vmem:[%s20066_s0 + $0x50] sm:$0xff] }
 0x9ad   :  { %v7241_v14 = vrot.slane %v7215_v10, 6  ;;  %v7242_v0 = vrot.slane %v7216_v28, 6  ;;  %v7244_v3 = vrot.slane %v7217_v16, 6  ;;  %v7224_v26 = vrot.slane %v7209_v33, 6  ;;  %v7260_v33 = vld [vmem:[%s20066_s0 + $0x40] sm:$0xff] }
 0x9ae   :  { %v7225_v47 = vrot.slane %v7210_v30, 6  ;;  %v7227_v39 = vrot.slane %v7211_v38, 6  ;;  %v19069_v30 = vld [vmem:[%s20068_s9] sm:$0xff] }
 0x9af   :  { %v7243_v44 = vsel %vm3993_vm10, %v7241_v14, %v7242_v0  ;;  %v7245_v54 = vsel %vm3993_vm10, %v7242_v0, %v7244_v3  ;;  %v18903_v2 = vadd.f32 %v7224_v26, %v7218_v61  ;;  %v18905_v56 = vadd.f32 %v7241_v14, %v7235_v27 }
 0x9b0   :  { %v18907_v21 = vadd.f32 %v7245_v54, %v7237_v29  ;;  %v7226_v55 = vsel %vm3993_vm10, %v7224_v26, %v7225_v47  ;;  %v7228_v46 = vsel %vm3993_vm10, %v7225_v47, %v7227_v39  ;;  %v18911_v43 = vadd.f32 %v7243_v44, %v7236_v59 }
 0x9b1   :  { %v18913_v37 = vadd.f32 %v7226_v55, %v7219_v11  ;;  %v7268_v18 = vrot.slane %v18903_v2, 3  ;;  %v7359_v57 = vrot.slane %v18903_v2, 2  ;;  %v18917_v42 = vadd.f32 %v7228_v46, %v7220_v53  ;;  %v19076_v11 = vld [vmem:[%s20068_s9 + $0x58] sm:$0xff] }
 0x9b2   :  { %v7450_v7 = vrot.slane %v18903_v2, 4  ;;  %v7547_v5 = vrot.slane %v18905_v56, 3  ;;  %v7548_v49 = vrot.slane %v18911_v43, 3  ;;  %v7550_v4 = vrot.slane %v18907_v21, 3 }
 0x9b3   :  { %v7269_v51 = vrot.slane %v18913_v37, 3  ;;  %v7360_v45 = vrot.slane %v18913_v37, 2  ;;  %v7271_v19 = vrot.slane %v18917_v42, 3  ;;  %v7362_v13 = vrot.slane %v18917_v42, 2 }
 0x9b4   :  { %v7451_v58 = vrot.slane %v18913_v37, 4  ;;  %v7549_v41 = vsel %vm3111_vm7, %v7547_v5, %v7548_v49  ;;  %v7453_v20 = vrot.slane %v18917_v42, 4  ;;  %v7551_v50 = vsel %vm3111_vm7, %v7548_v49, %v7550_v4 }
 0x9b5   :  { %v7270_v40 = vsel %vm3111_vm7, %v7268_v18, %v7269_v51  ;;  %v7361_v52 = vsel %vm663_vm2, %v7359_v57, %v7360_v45  ;;  %v7272_v36 = vsel %vm3111_vm7, %v7269_v51, %v7271_v19  ;;  %v7363_v12 = vsel %vm663_vm2, %v7360_v45, %v7362_v13 }
 0x9b6   :  { %14318 = vmatmul.mubr.msk.f32.vlgmr.msra.gmra.mxu0 %vm1337_vm3, %v7270_v40  ;;  %14335 = vmatmul.mubr.msk.f32.vlgmr.msra.gmra.mxu1 %vm1337_vm3, %v7361_v52  ;;  %v7452_v17 = vsel %vm4409_vm11, %v7450_v7, %v7451_v58  ;;  %v7454_v24 = vsel %vm4409_vm11, %v7451_v58, %v7453_v20  ;;  %v7638_v63 = vrot.slane %v18905_v56, 2  ;;  %v7639_v22 = vrot.slane %v18911_v43, 2 }
 0x9b7   :  { %14320 = vmatprep.mubr.msk.f32.mxu0 %vm15044_vm8, %v20054_v9  ;;  %14337 = vmatprep.mubr.msk.f32.mxu1 %vm15044_vm8, %v20054_v9  ;;  %v7729_v6 = vrot.slane %v18905_v56, 4  ;;  %v7730_v25 = vrot.slane %v18911_v43, 4  ;;  %v7641_v29 = vrot.slane %v18907_v21, 2  ;;  %v7732_v35 = vrot.slane %v18907_v21, 4 }
 0x9b8   :  { %14344 = vmatpush3.msra.mxu0 %v7263_v62  ;;  %14361 = vmatpush3.msra.mxu1 %v18819_v32  ;;  %v7640_v61 = vsel %vm663_vm2, %v7638_v63, %v7639_v22  ;;  %v7261_v32 = vld [vmem:[%s20066_s0 + $0x48] sm:$0xff] }
 0x9b9   :  { %14345 = vmatprep.subr.mxu0 %v20054_v9  ;;  %14362 = vmatprep.subr.mxu1 %v20054_v9  ;;  %v7731_v10 = vsel %vm4409_vm11, %v7729_v6, %v7730_v25  ;;  %v7642_v28 = vsel %vm663_vm2, %v7639_v22, %v7641_v29  ;;  %v7733_v16 = vsel %vm4409_vm11, %v7730_v25, %v7732_v35 }
 0x9ba   :  { %14321 = vmatmul.mubr.msk.f32.gmra.mxu0 %vm1337_vm3, %v7272_v36  ;;  %14338 = vmatmul.mubr.msk.f32.gmra.mxu1 %vm1337_vm3, %v7363_v12 }
 0x9bb   :  { %14323 = vmatprep.mubr.msk.f32.mxu0 %vm15044_vm8, %v20054_v9  ;;  %14340 = vmatprep.mubr.msk.f32.mxu1 %vm15044_vm8, %v20054_v9 }
 0x9bc   :  { %14346 = vmatpush3.msra.mxu0 %v7262_v48  ;;  %14363 = vmatpush3.msra.mxu1 %v18825_v60  ;;  %v19043_v60 = vld [vmem:[%s20068_s9 + $0x18] sm:$0xff] }
 0x9bd   :  { %14347 = vmatprep.subr.mxu0 %v20054_v9  ;;  %14364 = vmatprep.subr.mxu1 %v20054_v9 }
 0x9be   :  { %14324 = vmatmul.mubr.msk.f32.gmra.mxu0 %vm1337_vm3, %v7271_v19  ;;  %14341 = vmatmul.mubr.msk.f32.gmra.mxu1 %vm1337_vm3, %v7362_v13 }
 0x9bf   :  { %14348 = vmatpush3.msra.mxu0 %v7261_v32  ;;  %14365 = vmatpush3.msra.mxu1 %v18835_v34  ;;  %v19051_v34 = vld [vmem:[%s20068_s9 + $0x10] sm:$0xff] }
 0x9c0   :  { %14349 = vmatprep.subr.mxu0 %v20054_v9  ;;  %14366 = vmatprep.subr.mxu1 %v20054_v9 }
 0x9c1   :  { %14350 = vmatpush3.msra.mxu0 %v7260_v33  ;;  %14351 = vmatprep.mubr.msk.f32.mxu0 %vm15044_vm8, %v20054_v9 }
 0x9c2   :  { %14367 = vmatpush3.msra.mxu1 %v18845_v23  ;;  %14368 = vmatprep.mubr.msk.f32.mxu1 %vm15044_vm8, %v20054_v9  ;;  %v19059_v23 = vld [vmem:[%s20068_s9 + $0x8] sm:$0xff] }
 0x9c3   :  { %14352 = vmatmul.mubr.msk.f32.vlgmr.msra.gmra.mxu0 %vm1337_vm3, %v7452_v17  ;;  %14369 = vmatmul.mubr.msk.f32.vlgmr.msra.gmra.mxu1 %vm1337_vm3, %v7549_v41 }
 0x9c4   :  { %14354 = vmatprep.mubr.msk.f32.mxu0 %vm15044_vm8, %v20054_v9  ;;  %14371 = vmatprep.mubr.msk.f32.mxu1 %vm15044_vm8, %v20054_v9 }
 0x9c5   :  { %14377 = vmatprep.subr.mxu0 %v20054_v9  ;;  %14394 = vmatprep.subr.mxu1 %v20054_v9 }
 0x9c6   :  { %14378 = vmatpush3.msra.mxu0 %v18822_v31  ;;  %14395 = vmatpush3.msra.mxu1 %v7263_v62  ;;  %v19040_v31 = vld [vmem:[%s20068_s9 + $0x38] sm:$0xff] }
 0x9c7   :  { %14355 = vmatmul.mubr.msk.f32.gmra.mxu0 %vm1337_vm3, %v7454_v24  ;;  %14372 = vmatmul.mubr.msk.f32.gmra.mxu1 %vm1337_vm3, %v7551_v50 }
 0x9c8   :  { %14379 = vmatprep.subr.mxu0 %v20054_v9  ;;  %14396 = vmatprep.subr.mxu1 %v20054_v9 }
 0x9c9   :  { %14357 = vmatprep.mubr.msk.f32.mxu0 %vm15044_vm8, %v20054_v9  ;;  %14374 = vmatprep.mubr.msk.f32.mxu1 %vm15044_vm8, %v20054_v9 }
 0x9ca   :  { %14380 = vmatpush3.msra.mxu0 %v18830_v1  ;;  %14397 = vmatpush3.msra.mxu1 %v7262_v48  ;;  %v19046_v1 = vld [vmem:[%s20068_s9 + $0x30] sm:$0xff] }
 0x9cb   :  { %14358 = vmatmul.mubr.msk.f32.gmra.mxu0 %vm1337_vm3, %v7453_v20  ;;  %14375 = vmatmul.mubr.msk.f32.gmra.mxu1 %vm1337_vm3, %v7550_v4  ;;  %v12611_v4 = vld [vmem:[%s20069_s13] ss:$0 sm:$0xff] }
 0x9cc   :  { %14381 = vmatprep.subr.mxu0 %v20054_v9  ;;  %14398 = vmatprep.subr.mxu1 %v20054_v9 }
 0x9cd   :  { %14382 = vmatpush3.msra.mxu0 %v18838_v15  ;;  %14399 = vmatpush3.msra.mxu1 %v7261_v32  ;;  %v19056_v15 = vld [vmem:[%s20068_s9 + $0x28] sm:$0xff] }
 0x9ce   :  { %14383 = vmatprep.subr.mxu0 %v20054_v9  ;;  %14400 = vmatprep.subr.mxu1 %v20054_v9 }
 0x9cf   :  { %14384 = vmatpush3.msra.mxu0 %v18848_v8  ;;  %14385 = vmatprep.mubr.msk.f32.mxu0 %vm15044_vm8, %v20054_v9  ;;  %v19066_v8 = vld [vmem:[%s20068_s9 + $0x20] sm:$0xff] }
 0x9d0   :  { %14401 = vmatpush3.msra.mxu1 %v7260_v33  ;;  %14402 = vmatprep.mubr.msk.f32.mxu1 %vm15044_vm8, %v20054_v9 }
 0x9d1   :  { %14386 = vmatmul.mubr.msk.f32.vlgmr.msra.gmra.mxu0 %vm1337_vm3, %v7640_v61  ;;  %14403 = vmatmul.mubr.msk.f32.vlgmr.msra.gmra.mxu1 %vm1337_vm3, %v7731_v10 }
 0x9d2   :  { %14388 = vmatprep.mubr.msk.f32.mxu0 %vm15044_vm8, %v20054_v9  ;;  %14405 = vmatprep.mubr.msk.f32.mxu1 %vm15044_vm8, %v20054_v9 }
 0x9d3   :  { %14411 = vmatprep.subr.mxu0 %v19040_v31  ;;  %14422 = vmatprep.subr.mxu1 %v19043_v60 }
 0x9d4   :  { %14412 = vmatpush3.msra.mxu0 %v19040_v31  ;;  %14423 = vmatpush3.msra.mxu1 %v19043_v60 }
 0x9d5   :  { %14389 = vmatmul.mubr.msk.f32.gmra.mxu0 %vm1337_vm3, %v7642_v28  ;;  %14406 = vmatmul.mubr.msk.f32.gmra.mxu1 %vm1337_vm3, %v7733_v16 }
 0x9d6   :  { %14391 = vmatprep.mubr.msk.f32.mxu0 %vm15044_vm8, %v20054_v9  ;;  %14408 = vmatprep.mubr.msk.f32.mxu1 %vm15044_vm8, %v20054_v9 }
 0x9d7   :  { %14413 = vmatprep.subr.mxu0 %v19046_v1  ;;  %14424 = vmatprep.subr.mxu1 %v19051_v34 }
 0x9d8   :  { %14414 = vmatpush3.msra.mxu0 %v19046_v1  ;;  %14425 = vmatpush3.msra.mxu1 %v19051_v34 }
 0x9d9   :  { %14392 = vmatmul.mubr.msk.f32.gmra.mxu0 %vm1337_vm3, %v7641_v29  ;;  %14409 = vmatmul.mubr.msk.f32.gmra.mxu1 %vm1337_vm3, %v7732_v35 }
 0x9da   :  { %14415 = vmatprep.subr.mxu0 %v19056_v15  ;;  %14426 = vmatprep.subr.mxu1 %v19059_v23 }
 0x9db   :  { %14416 = vmatpush3.msra.mxu0 %v19056_v15  ;;  %14427 = vmatpush3.msra.mxu1 %v19059_v23 }
 0x9dc   :  { %14417 = vmatprep.subr.mxu0 %v19066_v8  ;;  %14428 = vmatprep.subr.mxu1 %v19069_v30 }
 0x9dd   :  { %14418 = vmatpush3.msra.mxu0 %v19066_v8  ;;  %14429 = vmatpush3.msra.mxu1 %v19069_v30 }
 0x9de   :  { %14433 = vmatprep.subr.mxu0 %v19076_v11  ;;  %14444 = vmatprep.subr.mxu1 %v19040_v31 }
 0xa76   :  { %v7345_v38 = vpop.f32.mrf.mxu0  ;;  %v7436_v27 = vpop.f32.mrf.mxu1 }
 0xa77   :  { %v7437_v18 = vadd.f32 %v7436_v27, %v7345_v38 }
 0xa78   :  { %v14319_v14 = vpop.f32.mrf.mxu0  ;;  %v14336_v0 = vpop.f32.mrf.mxu1 }
 0xa7a   :  { %v7350_v3 = vpop.f32.mrf.mxu0  ;;  %v7441_v26 = vpop.f32.mrf.mxu1 }
 0xa7b   :  { %v7442_v5 = vadd.f32 %v7441_v26, %v7350_v3 }
 0xa7c   :  { %v14322_v47 = vpop.f32.mrf.mxu0  ;;  %v14339_v53 = vpop.f32.mrf.mxu1 }
 0xa7e   :  { %v7355_v39 = vpop.f32.mrf.mxu0  ;;  %v7446_v59 = vpop.f32.mrf.mxu1 }
 0xa7f   :  { %v7447_v41 = vadd.f32 %v7446_v59, %v7355_v39 }
 0xa80   :  { %v14325_v44 = vpop.f32.mrf.mxu0  ;;  %v14342_v54 = vpop.f32.mrf.mxu1 }
 0xa83   :  { %v7527_v55 = vpop.f32.mrf.mxu0  ;;  %v7624_v46 = vpop.f32.mrf.mxu1 }
 0xa84   :  { %v7541_v49 = vadd.f32 %v7527_v55, %v7437_v18 }
 0xa85   :  { %v14353_v57 = vpop.f32.mrf.mxu0  ;;  %v14370_v7 = vpop.f32.mrf.mxu1 }
 0xa86   :  { %v7829_v20 = vadd.f32 %v12611_v4, %v7541_v49 }
 0xa87   :  { %v7532_v51 = vpop.f32.mrf.mxu0  ;;  %v7629_v45 = vpop.f32.mrf.mxu1 }
 0xa88   :  { %v7542_v19 = vadd.f32 %v7532_v51, %v7442_v5  ;;  %v19087_v24 = vmax.f32 %v7829_v20, 0.0 }
 0xa89   :  { %v14356_v13 = vpop.f32.mrf.mxu0  ;;  %v14373_v58 = vpop.f32.mrf.mxu1 }
 0xa8a   :  { %v7830_v50 = vadd.f32 %v12611_v4, %v7542_v19  ;;  %v7852_v35 = vmul.f32 %v19087_v24, %v19087_v24  ;;  %v7841_v32 = vsel %vm1337_vm3, %v19087_v24, 0.0 }
 0xa8b   :  { %v7537_v40 = vpop.f32.mrf.mxu0  ;;  %v7634_v52 = vpop.f32.mrf.mxu1 }
 0xa8c   :  { %v19085_v36 = vmax.f32 %v7830_v50, 0.0  ;;  %v7543_v12 = vadd.f32 %v7537_v40, %v7447_v41  ;;  %v7855_v26 = vsel %vm1337_vm3, %v7852_v35, 0.0 }
 0xa8d   :  { %v14359_v62 = vpop.f32.mrf.mxu0  ;;  %v14376_v17 = vpop.f32.mrf.mxu1 }
 0xa8e   :  { %v7831_v63 = vadd.f32 %v12611_v4, %v7543_v12  ;;  %v7853_v22 = vmul.f32 %v19085_v36, %v19085_v36  ;;  %v7842_v61 = vsel %vm1337_vm3, %v19085_v36, 0.0 }
 0xa8f   :  { %v7843_v14 = vadd.f32 %v7842_v61, %v7841_v32 }
 0xa90   :  { %v19091_v6 = vmax.f32 %v7831_v63, 0.0  ;;  %v7856_v33 = vsel %vm1337_vm3, %v7853_v22, 0.0 }
 0xa91   :  { %v7715_v25 = vpop.f32.mrf.mxu0  ;;  %v7806_v29 = vpop.f32.mrf.mxu1  ;;  %v7857_v59 = vadd.f32 %v7856_v33, %v7855_v26 }
 0xa92   :  { %v7854_v48 = vmul.f32 %v19091_v6, %v19091_v6  ;;  %v7716_v10 = vadd.f32 %v7715_v25, %v7624_v46  ;;  %v7844_v38 = vsel %vm3821_vm9, %v19091_v6, 0.0 }
 0xa93   :  { %v14387_v28 = vpop.f32.mrf.mxu0  ;;  %v14404_v16 = vpop.f32.mrf.mxu1  ;;  %v7845_v44 = vadd.f32 %v7844_v38, %v7843_v14 }
 0xa94   :  { %v7820_v27 = vadd.f32 %v7806_v29, %v7716_v10  ;;  %v7858_v47 = vsel %vm3821_vm9, %v7854_v48, 0.0 }
 0xa95   :  { %v7720_v0 = vpop.f32.mrf.mxu0  ;;  %v7811_v3 = vpop.f32.mrf.mxu1  ;;  %v7859_v18 = vadd.f32 %v7858_v47, %v7857_v59  ;;  %v7846_v19 = vrot.slane %v7845_v44, 4 }
 0xa96   :  { %v7835_v53 = vadd.f32 %v12611_v4, %v7820_v27  ;;  %v7721_v39 = vadd.f32 %v7720_v0, %v7629_v45 }
 0xa97   :  { %v14390_v54 = vpop.f32.mrf.mxu0  ;;  %v14407_v55 = vpop.f32.mrf.mxu1  ;;  %v7860_v50 = vrot.slane %v7859_v18, 4  ;;  %v7847_v17 = vadd.f32 %v7846_v19, %v7845_v44 }
 0xa98   :  { %v7821_v46 = vadd.f32 %v7811_v3, %v7721_v39  ;;  %v19106_v5 = vmax.f32 %v7835_v53, 0.0 }
 0xa99   :  { %v7725_v57 = vpop.f32.mrf.mxu0  ;;  %v7816_v7 = vpop.f32.mrf.mxu1  ;;  %v7861_v25 = vadd.f32 %v7860_v50, %v7859_v18  ;;  %v7848_v10 = vrot.slane %v7847_v17, 2 }
 0xa9a   :  { %v7836_v49 = vadd.f32 %v12611_v4, %v7821_v46  ;;  %v7726_v51 = vadd.f32 %v7725_v57, %v7634_v52  ;;  %v7878_v45 = vmul.f32 %v19106_v5, %v19106_v5  ;;  %v7866_v63 = vsel %vm1337_vm3, %v19106_v5, 0.0 }
 0xa9b   :  { %v14393_v13 = vpop.f32.mrf.mxu0  ;;  %v14410_v58 = vpop.f32.mrf.mxu1  ;;  %v7849_v27 = vadd.f32 %v7848_v10, %v7847_v17 }
 0xa9c   :  { %v7839_v41 = vmax.f32 %v7836_v49, 0.0  ;;  %v7822_v20 = vadd.f32 %v7816_v7, %v7726_v51  ;;  %v7881_v35 = vsel %vm1337_vm3, %v7878_v45, 0.0 }
 0xa9d   :  { %v7850_v53 = vrot.slane %v7849_v27, 1 }
 0xa9e   :  { %v7867_v40 = vsel %vm1337_vm3, %v7839_v41, 0.0  ;;  %v7879_v12 = vmul.f32 %v7839_v41, %v7839_v41  ;;  %v7837_v62 = vadd.f32 %v12611_v4, %v7822_v20  ;;  %v7862_v4 = vrot.slane %v7861_v25, 2 }
 0xa9f   :  { %v7868_v29 = vadd.f32 %v7867_v40, %v7866_v63  ;;  %v7851_v46 = vadd.f32 %v7850_v53, %v7849_v27 }
 0xaa0   :  { %v7882_v22 = vsel %vm1337_vm3, %v7879_v12, 0.0  ;;  %v7840_v52 = vmax.f32 %v7837_v62, 0.0  ;;  %v7863_v3 = vadd.f32 %v7862_v4, %v7861_v25 }
 0xaa1   :  { %v7883_v28 = vadd.f32 %v7882_v22, %v7881_v35  ;;  %v7930_v22 = vmul.f32 0.66, %v18907_v21  ;;  %v7913_v21 = vmul.f32 0.66, %v18917_v42 }
 0xaa2   :  { %v7869_v61 = vsel %vm3821_vm9, %v7840_v52, 0.0  ;;  %v7880_v48 = vmul.f32 %v7840_v52, %v7840_v52  ;;  %v7864_v44 = vrot.slane %v7863_v3, 1 }
 0xaa3   :  { %v7870_v16 = vadd.f32 %v7869_v61, %v7868_v29 }
 0xaa4   :  { %v7884_v32 = vsel %vm3821_vm9, %v7880_v48, 0.0  ;;  %v7865_v7 = vadd.f32 %v7864_v44, %v7863_v3 }
 0xaa5   :  { %v7871_v33 = vrot.slane %v7870_v16, 4  ;;  %v7885_v38 = vadd.f32 %v7884_v32, %v7883_v28  ;;  %v7911_v28 = vmul.f32 0.66, %v18903_v2  ;;  %v7929_v2 = vmul.f32 0.66, %v18911_v43 }
 0xaa7   :  { %v7872_v14 = vadd.f32 %v7871_v33, %v7870_v16  ;;  %v7886_v0 = vrot.slane %v7885_v38, 4 }
 0xaa9   :  { %v7873_v26 = vrot.slane %v7872_v14, 2  ;;  %v7887_v47 = vadd.f32 %v7886_v0, %v7885_v38 }
 0xaab   :  { %v7874_v39 = vadd.f32 %v7873_v26, %v7872_v14  ;;  %v7888_v59 = vrot.slane %v7887_v47, 2 }
 0xaad   :  { %v7875_v54 = vrot.slane %v7874_v39, 1  ;;  %v7889_v55 = vadd.f32 %v7888_v59, %v7887_v47 }
 0xaaf   :  { %v7876_v18 = vadd.f32 %v7875_v54, %v7874_v39  ;;  %v7890_v57 = vrot.slane %v7889_v55, 1 }
 0xab1   :  { %v7877_v49 = vadd.f32 %v7876_v18, %v7851_v46  ;;  %v7891_v51 = vadd.f32 %v7890_v57, %v7889_v55 }
 0xab3   :  { %v7892_v19 = vadd.f32 %v7891_v51, %v7865_v7  ;;  %v7893_v13 = vmul.f32 0.027777778, %v7877_v49 }
 0xab5   :  { %v7894_v58 = vmul.f32 0.027777778, %v7892_v19  ;;  %v7895_v20 = vmul.f32 %v7893_v13, %v7893_v13  ;;  %v7906_v40 = vsub.f32 %v7839_v41, %v7893_v13  ;;  %v7907_v12 = vsub.f32 %v7840_v52, %v7893_v13 }
 0xab6   :  { %v7899_v62 = vsub.f32 %v19087_v24, %v7893_v13  ;;  %v7900_v17 = vsub.f32 %v19085_v36, %v7893_v13  ;;  %v7901_v25 = vsub.f32 %v19091_v6, %v7893_v13  ;;  %v7905_v29 = vsub.f32 %v19106_v5, %v7893_v13 }
 0xab7   :  { %v7896_v50 = vsub.f32 %v7894_v58, %v7895_v20  ;;  %v7912_v41 = vmul.f32 0.66, %v18913_v37  ;;  %v7928_v6 = vmul.f32 0.66, %v18905_v56  ;;  %v7955_v58 = vld [vmem:[%s20068_s9 + $0x50] sm:$0xff] }
 0xab9   :  { %v7897_v45 = vadd.f32 1e-05, %v7896_v50 }
 0xabb   :  { %14924 = vrsqrt.f32 %v7897_v45 }
 0xac8   :  { %v14925_v63 = vpop.eup %14924 }
 0xac9   :  { %v7909_v35 = vmul.f32 %v14925_v63, %v7906_v40  ;;  %v7910_v61 = vmul.f32 %v14925_v63, %v7907_v12  ;;  %v7902_v48 = vmul.f32 %v14925_v63, %v7899_v62  ;;  %v7903_v10 = vmul.f32 %v14925_v63, %v7900_v17 }
 0xaca   :  { %v7904_v52 = vmul.f32 %v14925_v63, %v7901_v25  ;;  %v7908_v16 = vmul.f32 %v14925_v63, %v7905_v29  ;;  %v7954_v29 = vld [vmem:[%s20068_s9 + $0x48] sm:$0xff] }
 0xacb   :  { %v7935_v24 = vrot.slane %v7909_v35, 5  ;;  %v7937_v32 = vrot.slane %v7910_v61, 5  ;;  %v7917_v36 = vrot.slane %v7902_v48, 5  ;;  %v7918_v4 = vrot.slane %v7903_v10, 5 }
 0xacc   :  { %v7920_v33 = vrot.slane %v7904_v52, 5  ;;  %v7934_v5 = vrot.slane %v7908_v16, 5 }
 0xacd   :  { %v7938_v38 = vsel %vm5241_vm12, %v7935_v24, %v7937_v32  ;;  %v7919_v27 = vsel %vm5241_vm12, %v7917_v36, %v7918_v4  ;;  %v19128_v14 = vadd.f32 %v7917_v36, %v7911_v28  ;;  %v7953_v28 = vld [vmem:[%s20068_s9 + $0x40] sm:$0xff] }
 0xace   :  { %v19131_v37 = vadd.f32 %v7938_v38, %v7930_v22  ;;  %v19133_v0 = vadd.f32 %v7919_v27, %v7912_v41  ;;  %v7921_v3 = vsel %vm5241_vm12, %v7918_v4, %v7920_v33  ;;  %v7936_v42 = vsel %vm5241_vm12, %v7934_v5, %v7935_v24  ;;  %v19243_v41 = vld [vmem:[%s20070_s17 + $0x58] sm:$0xff]  ;;  %v12624_v4 = vld [vmem:[%s20071_s21] ss:$0 sm:$0xff] }
 0xacf   :  { %v7961_v26 = vrot.slane %v19128_v14, 4  ;;  %v8045_v56 = vrot.slane %v19128_v14, 3  ;;  %v19139_v47 = vadd.f32 %v7921_v3, %v7913_v21  ;;  %v8129_v53 = vrot.slane %v19128_v14, 5 }
 0xad0   :  { %v7962_v39 = vrot.slane %v19133_v0, 4  ;;  %v8046_v43 = vrot.slane %v19133_v0, 3  ;;  %v8130_v59 = vrot.slane %v19133_v0, 5  ;;  %v19145_v44 = vadd.f32 %v7934_v5, %v7928_v6 }
 0xad1   :  { %v7964_v54 = vrot.slane %v19139_v47, 4  ;;  %v8048_v55 = vrot.slane %v19139_v47, 3  ;;  %v19149_v46 = vadd.f32 %v7936_v42, %v7929_v2  ;;  %v8132_v18 = vrot.slane %v19139_v47, 5 }
 0xad2   :  { %v7963_v57 = vsel %vm4409_vm11, %v7961_v26, %v7962_v39  ;;  %v8047_v7 = vsel %vm3111_vm7, %v8045_v56, %v8046_v43  ;;  %v8131_v49 = vsel %vm5241_vm12, %v8129_v53, %v8130_v59  ;;  %v8218_v51 = vrot.slane %v19145_v44, 4 }
 0xad3   :  { %14419 = vmatprep.mubr.msk.f32.mxu0 %vm1337_vm3, %v7963_v57  ;;  %14430 = vmatprep.mubr.msk.f32.mxu1 %vm1337_vm3, %v8047_v7  ;;  %v7965_v19 = vsel %vm4409_vm11, %v7962_v39, %v7964_v54  ;;  %v8049_v13 = vsel %vm3111_vm7, %v8046_v43, %v8048_v55  ;;  %v8219_v20 = vrot.slane %v19149_v46, 4  ;;  %v8133_v50 = vsel %vm5241_vm12, %v8130_v59, %v8132_v18 }
 0xad4   :  { %14420 = vmatmul.mubr.msk.f32.vlgmr.msra.gmra.mxu0 %vm1337_vm3, %v7965_v19  ;;  %14431 = vmatmul.mubr.msk.f32.vlgmr.msra.gmra.mxu1 %vm1337_vm3, %v8049_v13  ;;  %v8221_v45 = vrot.slane %v19131_v37, 4  ;;  %v8302_v40 = vrot.slane %v19145_v44, 3  ;;  %v8303_v12 = vrot.slane %v19149_v46, 3  ;;  %v8386_v62 = vrot.slane %v19145_v44, 5 }
 0xad5   :  { %14434 = vmatpush3.msra.mxu0 %v19076_v11  ;;  %14445 = vmatpush3.msra.mxu1 %v19040_v31  ;;  %v8220_v17 = vsel %vm4409_vm11, %v8218_v51, %v8219_v20  ;;  %v8387_v63 = vrot.slane %v19149_v46, 5  ;;  %v8305_v22 = vrot.slane %v19131_v37, 3  ;;  %v8389_v25 = vrot.slane %v19131_v37, 5 }
 0xad6   :  { %14435 = vmatprep.subr.mxu0 %v7955_v58  ;;  %14441 = vmatprep.mubr.msk.f32.mxu0 %vm1337_vm3, %v8131_v49  ;;  %v8222_v35 = vsel %vm4409_vm11, %v8219_v20, %v8221_v45  ;;  %v8304_v61 = vsel %vm3111_vm7, %v8302_v40, %v8303_v12 }
 0xad7   :  { %14446 = vmatprep.subr.mxu1 %v19046_v1  ;;  %14452 = vmatprep.mubr.msk.f32.mxu1 %vm1337_vm3, %v8220_v17  ;;  %v8388_v31 = vsel %vm5241_vm12, %v8386_v62, %v8387_v63  ;;  %v8306_v48 = vsel %vm3111_vm7, %v8303_v12, %v8305_v22  ;;  %v8390_v10 = vsel %vm5241_vm12, %v8387_v63, %v8389_v25 }
 0xad8   :  { %14436 = vmatpush3.msra.mxu0 %v7955_v58  ;;  %14447 = vmatpush3.msra.mxu1 %v19046_v1  ;;  %v19210_v1 = vld [vmem:[%s20070_s17 + $0x18] sm:$0xff] }
 0xad9   :  { %14437 = vmatprep.subr.mxu0 %v7954_v29  ;;  %14448 = vmatprep.subr.mxu1 %v19056_v15 }
 0xada   :  { %14438 = vmatpush3.msra.mxu0 %v7954_v29  ;;  %14449 = vmatpush3.msra.mxu1 %v19056_v15  ;;  %v19218_v15 = vld [vmem:[%s20070_s17 + $0x10] sm:$0xff] }
 0xadb   :  { %14439 = vmatprep.subr.mxu0 %v7953_v28  ;;  %14450 = vmatprep.subr.mxu1 %v19066_v8 }
 0xadc   :  { %14440 = vmatpush3.msra.mxu0 %v7953_v28  ;;  %14451 = vmatpush3.msra.mxu1 %v19066_v8  ;;  %v19226_v8 = vld [vmem:[%s20070_s17 + $0x8] sm:$0xff] }
 0xadd   :  { %14442 = vmatmul.mubr.msk.f32.vlgmr.msra.gmra.mxu0 %vm1337_vm3, %v8133_v50  ;;  %14453 = vmatmul.mubr.msk.f32.vlgmr.msra.gmra.mxu1 %vm1337_vm3, %v8222_v35 }
 0xade   :  { %14455 = vmatprep.subr.mxu0 %v19043_v60  ;;  %14466 = vmatprep.subr.mxu1 %v19076_v11 }
 0xadf   :  { %14456 = vmatpush3.msra.mxu0 %v19043_v60  ;;  %14463 = vmatprep.mubr.msk.f32.mxu0 %vm1337_vm3, %v8304_v61  ;;  %v19207_v60 = vld [vmem:[%s20070_s17 + $0x38] sm:$0xff] }
 0xae0   :  { %14467 = vmatpush3.msra.mxu1 %v19076_v11  ;;  %14474 = vmatprep.mubr.msk.f32.mxu1 %vm1337_vm3, %v8388_v31  ;;  %v19236_v11 = vld [vmem:[%s20070_s17] sm:$0xff] }
 0xae1   :  { %14457 = vmatprep.subr.mxu0 %v19051_v34  ;;  %14468 = vmatprep.subr.mxu1 %v7955_v58 }
 0xae2   :  { %14458 = vmatpush3.msra.mxu0 %v19051_v34  ;;  %14469 = vmatpush3.msra.mxu1 %v7955_v58  ;;  %v19213_v34 = vld [vmem:[%s20070_s17 + $0x30] sm:$0xff] }
 0xae3   :  { %14459 = vmatprep.subr.mxu0 %v19059_v23  ;;  %14470 = vmatprep.subr.mxu1 %v7954_v29 }
 0xae4   :  { %14460 = vmatpush3.msra.mxu0 %v19059_v23  ;;  %14471 = vmatpush3.msra.mxu1 %v7954_v29  ;;  %v19223_v23 = vld [vmem:[%s20070_s17 + $0x28] sm:$0xff] }
 0xae5   :  { %14461 = vmatprep.subr.mxu0 %v19069_v30  ;;  %14472 = vmatprep.subr.mxu1 %v7953_v28 }
 0xae6   :  { %14462 = vmatpush3.msra.mxu0 %v19069_v30  ;;  %14473 = vmatpush3.msra.mxu1 %v7953_v28  ;;  %v19233_v30 = vld [vmem:[%s20070_s17 + $0x20] sm:$0xff] }
 0xae7   :  { %14464 = vmatmul.mubr.msk.f32.vlgmr.msra.gmra.mxu0 %vm1337_vm3, %v8306_v48  ;;  %14475 = vmatmul.mubr.msk.f32.vlgmr.msra.gmra.mxu1 %vm1337_vm3, %v8390_v10 }
 0xae8   :  { %14477 = vmatprep.subr.mxu0 %v19207_v60  ;;  %14488 = vmatprep.subr.mxu1 %v19210_v1 }
 0xae9   :  { %14478 = vmatpush3.msra.mxu0 %v19207_v60  ;;  %14489 = vmatpush3.msra.mxu1 %v19210_v1 }
 0xaea   :  { %14479 = vmatprep.subr.mxu0 %v19213_v34  ;;  %14490 = vmatprep.subr.mxu1 %v19218_v15 }
 0xaeb   :  { %14480 = vmatpush3.msra.mxu0 %v19213_v34  ;;  %14491 = vmatpush3.msra.mxu1 %v19218_v15 }
 0xaec   :  { %14481 = vmatprep.subr.mxu0 %v19223_v23  ;;  %14492 = vmatprep.subr.mxu1 %v19226_v8 }
 0xaed   :  { %14482 = vmatpush3.msra.mxu0 %v19223_v23  ;;  %14493 = vmatpush3.msra.mxu1 %v19226_v8 }
 0xaee   :  { %14483 = vmatprep.subr.mxu0 %v19233_v30  ;;  %14494 = vmatprep.subr.mxu1 %v19236_v11 }
 0xaef   :  { %14484 = vmatpush3.msra.mxu0 %v19233_v30  ;;  %14495 = vmatpush3.msra.mxu1 %v19236_v11 }
 0xaf0   :  { %14499 = vmatprep.subr.mxu0 %v19243_v41  ;;  %14510 = vmatprep.subr.mxu1 %v19207_v60 }
 0xb94   :  { %v14421_v52 = vpop.f32.mrf.mxu0  ;;  %v14432_v16 = vpop.f32.mrf.mxu1 }
 0xb95   :  { %v8126_v36 = vadd.f32 %v14432_v16, %v14421_v52 }
 0xb96   :  { %v8036_v24 = vpop.f32.mrf.mxu0  ;;  %v8120_v32 = vpop.f32.mrf.mxu1 }
 0xb97   :  { %v8121_v33 = vadd.f32 %v8120_v32, %v8036_v24 }
 0xb9d   :  { %v14443_v21 = vpop.f32.mrf.mxu0  ;;  %v14454_v2 = vpop.f32.mrf.mxu1 }
 0xb9e   :  { %v8214_v6 = vadd.f32 %v14443_v21, %v8126_v36 }
 0xb9f   :  { %v8204_v5 = vpop.f32.mrf.mxu0  ;;  %v8293_v53 = vpop.f32.mrf.mxu1 }
 0xba0   :  { %v8479_v38 = vadd.f32 %v12624_v4, %v8214_v6  ;;  %v8213_v27 = vadd.f32 %v8204_v5, %v8121_v33 }
 0xba2   :  { %v19252_v3 = vmax.f32 %v8479_v38, 0.0  ;;  %v8478_v42 = vadd.f32 %v12624_v4, %v8213_v27 }
 0xba4   :  { %v8496_v26 = vmul.f32 %v19252_v3, %v19252_v3  ;;  %v19256_v56 = vmax.f32 %v8478_v42, 0.0  ;;  %v8487_v39 = vsel %vm1337_vm3, %v19252_v3, 0.0 }
 0xba6   :  { %v8486_v43 = vsel %vm1337_vm3, %v19256_v56, 0.0  ;;  %v8495_v59 = vmul.f32 %v19256_v56, %v19256_v56  ;;  %v8498_v57 = vsel %vm1337_vm3, %v8496_v26, 0.0 }
 0xba7   :  { %v8488_v54 = vadd.f32 %v8487_v39, %v8486_v43  ;;  %v14465_v55 = vpop.f32.mrf.mxu0  ;;  %v14476_v18 = vpop.f32.mrf.mxu1 }
 0xba8   :  { %v8497_v7 = vsel %vm1337_vm3, %v8495_v59, 0.0  ;;  %v8383_v49 = vadd.f32 %v14465_v55, %v14454_v2 }
 0xba9   :  { %v8499_v51 = vadd.f32 %v8498_v57, %v8497_v7  ;;  %v8377_v19 = vpop.f32.mrf.mxu0  ;;  %v8489_v20 = vrot.slane %v8488_v54, 4  ;;  %v8461_v50 = vpop.f32.mrf.mxu1 }
 0xbaa   :  { %v8471_v13 = vadd.f32 %v14476_v18, %v8383_v49  ;;  %v8378_v58 = vadd.f32 %v8377_v19, %v8293_v53 }
 0xbab   :  { %v8500_v12 = vrot.slane %v8499_v51, 4  ;;  %v8490_v63 = vadd.f32 %v8489_v20, %v8488_v54 }
 0xbac   :  { %v8483_v45 = vadd.f32 %v12624_v4, %v8471_v13  ;;  %v8470_v40 = vadd.f32 %v8461_v50, %v8378_v58 }
 0xbad   :  { %v8501_v29 = vadd.f32 %v8500_v12, %v8499_v51  ;;  %v8491_v48 = vrot.slane %v8490_v63, 2 }
 0xbae   :  { %v8485_v62 = vmax.f32 %v8483_v45, 0.0  ;;  %v8482_v17 = vadd.f32 %v12624_v4, %v8470_v40 }
 0xbaf   :  { %v8502_v16 = vrot.slane %v8501_v29, 2  ;;  %v8492_v36 = vadd.f32 %v8491_v48, %v8490_v63 }
 0xbb0   :  { %v8517_v22 = vmul.f32 %v8485_v62, %v8485_v62  ;;  %v8484_v25 = vmax.f32 %v8482_v17, 0.0  ;;  %v8507_v35 = vsel %vm1337_vm3, %v8485_v62, 0.0 }
 0xbb1   :  { %v8503_v33 = vadd.f32 %v8502_v16, %v8501_v29  ;;  %v8493_v38 = vrot.slane %v8492_v36, 1  ;;  %v8556_v29 = vmul.f32 0.66, %v19145_v44 }
 0xbb2   :  { %v8506_v61 = vsel %vm1337_vm3, %v8484_v25, 0.0  ;;  %v8516_v31 = vmul.f32 %v8484_v25, %v8484_v25  ;;  %v8519_v28 = vsel %vm1337_vm3, %v8517_v22, 0.0 }
 0xbb3   :  { %v8508_v10 = vadd.f32 %v8507_v35, %v8506_v61  ;;  %v8504_v42 = vrot.slane %v8503_v33, 1  ;;  %v8494_v39 = vadd.f32 %v8493_v38, %v8492_v36  ;;  %v8557_v35 = vmul.f32 0.66, %v19149_v46 }
 0xbb4   :  { %v8518_v52 = vsel %vm1337_vm3, %v8516_v31, 0.0  ;;  %v8542_v61 = vmul.f32 0.66, %v19128_v14 }
 0xbb5   :  { %v8509_v24 = vrot.slane %v8508_v10, 4  ;;  %v8520_v32 = vadd.f32 %v8519_v28, %v8518_v52  ;;  %v8505_v54 = vadd.f32 %v8504_v42, %v8503_v33 }
 0xbb7   :  { %v8510_v4 = vadd.f32 %v8509_v24, %v8508_v10  ;;  %v8521_v21 = vrot.slane %v8520_v32, 4 }
 0xbb9   :  { %v8511_v6 = vrot.slane %v8510_v4, 2  ;;  %v8522_v5 = vadd.f32 %v8521_v21, %v8520_v32 }
 0xbbb   :  { %v8512_v27 = vadd.f32 %v8511_v6, %v8510_v4  ;;  %v8523_v2 = vrot.slane %v8522_v5, 2 }
 0xbbd   :  { %v8513_v26 = vrot.slane %v8512_v27, 1  ;;  %v8524_v53 = vadd.f32 %v8523_v2, %v8522_v5 }
 0xbbf   :  { %v8514_v43 = vadd.f32 %v8513_v26, %v8512_v27  ;;  %v8525_v59 = vrot.slane %v8524_v53, 1 }
 0xbc1   :  { %v8515_v55 = vadd.f32 %v8514_v43, %v8494_v39  ;;  %v8526_v18 = vadd.f32 %v8525_v59, %v8524_v53  ;;  %v8580_v43 = vld [vmem:[%s20070_s17 + $0x50] sm:$0xff] }
 0xbc3   :  { %v8527_v57 = vadd.f32 %v8526_v18, %v8505_v54  ;;  %v8528_v7 = vmul.f32 0.03125, %v8515_v55 }
 0xbc5   :  { %v8529_v49 = vmul.f32 0.03125, %v8527_v57  ;;  %v8530_v51 = vmul.f32 %v8528_v7, %v8528_v7  ;;  %v8538_v58 = vsub.f32 %v8484_v25, %v8528_v7  ;;  %v8539_v20 = vsub.f32 %v8485_v62, %v8528_v7 }
 0xbc6   :  { %v8534_v50 = vsub.f32 %v19256_v56, %v8528_v7  ;;  %v8535_v45 = vsub.f32 %v19252_v3, %v8528_v7  ;;  %v8543_v62 = vmul.f32 0.66, %v19133_v0  ;;  %v8544_v56 = vmul.f32 0.66, %v19139_v47 }
 0xbc7   :  { %v8531_v19 = vsub.f32 %v8529_v49, %v8530_v51  ;;  %v8558_v3 = vmul.f32 0.66, %v19131_v37 }
 0xbc9   :  { %v8532_v13 = vadd.f32 1e-05, %v8531_v19 }
 0xbcb   :  { %14926 = vrsqrt.f32 %v8532_v13 }
 0xbd8   :  { %v14927_v40 = vpop.eup %14926 }
 0xbd9   :  { %v8540_v12 = vmul.f32 %v14927_v40, %v8538_v58  ;;  %v8541_v17 = vmul.f32 %v14927_v40, %v8539_v20  ;;  %v8536_v63 = vmul.f32 %v14927_v40, %v8534_v50  ;;  %v8537_v22 = vmul.f32 %v14927_v40, %v8535_v45  ;;  %v8579_v58 = vld [vmem:[%s20070_s17 + $0x48] sm:$0xff]  ;;  %v8578_v40 = vld [vmem:[%s20070_s17 + $0x40] sm:$0xff] }
 0xbdb   :  { %v8561_v31 = vrot.slane %v8540_v12, 4  ;;  %v8562_v48 = vrot.slane %v8541_v17, 4  ;;  %v8547_v10 = vrot.slane %v8536_v63, 4  ;;  %v8548_v25 = vrot.slane %v8537_v22, 4  ;;  %v19392_v12 = vld [vmem:[%s20072_s25 + $0x58] sm:$0xff] }
 0xbdd   :  { %v8563_v28 = vsel %vm4409_vm11, %v8561_v31, %v8562_v48  ;;  %v19279_v52 = vadd.f32 %v8561_v31, %v8556_v29  ;;  %v8549_v44 = vsel %vm4409_vm11, %v8547_v10, %v8548_v25  ;;  %v19282_v16 = vadd.f32 %v8547_v10, %v8542_v61  ;;  %v12637_v61 = vld [vmem:[%s20073_s29] ss:$0 sm:$0xff] }
 0xbde   :  { %v19284_v46 = vadd.f32 %v8563_v28, %v8557_v35  ;;  %v19286_v14 = vadd.f32 %v8549_v44, %v8543_v62  ;;  %v19288_v24 = vadd.f32 %v8548_v25, %v8544_v56  ;;  %v19290_v32 = vadd.f32 %v8562_v48, %v8558_v3 }
 0xbdf   :  { %v8586_v0 = vrot.slane %v19282_v16, 5  ;;  %v8670_v37 = vrot.slane %v19282_v16, 4  ;;  %v8754_v47 = vrot.slane %v19282_v16, 6  ;;  %v8843_v36 = vrot.slane %v19279_v52, 5 }
 0xbe0   :  { %v8587_v4 = vrot.slane %v19286_v14, 5  ;;  %v8671_v21 = vrot.slane %v19286_v14, 4  ;;  %v8589_v33 = vrot.slane %v19288_v24, 5  ;;  %v8673_v6 = vrot.slane %v19288_v24, 4 }
 0xbe1   :  { %v8755_v5 = vrot.slane %v19286_v14, 6  ;;  %v8844_v38 = vrot.slane %v19284_v46, 5  ;;  %v8757_v27 = vrot.slane %v19288_v24, 6  ;;  %v8846_v2 = vrot.slane %v19290_v32, 5 }
 0xbe2   :  { %v8588_v42 = vsel %vm5241_vm12, %v8586_v0, %v8587_v4  ;;  %v8672_v26 = vsel %vm4409_vm11, %v8670_v37, %v8671_v21  ;;  %v8590_v53 = vsel %vm5241_vm12, %v8587_v4, %v8589_v33  ;;  %v8674_v39 = vsel %vm4409_vm11, %v8671_v21, %v8673_v6 }
 0xbe3   :  { %14485 = vmatprep.mubr.msk.f32.mxu0 %vm1337_vm3, %v8588_v42  ;;  %14496 = vmatprep.mubr.msk.f32.mxu1 %vm1337_vm3, %v8672_v26  ;;  %v8756_v59 = vsel %vm3993_vm10, %v8754_v47, %v8755_v5  ;;  %v8845_v54 = vsel %vm5241_vm12, %v8843_v36, %v8844_v38  ;;  %v8758_v55 = vsel %vm3993_vm10, %v8755_v5, %v8757_v27  ;;  %v8927_v18 = vrot.slane %v19279_v52, 4 }
 0xbe4   :  { %14486 = vmatmul.mubr.msk.f32.vlgmr.msra.gmra.mxu0 %vm1337_vm3, %v8590_v53  ;;  %14497 = vmatmul.mubr.msk.f32.vlgmr.msra.gmra.mxu1 %vm1337_vm3, %v8674_v39  ;;  %v8847_v57 = vsel %vm5241_vm12, %v8844_v38, %v8846_v2  ;;  %v8928_v7 = vrot.slane %v19284_v46, 4  ;;  %v9011_v49 = vrot.slane %v19279_v52, 6  ;;  %v9012_v51 = vrot.slane %v19284_v46, 6 }
 0xbe5   :  { %14500 = vmatpush3.msra.mxu0 %v19243_v41  ;;  %14511 = vmatpush3.msra.mxu1 %v19207_v60  ;;  %v8930_v19 = vrot.slane %v19290_v32, 4  ;;  %v9014_v13 = vrot.slane %v19290_v32, 6 }
 0xbe6   :  { %14501 = vmatprep.subr.mxu0 %v8580_v43  ;;  %14507 = vmatprep.mubr.msk.f32.mxu0 %vm1337_vm3, %v8756_v59  ;;  %v8929_v20 = vsel %vm4409_vm11, %v8927_v18, %v8928_v7  ;;  %v9013_v50 = vsel %vm3993_vm10, %v9011_v49, %v9012_v51 }
 0xbe7   :  { %14512 = vmatprep.subr.mxu1 %v19213_v34  ;;  %14518 = vmatprep.mubr.msk.f32.mxu1 %vm1337_vm3, %v8845_v54  ;;  %v8931_v45 = vsel %vm4409_vm11, %v8928_v7, %v8930_v19  ;;  %v9015_v60 = vsel %vm3993_vm10, %v9012_v51, %v9014_v13 }
 0xbe8   :  { %14502 = vmatpush3.msra.mxu0 %v8580_v43  ;;  %14513 = vmatpush3.msra.mxu1 %v19213_v34  ;;  %v19359_v34 = vld [vmem:[%s20072_s25 + $0x18] sm:$0xff] }
 0xbe9   :  { %14503 = vmatprep.subr.mxu0 %v8579_v58  ;;  %14514 = vmatprep.subr.mxu1 %v19223_v23 }
 0xbea   :  { %14504 = vmatpush3.msra.mxu0 %v8579_v58  ;;  %14515 = vmatpush3.msra.mxu1 %v19223_v23  ;;  %v19367_v23 = vld [vmem:[%s20072_s25 + $0x10] sm:$0xff] }
 0xbeb   :  { %14505 = vmatprep.subr.mxu0 %v8578_v40  ;;  %14516 = vmatprep.subr.mxu1 %v19233_v30 }
 0xbec   :  { %14506 = vmatpush3.msra.mxu0 %v8578_v40  ;;  %14517 = vmatpush3.msra.mxu1 %v19233_v30  ;;  %v19375_v30 = vld [vmem:[%s20072_s25 + $0x8] sm:$0xff] }
 0xbed   :  { %14508 = vmatmul.mubr.msk.f32.vlgmr.msra.gmra.mxu0 %vm1337_vm3, %v8758_v55  ;;  %14519 = vmatmul.mubr.msk.f32.vlgmr.msra.gmra.mxu1 %vm1337_vm3, %v8847_v57 }
 0xbee   :  { %14521 = vmatprep.subr.mxu0 %v19210_v1  ;;  %14532 = vmatprep.subr.mxu1 %v19243_v41 }
 0xbef   :  { %14522 = vmatpush3.msra.mxu0 %v19210_v1  ;;  %14529 = vmatprep.mubr.msk.f32.mxu0 %vm1337_vm3, %v8929_v20  ;;  %v19356_v1 = vld [vmem:[%s20072_s25 + $0x38] sm:$0xff] }
 0xbf0   :  { %14533 = vmatpush3.msra.mxu1 %v19243_v41  ;;  %14540 = vmatprep.mubr.msk.f32.mxu1 %vm1337_vm3, %v9013_v50  ;;  %v19385_v41 = vld [vmem:[%s20072_s25] sm:$0xff] }
 0xbf1   :  { %14523 = vmatprep.subr.mxu0 %v19218_v15  ;;  %14534 = vmatprep.subr.mxu1 %v8580_v43 }
 0xbf2   :  { %14524 = vmatpush3.msra.mxu0 %v19218_v15  ;;  %14535 = vmatpush3.msra.mxu1 %v8580_v43  ;;  %v19362_v15 = vld [vmem:[%s20072_s25 + $0x30] sm:$0xff] }
 0xbf3   :  { %14525 = vmatprep.subr.mxu0 %v19226_v8  ;;  %14536 = vmatprep.subr.mxu1 %v8579_v58 }
 0xbf4   :  { %14526 = vmatpush3.msra.mxu0 %v19226_v8  ;;  %14537 = vmatpush3.msra.mxu1 %v8579_v58  ;;  %v19372_v8 = vld [vmem:[%s20072_s25 + $0x28] sm:$0xff] }
 0xbf5   :  { %14527 = vmatprep.subr.mxu0 %v19236_v11  ;;  %14538 = vmatprep.subr.mxu1 %v8578_v40 }
 0xbf6   :  { %14528 = vmatpush3.msra.mxu0 %v19236_v11  ;;  %14539 = vmatpush3.msra.mxu1 %v8578_v40  ;;  %v19382_v11 = vld [vmem:[%s20072_s25 + $0x20] sm:$0xff] }
 0xbf7   :  { %14530 = vmatmul.mubr.msk.f32.vlgmr.msra.gmra.mxu0 %vm1337_vm3, %v8931_v45  ;;  %14541 = vmatmul.mubr.msk.f32.vlgmr.msra.gmra.mxu1 %vm1337_vm3, %v9015_v60 }
 0xbf8   :  { %14543 = vmatprep.subr.mxu0 %v19356_v1  ;;  %14554 = vmatprep.subr.mxu1 %v19359_v34 }
 0xbf9   :  { %14544 = vmatpush3.msra.mxu0 %v19356_v1  ;;  %14555 = vmatpush3.msra.mxu1 %v19359_v34 }
 0xbfa   :  { %14545 = vmatprep.subr.mxu0 %v19362_v15  ;;  %14556 = vmatprep.subr.mxu1 %v19367_v23 }
 0xbfb   :  { %14546 = vmatpush3.msra.mxu0 %v19362_v15  ;;  %14557 = vmatpush3.msra.mxu1 %v19367_v23 }
 0xbfc   :  { %14547 = vmatprep.subr.mxu0 %v19372_v8  ;;  %14558 = vmatprep.subr.mxu1 %v19375_v30 }
 0xbfd   :  { %14548 = vmatpush3.msra.mxu0 %v19372_v8  ;;  %14559 = vmatpush3.msra.mxu1 %v19375_v30 }
 0xbfe   :  { %14549 = vmatprep.subr.mxu0 %v19382_v11  ;;  %14560 = vmatprep.subr.mxu1 %v19385_v41 }
 0xbff   :  { %14550 = vmatpush3.msra.mxu0 %v19382_v11  ;;  %14561 = vmatpush3.msra.mxu1 %v19385_v41 }
 0xc00   :  { %14565 = vmatprep.subr.mxu0 %v19392_v12  ;;  %14576 = vmatprep.subr.mxu1 %v19356_v1 }
 0xca4   :  { %v14487_v17 = vpop.f32.mrf.mxu0  ;;  %v14498_v63 = vpop.f32.mrf.mxu1 }
 0xca5   :  { %v8751_v35 = vadd.f32 %v14498_v63, %v14487_v17 }
 0xca6   :  { %v8661_v22 = vpop.f32.mrf.mxu0  ;;  %v8745_v29 = vpop.f32.mrf.mxu1 }
 0xca7   :  { %v8746_v48 = vadd.f32 %v8745_v29, %v8661_v22 }
 0xcad   :  { %v14509_v31 = vpop.f32.mrf.mxu0  ;;  %v14520_v3 = vpop.f32.mrf.mxu1 }
 0xcae   :  { %v8839_v10 = vadd.f32 %v14509_v31, %v8751_v35 }
 0xcaf   :  { %v8829_v25 = vpop.f32.mrf.mxu0  ;;  %v8918_v47 = vpop.f32.mrf.mxu1 }
 0xcb0   :  { %v9104_v62 = vadd.f32 %v12637_v61, %v8839_v10  ;;  %v8838_v56 = vadd.f32 %v8829_v25, %v8746_v48 }
 0xcb2   :  { %v19401_v28 = vmax.f32 %v9104_v62, 0.0  ;;  %v9103_v44 = vadd.f32 %v12637_v61, %v8838_v56 }
 0xcb4   :  { %v9121_v0 = vmul.f32 %v19401_v28, %v19401_v28  ;;  %v19405_v37 = vmax.f32 %v9103_v44, 0.0  ;;  %v9112_v36 = vsel %vm1355_vm4, %v19401_v28, 0.0 }
 0xcb6   :  { %v9111_v4 = vsel %vm1337_vm3, %v19405_v37, 0.0  ;;  %v9120_v21 = vmul.f32 %v19405_v37, %v19405_v37  ;;  %v9123_v38 = vsel %vm1355_vm4, %v9121_v0, 0.0 }
 0xcb7   :  { %v9113_v33 = vadd.f32 %v9112_v36, %v9111_v4  ;;  %v14531_v6 = vpop.f32.mrf.mxu0  ;;  %v14542_v5 = vpop.f32.mrf.mxu1 }
 0xcb8   :  { %v9122_v27 = vsel %vm1337_vm3, %v9120_v21, 0.0  ;;  %v9008_v2 = vadd.f32 %v14531_v6, %v14520_v3 }
 0xcb9   :  { %v9124_v42 = vadd.f32 %v9123_v38, %v9122_v27  ;;  %v9002_v26 = vpop.f32.mrf.mxu0  ;;  %v9114_v43 = vrot.slane %v9113_v33, 4  ;;  %v9086_v59 = vpop.f32.mrf.mxu1 }
 0xcba   :  { %v9096_v53 = vadd.f32 %v14542_v5, %v9008_v2  ;;  %v9003_v39 = vadd.f32 %v9002_v26, %v8918_v47 }
 0xcbb   :  { %v9125_v18 = vrot.slane %v9124_v42, 4  ;;  %v9115_v49 = vadd.f32 %v9114_v43, %v9113_v33 }
 0xcbc   :  { %v9108_v54 = vadd.f32 %v12637_v61, %v9096_v53  ;;  %v9095_v55 = vadd.f32 %v9086_v59, %v9003_v39 }
 0xcbd   :  { %v9126_v13 = vadd.f32 %v9125_v18, %v9124_v42  ;;  %v9116_v45 = vrot.slane %v9115_v49, 2 }
 0xcbe   :  { %v9110_v57 = vmax.f32 %v9108_v54, 0.0  ;;  %v9107_v7 = vadd.f32 %v12637_v61, %v9095_v55 }
 0xcbf   :  { %v9127_v63 = vrot.slane %v9126_v13, 2  ;;  %v9117_v35 = vadd.f32 %v9116_v45, %v9115_v49 }
 0xcc0   :  { %v9142_v51 = vmul.f32 %v9110_v57, %v9110_v57  ;;  %v9109_v19 = vmax.f32 %v9107_v7, 0.0  ;;  %v9132_v58 = vsel %vm1355_vm4, %v9110_v57, 0.0 }
 0xcc1   :  { %v9128_v48 = vadd.f32 %v9127_v63, %v9126_v13  ;;  %v9118_v62 = vrot.slane %v9117_v35, 1  ;;  %v9181_v13 = vmul.f32 0.66, %v19279_v52 }
 0xcc2   :  { %v9131_v20 = vsel %vm1337_vm3, %v9109_v19, 0.0  ;;  %v9141_v50 = vmul.f32 %v9109_v19, %v9109_v19  ;;  %v9144_v40 = vsel %vm1355_vm4, %v9142_v51, 0.0 }
 0xcc3   :  { %v9133_v60 = vadd.f32 %v9132_v58, %v9131_v20  ;;  %v9129_v44 = vrot.slane %v9128_v48, 1  ;;  %v9119_v36 = vadd.f32 %v9118_v62, %v9117_v35  ;;  %v9182_v58 = vmul.f32 0.66, %v19284_v46 }
 0xcc4   :  { %v9143_v17 = vsel %vm1337_vm3, %v9141_v50, 0.0  ;;  %v9167_v20 = vmul.f32 0.66, %v19282_v16 }
 0xcc5   :  { %v9134_v22 = vrot.slane %v9133_v60, 4  ;;  %v9145_v29 = vadd.f32 %v9144_v40, %v9143_v17  ;;  %v9130_v33 = vadd.f32 %v9129_v44, %v9128_v48 }
 0xcc7   :  { %v9135_v61 = vadd.f32 %v9134_v22, %v9133_v60  ;;  %v9146_v31 = vrot.slane %v9145_v29, 4 }
 0xcc9   :  { %v9136_v10 = vrot.slane %v9135_v61, 2  ;;  %v9147_v25 = vadd.f32 %v9146_v31, %v9145_v29 }
 0xccb   :  { %v9137_v56 = vadd.f32 %v9136_v10, %v9135_v61  ;;  %v9148_v3 = vrot.slane %v9147_v25, 2 }
 0xccd   :  { %v9138_v0 = vrot.slane %v9137_v56, 1  ;;  %v9149_v47 = vadd.f32 %v9148_v3, %v9147_v25 }
 0xccf   :  { %v9139_v4 = vadd.f32 %v9138_v0, %v9137_v56  ;;  %v9150_v21 = vrot.slane %v9149_v47, 1 }
 0xcd1   :  { %v9140_v6 = vadd.f32 %v9139_v4, %v9119_v36  ;;  %v9151_v5 = vadd.f32 %v9150_v21, %v9149_v47  ;;  %v9205_v4 = vld [vmem:[%s20072_s25 + $0x50] sm:$0xff] }
 0xcd3   :  { %v9152_v38 = vadd.f32 %v9151_v5, %v9130_v33  ;;  %v9153_v27 = vmul.f32 0.035714287, %v9140_v6 }
 0xcd5   :  { %v9154_v2 = vmul.f32 0.035714287, %v9152_v38  ;;  %v9155_v42 = vmul.f32 %v9153_v27, %v9153_v27  ;;  %v9163_v39 = vsub.f32 %v9109_v19, %v9153_v27  ;;  %v9164_v43 = vsub.f32 %v9110_v57, %v9153_v27 }
 0xcd6   :  { %v9159_v59 = vsub.f32 %v19405_v37, %v9153_v27  ;;  %v9160_v54 = vsub.f32 %v19401_v28, %v9153_v27  ;;  %v9168_v57 = vmul.f32 0.66, %v19286_v14  ;;  %v9169_v37 = vmul.f32 0.66, %v19288_v24 }
 0xcd7   :  { %v9156_v26 = vsub.f32 %v9154_v2, %v9155_v42  ;;  %v9183_v28 = vmul.f32 0.66, %v19290_v32 }
 0xcd9   :  { %v9157_v53 = vadd.f32 1e-05, %v9156_v26 }
 0xcdb   :  { %14928 = vrsqrt.f32 %v9157_v53 }
 0xce8   :  { %v14929_v55 = vpop.eup %14928 }
 0xce9   :  { %v9165_v18 = vmul.f32 %v14929_v55, %v9163_v39  ;;  %v9166_v7 = vmul.f32 %v14929_v55, %v9164_v43  ;;  %v9161_v49 = vmul.f32 %v14929_v55, %v9159_v59  ;;  %v9162_v51 = vmul.f32 %v14929_v55, %v9160_v54  ;;  %v9204_v39 = vld [vmem:[%s20072_s25 + $0x48] sm:$0xff]  ;;  %v9203_v55 = vld [vmem:[%s20072_s25 + $0x40] sm:$0xff] }
 0xceb   :  { %v9186_v50 = vrot.slane %v9165_v18, 3  ;;  %v9187_v45 = vrot.slane %v9166_v7, 3  ;;  %v9172_v60 = vrot.slane %v9161_v49, 3  ;;  %v9173_v19 = vrot.slane %v9162_v51, 3  ;;  %v19541_v18 = vld [vmem:[%s20074_s3 + $0x58] sm:$0xff] }
 0xced   :  { %v9188_v40 = vsel %vm3111_vm7, %v9186_v50, %v9187_v45  ;;  %v19428_v17 = vadd.f32 %v9186_v50, %v9181_v13  ;;  %v9174_v52 = vsel %vm3111_vm7, %v9172_v60, %v9173_v19  ;;  %v19431_v63 = vadd.f32 %v9172_v60, %v9167_v20  ;;  %v12650_v20 = vld [vmem:[%s20075_s8] ss:$0 sm:$0xff] }
 0xcee   :  { %v19433_v46 = vadd.f32 %v9188_v40, %v9182_v58  ;;  %v19435_v16 = vadd.f32 %v9174_v52, %v9168_v57  ;;  %v19437_v22 = vadd.f32 %v9173_v19, %v9169_v37  ;;  %v19439_v29 = vadd.f32 %v9187_v45, %v9183_v28 }
 0xcef   :  { %v9211_v14 = vrot.slane %v19431_v63, 6  ;;  %v9295_v24 = vrot.slane %v19431_v63, 5  ;;  %v9379_v32 = vrot.slane %v19431_v63, 7  ;;  %v9468_v35 = vrot.slane %v19428_v17, 6 }
 0xcf0   :  { %v9212_v61 = vrot.slane %v19435_v16, 6  ;;  %v9296_v31 = vrot.slane %v19435_v16, 5  ;;  %v9214_v48 = vrot.slane %v19437_v22, 6  ;;  %v9298_v10 = vrot.slane %v19437_v22, 5 }
 0xcf1   :  { %v9380_v25 = vrot.slane %v19435_v16, 7  ;;  %v9469_v62 = vrot.slane %v19433_v46, 6  ;;  %v9382_v56 = vrot.slane %v19437_v22, 7  ;;  %v9471_v3 = vrot.slane %v19439_v29, 6 }
 0xcf2   :  { %v9213_v44 = vsel %vm3993_vm10, %v9211_v14, %v9212_v61  ;;  %v9297_v0 = vsel %vm5241_vm12, %v9295_v24, %v9296_v31  ;;  %v9215_v47 = vsel %vm3993_vm10, %v9212_v61, %v9214_v48  ;;  %v9299_v36 = vsel %vm5241_vm12, %v9296_v31, %v9298_v10 }
 0xcf3   :  { %14551 = vmatprep.mubr.msk.f32.mxu0 %vm1337_vm3, %v9213_v44  ;;  %14562 = vmatprep.mubr.msk.f32.mxu1 %vm1337_vm3, %v9297_v0  ;;  %v9381_v21 = vsel %vm2681_vm6, %v9379_v32, %v9380_v25  ;;  %v9470_v33 = vsel %vm3993_vm10, %v9468_v35, %v9469_v62  ;;  %v9383_v6 = vsel %vm2681_vm6, %v9380_v25, %v9382_v56  ;;  %v9552_v5 = vrot.slane %v19428_v17, 5 }
 0xcf4   :  { %14552 = vmatmul.mubr.msk.f32.vlgmr.msra.gmra.mxu0 %vm1337_vm3, %v9215_v47  ;;  %14563 = vmatmul.mubr.msk.f32.vlgmr.msra.gmra.mxu1 %vm1337_vm3, %v9299_v36  ;;  %v9472_v38 = vsel %vm3993_vm10, %v9469_v62, %v9471_v3  ;;  %v9553_v27 = vrot.slane %v19433_v46, 5  ;;  %v9636_v2 = vrot.slane %v19428_v17, 7  ;;  %v9637_v42 = vrot.slane %v19433_v46, 7 }
 0xcf5   :  { %14566 = vmatpush3.msra.mxu0 %v19392_v12  ;;  %14577 = vmatpush3.msra.mxu1 %v19356_v1  ;;  %v9555_v26 = vrot.slane %v19439_v29, 5  ;;  %v9639_v53 = vrot.slane %v19439_v29, 7 }
 0xcf6   :  { %14567 = vmatprep.subr.mxu0 %v9205_v4  ;;  %14573 = vmatprep.mubr.msk.f32.mxu0 %vm1337_vm3, %v9381_v21  ;;  %v9554_v43 = vsel %vm5241_vm12, %v9552_v5, %v9553_v27  ;;  %v9638_v59 = vsel %vm2681_vm6, %v9636_v2, %v9637_v42 }
 0xcf7   :  { %14578 = vmatprep.subr.mxu1 %v19362_v15  ;;  %14584 = vmatprep.mubr.msk.f32.mxu1 %vm1337_vm3, %v9470_v33  ;;  %v9556_v54 = vsel %vm5241_vm12, %v9553_v27, %v9555_v26  ;;  %v9640_v1 = vsel %vm2681_vm6, %v9637_v42, %v9639_v53 }
 0xcf8   :  { %14568 = vmatpush3.msra.mxu0 %v9205_v4  ;;  %14579 = vmatpush3.msra.mxu1 %v19362_v15  ;;  %v19508_v15 = vld [vmem:[%s20074_s3 + $0x18] sm:$0xff] }
 0xcf9   :  { %14569 = vmatprep.subr.mxu0 %v9204_v39  ;;  %14580 = vmatprep.subr.mxu1 %v19372_v8 }
 0xcfa   :  { %14570 = vmatpush3.msra.mxu0 %v9204_v39  ;;  %14581 = vmatpush3.msra.mxu1 %v19372_v8  ;;  %v19516_v8 = vld [vmem:[%s20074_s3 + $0x10] sm:$0xff] }
 0xcfb   :  { %14571 = vmatprep.subr.mxu0 %v9203_v55  ;;  %14582 = vmatprep.subr.mxu1 %v19382_v11 }
 0xcfc   :  { %14572 = vmatpush3.msra.mxu0 %v9203_v55  ;;  %14583 = vmatpush3.msra.mxu1 %v19382_v11  ;;  %v19524_v11 = vld [vmem:[%s20074_s3 + $0x8] sm:$0xff] }
 0xcfd   :  { %14574 = vmatmul.mubr.msk.f32.vlgmr.msra.gmra.mxu0 %vm1337_vm3, %v9383_v6  ;;  %14585 = vmatmul.mubr.msk.f32.vlgmr.msra.gmra.mxu1 %vm1337_vm3, %v9472_v38 }
 0xcfe   :  { %14587 = vmatprep.subr.mxu0 %v19359_v34  ;;  %14598 = vmatprep.subr.mxu1 %v19392_v12 }
 0xcff   :  { %14588 = vmatpush3.msra.mxu0 %v19359_v34  ;;  %14595 = vmatprep.mubr.msk.f32.mxu0 %vm1337_vm3, %v9554_v43  ;;  %v19505_v34 = vld [vmem:[%s20074_s3 + $0x38] sm:$0xff] }
 0xd00   :  { %14599 = vmatpush3.msra.mxu1 %v19392_v12  ;;  %14606 = vmatprep.mubr.msk.f32.mxu1 %vm1337_vm3, %v9638_v59  ;;  %v19534_v12 = vld [vmem:[%s20074_s3] sm:$0xff] }
 0xd01   :  { %14589 = vmatprep.subr.mxu0 %v19367_v23  ;;  %14600 = vmatprep.subr.mxu1 %v9205_v4 }
 0xd02   :  { %14590 = vmatpush3.msra.mxu0 %v19367_v23  ;;  %14601 = vmatpush3.msra.mxu1 %v9205_v4  ;;  %v19511_v23 = vld [vmem:[%s20074_s3 + $0x30] sm:$0xff] }
 0xd03   :  { %14591 = vmatprep.subr.mxu0 %v19375_v30  ;;  %14602 = vmatprep.subr.mxu1 %v9204_v39 }
 0xd04   :  { %14592 = vmatpush3.msra.mxu0 %v19375_v30  ;;  %14603 = vmatpush3.msra.mxu1 %v9204_v39  ;;  %v19521_v30 = vld [vmem:[%s20074_s3 + $0x28] sm:$0xff] }
 0xd05   :  { %14593 = vmatprep.subr.mxu0 %v19385_v41  ;;  %14604 = vmatprep.subr.mxu1 %v9203_v55 }
 0xd06   :  { %14594 = vmatpush3.msra.mxu0 %v19385_v41  ;;  %14605 = vmatpush3.msra.mxu1 %v9203_v55  ;;  %v19531_v41 = vld [vmem:[%s20074_s3 + $0x20] sm:$0xff] }
 0xd07   :  { %14596 = vmatmul.mubr.msk.f32.vlgmr.msra.gmra.mxu0 %vm1337_vm3, %v9556_v54  ;;  %14607 = vmatmul.mubr.msk.f32.vlgmr.msra.gmra.mxu1 %vm1337_vm3, %v9640_v1 }
 0xd08   :  { %14609 = vmatprep.subr.mxu0 %v19505_v34  ;;  %14620 = vmatprep.subr.mxu1 %v19508_v15 }
 0xd09   :  { %14610 = vmatpush3.msra.mxu0 %v19505_v34  ;;  %14621 = vmatpush3.msra.mxu1 %v19508_v15 }
 0xd0a   :  { %14611 = vmatprep.subr.mxu0 %v19511_v23  ;;  %14622 = vmatprep.subr.mxu1 %v19516_v8 }
 0xd0b   :  { %14612 = vmatpush3.msra.mxu0 %v19511_v23  ;;  %14623 = vmatpush3.msra.mxu1 %v19516_v8 }
 0xd0c   :  { %14613 = vmatprep.subr.mxu0 %v19521_v30  ;;  %14624 = vmatprep.subr.mxu1 %v19524_v11 }
 0xd0d   :  { %14614 = vmatpush3.msra.mxu0 %v19521_v30  ;;  %14625 = vmatpush3.msra.mxu1 %v19524_v11 }
 0xd0e   :  { %14615 = vmatprep.subr.mxu0 %v19531_v41  ;;  %14626 = vmatprep.subr.mxu1 %v19534_v12 }
 0xd0f   :  { %14616 = vmatpush3.msra.mxu0 %v19531_v41  ;;  %14627 = vmatpush3.msra.mxu1 %v19534_v12 }
 0xd10   :  { %14631 = vmatprep.subr.mxu0 %v19541_v18  ;;  %14642 = vmatprep.subr.mxu1 %v19505_v34 }
 0xdb4   :  { %v14553_v7 = vpop.f32.mrf.mxu0  ;;  %v14564_v49 = vpop.f32.mrf.mxu1 }
 0xdb5   :  { %v9376_v58 = vadd.f32 %v14564_v49, %v14553_v7 }
 0xdb6   :  { %v9286_v51 = vpop.f32.mrf.mxu0  ;;  %v9370_v13 = vpop.f32.mrf.mxu1 }
 0xdb7   :  { %v9371_v45 = vadd.f32 %v9370_v13, %v9286_v51 }
 0xdbd   :  { %v14575_v50 = vpop.f32.mrf.mxu0  ;;  %v14586_v28 = vpop.f32.mrf.mxu1 }
 0xdbe   :  { %v9464_v60 = vadd.f32 %v14575_v50, %v9376_v58 }
 0xdbf   :  { %v9454_v19 = vpop.f32.mrf.mxu0  ;;  %v9543_v32 = vpop.f32.mrf.mxu1 }
 0xdc0   :  { %v9729_v57 = vadd.f32 %v12650_v20, %v9464_v60  ;;  %v9463_v37 = vadd.f32 %v9454_v19, %v9371_v45 }
 0xdc2   :  { %v19550_v40 = vmax.f32 %v9729_v57, 0.0  ;;  %v9728_v52 = vadd.f32 %v12650_v20, %v9463_v37 }
 0xdc4   :  { %v9746_v14 = vmul.f32 %v19550_v40, %v19550_v40  ;;  %v19554_v24 = vmax.f32 %v9728_v52, 0.0  ;;  %v9737_v35 = vsel %vm2509_vm5, %v19550_v40, 0.0 }
 0xdc6   :  { %v9736_v61 = vsel %vm1337_vm3, %v19554_v24, 0.0  ;;  %v9745_v31 = vmul.f32 %v19554_v24, %v19554_v24  ;;  %v9748_v62 = vsel %vm2509_vm5, %v9746_v14, 0.0 }
 0xdc7   :  { %v9738_v48 = vadd.f32 %v9737_v35, %v9736_v61  ;;  %v14597_v10 = vpop.f32.mrf.mxu0  ;;  %v14608_v25 = vpop.f32.mrf.mxu1 }
 0xdc8   :  { %v9747_v56 = vsel %vm1337_vm3, %v9745_v31, 0.0  ;;  %v9633_v3 = vadd.f32 %v14597_v10, %v14586_v28 }
 0xdc9   :  { %v9749_v44 = vadd.f32 %v9748_v62, %v9747_v56  ;;  %v9627_v0 = vpop.f32.mrf.mxu0  ;;  %v9739_v4 = vrot.slane %v9738_v48, 4  ;;  %v9711_v21 = vpop.f32.mrf.mxu1 }
 0xdca   :  { %v9721_v47 = vadd.f32 %v14608_v25, %v9633_v3  ;;  %v9628_v36 = vadd.f32 %v9627_v0, %v9543_v32 }
 0xdcb   :  { %v9750_v5 = vrot.slane %v9749_v44, 4  ;;  %v9740_v2 = vadd.f32 %v9739_v4, %v9738_v48 }
 0xdcc   :  { %v9733_v33 = vadd.f32 %v12650_v20, %v9721_v47  ;;  %v9720_v6 = vadd.f32 %v9711_v21, %v9628_v36 }
 0xdcd   :  { %v9751_v53 = vadd.f32 %v9750_v5, %v9749_v44  ;;  %v9741_v54 = vrot.slane %v9740_v2, 2 }
 0xdce   :  { %v9735_v38 = vmax.f32 %v9733_v33, 0.0  ;;  %v9732_v27 = vadd.f32 %v12650_v20, %v9720_v6 }
 0xdcf   :  { %v9752_v49 = vrot.slane %v9751_v53, 2  ;;  %v9742_v58 = vadd.f32 %v9741_v54, %v9740_v2 }
 0xdd0   :  { %v9767_v42 = vmul.f32 %v9735_v38, %v9735_v38  ;;  %v9734_v26 = vmax.f32 %v9732_v27, 0.0  ;;  %v9757_v39 = vsel %vm2509_vm5, %v9735_v38, 0.0 }
 0xdd1   :  { %v9753_v45 = vadd.f32 %v9752_v49, %v9751_v53  ;;  %v9743_v57 = vrot.slane %v9742_v58, 1  ;;  %v9806_v53 = vmul.f32 0.66, %v19428_v17 }
 0xdd2   :  { %v9756_v43 = vsel %vm1337_vm3, %v9734_v26, 0.0  ;;  %v9766_v59 = vmul.f32 %v9734_v26, %v9734_v26  ;;  %v9769_v55 = vsel %vm2509_vm5, %v9767_v42, 0.0 }
 0xdd3   :  { %v9758_v1 = vadd.f32 %v9757_v39, %v9756_v43  ;;  %v9754_v52 = vrot.slane %v9753_v45, 1  ;;  %v9744_v35 = vadd.f32 %v9743_v57, %v9742_v58  ;;  %v9807_v39 = vmul.f32 0.66, %v19433_v46 }
 0xdd4   :  { %v9768_v7 = vsel %vm1337_vm3, %v9766_v59, 0.0  ;;  %v9792_v43 = vmul.f32 0.66, %v19431_v63 }
 0xdd5   :  { %v9759_v51 = vrot.slane %v9758_v1, 4  ;;  %v9770_v13 = vadd.f32 %v9769_v55, %v9768_v7  ;;  %v9755_v48 = vadd.f32 %v9754_v52, %v9753_v45 }
 0xdd7   :  { %v9760_v20 = vadd.f32 %v9759_v51, %v9758_v1  ;;  %v9771_v50 = vrot.slane %v9770_v13, 4 }
 0xdd9   :  { %v9761_v60 = vrot.slane %v9760_v20, 2  ;;  %v9772_v19 = vadd.f32 %v9771_v50, %v9770_v13 }
 0xddb   :  { %v9762_v37 = vadd.f32 %v9761_v60, %v9760_v20  ;;  %v9773_v28 = vrot.slane %v9772_v19, 2 }
 0xddd   :  { %v9763_v14 = vrot.slane %v9762_v37, 1  ;;  %v9774_v32 = vadd.f32 %v9773_v28, %v9772_v19 }
 0xddf   :  { %v9764_v61 = vadd.f32 %v9763_v14, %v9762_v37  ;;  %v9775_v31 = vrot.slane %v9774_v32, 1 }
 0xde1   :  { %v9765_v10 = vadd.f32 %v9764_v61, %v9744_v35  ;;  %v9776_v25 = vadd.f32 %v9775_v31, %v9774_v32  ;;  %v9830_v32 = vld [vmem:[%s20074_s3 + $0x50] sm:$0xff]  ;;  %v9829_v31 = vld [vmem:[%s20074_s3 + $0x48] sm:$0xff] }
 0xde3   :  { %v9777_v62 = vadd.f32 %v9776_v25, %v9755_v48  ;;  %v9778_v56 = vmul.f32 0.041666668, %v9765_v10  ;;  %v9828_v48 = vld [vmem:[%s20074_s3 + $0x40] sm:$0xff] }
 0xde5   :  { %v9779_v3 = vmul.f32 0.041666668, %v9777_v62  ;;  %v9780_v44 = vmul.f32 %v9778_v56, %v9778_v56  ;;  %v9788_v36 = vsub.f32 %v9734_v26, %v9778_v56  ;;  %v9789_v4 = vsub.f32 %v9735_v38, %v9778_v56 }
 0xde6   :  { %v9784_v21 = vsub.f32 %v19554_v24, %v9778_v56  ;;  %v9785_v33 = vsub.f32 %v19550_v40, %v9778_v56  ;;  %v9793_v38 = vmul.f32 0.66, %v19435_v16  ;;  %v9794_v24 = vmul.f32 0.66, %v19437_v22 }
 0xde7   :  { %v9781_v0 = vsub.f32 %v9779_v3, %v9780_v44  ;;  %v9808_v40 = vmul.f32 0.66, %v19439_v29  ;;  %v12663_v3 = vld [vmem:[%s20077_s19] ss:$0 sm:$0xff] }
 0xde9   :  { %v9782_v47 = vadd.f32 1e-05, %v9781_v0 }
 0xdeb   :  { %14930 = vrsqrt.f32 %v9782_v47 }
 0xdf8   :  { %v14931_v6 = vpop.eup %14930 }
 0xdf9   :  { %v9790_v5 = vmul.f32 %v14931_v6, %v9788_v36  ;;  %v9791_v27 = vmul.f32 %v14931_v6, %v9789_v4  ;;  %v9786_v2 = vmul.f32 %v14931_v6, %v9784_v21  ;;  %v9787_v42 = vmul.f32 %v14931_v6, %v9785_v33 }
 0xdfb   :  { %v9811_v59 = vrot.slane %v9790_v5, 2  ;;  %v9812_v54 = vrot.slane %v9791_v27, 2  ;;  %v9797_v1 = vrot.slane %v9786_v2, 2  ;;  %v9798_v26 = vrot.slane %v9787_v42, 2 }
 0xdfd   :  { %v9813_v55 = vsel %vm663_vm2, %v9811_v59, %v9812_v54  ;;  %v19577_v7 = vadd.f32 %v9811_v59, %v9806_v53  ;;  %v9799_v17 = vsel %vm663_vm2, %v9797_v1, %v9798_v26  ;;  %v19580_v49 = vadd.f32 %v9797_v1, %v9792_v43 }
 0xdfe   :  { %v19582_v46 = vadd.f32 %v9813_v55, %v9807_v39  ;;  %v19584_v63 = vadd.f32 %v9799_v17, %v9793_v38  ;;  %v19586_v51 = vadd.f32 %v9798_v26, %v9794_v24  ;;  %v19588_v13 = vadd.f32 %v9812_v54, %v9808_v40 }
 0xdff   :  { %v9836_v16 = vrot.slane %v19580_v49, 7  ;;  %v9920_v22 = vrot.slane %v19580_v49, 6  ;;  %v10086_v29 = vrot.slane %v19577_v7, 7  ;;  %v10170_v58 = vrot.slane %v19577_v7, 6 }
 0xe00   :  { %v9837_v20 = vrot.slane %v19584_v63, 7  ;;  %v9921_v50 = vrot.slane %v19584_v63, 6  ;;  %v9839_v45 = vrot.slane %v19586_v51, 7  ;;  %v10087_v60 = vrot.slane %v19582_v46, 7 }
 0xe01   :  { %v10089_v19 = vrot.slane %v19588_v13, 7  ;;  %v10171_v57 = vrot.slane %v19582_v46, 6  ;;  %vm11964_vm2 = vcmask 97280  }
 0xe02   :  { %v9838_v37 = vsel %vm2681_vm6, %v9836_v16, %v9837_v20  ;;  %v9922_v28 = vsel %vm3993_vm10, %v9920_v22, %v9921_v50  ;;  %v9840_v52 = vsel %vm2681_vm6, %v9837_v20, %v9839_v45  ;;  %v10088_v14 = vsel %vm2681_vm6, %v10086_v29, %v10087_v60 }
 0xe03   :  { %14617 = vmatprep.mubr.msk.f32.mxu0 %vm1337_vm3, %v9838_v37  ;;  %14628 = vmatprep.mubr.msk.f32.mxu1 %vm1337_vm3, %v9922_v28  ;;  %v10090_v35 = vsel %vm2681_vm6, %v10087_v60, %v10089_v19  ;;  %v10172_v61 = vsel %vm3993_vm10, %v10170_v58, %v10171_v57 }
 0xe04   :  { %14618 = vmatmul.mubr.msk.f32.vlgmr.msra.gmra.mxu0 %vm1337_vm3, %v9840_v52  ;;  %14629 = vmatmul.mubr.msk.f32.vlgmr.msra.gmra.mxu1 %vm1337_vm3, %v9921_v50 }
 0xe05   :  { %14632 = vmatpush3.msra.mxu0 %v19541_v18  ;;  %14643 = vmatpush3.msra.mxu1 %v19505_v34  ;;  %v19650_v34 = vld [vmem:[%s20076_s14 + $0x38] sm:$0xff] }
 0xe06   :  { %14633 = vmatprep.subr.mxu0 %v9830_v32  ;;  %14639 = vmatprep.mubr.msk.f32.mxu0 %vm1337_vm3, %v19584_v63 }
 0xe07   :  { %14644 = vmatprep.subr.mxu1 %v19511_v23  ;;  %14650 = vmatprep.mubr.msk.f32.mxu1 %vm1337_vm3, %v10088_v14 }
 0xe08   :  { %14634 = vmatpush3.msra.mxu0 %v9830_v32  ;;  %14645 = vmatpush3.msra.mxu1 %v19511_v23  ;;  %v19656_v23 = vld [vmem:[%s20076_s14 + $0x18] sm:$0xff] }
 0xe09   :  { %14635 = vmatprep.subr.mxu0 %v9829_v31  ;;  %14646 = vmatprep.subr.mxu1 %v19521_v30 }
 0xe0a   :  { %14636 = vmatpush3.msra.mxu0 %v9829_v31  ;;  %14647 = vmatpush3.msra.mxu1 %v19521_v30  ;;  %v19665_v30 = vld [vmem:[%s20076_s14 + $0x28] sm:$0xff] }
 0xe0b   :  { %14637 = vmatprep.subr.mxu0 %v9828_v48  ;;  %14648 = vmatprep.subr.mxu1 %v19531_v41 }
 0xe0c   :  { %14638 = vmatpush3.msra.mxu0 %v9828_v48  ;;  %14649 = vmatpush3.msra.mxu1 %v19531_v41  ;;  %v19675_v41 = vld [vmem:[%s20076_s14 + $0x20] sm:$0xff] }
 0xe0d   :  { %14640 = vmatmul.mubr.msk.f32.vlgmr.msra.gmra.mxu0 %vm1337_vm3, %v19586_v51  ;;  %14651 = vmatmul.mubr.msk.f32.vlgmr.msra.gmra.mxu1 %vm1337_vm3, %v10090_v35 }
 0xe0e   :  { %14653 = vmatprep.subr.mxu0 %v19508_v15  ;;  %14664 = vmatprep.subr.mxu1 %v19541_v18 }
 0xe0f   :  { %14654 = vmatpush3.msra.mxu0 %v19508_v15  ;;  %14661 = vmatprep.mubr.msk.f32.mxu0 %vm1337_vm3, %v10172_v61  ;;  %v19653_v15 = vld [vmem:[%s20076_s14 + $0x30] sm:$0xff] }
 0xe10   :  { %14665 = vmatpush3.msra.mxu1 %v19541_v18  ;;  %14672 = vmatprep.mubr.msk.f32.mxu1 %vm1337_vm3, %v19582_v46 }
 0xe11   :  { %14655 = vmatprep.subr.mxu0 %v19516_v8  ;;  %14666 = vmatprep.subr.mxu1 %v9830_v32 }
 0xe12   :  { %14656 = vmatpush3.msra.mxu0 %v19516_v8  ;;  %14667 = vmatpush3.msra.mxu1 %v9830_v32  ;;  %v19661_v8 = vld [vmem:[%s20076_s14 + $0x10] sm:$0xff] }
 0xe13   :  { %14657 = vmatprep.subr.mxu0 %v19524_v11  ;;  %14668 = vmatprep.subr.mxu1 %v9829_v31 }
 0xe14   :  { %14658 = vmatpush3.msra.mxu0 %v19524_v11  ;;  %14669 = vmatpush3.msra.mxu1 %v9829_v31  ;;  %v19669_v11 = vld [vmem:[%s20076_s14 + $0x8] sm:$0xff] }
 0xe15   :  { %14659 = vmatprep.subr.mxu0 %v19534_v12  ;;  %14670 = vmatprep.subr.mxu1 %v9828_v48 }
 0xe16   :  { %14660 = vmatpush3.msra.mxu0 %v19534_v12  ;;  %14671 = vmatpush3.msra.mxu1 %v9828_v48  ;;  %v19679_v12 = vld [vmem:[%s20076_s14] sm:$0xff] }
 0xe17   :  { %14662 = vmatmul.mubr.msk.f32.vlgmr.msra.gmra.mxu0 %vm1337_vm3, %v10171_v57  ;;  %14673 = vmatmul.mubr.msk.f32.vlgmr.msra.gmra.mxu1 %vm1337_vm3, %v19588_v13 }
 0xe18   :  { %14675 = vmatprep.subr.mxu0 %v20054_v9  ;;  %14686 = vmatprep.subr.mxu1 %v20054_v9 }
 0xe19   :  { %14683 = vmatprep.mubr.msk.f32.mxu0 %vm15044_vm8, %v20054_v9  ;;  %14694 = vmatprep.mubr.msk.f32.mxu1 %vm15044_vm8, %v20054_v9 }
 0xe1a   :  { %14676 = vmatpush3.msra.mxu0 %v19650_v34  ;;  %14687 = vmatpush3.msra.mxu1 %v19656_v23 }
 0xe1b   :  { %14677 = vmatprep.subr.mxu0 %v20054_v9  ;;  %14688 = vmatprep.subr.mxu1 %v20054_v9 }
 0xe1c   :  { %14678 = vmatpush3.msra.mxu0 %v19653_v15  ;;  %14689 = vmatpush3.msra.mxu1 %v19661_v8 }
 0xe1d   :  { %14679 = vmatprep.subr.mxu0 %v20054_v9  ;;  %14690 = vmatprep.subr.mxu1 %v20054_v9 }
 0xe1e   :  { %14680 = vmatpush3.msra.mxu0 %v19665_v30  ;;  %14691 = vmatpush3.msra.mxu1 %v19669_v11 }
 0xe1f   :  { %14681 = vmatprep.subr.mxu0 %v20054_v9  ;;  %14692 = vmatprep.subr.mxu1 %v20054_v9 }
 0xe20   :  { %14682 = vmatpush3.msra.mxu0 %v19675_v41  ;;  %14693 = vmatpush3.msra.mxu1 %v19679_v12 }
 0xe21   :  { %14697 = vmatprep.subr.mxu0 %v20054_v9  ;;  %14708 = vmatprep.subr.mxu1 %v20054_v9 }
 0xec4   :  { %v14619_v18 = vpop.f32.mrf.mxu0  ;;  %v14630_v10 = vpop.f32.mrf.mxu1 }
 0xec5   :  { %v9999_v56 = vadd.f32 %v14630_v10, %v14619_v18 }
 0xec6   :  { %v9911_v25 = vpop.f32.mrf.mxu0  ;;  %v9993_v62 = vpop.f32.mrf.mxu1 }
 0xec7   :  { %v9994_v0 = vadd.f32 %v9993_v62, %v9911_v25 }
 0xecd   :  { %v14641_v44 = vpop.f32.mrf.mxu0  ;;  %v14652_v33 = vpop.f32.mrf.mxu1 }
 0xece   :  { %v10082_v47 = vadd.f32 %v14641_v44, %v9999_v56 }
 0xecf   :  { %v10072_v36 = vpop.f32.mrf.mxu0  ;;  %v10161_v42 = vpop.f32.mrf.mxu1 }
 0xed0   :  { %v10340_v4 = vadd.f32 %v12663_v3, %v10082_v47  ;;  %v10081_v21 = vadd.f32 %v10072_v36, %v9994_v0 }
 0xed2   :  { %v19690_v6 = vmax.f32 %v10340_v4, 0.0  ;;  %v10339_v5 = vadd.f32 %v12663_v3, %v10081_v21 }
 0xed4   :  { %v10357_v27 = vmul.f32 %v19690_v6, %v19690_v6  ;;  %v19694_v2 = vmax.f32 %v10339_v5, 0.0  ;;  %v10348_v53 = vsel %vm3821_vm9, %v19690_v6, 0.0 }
 0xed6   :  { %v10347_v39 = vsel %vm1337_vm3, %v19694_v2, 0.0  ;;  %v10356_v43 = vmul.f32 %v19694_v2, %v19694_v2  ;;  %v10359_v26 = vsel %vm3821_vm9, %v10357_v27, 0.0 }
 0xed7   :  { %v10349_v59 = vadd.f32 %v10348_v53, %v10347_v39  ;;  %v14663_v54 = vpop.f32.mrf.mxu0  ;;  %v14674_v1 = vpop.f32.mrf.mxu1 }
 0xed8   :  { %v10358_v38 = vsel %vm1337_vm3, %v10356_v43, 0.0  ;;  %v10249_v24 = vadd.f32 %v14663_v54, %v14652_v33 }
 0xed9   :  { %v10360_v40 = vadd.f32 %v10359_v26, %v10358_v38  ;;  %v10243_v55 = vpop.f32.mrf.mxu0  ;;  %v10350_v22 = vrot.slane %v10349_v59, 4  ;;  %v10322_v29 = vpop.f32.mrf.mxu1 }
 0xeda   :  { %v10332_v17 = vadd.f32 %v14674_v1, %v10249_v24  ;;  %v10244_v16 = vadd.f32 %v10243_v55, %v10161_v42 }
 0xedb   :  { %v10361_v50 = vrot.slane %v10360_v40, 4  ;;  %v10351_v19 = vadd.f32 %v10350_v22, %v10349_v59 }
 0xedc   :  { %v10344_v58 = vadd.f32 %v12663_v3, %v10332_v17  ;;  %v10331_v20 = vadd.f32 %v10322_v29, %v10244_v16 }
 0xedd   :  { %v10362_v28 = vadd.f32 %v10361_v50, %v10360_v40  ;;  %v10352_v35 = vrot.slane %v10351_v19, 2 }
 0xede   :  { %v10346_v45 = vmax.f32 %v10344_v58, 0.0  ;;  %v10343_v60 = vadd.f32 %v12663_v3, %v10331_v20 }
 0xedf   :  { %v10363_v18 = vrot.slane %v10362_v28, 2  ;;  %v10353_v62 = vadd.f32 %v10352_v35, %v10351_v19  ;;  %v10419_v35 = vmul.f32 0.66, %v19588_v13 }
 0xee0   :  { %v10378_v57 = vmul.f32 %v10346_v45, %v10346_v45  ;;  %v10345_v37 = vmax.f32 %v10343_v60, 0.0  ;;  %v10368_v52 = vsel %vm3821_vm9, %v10346_v45, 0.0 }
 0xee1   :  { %v10364_v44 = vadd.f32 %v10363_v18, %v10362_v28  ;;  %v10354_v36 = vrot.slane %v10353_v62, 1  ;;  %v10418_v28 = vmul.f32 0.66, %v19582_v46  ;;  %v10442_v18 = vld [vmem:[%s20076_s14 + $0x58] sm:$0xff] }
 0xee2   :  { %v10367_v14 = vsel %vm1337_vm3, %v10345_v37, 0.0  ;;  %v10377_v32 = vmul.f32 %v10345_v37, %v10345_v37  ;;  %v10380_v31 = vsel %vm3821_vm9, %v10378_v57, 0.0  ;;  %v10417_v57 = vmul.f32 0.66, %v19577_v7 }
 0xee3   :  { %v10369_v61 = vadd.f32 %v10368_v52, %v10367_v14  ;;  %v10365_v33 = vrot.slane %v10364_v44, 1  ;;  %v10355_v42 = vadd.f32 %v10354_v36, %v10353_v62  ;;  %v10403_v52 = vmul.f32 0.66, %v19580_v49 }
 0xee4   :  { %v10379_v48 = vsel %vm1337_vm3, %v10377_v32, 0.0 }
 0xee5   :  { %v10370_v10 = vrot.slane %v10369_v61, 4  ;;  %v10381_v25 = vadd.f32 %v10380_v31, %v10379_v48  ;;  %v10366_v43 = vadd.f32 %v10365_v33, %v10364_v44 }
 0xee7   :  { %v10371_v56 = vadd.f32 %v10370_v10, %v10369_v61  ;;  %v10382_v3 = vrot.slane %v10381_v25, 4 }
 0xee9   :  { %v10372_v0 = vrot.slane %v10371_v56, 2  ;;  %v10383_v47 = vadd.f32 %v10382_v3, %v10381_v25 }
 0xeeb   :  { %v10373_v4 = vadd.f32 %v10372_v0, %v10371_v56  ;;  %v10384_v21 = vrot.slane %v10383_v47, 2 }
 0xeed   :  { %v10374_v5 = vrot.slane %v10373_v4, 1  ;;  %v10385_v27 = vadd.f32 %v10384_v21, %v10383_v47 }
 0xeef   :  { %v10375_v53 = vadd.f32 %v10374_v5, %v10373_v4  ;;  %v10386_v39 = vrot.slane %v10385_v27, 1  ;;  %v10440_v4 = vld [vmem:[%s20076_s14 + $0x48] sm:$0xff] }
 0xef1   :  { %v10376_v59 = vadd.f32 %v10375_v53, %v10355_v42  ;;  %v10387_v54 = vadd.f32 %v10386_v39, %v10385_v27  ;;  %v10439_v27 = vld [vmem:[%s20076_s14 + $0x40] sm:$0xff] }
 0xef2   :  { %v12670_v53 = vld [vmem:[%s20079_s30] ss:$0 sm:$0xff] }
 0xef3   :  { %v10388_v1 = vadd.f32 %v10387_v54, %v10366_v43  ;;  %v10389_v26 = vmul.f32 0.05, %v10376_v59 }
 0xef5   :  { %v10390_v38 = vmul.f32 0.05, %v10388_v1  ;;  %v10391_v24 = vmul.f32 %v10389_v26, %v10389_v26  ;;  %v10399_v17 = vsub.f32 %v10345_v37, %v10389_v26  ;;  %v10400_v16 = vsub.f32 %v10346_v45, %v10389_v26 }
 0xef6   :  { %v10395_v22 = vsub.f32 %v19694_v2, %v10389_v26  ;;  %v10396_v29 = vsub.f32 %v19690_v6, %v10389_v26  ;;  %v10404_v2 = vmul.f32 0.66, %v19584_v63  ;;  %v10405_v6 = vmul.f32 0.66, %v19586_v51  ;;  %v10441_v51 = vld [vmem:[%s20076_s14 + $0x50] sm:$0xff] }
 0xef7   :  { %v10392_v40 = vsub.f32 %v10390_v38, %v10391_v24 }
 0xef9   :  { %v10393_v55 = vadd.f32 1e-05, %v10392_v40 }
 0xefb   :  { %14932 = vrsqrt.f32 %v10393_v55 }
 0xf08   :  { %v14933_v58 = vpop.eup %14932 }
 0xf09   :  { %v10401_v20 = vmul.f32 %v14933_v58, %v10399_v17  ;;  %v10402_v50 = vmul.f32 %v14933_v58, %v10400_v16  ;;  %v10397_v60 = vmul.f32 %v14933_v58, %v10395_v22  ;;  %v10398_v19 = vmul.f32 %v14933_v58, %v10396_v29 }
 0xf0b   :  { %v10422_v14 = vrot.slane %v10401_v20, 1  ;;  %v10423_v32 = vrot.slane %v10402_v50, 1  ;;  %v10408_v37 = vrot.slane %v10397_v60, 1  ;;  %v10409_v45 = vrot.slane %v10398_v19, 1 }
 0xf0d   :  { %v10424_v61 = vsel %vm373_vm1, %v10422_v14, %v10423_v32  ;;  %v10428_v31 = vadd.f32 %v10422_v14, %v10417_v57  ;;  %v10410_v7 = vsel %vm373_vm1, %v10408_v37, %v10409_v45  ;;  %v10414_v48 = vadd.f32 %v10408_v37, %v10403_v52 }
 0xf0e   :  { %v19718_v46 = vadd.f32 %v10424_v61, %v10418_v28  ;;  %v19720_v49 = vadd.f32 %v10410_v7, %v10404_v2  ;;  %v10416_v10 = vadd.f32 %v10409_v45, %v10405_v6  ;;  %v10430_v25 = vadd.f32 %v10423_v32, %v10419_v35 }
 0xf0f   :  { %v10744_v62 = vrot.slane %v10428_v31, 7  ;;  %v10518_v63 = vrot.slane %v10414_v48, 7 }
 0xf10   :  { %14684 = vmatmul.mubr.msk.f32.vlgmr.msra.gmra.mxu0 %vm1337_vm3, %v19720_v49  ;;  %v10519_v13 = vrot.slane %v19720_v49, 7  ;;  %v10594_v56 = vrot.slane %v19720_v49, 1  ;;  %v10595_v3 = vrot.slane %v10416_v10, 1  ;;  %v10745_v44 = vrot.slane %v19718_v46, 7 }
 0xf11   :  { %14698 = vmatpush3.msra.mxu0 %v10442_v18  ;;  %14705 = vmatprep.mubr.msk.f32.mxu0 %vm15044_vm8, %v20054_v9  ;;  %v10820_v0 = vrot.slane %v19718_v46, 1  ;;  %v10821_v47 = vrot.slane %v10430_v25, 1 }
 0xf12   :  { %14699 = vmatprep.subr.mxu0 %v20054_v9  ;;  %v10520_v36 = vsel %vm2681_vm6, %v10518_v63, %v10519_v13  ;;  %v10596_v21 = vsel %vm373_vm1, %v10594_v56, %v10595_v3  ;;  %v10746_v33 = vsel %vm2681_vm6, %v10744_v62, %v10745_v44 }
 0xf13   :  { %14700 = vmatpush3.msra.mxu0 %v10441_v51  ;;  %14695 = vmatmul.mubr.msk.f32.vlgmr.msra.gmra.mxu1 %vm1337_vm3, %v10520_v36  ;;  %v10822_v5 = vsel %vm373_vm1, %v10820_v0, %v10821_v47  ;;  %vm11128_vm1 = vcmask 130048  }
 0xf14   :  { %14701 = vmatprep.subr.mxu0 %v20054_v9  ;;  %14709 = vmatpush3.msra.mxu1 %v19650_v34  ;;  %v10955_v34 = vld [vmem:[%s20078_s24 + $0x18] sm:$0xff] }
 0xf15   :  { %14702 = vmatpush3.msra.mxu0 %v10440_v4  ;;  %14710 = vmatprep.subr.mxu1 %v20054_v9 }
 0xf16   :  { %14703 = vmatprep.subr.mxu0 %v20054_v9  ;;  %14711 = vmatpush3.msra.mxu1 %v19653_v15  ;;  %v10954_v15 = vld [vmem:[%s20078_s24 + $0x10] sm:$0xff] }
 0xf17   :  { %14704 = vmatpush3.msra.mxu0 %v10439_v27  ;;  %14712 = vmatprep.subr.mxu1 %v20054_v9 }
 0xf18   :  { %14706 = vmatmul.mubr.msk.f32.vlgmr.msra.gmra.mxu0 %vm1337_vm3, %v10596_v21  ;;  %14713 = vmatpush3.msra.mxu1 %v19665_v30 }
 0xf19   :  { %14719 = vmatprep.subr.mxu0 %v20054_v9  ;;  %14714 = vmatprep.subr.mxu1 %v20054_v9 }
 0xf1a   :  { %14720 = vmatpush3.msra.mxu0 %v19656_v23  ;;  %14715 = vmatpush3.msra.mxu1 %v19675_v41  ;;  %v10953_v23 = vld [vmem:[%s20078_s24 + $0x8] sm:$0xff] }
 0xf1b   :  { %14716 = vmatprep.mubr.msk.f32.mxu1 %vm15044_vm8, %v20054_v9  ;;  %14721 = vmatprep.subr.mxu0 %v20054_v9 }
 0xf1c   :  { %14717 = vmatmul.mubr.msk.f32.vlgmr.msra.gmra.mxu1 %vm1337_vm3, %v19718_v46  ;;  %14722 = vmatpush3.msra.mxu0 %v19661_v8  ;;  %v10952_v8 = vld [vmem:[%s20078_s24] sm:$0xff] }
 0xf1d   :  { %14730 = vmatprep.subr.mxu1 %v20054_v9  ;;  %14723 = vmatprep.subr.mxu0 %v20054_v9 }
 0xf1e   :  { %14731 = vmatpush3.msra.mxu1 %v10442_v18  ;;  %14724 = vmatpush3.msra.mxu0 %v19669_v11 }
 0xf1f   :  { %14732 = vmatprep.subr.mxu1 %v20054_v9  ;;  %14725 = vmatprep.subr.mxu0 %v20054_v9 }
 0xf20   :  { %14733 = vmatpush3.msra.mxu1 %v10441_v51  ;;  %14726 = vmatpush3.msra.mxu0 %v19679_v12 }
 0xf21   :  { %14727 = vmatprep.mubr.msk.f32.mxu0 %vm15044_vm8, %v20054_v9  ;;  %14734 = vmatprep.subr.mxu1 %v20054_v9 }
 0xf22   :  { %14728 = vmatmul.mubr.msk.f32.vlgmr.msra.gmra.mxu0 %vm1337_vm3, %v10746_v33  ;;  %14735 = vmatpush3.msra.mxu1 %v10440_v4 }
 0xf23   :  { %14736 = vmatprep.subr.mxu1 %v20054_v9  ;;  %14738 = vmatprep.mubr.msk.f32.mxu1 %vm15044_vm8, %v20054_v9 }
 0xf24   :  { %14737 = vmatpush3.msra.mxu1 %v10439_v27  ;;  %14741 = vmatprep.subr.mxu0 %v20054_v9 }
 0xf25   :  { %14739 = vmatmul.mubr.msk.f32.vlgmr.msra.gmra.mxu1 %vm1337_vm3, %v10822_v5  ;;  %14752 = vmatprep.subr.mxu1 %v20054_v9 }
 0xf26   :  { %14749 = vmatprep.mubr.msk.f32.mxu0 %vm15044_vm8, %v20054_v9  ;;  %14760 = vmatprep.mubr.msk.f32.mxu1 %vm15044_vm8, %v20054_v9 }
 0xf27   :  { %14742 = vmatpush3.msra.mxu0 %v10955_v34  ;;  %14753 = vmatpush3.msra.mxu1 %v10955_v34 }
 0xf28   :  { %14743 = vmatprep.subr.mxu0 %v20054_v9  ;;  %14754 = vmatprep.subr.mxu1 %v20054_v9 }
 0xf29   :  { %14744 = vmatpush3.msra.mxu0 %v10954_v15  ;;  %14755 = vmatpush3.msra.mxu1 %v10954_v15 }
 0xf2a   :  { %14745 = vmatprep.subr.mxu0 %v20054_v9  ;;  %14756 = vmatprep.subr.mxu1 %v20054_v9 }
 0xf2b   :  { %14746 = vmatpush3.msra.mxu0 %v10953_v23  ;;  %14757 = vmatpush3.msra.mxu1 %v10953_v23 }
 0xf2c   :  { %14747 = vmatprep.subr.mxu0 %v20054_v9  ;;  %14758 = vmatprep.subr.mxu1 %v20054_v9 }
 0xf2d   :  { %14748 = vmatpush3.msra.mxu0 %v10952_v8  ;;  %14759 = vmatpush3.msra.mxu1 %v10952_v8 }
 0xf2e   :  { %14763 = vmatprep.subr.mxu0 %v20054_v9  ;;  %14770 = vmatprep.subr.mxu1 %v20054_v9 }
 0xfd0   :  { %v10513_v30 = vpop.f32.mrf.mxu0 }
 0xfd2   :  { %v14685_v11 = vpop.f32.mrf.mxu0 }
 0xfd3   :  { %v10589_v41 = vpop.f32.mrf.mxu1 }
 0xfd4   :  { %v10590_v42 = vadd.f32 %v10589_v41, %v10513_v30  ;;  %v10950_v41 = vmul.f32 0.66, %v19718_v46  ;;  %v11102_v46 = vld [vmem:[%s20080_s6] sm:$0xff] }
 0xfd5   :  { %v14696_v12 = vpop.f32.mrf.mxu1 }
 0xfd6   :  { %v10948_v12 = vmul.f32 0.66, %v19720_v49 }
 0xfd8   :  { %v10665_v39 = vpop.f32.mrf.mxu0 }
 0xfd9   :  { %v10669_v43 = vadd.f32 %v10665_v39, %v10590_v42  ;;  %v11103_v39 = vld [vmem:[%s20080_s6 + $0x8] sm:$0xff] }
 0xfda   :  { %v14707_v59 = vpop.f32.mrf.mxu0 }
 0xfdb   :  { %v10902_v54 = vadd.f32 %v12670_v53, %v10669_v43 }
 0xfdc   :  { %v10739_v1 = vpop.f32.mrf.mxu1 }
 0xfdd   :  { %v10903_v26 = vmax.f32 %v10902_v54, 0.0 }
 0xfde   :  { %v14718_v38 = vpop.f32.mrf.mxu1 }
 0xfdf   :  { %v10913_v24 = vmul.f32 %v10903_v26, %v10903_v26  ;;  %v10906_v40 = vsel %vm1337_vm3, %v10903_v26, 0.0  ;;  %v11106_v38 = vld [vmem:[%s20081_s22 + $0x8] sm:$0xff] }
 0xfe0   :  { %v10907_v16 = vrot.slane %v10906_v40, 4 }
 0xfe1   :  { %v10914_v55 = vsel %vm1337_vm3, %v10913_v24, 0.0  ;;  %v11105_v24 = vld [vmem:[%s20081_s22] sm:$0xff] }
 0xfe2   :  { %v10815_v17 = vpop.f32.mrf.mxu0  ;;  %v10915_v58 = vrot.slane %v10914_v55, 4  ;;  %v10908_v60 = vadd.f32 %v10907_v16, %v10906_v40  ;;  %v12673_v40 = vld [vmem:[%s20082_s23] ss:$0 sm:$0xff] }
 0xfe3   :  { %v10816_v22 = vadd.f32 %v10815_v17, %v10739_v1  ;;  %v11108_v1 = vld [vmem:[%s20081_s22 + $0x18] sm:$0xff] }
 0xfe4   :  { %v14729_v29 = vpop.f32.mrf.mxu0  ;;  %v10916_v28 = vadd.f32 %v10915_v58, %v10914_v55  ;;  %v10909_v14 = vrot.slane %v10908_v60, 2 }
 0xfe5   :  { %v10891_v20 = vpop.f32.mrf.mxu1 }
 0xfe6   :  { %v10895_v50 = vadd.f32 %v10891_v20, %v10816_v22  ;;  %v10917_v45 = vrot.slane %v10916_v28, 2  ;;  %v10910_v35 = vadd.f32 %v10909_v14, %v10908_v60 }
 0xfe7   :  { %v14740_v19 = vpop.f32.mrf.mxu1 }
 0xfe8   :  { %v10904_v57 = vadd.f32 %v12670_v53, %v10895_v50  ;;  %v10918_v7 = vadd.f32 %v10917_v45, %v10916_v28  ;;  %v10911_v10 = vrot.slane %v10910_v35, 1 }
 0xfea   :  { %v10905_v52 = vmax.f32 %v10904_v57, 0.0  ;;  %v10919_v63 = vrot.slane %v10918_v7, 1  ;;  %v10912_v56 = vadd.f32 %v10911_v10, %v10910_v35 }
 0xfec   :  { %v10921_v32 = vsel %vm1337_vm3, %v10905_v52, 0.0  ;;  %v10929_v37 = vmul.f32 %v10905_v52, %v10905_v52  ;;  %v10920_v0 = vadd.f32 %v10919_v63, %v10918_v7 }
 0xfed   :  { %v10922_v2 = vrot.slane %v10921_v32, 4 }
 0xfee   :  { %v10930_v6 = vsel %vm1337_vm3, %v10929_v37, 0.0 }
 0xfef   :  { %v10923_v61 = vadd.f32 %v10922_v2, %v10921_v32  ;;  %v10931_v31 = vrot.slane %v10930_v6, 4 }
 0xff1   :  { %v10924_v48 = vrot.slane %v10923_v61, 2  ;;  %v10932_v18 = vadd.f32 %v10931_v31, %v10930_v6 }
 0xff3   :  { %v10925_v25 = vadd.f32 %v10924_v48, %v10923_v61  ;;  %v10933_v62 = vrot.slane %v10932_v18, 2 }
 0xff5   :  { %v10926_v51 = vrot.slane %v10925_v25, 1  ;;  %v10934_v13 = vadd.f32 %v10933_v62, %v10932_v18 }
 0xff7   :  { %v10927_v3 = vadd.f32 %v10926_v51, %v10925_v25  ;;  %v10935_v44 = vrot.slane %v10934_v13, 1 }
 0xff9   :  { %v10928_v47 = vadd.f32 %v10927_v3, %v10912_v56  ;;  %v10936_v36 = vadd.f32 %v10935_v44, %v10934_v13 }
 0xffb   :  { %v10937_v4 = vadd.f32 %v10936_v36, %v10920_v0  ;;  %v10938_v21 = vmul.f32 0.0625, %v10928_v47 }
 0xffd   :  { %v10939_v33 = vmul.f32 0.0625, %v10937_v4  ;;  %v10940_v5 = vmul.f32 %v10938_v21, %v10938_v21  ;;  %v10944_v15 = vsub.f32 %v10903_v26, %v10938_v21  ;;  %v10946_v23 = vsub.f32 %v10905_v52, %v10938_v21  ;;  %v11107_v26 = vld [vmem:[%s20081_s22 + $0x10] sm:$0xff] }
 0xfff   :  { %v10941_v27 = vsub.f32 %v10939_v33, %v10940_v5 }
0x1001   :  { %v10942_v34 = vadd.f32 1e-05, %v10941_v27 }
0x1003   :  { %14934 = vrsqrt.f32 %v10942_v34 }
0x1010   :  { %v14935_v8 = vpop.eup %14934 }
0x1011   :  { %v10945_v30 = vmul.f32 %v14935_v8, %v10944_v15  ;;  %v10947_v11 = vmul.f32 %v14935_v8, %v10946_v23 }
0x1013   :  { %v10951_v42 = vadd.f32 %v10950_v41, %v10947_v11  ;;  %v10949_v53 = vadd.f32 %v10948_v12, %v10945_v30 }
0x1015   :  { %14750 = vmatmul.mubr.msk.f32.vlgmr.msra.gmra.mxu0 %vm1337_vm3, %v10949_v53  ;;  %14761 = vmatmul.mubr.msk.f32.vlgmr.msra.gmra.mxu1 %vm1337_vm3, %v10951_v42  ;;  %v11110_v42 = vld [vmem:[%s20083_s26 + $0x8] sm:$0xff]  ;;  %v11109_v53 = vld [vmem:[%s20083_s26] sm:$0xff] }
0x1016   :  { %14764 = vmatpush3.msra.mxu0 %v11103_v39  ;;  %14771 = vmatpush3.msra.mxu1 %v11103_v39  ;;  %v11115_v39 = vld [vmem:[%s20084_s28 + $0x18] sm:$0xff] }
0x1017   :  { %14765 = vmatprep.subr.mxu0 %v20054_v9  ;;  %14772 = vmatprep.subr.mxu1 %v20054_v9 }
0x1018   :  { %14767 = vmatprep.mubr.msk.f32.mxu0 %vm15044_vm8, %v20054_v9  ;;  %14774 = vmatprep.mubr.msk.f32.mxu1 %vm15044_vm8, %v20054_v9 }
0x1019   :  { %14766 = vmatpush3.msra.mxu0 %v11102_v46  ;;  %14773 = vmatpush3.msra.mxu1 %v11102_v46  ;;  %v11114_v46 = vld [vmem:[%s20084_s28 + $0x10] sm:$0xff] }
0x101a   :  { %14777 = vmatprep.subr.mxu0 %v20054_v9  ;;  %14788 = vmatprep.subr.mxu1 %v20054_v9 }
0x10d5   :  { %v19809_v49 = vpop.f32.mrf.mxu0  ;;  %v19811_v43 = vpop.f32.mrf.mxu1 }
0x10d6   :  { %14768 = vmatmul.mubr.msk.f32.vlgmr.msra.gmra.mxu0 %vm11128_vm1, %v19809_v49  ;;  %14775 = vmatmul.mubr.msk.f32.vlgmr.msra.gmra.mxu1 %vm11128_vm1, %v19811_v43 }
0x10d7   :  { %v14751_v59 = vpop.f32.mrf.mxu0  ;;  %v14762_v54 = vpop.f32.mrf.mxu1  ;;  %14785 = vmatprep.mubr.msk.f32.mxu0 %vm15044_vm8, %v20054_v9  ;;  %14796 = vmatprep.mubr.msk.f32.mxu1 %vm15044_vm8, %v20054_v9 }
0x10d8   :  { %14778 = vmatpush3.msra.mxu0 %v11108_v1  ;;  %14789 = vmatpush3.msra.mxu1 %v11108_v1 }
0x10d9   :  { %14779 = vmatprep.subr.mxu0 %v20054_v9  ;;  %14790 = vmatprep.subr.mxu1 %v20054_v9 }
0x10da   :  { %14780 = vmatpush3.msra.mxu0 %v11107_v26  ;;  %14791 = vmatpush3.msra.mxu1 %v11107_v26 }
0x10db   :  { %14781 = vmatprep.subr.mxu0 %v20054_v9  ;;  %14792 = vmatprep.subr.mxu1 %v20054_v9 }
0x10dc   :  { %14782 = vmatpush3.msra.mxu0 %v11106_v38  ;;  %14793 = vmatpush3.msra.mxu1 %v11106_v38 }
0x10dd   :  { %14783 = vmatprep.subr.mxu0 %v20054_v9  ;;  %14794 = vmatprep.subr.mxu1 %v20054_v9 }
0x10de   :  { %14784 = vmatpush3.msra.mxu0 %v11105_v24  ;;  %14795 = vmatpush3.msra.mxu1 %v11105_v24 }
0x10df   :  { %14799 = vmatprep.subr.mxu0 %v20054_v9  ;;  %14806 = vmatprep.subr.mxu1 %v20054_v9 }
0x1196   :  { %v11198_v55 = vpop.f32.mrf.mxu0  ;;  %v11272_v17 = vpop.f32.mrf.mxu1 }
0x1197   :  { %v11199_v16 = vadd.f32 %v12673_v40, %v11198_v55  ;;  %v11273_v22 = vadd.f32 %v12673_v40, %v11272_v17 }
0x1198   :  { %v14769_v29 = vpop.f32.mrf.mxu0  ;;  %v14776_v58 = vpop.f32.mrf.mxu1 }
0x1199   :  { %v11202_v20 = vmax.f32 %v11199_v16, 0.0  ;;  %v11276_v50 = vmax.f32 %v11273_v22, 0.0 }
0x119b   :  { %v11277_v60 = vsel %vm1337_vm3, %v11202_v20, 0.0  ;;  %v11284_v19 = vmul.f32 %v11202_v20, %v11202_v20  ;;  %v11292_v57 = vsel %vm1337_vm3, %v11276_v50, 0.0  ;;  %v11300_v28 = vmul.f32 %v11276_v50, %v11276_v50 }
0x119c   :  { %v11278_v52 = vrot.slane %v11277_v60, 4  ;;  %v11293_v14 = vrot.slane %v11292_v57, 4 }
0x119d   :  { %v11285_v32 = vsel %vm1337_vm3, %v11284_v19, 0.0  ;;  %v11301_v37 = vsel %vm1337_vm3, %v11300_v28, 0.0  ;;  %v12678_v19 = vld [vmem:[%s20085_s1] ss:$0 sm:$0xff] }
0x119e   :  { %v11279_v45 = vadd.f32 %v11278_v52, %v11277_v60  ;;  %v11286_v2 = vrot.slane %v11285_v32, 4  ;;  %v11294_v6 = vadd.f32 %v11293_v14, %v11292_v57  ;;  %v11302_v35 = vrot.slane %v11301_v37, 4 }
0x11a0   :  { %v11280_v61 = vrot.slane %v11279_v45, 2  ;;  %v11287_v31 = vadd.f32 %v11286_v2, %v11285_v32  ;;  %v11295_v7 = vrot.slane %v11294_v6, 2  ;;  %v11303_v48 = vadd.f32 %v11302_v35, %v11301_v37 }
0x11a2   :  { %v11281_v18 = vadd.f32 %v11280_v61, %v11279_v45  ;;  %v11288_v10 = vrot.slane %v11287_v31, 2  ;;  %v11296_v25 = vadd.f32 %v11295_v7, %v11294_v6  ;;  %v11304_v62 = vrot.slane %v11303_v48, 2 }
0x11a4   :  { %v11282_v63 = vrot.slane %v11281_v18, 1  ;;  %v11289_v51 = vadd.f32 %v11288_v10, %v11287_v31  ;;  %v11297_v13 = vrot.slane %v11296_v25, 1  ;;  %v11305_v56 = vadd.f32 %v11304_v62, %v11303_v48 }
0x11a6   :  { %v11283_v3 = vadd.f32 %v11282_v63, %v11281_v18  ;;  %v11290_v44 = vrot.slane %v11289_v51, 1  ;;  %v11298_v0 = vadd.f32 %v11297_v13, %v11296_v25  ;;  %v11306_v47 = vrot.slane %v11305_v56, 1 }
0x11a8   :  { %v11291_v36 = vadd.f32 %v11290_v44, %v11289_v51  ;;  %v11299_v4 = vadd.f32 %v11298_v0, %v11283_v3  ;;  %v11307_v21 = vadd.f32 %v11306_v47, %v11305_v56 }
0x11aa   :  { %v11308_v33 = vadd.f32 %v11307_v21, %v11291_v36  ;;  %v11309_v5 = vmul.f32 0.0625, %v11299_v4 }
0x11ac   :  { %v11310_v27 = vmul.f32 0.0625, %v11308_v33  ;;  %v11311_v34 = vmul.f32 %v11309_v5, %v11309_v5  ;;  %v11315_v8 = vsub.f32 %v11202_v20, %v11309_v5  ;;  %v11317_v30 = vsub.f32 %v11276_v50, %v11309_v5 }
0x11ae   :  { %v11312_v15 = vsub.f32 %v11310_v27, %v11311_v34 }
0x11b0   :  { %v11313_v23 = vadd.f32 1e-05, %v11312_v15 }
0x11b2   :  { %14936 = vrsqrt.f32 %v11313_v23 }
0x11bf   :  { %v14937_v11 = vpop.eup %14936 }
0x11c0   :  { %v11316_v41 = vmul.f32 %v14937_v11, %v11315_v8  ;;  %v11318_v12 = vmul.f32 %v14937_v11, %v11317_v30 }
0x11c2   :  { %14786 = vmatmul.mubr.msk.f32.vlgmr.msra.gmra.mxu0 %vm1337_vm3, %v11316_v41  ;;  %14797 = vmatmul.mubr.msk.f32.vlgmr.msra.gmra.mxu1 %vm1337_vm3, %v11318_v12 }
0x11c3   :  { %14800 = vmatpush3.msra.mxu0 %v11110_v42  ;;  %14807 = vmatpush3.msra.mxu1 %v11110_v42 }
0x11c4   :  { %14801 = vmatprep.subr.mxu0 %v20054_v9  ;;  %14808 = vmatprep.subr.mxu1 %v20054_v9 }
0x11c5   :  { %14802 = vmatpush3.msra.mxu0 %v11109_v53  ;;  %14803 = vmatprep.mubr.msk.f32.mxu0 %vm15044_vm8, %v20054_v9 }
0x11c6   :  { %14809 = vmatpush3.msra.mxu1 %v11109_v53  ;;  %14810 = vmatprep.mubr.msk.f32.mxu1 %vm15044_vm8, %v20054_v9 }
0x11c7   :  { %14804 = vmatmul.mubr.msk.f32.vlgmr.msra.gmra.mxu0 %vm11128_vm1, %v19809_v49  ;;  %14811 = vmatmul.mubr.msk.f32.vlgmr.msra.gmra.mxu1 %vm11128_vm1, %v19811_v43  ;;  %v11113_v49 = vld [vmem:[%s20084_s28 + $0x8] sm:$0xff]  ;;  %v11112_v43 = vld [vmem:[%s20084_s28] sm:$0xff] }
0x11c8   :  { %14813 = vmatprep.subr.mxu0 %v20054_v9  ;;  %14824 = vmatprep.subr.mxu1 %v20054_v9 }
0x11c9   :  { %14821 = vmatprep.mubr.msk.f32.mxu0 %vm15044_vm8, %v20054_v9  ;;  %14832 = vmatprep.mubr.msk.f32.mxu1 %vm15044_vm8, %v20054_v9 }
0x11ca   :  { %14814 = vmatpush3.msra.mxu0 %v11115_v39  ;;  %14825 = vmatpush3.msra.mxu1 %v11115_v39 }
0x11cb   :  { %14815 = vmatprep.subr.mxu0 %v20054_v9  ;;  %14826 = vmatprep.subr.mxu1 %v20054_v9 }
0x11cc   :  { %14816 = vmatpush3.msra.mxu0 %v11114_v46  ;;  %14827 = vmatpush3.msra.mxu1 %v11114_v46 }
0x11cd   :  { %14817 = vmatprep.subr.mxu0 %v20054_v9  ;;  %14828 = vmatprep.subr.mxu1 %v20054_v9 }
0x11ce   :  { %14818 = vmatpush3.msra.mxu0 %v11113_v49  ;;  %14829 = vmatpush3.msra.mxu1 %v11113_v49 }
0x11cf   :  { %14819 = vmatprep.subr.mxu0 %v20054_v9  ;;  %14830 = vmatprep.subr.mxu1 %v20054_v9 }
0x11d0   :  { %14820 = vmatpush3.msra.mxu0 %v11112_v43  ;;  %14831 = vmatpush3.msra.mxu1 %v11112_v43 }
0x11d1   :  { %14835 = vmatprep.subr.mxu0 %v20054_v9  ;;  %14842 = vmatprep.subr.mxu1 %v20054_v9 }
0x1282   :  { %v19870_v59 = vpop.f32.mrf.mxu0  ;;  %v19872_v54 = vpop.f32.mrf.mxu1 }
0x1283   :  { %v11465_v1 = vsel %vm11128_vm1, %v19870_v59, 0.0  ;;  %v11472_v26 = vmul.f32 %v19870_v59, %v19870_v59  ;;  %v11480_v38 = vsel %vm11128_vm1, %v19872_v54, 0.0  ;;  %v11488_v24 = vmul.f32 %v19872_v54, %v19872_v54 }
0x1284   :  { %v11466_v40 = vrot.slane %v11465_v1, 4  ;;  %v11481_v55 = vrot.slane %v11480_v38, 4  ;;  %v14787_v17 = vpop.f32.mrf.mxu0  ;;  %v14798_v16 = vpop.f32.mrf.mxu1 }
0x1285   :  { %v11473_v22 = vsel %vm11128_vm1, %v11472_v26, 0.0  ;;  %v11489_v29 = vsel %vm11128_vm1, %v11488_v24, 0.0 }
0x1286   :  { %v11467_v58 = vadd.f32 %v11466_v40, %v11465_v1  ;;  %v11474_v20 = vrot.slane %v11473_v22, 4  ;;  %v11482_v50 = vadd.f32 %v11481_v55, %v11480_v38  ;;  %v11490_v60 = vrot.slane %v11489_v29, 4 }
0x1287   :  { %v11579_v57 = vpop.f32.mrf.mxu0  ;;  %v11650_v28 = vpop.f32.mrf.mxu1 }
0x1288   :  { %v11468_v52 = vrot.slane %v11467_v58, 2  ;;  %v11475_v14 = vadd.f32 %v11474_v20, %v11473_v22  ;;  %v11483_v32 = vrot.slane %v11482_v50, 2  ;;  %v11491_v37 = vadd.f32 %v11490_v60, %v11489_v29 }
0x1289   :  { %v11580_v45 = vadd.f32 %v12678_v19, %v11579_v57  ;;  %v11651_v2 = vadd.f32 %v12678_v19, %v11650_v28  ;;  %v14805_v6 = vpop.f32.mrf.mxu0  ;;  %v14812_v35 = vpop.f32.mrf.mxu1 }
0x128a   :  { %v11469_v61 = vadd.f32 %v11468_v52, %v11467_v58  ;;  %v11476_v31 = vrot.slane %v11475_v14, 2  ;;  %v11484_v7 = vadd.f32 %v11483_v32, %v11482_v50  ;;  %v11492_v48 = vrot.slane %v11491_v37, 2 }
0x128b   :  { %v11583_v18 = vmax.f32 %v11580_v45, 0.0  ;;  %v11654_v10 = vmax.f32 %v11651_v2, 0.0 }
0x128c   :  { %v11470_v25 = vrot.slane %v11469_v61, 1  ;;  %v11477_v62 = vadd.f32 %v11476_v31, %v11475_v14  ;;  %v11485_v63 = vrot.slane %v11484_v7, 1  ;;  %v11493_v51 = vadd.f32 %v11492_v48, %v11491_v37 }
0x128d   :  { %v11655_v13 = vsel %vm1337_vm3, %v11583_v18, 0.0  ;;  %v11662_v56 = vmul.f32 %v11583_v18, %v11583_v18  ;;  %v11670_v3 = vsel %vm1337_vm3, %v11654_v10, 0.0  ;;  %v11678_v44 = vmul.f32 %v11654_v10, %v11654_v10 }
0x128e   :  { %v11471_v0 = vadd.f32 %v11470_v25, %v11469_v61  ;;  %v11478_v47 = vrot.slane %v11477_v62, 1  ;;  %v11486_v36 = vadd.f32 %v11485_v63, %v11484_v7  ;;  %v11494_v4 = vrot.slane %v11493_v51, 1  ;;  %v11117_v25 = vld [vmem:[%s20086_s2 + $0x8] sm:$0xff] }
0x128f   :  { %v11656_v21 = vrot.slane %v11655_v13, 4  ;;  %v11663_v33 = vsel %vm1337_vm3, %v11662_v56, 0.0  ;;  %v11671_v5 = vrot.slane %v11670_v3, 4  ;;  %v11679_v27 = vsel %vm1337_vm3, %v11678_v44, 0.0  ;;  %v19910_v56 = vld [vmem:[%s15237_s27] sm:$0xff] }
0x1290   :  { %v11664_v34 = vrot.slane %v11663_v33, 4  ;;  %v11680_v8 = vrot.slane %v11679_v27, 4  ;;  %v11479_v30 = vadd.f32 %v11478_v47, %v11477_v62  ;;  %v11487_v11 = vadd.f32 %v11486_v36, %v11471_v0 }
0x1291   :  { %v11657_v15 = vadd.f32 %v11656_v21, %v11655_v13  ;;  %v11672_v23 = vadd.f32 %v11671_v5, %v11670_v3  ;;  %v11495_v41 = vadd.f32 %v11494_v4, %v11493_v51  ;;  %v11116_v51 = vld [vmem:[%s20086_s2] sm:$0xff]  ;;  %v19907_v13 = vld [vmem:[%s15237_s27 + $0x8] sm:$0xff]  ;;  %s15045_s27 = smov [#allocation2]  }
0x1292   :  { %v11665_v12 = vadd.f32 %v11664_v34, %v11663_v33  ;;  %v11681_v39 = vadd.f32 %v11680_v8, %v11679_v27  ;;  %v11497_v38 = vmul.f32 0.0625, %v11487_v11  ;;  %v12683_v27 = vld [vmem:[%s20087_s7] ss:$0 sm:$0xff] }
0x1293   :  { %v11658_v42 = vrot.slane %v11657_v15, 2  ;;  %v11673_v53 = vrot.slane %v11672_v23, 2  ;;  %v11496_v26 = vadd.f32 %v11495_v41, %v11479_v30 }
0x1294   :  { %v11666_v49 = vrot.slane %v11665_v12, 2  ;;  %v11682_v1 = vrot.slane %v11681_v39, 2  ;;  %v11499_v50 = vmul.f32 %v11497_v38, %v11497_v38  ;;  %v11503_v63 = vsub.f32 %v19870_v59, %v11497_v38 }
0x1295   :  { %v11659_v46 = vadd.f32 %v11658_v42, %v11657_v15  ;;  %v11674_v43 = vadd.f32 %v11673_v53, %v11672_v23  ;;  %v11498_v20 = vmul.f32 0.0625, %v11496_v26  ;;  %v11505_v59 = vsub.f32 %v19872_v54, %v11497_v38 }
0x1296   :  { %v11667_v40 = vadd.f32 %v11666_v49, %v11665_v12  ;;  %v11683_v17 = vadd.f32 %v11682_v1, %v11681_v39 }
0x1297   :  { %v11660_v24 = vrot.slane %v11659_v46, 1  ;;  %v11675_v55 = vrot.slane %v11674_v43, 1  ;;  %v11500_v14 = vsub.f32 %v11498_v20, %v11499_v50 }
0x1298   :  { %v11668_v22 = vrot.slane %v11667_v40, 1  ;;  %v11684_v58 = vrot.slane %v11683_v17, 1 }
0x1299   :  { %v11661_v16 = vadd.f32 %v11660_v24, %v11659_v46  ;;  %v11676_v29 = vadd.f32 %v11675_v55, %v11674_v43  ;;  %v11501_v2 = vadd.f32 1e-05, %v11500_v14 }
0x129a   :  { %v11669_v60 = vadd.f32 %v11668_v22, %v11667_v40  ;;  %v11685_v57 = vadd.f32 %v11684_v58, %v11683_v17 }
0x129b   :  { %v11677_v19 = vadd.f32 %v11676_v29, %v11661_v16 }
0x129c   :  { %v11686_v28 = vadd.f32 %v11685_v57, %v11669_v60 }
0x129d   :  { %v11687_v52 = vmul.f32 0.0625, %v11677_v19 }
0x129e   :  { %v11688_v32 = vmul.f32 0.0625, %v11686_v28 }
0x129f   :  { %v11689_v37 = vmul.f32 %v11687_v52, %v11687_v52  ;;  %v11693_v35 = vsub.f32 %v11583_v18, %v11687_v52  ;;  %v11695_v61 = vsub.f32 %v11654_v10, %v11687_v52 }
0x12a1   :  { %v11690_v45 = vsub.f32 %v11688_v32, %v11689_v37 }
0x12a3   :  { %v11691_v6 = vadd.f32 1e-05, %v11690_v45 }
0x12a5   :  { %14938 = vrsqrt.f32 %v11691_v6 }
0x12a6   :  { %14940 = vrsqrt.f32 %v11501_v2 }
0x12b2   :  { %v14939_v31 = vpop.eup %14938 }
0x12b3   :  { %v11694_v7 = vmul.f32 %v14939_v31, %v11693_v35  ;;  %v11696_v48 = vmul.f32 %v14939_v31, %v11695_v61  ;;  %v14941_v62 = vpop.eup %14940 }
0x12b4   :  { %v11504_v18 = vmul.f32 %v14941_v62, %v11503_v63  ;;  %v11506_v10 = vmul.f32 %v14941_v62, %v11505_v59 }
0x12b5   :  { %14822 = vmatmul.mubr.msk.f32.vlgmr.msra.gmra.mxu0 %vm1337_vm3, %v11694_v7  ;;  %14833 = vmatmul.mubr.msk.f32.vlgmr.msra.gmra.mxu1 %vm1337_vm3, %v11696_v48  ;;  %v12685_v48 = vld [vmem:[%s15242_s4] ss:$0 sm:$0xff]  ;;  %s12225_s4 = sshll.u32 %s15045_s27, 4  ;;  %s12226_s4 = int_to_ptr.vmem [resolvable:$true] %s12225_s4 }
0x12b6   :  { %14836 = vmatpush3.msra.mxu0 %v11117_v25  ;;  %14839 = vmatprep.mubr.msk.f32.mxu0 %vm15044_vm8, %v20054_v9  ;;  %s14960_s10 = scalar_lea.vmem %s12226_s4, 256  ;;  %p14965_p1 = scmp.lt.s32.totalorder %s12226_s4, %s12226_s4 }
0x12b7   :  { %14837 = vmatprep.subr.mxu0 %v20054_v9  ;;  %14846 = vmatprep.mubr.msk.f32.mxu1 %vm15044_vm8, %v20054_v9  ;;  %p14961_p0 = scmp.ne.s32.totalorder %s12226_s4, %s14960_s10  ;;  %p14966_p2 = scmp.lt.s32.totalorder %s14960_s10, %s14960_s10 }
0x12b8   :  { %14838 = vmatpush3.msra.mxu0 %v11116_v51  ;;  %14843 = vmatpush3.msra.mxu1 %v19907_v13 }
0x12b9   :  { %14840 = vmatmul.mubr.msk.f32.vlgmr.msra.gmra.mxu0 %vm11128_vm1, %v11504_v18  ;;  %14849 = vmatprep.subr.mxu0 %v20054_v9  ;;  %p14967_p3 = por %p14966_p2, %p14965_p1 }
0x12ba   :  { %14850 = vmatpush3.msra.mxu0 %v11117_v25  ;;  %14853 = vmatprep.mubr.msk.f32.mxu0 %vm15044_vm8, %v20054_v9 }
0x12bb   :  { %14851 = vmatprep.subr.mxu0 %v20054_v9  ;;  %14844 = vmatprep.subr.mxu1 %v20054_v9  ;;  %p14968_p4 = pnand %p14967_p3, %p14961_p0 }
0x12bc   :  { %14852 = vmatpush3.msra.mxu0 %v11116_v51  ;;  %14845 = vmatpush3.msra.mxu1 %v19910_v56 }
0x12bd   :  { %14854 = vmatmul.mubr.msk.f32.vlgmr.msra.gmra.mxu0 %vm11128_vm1, %v11506_v10  ;;  %14856 = vmatprep.subr.mxu1 %v20054_v9 }
0x1375   :  { %v11766_v54 = vpop.f32.mrf.mxu0  ;;  %v11839_v3 = vpop.f32.mrf.mxu1 }
0x1376   :  { %v11843_v44 = vsel %vm11128_vm1, %v11766_v54, 0.0  ;;  %v11850_v0 = vmul.f32 %v11766_v54, %v11766_v54  ;;  %v11858_v47 = vsel %vm11128_vm1, %v11839_v3, 0.0  ;;  %v11866_v36 = vmul.f32 %v11839_v3, %v11839_v3 }
0x1377   :  { %v11844_v4 = vrot.slane %v11843_v44, 4  ;;  %v11859_v21 = vrot.slane %v11858_v47, 4  ;;  %v14823_v33 = vpop.f32.mrf.mxu0  ;;  %v14834_v5 = vpop.f32.mrf.mxu1 }
0x1378   :  { %v11851_v34 = vsel %vm11128_vm1, %v11850_v0, 0.0  ;;  %v11867_v15 = vsel %vm11128_vm1, %v11866_v36, 0.0 }
0x1379   :  { %v11845_v23 = vadd.f32 %v11844_v4, %v11843_v44  ;;  %v11852_v8 = vrot.slane %v11851_v34, 4  ;;  %v11860_v30 = vadd.f32 %v11859_v21, %v11858_v47  ;;  %v11868_v11 = vrot.slane %v11867_v15, 4  ;;  %v11960_v41 = vpop.f32.mrf.mxu0 }
0x137a   :  { %v11961_v12 = vadd.f32 %v12683_v27, %v11960_v41 }
0x137b   :  { %v11846_v42 = vrot.slane %v11845_v23, 2  ;;  %v11853_v53 = vadd.f32 %v11852_v8, %v11851_v34  ;;  %v11861_v39 = vrot.slane %v11860_v30, 2  ;;  %v11869_v46 = vadd.f32 %v11868_v11, %v11867_v15  ;;  %v14841_v49 = vpop.f32.mrf.mxu0 }
0x137c   :  { %11965 = vst.msk [vmem:[#allocation2] sm:$0xff] %vm11964_vm2, %v11961_v12 }
0x137d   :  { %v11847_v43 = vadd.f32 %v11846_v42, %v11845_v23  ;;  %v11854_v1 = vrot.slane %v11853_v53, 2  ;;  %v11862_v26 = vadd.f32 %v11861_v39, %v11860_v30  ;;  %v11870_v38 = vrot.slane %v11869_v46, 2  ;;  %v12127_v24 = vpop.f32.mrf.mxu0 }
0x137e   :  { %v12128_v40 = vadd.f32 %v12683_v27, %v12127_v24 }
0x137f   :  { %v11848_v55 = vrot.slane %v11847_v43, 1  ;;  %v11855_v17 = vadd.f32 %v11854_v1, %v11853_v53  ;;  %v11863_v16 = vrot.slane %v11862_v26, 1  ;;  %v11871_v22 = vadd.f32 %v11870_v38, %v11869_v46  ;;  %v14855_v29 = vpop.f32.mrf.mxu0 }
0x1380   :  { %12132 = vst.msk [vmem:[#allocation2 + $0x8] sm:$0xff] %vm11964_vm2, %v12128_v40 }
0x1381   :  { %v11849_v58 = vadd.f32 %v11848_v55, %v11847_v43  ;;  %v11856_v20 = vrot.slane %v11855_v17, 1  ;;  %v11864_v50 = vadd.f32 %v11863_v16, %v11862_v26  ;;  %v11872_v60 = vrot.slane %v11871_v22, 1 }
0x1383   :  { %v11857_v19 = vadd.f32 %v11856_v20, %v11855_v17  ;;  %v11865_v57 = vadd.f32 %v11864_v50, %v11849_v58  ;;  %v11873_v28 = vadd.f32 %v11872_v60, %v11871_v22 }
0x1385   :  { %v11874_v52 = vadd.f32 %v11873_v28, %v11857_v19  ;;  %v11875_v14 = vmul.f32 0.0625, %v11865_v57 }
0x1387   :  { %v11876_v32 = vmul.f32 0.0625, %v11874_v52  ;;  %v11877_v37 = vmul.f32 %v11875_v14, %v11875_v14  ;;  %v11881_v6 = vsub.f32 %v11766_v54, %v11875_v14  ;;  %v11883_v31 = vsub.f32 %v11839_v3, %v11875_v14 }
0x1389   :  { %v11878_v45 = vsub.f32 %v11876_v32, %v11877_v37 }
0x138b   :  { %v11879_v2 = vadd.f32 1e-05, %v11878_v45 }
0x138d   :  { %14942 = vrsqrt.f32 %v11879_v2 }
0x139a   :  { %v14943_v35 = vpop.eup %14942 }
0x139b   :  { %v11882_v61 = vmul.f32 %v14943_v35, %v11881_v6  ;;  %v11884_v7 = vmul.f32 %v14943_v35, %v11883_v31 }
0x139d   :  { %14847 = vmatmul.mubr.msk.f32.vlgmr.msra.gmra.mxu1 %vm11128_vm1, %v11882_v61 }
0x139e   :  { %14857 = vmatpush3.msra.mxu1 %v19907_v13  ;;  %14860 = vmatprep.mubr.msk.f32.mxu1 %vm15044_vm8, %v20054_v9 }
0x139f   :  { %14858 = vmatprep.subr.mxu1 %v20054_v9 }
0x13a0   :  { %14859 = vmatpush3.msra.mxu1 %v19910_v56 }
0x13a1   :  { %14861 = vmatmul.mubr.msk.f32.vlgmr.msra.gmra.mxu1 %vm11128_vm1, %v11884_v7 }
0x145d   :  { %v12041_v25 = vpop.f32.mrf.mxu1 }
0x145e   :  { %v12042_v62 = vadd.f32 %v12685_v48, %v12041_v25 }
0x145f   :  { %v14848_v63 = vpop.f32.mrf.mxu1 }
0x1460   :  { %v12045_v51 = vsel %vm11964_vm2, %v12042_v62, -inf }
0x1461   :  { %12046 = vmax.xlane.f32.xlu0 %v12045_v51  ;;  %v12202_v18 = vpop.f32.mrf.mxu1 }
0x1462   :  { %v12203_v59 = vadd.f32 %v12685_v48, %v12202_v18 }
0x1463   :  { %v14862_v10 = vpop.f32.mrf.mxu1 }
0x1464   :  { %v12206_v13 = vsel %vm11964_vm2, %v12203_v59, -inf }
0x1465   :  { %12207 = vmax.xlane.f32.xlu0 %v12206_v13 }
0x14ea   :  { %v12047_v54 = vpop.xlane.xlu0 %12046 }
0x14eb   :  { %v12048_v3 = vsub.f32 %v12042_v62, %v12047_v54 }
0x14ed   :  { %v12049_v9 = vmul.f32 1.442695, %v12048_v3 }
0x14ee   :  { %v12208_v44 = vpop.xlane.xlu0 %12207 }
0x14ef   :  { %14944 = vpow2.f32 %v12049_v9  ;;  %v12209_v56 = vsub.f32 %v12203_v59, %v12208_v44 }
0x14f1   :  { %v12210_v0 = vmul.f32 1.442695, %v12209_v56 }
0x14f3   :  { %14946 = vpow2.f32 %v12210_v0 }
0x14fc   :  { %v14945_v47 = vpop.eup %14944 }
0x14fd   :  { %v12051_v36 = vsel %vm11964_vm2, %v14945_v47, 0.0 }
0x14fe   :  { %12052 = vadd.xlane.f32.xlu1 %v12051_v36 }
0x1500   :  { %v14947_v4 = vpop.eup %14946 }
0x1501   :  { %v12212_v21 = vsel %vm11964_vm2, %v14947_v4, 0.0 }
0x1502   :  { %12213 = vadd.xlane.f32.xlu1 %v12212_v21 }
0x1503   :  { %14971 = shalt.err (!%p14968_p4)
}
0x1504   :  { %s15046_s11 = smov 128   ;;  %s15047_s15 = smov 8  }
0x1505   :  { %12231 = dma.vmem_to_hbm [thread:$0]  %s12226_s4, 256, %s15247_s12, [#allocation3], %s15046_s11, %s15046_s11, %s15047_s15  }
0x1506   :  { %s15048_s16 = smov [#allocation4]  }
0x1507   :  { %s12237_s18 = sshll.u32 %s15048_s16, 4  ;;  %s12238_s18 = int_to_ptr.vmem [resolvable:$true] %s12237_s18 }
0x1508   :  { %s14980_s0 = scalar_lea.vmem %s12238_s18, 256  ;;  %p14985_p6 = scmp.lt.s32.totalorder %s12238_s18, %s12238_s18 }
0x1509   :  { %p14981_p5 = scmp.ne.s32.totalorder %s12238_s18, %s14980_s0  ;;  %p14986_p7 = scmp.lt.s32.totalorder %s14980_s0, %s14980_s0 }
0x150b   :  { %p14987_p8 = por %p14986_p7, %p14985_p6 }
0x150d   :  { %p14988_p9 = pnand %p14987_p8, %p14981_p5 }
0x1587   :  { %v12053_v33 = vpop.xlane.xlu1 %12052 }
0x1588   :  { %14948 = vlog2.f32 %v12053_v33 }
0x158b   :  { %v12214_v5 = vpop.xlane.xlu1 %12213 }
0x158c   :  { %14950 = vlog2.f32 %v12214_v5 }
0x1595   :  { %v14949_v27 = vpop.eup %14948 }
0x1596   :  { %v12055_v34 = vmul.f32 0.6931472, %v14949_v27 }
0x1598   :  { %v12056_v15 = vsub.f32 %v12048_v3, %v12055_v34 }
0x1599   :  { %v14951_v23 = vpop.eup %14950 }
0x159a   :  { %12057 = vst.msk [vmem:[#allocation4] sm:$0xff] %vm11964_vm2, %v12056_v15  ;;  %v12216_v8 = vmul.f32 0.6931472, %v14951_v23 }
0x159c   :  { %v12217_v30 = vsub.f32 %v12209_v56, %v12216_v8 }
0x159e   :  { %12219 = vst.msk [vmem:[#allocation4 + $0x8] sm:$0xff] %vm11964_vm2, %v12217_v30 }
0x159f   :  { %14991 = shalt.err (!%p14988_p9)
}
0x15a0   :  { %12243 = dma.vmem_to_hbm [thread:$0]  %s12238_s18, 256, %s15252_s20, [#allocation5], %s15046_s11, %s15046_s11, %s15047_s15  }
0x15a1   :  { %15000 = dma.done.wait [#allocation3], 256  }
0x15a2   :  { %15001 = vsyncadd [#allocation3], 4294967040 }
0x15a3   :  { %15002 = dma.done.wait [#allocation5], 256  }
0x15a4   :  { %15003 = vsyncadd [#allocation5], 4294967040 }
0x15a5   :  { %12250 = vsyncpa [#allocation3], 1 }
0x15a6   :  { %12251 = vsyncpa [#allocation5], 1 }

</bundles_post_ra>
